<compile_context>
chip_gen: v7x
topology: tpu7x:2x2x1
jax: 0.10.0
libtpu: 0.0.40
codegen_flags: <defaults>
</compile_context>

<pallas_src>
import jax
import jax.numpy as jnp
from jax.experimental import pallas as pl
from jax.experimental.pallas import tpu as pltpu

# Problem sizes (small, consistent with the module).
IN_DIM = 24
MAX_M_DIM = 8
OUT_DIM = 16
H = IN_DIM + MAX_M_DIM      # 32
T = 8                       # number of Cell modules in the RNN ModuleList
B = 128                     # independent sequences batched on the sublane axis
BT = 128                    # batch tile per grid step (== B: single program)


def rnn_rollout_kernel(x_ref, m0_ref,
                       w1x_ref, w1m_ref, b1_ref,
                       w2_ref, b2_ref, w3_ref,
                       w4_ref, b4_ref,
                       out_ref, mem_out_ref):
    """Entire T-step rollout for one batch tile in a single grid step.

    x_ref:   (T, BT, IN_DIM)       VMEM-resident input slab
    m0_ref:  (BT, MAX_M_DIM)       initial memory
    w*_ref:  (T, ...)              per-timestep Cell weights, all resident
    out_ref: (BT, T * 2*OUT_DIM)   lane-dense packed per-step outputs
    mem_out_ref: (BT, T*MAX_M_DIM) lane-dense packed per-step memories
    """
    f32 = jnp.float32

    # --- Hoisted input projection: independent of the carried memory, so it
    #     does not belong on the serial critical path.
    h1_pre = [
        jnp.dot(x_ref[t], w1x_ref[t], preferred_element_type=f32) + b1_ref[t]
        for t in range(T)
    ]

    # --- Serial recurrence (fully unrolled; T is a small static constant).
    mem = m0_ref[...]                                   # (BT, MAX_M_DIM)
    mems = []
    for t in range(T):
        h1 = h1_pre[t] + jnp.dot(mem, w1m_ref[t], preferred_element_type=f32)
        # ELU(alpha=1).  exp(min(h,0)) - 1 instead of expm1 guarantees Mosaic
        # lowering; deviation < 1e-7 at these magnitudes.
        h1 = jnp.where(h1 > 0.0, h1, jnp.exp(jnp.minimum(h1, 0.0)) - 1.0)
        h2 = jnp.tanh(jnp.dot(h1, w2_ref[t], preferred_element_type=f32)
                      + b2_ref[t])
        mem = jnp.tanh(jnp.dot(h2, w3_ref[t], preferred_element_type=f32))
        mems.append(mem)

    # --- Hoisted output projection + single lane-dense stores.
    outs = [
        jnp.dot(mems[t], w4_ref[t], preferred_element_type=f32) + b4_ref[t]
        for t in range(T)
    ]
    out_ref[...] = jnp.concatenate(outs, axis=-1)       # (BT, T*2*OUT_DIM)
    mem_out_ref[...] = jnp.concatenate(mems, axis=-1)   # (BT, T*MAX_M_DIM)


def init_params(key):
    """Per-timestep Cell params, uniform +/- 1/sqrt(fan_in) (nn.Linear default).

    Weights are stored as (in_features, out_features) == PyTorch weight.T;
    enc1's weight is pre-split along its input rows into the data_in part (W1x)
    and the last_mem part (W1m). All params are stacked along a leading T axis.
    """
    def unif(k, shape, fan_in):
        bound = 1.0 / jnp.sqrt(float(fan_in))
        return jax.random.uniform(k, shape, jnp.float32, -bound, bound)

    keys = jax.random.split(key, T)
    w1x, w1m, b1, w2, b2, w3, w4, b4 = ([] for _ in range(8))
    for t in range(T):
        ks = jax.random.split(keys[t], 7)
        w1 = unif(ks[0], (H, H), H)
        w1x.append(w1[:IN_DIM])
        w1m.append(w1[IN_DIM:])
        b1.append(unif(ks[1], (1, H), H))
        w2.append(unif(ks[2], (H, H), H))
        b2.append(unif(ks[3], (1, H), H))
        w3.append(unif(ks[4], (H, MAX_M_DIM), H))              # enc3, bias=False
        w4.append(unif(ks[5], (MAX_M_DIM, OUT_DIM * 2), MAX_M_DIM))
        b4.append(unif(ks[6], (1, OUT_DIM * 2), MAX_M_DIM))
    stack = lambda xs: jnp.stack(xs, axis=0)
    return tuple(stack(p) for p in (w1x, w1m, b1, w2, b2, w3, w4, b4))


@jax.jit
def rnn_forward(data_seq, init_mem, params):
    """data_seq: (T, B, IN_DIM); init_mem: (B, MAX_M_DIM).

    Returns per-step outputs (T, B, 2*OUT_DIM) and memories (T, B, MAX_M_DIM).
    """
    w1x, w1m, b1, w2, b2, w3, w4, b4 = params

    def resident(shape):
        # Full-extent block: DMA'd once, VMEM-resident for the whole call.
        return pl.BlockSpec(shape, lambda b: (0,) * len(shape))

    in_specs = [
        pl.BlockSpec((T, BT, IN_DIM), lambda b: (0, b, 0)),        # data_seq
        pl.BlockSpec((BT, MAX_M_DIM), lambda b: (b, 0)),           # init_mem
        resident((T, IN_DIM, H)),                                  # W1x
        resident((T, MAX_M_DIM, H)),                               # W1m
        resident((T, 1, H)),                                       # b1
        resident((T, H, H)),                                       # W2
        resident((T, 1, H)),                                       # b2
        resident((T, H, MAX_M_DIM)),                               # W3
        resident((T, MAX_M_DIM, OUT_DIM * 2)),                     # W4
        resident((T, 1, OUT_DIM * 2)),                             # b4
    ]
    # Lane-dense packed output slabs, stored once per grid step.
    out_specs = (
        pl.BlockSpec((BT, T * OUT_DIM * 2), lambda b: (b, 0)),
        pl.BlockSpec((BT, T * MAX_M_DIM), lambda b: (b, 0)),
    )

    outs_packed, mems_packed = pl.pallas_call(
        rnn_rollout_kernel,
        out_shape=(
            jax.ShapeDtypeStruct((B, T * OUT_DIM * 2), jnp.float32),
            jax.ShapeDtypeStruct((B, T * MAX_M_DIM), jnp.float32),
        ),
        grid_spec=pltpu.PrefetchScalarGridSpec(
            num_scalar_prefetch=0,
            grid=(B // BT,),
            in_specs=in_specs,
            out_specs=out_specs,
        ),
        compiler_params=pltpu.CompilerParams(
            dimension_semantics=("arbitrary",)),
    )(data_seq, init_mem, w1x, w1m, b1, w2, b2, w3, w4, b4)

    # Unpack the lane-dense slabs back to (T, B, ·) — exact inverse of the
    # in-kernel concatenate along the last axis.
    outs = outs_packed.reshape(B, T, OUT_DIM * 2).transpose(1, 0, 2)
    mems = mems_packed.reshape(B, T, MAX_M_DIM).transpose(1, 0, 2)
    return outs, mems


def reference_forward(data_seq, init_mem, params):
    """Pure-JAX reference rollout for correctness checking."""
    w1x, w1m, b1, w2, b2, w3, w4, b4 = params
    mem = init_mem
    outs, mems = [], []
    for t in range(T):
        h1 = data_seq[t] @ w1x[t] + mem @ w1m[t] + b1[t]
        h1 = jnp.where(h1 > 0.0, h1, jnp.exp(jnp.minimum(h1, 0.0)) - 1.0)
        h2 = jnp.tanh(h1 @ w2[t] + b2[t])
        mem = jnp.tanh(h2 @ w3[t])
        outs.append(mem @ w4[t] + b4[t])
        mems.append(mem)
    return jnp.stack(outs), jnp.stack(mems)


if __name__ == "__main__":
    key = jax.random.PRNGKey(0)
    k_params, k_in, k_mem = jax.random.split(key, 3)

    params = init_params(k_params)
    data_seq = jax.random.normal(k_in, (T, B, IN_DIM), jnp.float32)
    init_mem = jax.random.normal(k_mem, (B, MAX_M_DIM), jnp.float32)

    outs, mems = rnn_forward(data_seq, init_mem, params)
    jax.block_until_ready((outs, mems))

    outs_ref, mems_ref = reference_forward(data_seq, init_mem, params)
    assert outs.shape == (T, B, OUT_DIM * 2) and mems.shape == (T, B, MAX_M_DIM)
    assert jnp.allclose(outs, outs_ref, atol=1e-4, rtol=1e-4)
    assert jnp.allclose(mems, mems_ref, atol=1e-4, rtol=1e-4)

    # TODO(synk): RNN.forward's MultivariateNormal sampling / log_prob stays in
    # host-side JAX (data-dependent sampling, no clean Pallas equivalent).
    print("KERNEL_OK")
</pallas_src>

<mosaic_0001>
module attributes {stable_mosaic.version = 11 : i64} {
  func.func @rnn_rollout_kernel(%arg0: i32, %arg1: memref<8x128x24xf32, #tpu.memory_space<vmem>>, %arg2: memref<128x8xf32, #tpu.memory_space<vmem>>, %arg3: memref<8x24x32xf32, #tpu.memory_space<vmem>>, %arg4: memref<8x8x32xf32, #tpu.memory_space<vmem>>, %arg5: memref<8x1x32xf32, #tpu.memory_space<vmem>>, %arg6: memref<8x32x32xf32, #tpu.memory_space<vmem>>, %arg7: memref<8x1x32xf32, #tpu.memory_space<vmem>>, %arg8: memref<8x32x8xf32, #tpu.memory_space<vmem>>, %arg9: memref<8x8x32xf32, #tpu.memory_space<vmem>>, %arg10: memref<8x1x32xf32, #tpu.memory_space<vmem>>, %arg11: memref<128x256xf32, #tpu.memory_space<vmem>>, %arg12: memref<128x64xf32, #tpu.memory_space<vmem>>) attributes {dimension_semantics = [#tpu.dimension_semantics<arbitrary>], iteration_bounds = array<i64: 1>, scalar_prefetch = 0 : i64, scratch_operands = 0 : i64, tpu.core_type = #tpu.core_type<tc>, window_params = [{transform_indices = @transform_0, window_bounds = array<i64: 8, 128, 24>}, {transform_indices = @transform_1, window_bounds = array<i64: 128, 8>}, {pipeline_mode = #tpu.pipeline_mode<synchronous>, transform_indices = @transform_2, window_bounds = array<i64: 8, 24, 32>}, {pipeline_mode = #tpu.pipeline_mode<synchronous>, transform_indices = @transform_3, window_bounds = array<i64: 8, 8, 32>}, {pipeline_mode = #tpu.pipeline_mode<synchronous>, transform_indices = @transform_4, window_bounds = array<i64: 8, 1, 32>}, {pipeline_mode = #tpu.pipeline_mode<synchronous>, transform_indices = @transform_5, window_bounds = array<i64: 8, 32, 32>}, {pipeline_mode = #tpu.pipeline_mode<synchronous>, transform_indices = @transform_6, window_bounds = array<i64: 8, 1, 32>}, {pipeline_mode = #tpu.pipeline_mode<synchronous>, transform_indices = @transform_7, window_bounds = array<i64: 8, 32, 8>}, {pipeline_mode = #tpu.pipeline_mode<synchronous>, transform_indices = @transform_8, window_bounds = array<i64: 8, 8, 32>}, {pipeline_mode = #tpu.pipeline_mode<synchronous>, transform_indices = @transform_9, window_bounds = array<i64: 8, 1, 32>}, {transform_indices = @transform_10, window_bounds = array<i64: 128, 256>}, {transform_indices = @transform_11, window_bounds = array<i64: 128, 64>}]} {
    %c0 = arith.constant 0 : index
    %c0_0 = arith.constant 0 : index
    %c0_1 = arith.constant 0 : index
    %0 = vector.load %arg1[%c0, %c0_0, %c0_1] : memref<8x128x24xf32, #tpu.memory_space<vmem>>, vector<1x128x24xf32>
    %1 = vector.shape_cast %0 : vector<1x128x24xf32> to vector<128x24xf32>
    %c0_2 = arith.constant 0 : index
    %c0_3 = arith.constant 0 : index
    %c0_4 = arith.constant 0 : index
    %2 = vector.load %arg3[%c0_2, %c0_3, %c0_4] : memref<8x24x32xf32, #tpu.memory_space<vmem>>, vector<1x24x32xf32>
    %3 = vector.shape_cast %2 : vector<1x24x32xf32> to vector<24x32xf32>
    %cst = arith.constant dense<0.000000e+00> : vector<128x32xf32>
    %4 = tpu.matmul %1, %3, %cst {dimension_numbers = #tpu.dot_dimension_numbers<[1], [0], [0], [1], [0, 0, 1, 1], [], []>} : vector<128x24xf32>, vector<24x32xf32>, vector<128x32xf32> -> vector<128x32xf32>
    %c0_5 = arith.constant 0 : index
    %c0_6 = arith.constant 0 : index
    %c0_7 = arith.constant 0 : index
    %5 = vector.load %arg5[%c0_5, %c0_6, %c0_7] : memref<8x1x32xf32, #tpu.memory_space<vmem>>, vector<1x1x32xf32>
    %6 = vector.shape_cast %5 : vector<1x1x32xf32> to vector<1x32xf32>
    %7 = vector.broadcast %6 : vector<1x32xf32> to vector<128x32xf32>
    %8 = arith.addf %4, %7 : vector<128x32xf32>
    %c1 = arith.constant 1 : index
    %c0_8 = arith.constant 0 : index
    %c0_9 = arith.constant 0 : index
    %9 = vector.load %arg1[%c1, %c0_8, %c0_9] : memref<8x128x24xf32, #tpu.memory_space<vmem>>, vector<1x128x24xf32>
    %10 = vector.shape_cast %9 : vector<1x128x24xf32> to vector<128x24xf32>
    %c1_10 = arith.constant 1 : index
    %c0_11 = arith.constant 0 : index
    %c0_12 = arith.constant 0 : index
    %11 = vector.load %arg3[%c1_10, %c0_11, %c0_12] : memref<8x24x32xf32, #tpu.memory_space<vmem>>, vector<1x24x32xf32>
    %12 = vector.shape_cast %11 : vector<1x24x32xf32> to vector<24x32xf32>
    %cst_13 = arith.constant dense<0.000000e+00> : vector<128x32xf32>
    %13 = tpu.matmul %10, %12, %cst_13 {dimension_numbers = #tpu.dot_dimension_numbers<[1], [0], [0], [1], [0, 0, 1, 1], [], []>} : vector<128x24xf32>, vector<24x32xf32>, vector<128x32xf32> -> vector<128x32xf32>
    %c1_14 = arith.constant 1 : index
    %c0_15 = arith.constant 0 : index
    %c0_16 = arith.constant 0 : index
    %14 = vector.load %arg5[%c1_14, %c0_15, %c0_16] : memref<8x1x32xf32, #tpu.memory_space<vmem>>, vector<1x1x32xf32>
    %15 = vector.shape_cast %14 : vector<1x1x32xf32> to vector<1x32xf32>
    %16 = vector.broadcast %15 : vector<1x32xf32> to vector<128x32xf32>
    %17 = arith.addf %13, %16 : vector<128x32xf32>
    %c2 = arith.constant 2 : index
    %c0_17 = arith.constant 0 : index
    %c0_18 = arith.constant 0 : index
    %18 = vector.load %arg1[%c2, %c0_17, %c0_18] : memref<8x128x24xf32, #tpu.memory_space<vmem>>, vector<1x128x24xf32>
    %19 = vector.shape_cast %18 : vector<1x128x24xf32> to vector<128x24xf32>
    %c2_19 = arith.constant 2 : index
    %c0_20 = arith.constant 0 : index
    %c0_21 = arith.constant 0 : index
    %20 = vector.load %arg3[%c2_19, %c0_20, %c0_21] : memref<8x24x32xf32, #tpu.memory_space<vmem>>, vector<1x24x32xf32>
    %21 = vector.shape_cast %20 : vector<1x24x32xf32> to vector<24x32xf32>
    %cst_22 = arith.constant dense<0.000000e+00> : vector<128x32xf32>
    %22 = tpu.matmul %19, %21, %cst_22 {dimension_numbers = #tpu.dot_dimension_numbers<[1], [0], [0], [1], [0, 0, 1, 1], [], []>} : vector<128x24xf32>, vector<24x32xf32>, vector<128x32xf32> -> vector<128x32xf32>
    %c2_23 = arith.constant 2 : index
    %c0_24 = arith.constant 0 : index
    %c0_25 = arith.constant 0 : index
    %23 = vector.load %arg5[%c2_23, %c0_24, %c0_25] : memref<8x1x32xf32, #tpu.memory_space<vmem>>, vector<1x1x32xf32>
    %24 = vector.shape_cast %23 : vector<1x1x32xf32> to vector<1x32xf32>
    %25 = vector.broadcast %24 : vector<1x32xf32> to vector<128x32xf32>
    %26 = arith.addf %22, %25 : vector<128x32xf32>
    %c3 = arith.constant 3 : index
    %c0_26 = arith.constant 0 : index
    %c0_27 = arith.constant 0 : index
    %27 = vector.load %arg1[%c3, %c0_26, %c0_27] : memref<8x128x24xf32, #tpu.memory_space<vmem>>, vector<1x128x24xf32>
    %28 = vector.shape_cast %27 : vector<1x128x24xf32> to vector<128x24xf32>
    %c3_28 = arith.constant 3 : index
    %c0_29 = arith.constant 0 : index
    %c0_30 = arith.constant 0 : index
    %29 = vector.load %arg3[%c3_28, %c0_29, %c0_30] : memref<8x24x32xf32, #tpu.memory_space<vmem>>, vector<1x24x32xf32>
    %30 = vector.shape_cast %29 : vector<1x24x32xf32> to vector<24x32xf32>
    %cst_31 = arith.constant dense<0.000000e+00> : vector<128x32xf32>
    %31 = tpu.matmul %28, %30, %cst_31 {dimension_numbers = #tpu.dot_dimension_numbers<[1], [0], [0], [1], [0, 0, 1, 1], [], []>} : vector<128x24xf32>, vector<24x32xf32>, vector<128x32xf32> -> vector<128x32xf32>
    %c3_32 = arith.constant 3 : index
    %c0_33 = arith.constant 0 : index
    %c0_34 = arith.constant 0 : index
    %32 = vector.load %arg5[%c3_32, %c0_33, %c0_34] : memref<8x1x32xf32, #tpu.memory_space<vmem>>, vector<1x1x32xf32>
    %33 = vector.shape_cast %32 : vector<1x1x32xf32> to vector<1x32xf32>
    %34 = vector.broadcast %33 : vector<1x32xf32> to vector<128x32xf32>
    %35 = arith.addf %31, %34 : vector<128x32xf32>
    %c4 = arith.constant 4 : index
    %c0_35 = arith.constant 0 : index
    %c0_36 = arith.constant 0 : index
    %36 = vector.load %arg1[%c4, %c0_35, %c0_36] : memref<8x128x24xf32, #tpu.memory_space<vmem>>, vector<1x128x24xf32>
    %37 = vector.shape_cast %36 : vector<1x128x24xf32> to vector<128x24xf32>
    %c4_37 = arith.constant 4 : index
    %c0_38 = arith.constant 0 : index
    %c0_39 = arith.constant 0 : index
    %38 = vector.load %arg3[%c4_37, %c0_38, %c0_39] : memref<8x24x32xf32, #tpu.memory_space<vmem>>, vector<1x24x32xf32>
    %39 = vector.shape_cast %38 : vector<1x24x32xf32> to vector<24x32xf32>
    %cst_40 = arith.constant dense<0.000000e+00> : vector<128x32xf32>
    %40 = tpu.matmul %37, %39, %cst_40 {dimension_numbers = #tpu.dot_dimension_numbers<[1], [0], [0], [1], [0, 0, 1, 1], [], []>} : vector<128x24xf32>, vector<24x32xf32>, vector<128x32xf32> -> vector<128x32xf32>
    %c4_41 = arith.constant 4 : index
    %c0_42 = arith.constant 0 : index
    %c0_43 = arith.constant 0 : index
    %41 = vector.load %arg5[%c4_41, %c0_42, %c0_43] : memref<8x1x32xf32, #tpu.memory_space<vmem>>, vector<1x1x32xf32>
    %42 = vector.shape_cast %41 : vector<1x1x32xf32> to vector<1x32xf32>
    %43 = vector.broadcast %42 : vector<1x32xf32> to vector<128x32xf32>
    %44 = arith.addf %40, %43 : vector<128x32xf32>
    %c5 = arith.constant 5 : index
    %c0_44 = arith.constant 0 : index
    %c0_45 = arith.constant 0 : index
    %45 = vector.load %arg1[%c5, %c0_44, %c0_45] : memref<8x128x24xf32, #tpu.memory_space<vmem>>, vector<1x128x24xf32>
    %46 = vector.shape_cast %45 : vector<1x128x24xf32> to vector<128x24xf32>
    %c5_46 = arith.constant 5 : index
    %c0_47 = arith.constant 0 : index
    %c0_48 = arith.constant 0 : index
    %47 = vector.load %arg3[%c5_46, %c0_47, %c0_48] : memref<8x24x32xf32, #tpu.memory_space<vmem>>, vector<1x24x32xf32>
    %48 = vector.shape_cast %47 : vector<1x24x32xf32> to vector<24x32xf32>
    %cst_49 = arith.constant dense<0.000000e+00> : vector<128x32xf32>
    %49 = tpu.matmul %46, %48, %cst_49 {dimension_numbers = #tpu.dot_dimension_numbers<[1], [0], [0], [1], [0, 0, 1, 1], [], []>} : vector<128x24xf32>, vector<24x32xf32>, vector<128x32xf32> -> vector<128x32xf32>
    %c5_50 = arith.constant 5 : index
    %c0_51 = arith.constant 0 : index
    %c0_52 = arith.constant 0 : index
    %50 = vector.load %arg5[%c5_50, %c0_51, %c0_52] : memref<8x1x32xf32, #tpu.memory_space<vmem>>, vector<1x1x32xf32>
    %51 = vector.shape_cast %50 : vector<1x1x32xf32> to vector<1x32xf32>
    %52 = vector.broadcast %51 : vector<1x32xf32> to vector<128x32xf32>
    %53 = arith.addf %49, %52 : vector<128x32xf32>
    %c6 = arith.constant 6 : index
    %c0_53 = arith.constant 0 : index
    %c0_54 = arith.constant 0 : index
    %54 = vector.load %arg1[%c6, %c0_53, %c0_54] : memref<8x128x24xf32, #tpu.memory_space<vmem>>, vector<1x128x24xf32>
    %55 = vector.shape_cast %54 : vector<1x128x24xf32> to vector<128x24xf32>
    %c6_55 = arith.constant 6 : index
    %c0_56 = arith.constant 0 : index
    %c0_57 = arith.constant 0 : index
    %56 = vector.load %arg3[%c6_55, %c0_56, %c0_57] : memref<8x24x32xf32, #tpu.memory_space<vmem>>, vector<1x24x32xf32>
    %57 = vector.shape_cast %56 : vector<1x24x32xf32> to vector<24x32xf32>
    %cst_58 = arith.constant dense<0.000000e+00> : vector<128x32xf32>
    %58 = tpu.matmul %55, %57, %cst_58 {dimension_numbers = #tpu.dot_dimension_numbers<[1], [0], [0], [1], [0, 0, 1, 1], [], []>} : vector<128x24xf32>, vector<24x32xf32>, vector<128x32xf32> -> vector<128x32xf32>
    %c6_59 = arith.constant 6 : index
    %c0_60 = arith.constant 0 : index
    %c0_61 = arith.constant 0 : index
    %59 = vector.load %arg5[%c6_59, %c0_60, %c0_61] : memref<8x1x32xf32, #tpu.memory_space<vmem>>, vector<1x1x32xf32>
    %60 = vector.shape_cast %59 : vector<1x1x32xf32> to vector<1x32xf32>
    %61 = vector.broadcast %60 : vector<1x32xf32> to vector<128x32xf32>
    %62 = arith.addf %58, %61 : vector<128x32xf32>
    %c7 = arith.constant 7 : index
    %c0_62 = arith.constant 0 : index
    %c0_63 = arith.constant 0 : index
    %63 = vector.load %arg1[%c7, %c0_62, %c0_63] : memref<8x128x24xf32, #tpu.memory_space<vmem>>, vector<1x128x24xf32>
    %64 = vector.shape_cast %63 : vector<1x128x24xf32> to vector<128x24xf32>
    %c7_64 = arith.constant 7 : index
    %c0_65 = arith.constant 0 : index
    %c0_66 = arith.constant 0 : index
    %65 = vector.load %arg3[%c7_64, %c0_65, %c0_66] : memref<8x24x32xf32, #tpu.memory_space<vmem>>, vector<1x24x32xf32>
    %66 = vector.shape_cast %65 : vector<1x24x32xf32> to vector<24x32xf32>
    %cst_67 = arith.constant dense<0.000000e+00> : vector<128x32xf32>
    %67 = tpu.matmul %64, %66, %cst_67 {dimension_numbers = #tpu.dot_dimension_numbers<[1], [0], [0], [1], [0, 0, 1, 1], [], []>} : vector<128x24xf32>, vector<24x32xf32>, vector<128x32xf32> -> vector<128x32xf32>
    %c7_68 = arith.constant 7 : index
    %c0_69 = arith.constant 0 : index
    %c0_70 = arith.constant 0 : index
    %68 = vector.load %arg5[%c7_68, %c0_69, %c0_70] : memref<8x1x32xf32, #tpu.memory_space<vmem>>, vector<1x1x32xf32>
    %69 = vector.shape_cast %68 : vector<1x1x32xf32> to vector<1x32xf32>
    %70 = vector.broadcast %69 : vector<1x32xf32> to vector<128x32xf32>
    %71 = arith.addf %67, %70 : vector<128x32xf32>
    %c0_71 = arith.constant 0 : index
    %c0_72 = arith.constant 0 : index
    %72 = vector.load %arg2[%c0_71, %c0_72] : memref<128x8xf32, #tpu.memory_space<vmem>>, vector<128x8xf32>
    %c0_73 = arith.constant 0 : index
    %c0_74 = arith.constant 0 : index
    %c0_75 = arith.constant 0 : index
    %73 = vector.load %arg4[%c0_73, %c0_74, %c0_75] : memref<8x8x32xf32, #tpu.memory_space<vmem>>, vector<1x8x32xf32>
    %74 = vector.shape_cast %73 : vector<1x8x32xf32> to vector<8x32xf32>
    %cst_76 = arith.constant dense<0.000000e+00> : vector<128x32xf32>
    %75 = tpu.matmul %72, %74, %cst_76 {dimension_numbers = #tpu.dot_dimension_numbers<[1], [0], [0], [1], [0, 0, 1, 1], [], []>} : vector<128x8xf32>, vector<8x32xf32>, vector<128x32xf32> -> vector<128x32xf32>
    %76 = arith.addf %8, %75 : vector<128x32xf32>
    %cst_77 = arith.constant 0.000000e+00 : f32
    %77 = vector.broadcast %cst_77 : f32 to vector<128x32xf32>
    %78 = arith.cmpf ogt, %76, %77 : vector<128x32xf32>
    %cst_78 = arith.constant 0.000000e+00 : f32
    %79 = vector.broadcast %cst_78 : f32 to vector<128x32xf32>
    %80 = arith.minimumf %76, %79 : vector<128x32xf32>
    %81 = math.exp %80 : vector<128x32xf32>
    %cst_79 = arith.constant 1.000000e+00 : f32
    %82 = vector.broadcast %cst_79 : f32 to vector<128x32xf32>
    %83 = arith.subf %81, %82 : vector<128x32xf32>
    %84 = arith.select %78, %76, %83 : vector<128x32xi1>, vector<128x32xf32>
    %c0_80 = arith.constant 0 : index
    %c0_81 = arith.constant 0 : index
    %c0_82 = arith.constant 0 : index
    %85 = vector.load %arg6[%c0_80, %c0_81, %c0_82] : memref<8x32x32xf32, #tpu.memory_space<vmem>>, vector<1x32x32xf32>
    %86 = vector.shape_cast %85 : vector<1x32x32xf32> to vector<32x32xf32>
    %cst_83 = arith.constant dense<0.000000e+00> : vector<128x32xf32>
    %87 = tpu.matmul %84, %86, %cst_83 {dimension_numbers = #tpu.dot_dimension_numbers<[1], [0], [0], [1], [0, 0, 1, 1], [], []>} : vector<128x32xf32>, vector<32x32xf32>, vector<128x32xf32> -> vector<128x32xf32>
    %c0_84 = arith.constant 0 : index
    %c0_85 = arith.constant 0 : index
    %c0_86 = arith.constant 0 : index
    %88 = vector.load %arg7[%c0_84, %c0_85, %c0_86] : memref<8x1x32xf32, #tpu.memory_space<vmem>>, vector<1x1x32xf32>
    %89 = vector.shape_cast %88 : vector<1x1x32xf32> to vector<1x32xf32>
    %90 = vector.broadcast %89 : vector<1x32xf32> to vector<128x32xf32>
    %91 = arith.addf %87, %90 : vector<128x32xf32>
    %92 = math.tanh %91 : vector<128x32xf32>
    %c0_87 = arith.constant 0 : index
    %c0_88 = arith.constant 0 : index
    %c0_89 = arith.constant 0 : index
    %93 = vector.load %arg8[%c0_87, %c0_88, %c0_89] : memref<8x32x8xf32, #tpu.memory_space<vmem>>, vector<1x32x8xf32>
    %94 = vector.shape_cast %93 : vector<1x32x8xf32> to vector<32x8xf32>
    %cst_90 = arith.constant dense<0.000000e+00> : vector<128x8xf32>
    %95 = tpu.matmul %92, %94, %cst_90 {dimension_numbers = #tpu.dot_dimension_numbers<[1], [0], [0], [1], [0, 0, 1, 1], [], []>} : vector<128x32xf32>, vector<32x8xf32>, vector<128x8xf32> -> vector<128x8xf32>
    %96 = math.tanh %95 : vector<128x8xf32>
    %c1_91 = arith.constant 1 : index
    %c0_92 = arith.constant 0 : index
    %c0_93 = arith.constant 0 : index
    %97 = vector.load %arg4[%c1_91, %c0_92, %c0_93] : memref<8x8x32xf32, #tpu.memory_space<vmem>>, vector<1x8x32xf32>
    %98 = vector.shape_cast %97 : vector<1x8x32xf32> to vector<8x32xf32>
    %cst_94 = arith.constant dense<0.000000e+00> : vector<128x32xf32>
    %99 = tpu.matmul %96, %98, %cst_94 {dimension_numbers = #tpu.dot_dimension_numbers<[1], [0], [0], [1], [0, 0, 1, 1], [], []>} : vector<128x8xf32>, vector<8x32xf32>, vector<128x32xf32> -> vector<128x32xf32>
    %100 = arith.addf %17, %99 : vector<128x32xf32>
    %cst_95 = arith.constant 0.000000e+00 : f32
    %101 = vector.broadcast %cst_95 : f32 to vector<128x32xf32>
    %102 = arith.cmpf ogt, %100, %101 : vector<128x32xf32>
    %cst_96 = arith.constant 0.000000e+00 : f32
    %103 = vector.broadcast %cst_96 : f32 to vector<128x32xf32>
    %104 = arith.minimumf %100, %103 : vector<128x32xf32>
    %105 = math.exp %104 : vector<128x32xf32>
    %cst_97 = arith.constant 1.000000e+00 : f32
    %106 = vector.broadcast %cst_97 : f32 to vector<128x32xf32>
    %107 = arith.subf %105, %106 : vector<128x32xf32>
    %108 = arith.select %102, %100, %107 : vector<128x32xi1>, vector<128x32xf32>
    %c1_98 = arith.constant 1 : index
    %c0_99 = arith.constant 0 : index
    %c0_100 = arith.constant 0 : index
    %109 = vector.load %arg6[%c1_98, %c0_99, %c0_100] : memref<8x32x32xf32, #tpu.memory_space<vmem>>, vector<1x32x32xf32>
    %110 = vector.shape_cast %109 : vector<1x32x32xf32> to vector<32x32xf32>
    %cst_101 = arith.constant dense<0.000000e+00> : vector<128x32xf32>
    %111 = tpu.matmul %108, %110, %cst_101 {dimension_numbers = #tpu.dot_dimension_numbers<[1], [0], [0], [1], [0, 0, 1, 1], [], []>} : vector<128x32xf32>, vector<32x32xf32>, vector<128x32xf32> -> vector<128x32xf32>
    %c1_102 = arith.constant 1 : index
    %c0_103 = arith.constant 0 : index
    %c0_104 = arith.constant 0 : index
    %112 = vector.load %arg7[%c1_102, %c0_103, %c0_104] : memref<8x1x32xf32, #tpu.memory_space<vmem>>, vector<1x1x32xf32>
    %113 = vector.shape_cast %112 : vector<1x1x32xf32> to vector<1x32xf32>
    %114 = vector.broadcast %113 : vector<1x32xf32> to vector<128x32xf32>
    %115 = arith.addf %111, %114 : vector<128x32xf32>
    %116 = math.tanh %115 : vector<128x32xf32>
    %c1_105 = arith.constant 1 : index
    %c0_106 = arith.constant 0 : index
    %c0_107 = arith.constant 0 : index
    %117 = vector.load %arg8[%c1_105, %c0_106, %c0_107] : memref<8x32x8xf32, #tpu.memory_space<vmem>>, vector<1x32x8xf32>
    %118 = vector.shape_cast %117 : vector<1x32x8xf32> to vector<32x8xf32>
    %cst_108 = arith.constant dense<0.000000e+00> : vector<128x8xf32>
    %119 = tpu.matmul %116, %118, %cst_108 {dimension_numbers = #tpu.dot_dimension_numbers<[1], [0], [0], [1], [0, 0, 1, 1], [], []>} : vector<128x32xf32>, vector<32x8xf32>, vector<128x8xf32> -> vector<128x8xf32>
    %120 = math.tanh %119 : vector<128x8xf32>
    %c2_109 = arith.constant 2 : index
    %c0_110 = arith.constant 0 : index
    %c0_111 = arith.constant 0 : index
    %121 = vector.load %arg4[%c2_109, %c0_110, %c0_111] : memref<8x8x32xf32, #tpu.memory_space<vmem>>, vector<1x8x32xf32>
    %122 = vector.shape_cast %121 : vector<1x8x32xf32> to vector<8x32xf32>
    %cst_112 = arith.constant dense<0.000000e+00> : vector<128x32xf32>
    %123 = tpu.matmul %120, %122, %cst_112 {dimension_numbers = #tpu.dot_dimension_numbers<[1], [0], [0], [1], [0, 0, 1, 1], [], []>} : vector<128x8xf32>, vector<8x32xf32>, vector<128x32xf32> -> vector<128x32xf32>
    %124 = arith.addf %26, %123 : vector<128x32xf32>
    %cst_113 = arith.constant 0.000000e+00 : f32
    %125 = vector.broadcast %cst_113 : f32 to vector<128x32xf32>
    %126 = arith.cmpf ogt, %124, %125 : vector<128x32xf32>
    %cst_114 = arith.constant 0.000000e+00 : f32
    %127 = vector.broadcast %cst_114 : f32 to vector<128x32xf32>
    %128 = arith.minimumf %124, %127 : vector<128x32xf32>
    %129 = math.exp %128 : vector<128x32xf32>
    %cst_115 = arith.constant 1.000000e+00 : f32
    %130 = vector.broadcast %cst_115 : f32 to vector<128x32xf32>
    %131 = arith.subf %129, %130 : vector<128x32xf32>
    %132 = arith.select %126, %124, %131 : vector<128x32xi1>, vector<128x32xf32>
    %c2_116 = arith.constant 2 : index
    %c0_117 = arith.constant 0 : index
    %c0_118 = arith.constant 0 : index
    %133 = vector.load %arg6[%c2_116, %c0_117, %c0_118] : memref<8x32x32xf32, #tpu.memory_space<vmem>>, vector<1x32x32xf32>
    %134 = vector.shape_cast %133 : vector<1x32x32xf32> to vector<32x32xf32>
    %cst_119 = arith.constant dense<0.000000e+00> : vector<128x32xf32>
    %135 = tpu.matmul %132, %134, %cst_119 {dimension_numbers = #tpu.dot_dimension_numbers<[1], [0], [0], [1], [0, 0, 1, 1], [], []>} : vector<128x32xf32>, vector<32x32xf32>, vector<128x32xf32> -> vector<128x32xf32>
    %c2_120 = arith.constant 2 : index
    %c0_121 = arith.constant 0 : index
    %c0_122 = arith.constant 0 : index
    %136 = vector.load %arg7[%c2_120, %c0_121, %c0_122] : memref<8x1x32xf32, #tpu.memory_space<vmem>>, vector<1x1x32xf32>
    %137 = vector.shape_cast %136 : vector<1x1x32xf32> to vector<1x32xf32>
    %138 = vector.broadcast %137 : vector<1x32xf32> to vector<128x32xf32>
    %139 = arith.addf %135, %138 : vector<128x32xf32>
    %140 = math.tanh %139 : vector<128x32xf32>
    %c2_123 = arith.constant 2 : index
    %c0_124 = arith.constant 0 : index
    %c0_125 = arith.constant 0 : index
    %141 = vector.load %arg8[%c2_123, %c0_124, %c0_125] : memref<8x32x8xf32, #tpu.memory_space<vmem>>, vector<1x32x8xf32>
    %142 = vector.shape_cast %141 : vector<1x32x8xf32> to vector<32x8xf32>
    %cst_126 = arith.constant dense<0.000000e+00> : vector<128x8xf32>
    %143 = tpu.matmul %140, %142, %cst_126 {dimension_numbers = #tpu.dot_dimension_numbers<[1], [0], [0], [1], [0, 0, 1, 1], [], []>} : vector<128x32xf32>, vector<32x8xf32>, vector<128x8xf32> -> vector<128x8xf32>
    %144 = math.tanh %143 : vector<128x8xf32>
    %c3_127 = arith.constant 3 : index
    %c0_128 = arith.constant 0 : index
    %c0_129 = arith.constant 0 : index
    %145 = vector.load %arg4[%c3_127, %c0_128, %c0_129] : memref<8x8x32xf32, #tpu.memory_space<vmem>>, vector<1x8x32xf32>
    %146 = vector.shape_cast %145 : vector<1x8x32xf32> to vector<8x32xf32>
    %cst_130 = arith.constant dense<0.000000e+00> : vector<128x32xf32>
    %147 = tpu.matmul %144, %146, %cst_130 {dimension_numbers = #tpu.dot_dimension_numbers<[1], [0], [0], [1], [0, 0, 1, 1], [], []>} : vector<128x8xf32>, vector<8x32xf32>, vector<128x32xf32> -> vector<128x32xf32>
    %148 = arith.addf %35, %147 : vector<128x32xf32>
    %cst_131 = arith.constant 0.000000e+00 : f32
    %149 = vector.broadcast %cst_131 : f32 to vector<128x32xf32>
    %150 = arith.cmpf ogt, %148, %149 : vector<128x32xf32>
    %cst_132 = arith.constant 0.000000e+00 : f32
    %151 = vector.broadcast %cst_132 : f32 to vector<128x32xf32>
    %152 = arith.minimumf %148, %151 : vector<128x32xf32>
    %153 = math.exp %152 : vector<128x32xf32>
    %cst_133 = arith.constant 1.000000e+00 : f32
    %154 = vector.broadcast %cst_133 : f32 to vector<128x32xf32>
    %155 = arith.subf %153, %154 : vector<128x32xf32>
    %156 = arith.select %150, %148, %155 : vector<128x32xi1>, vector<128x32xf32>
    %c3_134 = arith.constant 3 : index
    %c0_135 = arith.constant 0 : index
    %c0_136 = arith.constant 0 : index
    %157 = vector.load %arg6[%c3_134, %c0_135, %c0_136] : memref<8x32x32xf32, #tpu.memory_space<vmem>>, vector<1x32x32xf32>
    %158 = vector.shape_cast %157 : vector<1x32x32xf32> to vector<32x32xf32>
    %cst_137 = arith.constant dense<0.000000e+00> : vector<128x32xf32>
    %159 = tpu.matmul %156, %158, %cst_137 {dimension_numbers = #tpu.dot_dimension_numbers<[1], [0], [0], [1], [0, 0, 1, 1], [], []>} : vector<128x32xf32>, vector<32x32xf32>, vector<128x32xf32> -> vector<128x32xf32>
    %c3_138 = arith.constant 3 : index
    %c0_139 = arith.constant 0 : index
    %c0_140 = arith.constant 0 : index
    %160 = vector.load %arg7[%c3_138, %c0_139, %c0_140] : memref<8x1x32xf32, #tpu.memory_space<vmem>>, vector<1x1x32xf32>
    %161 = vector.shape_cast %160 : vector<1x1x32xf32> to vector<1x32xf32>
    %162 = vector.broadcast %161 : vector<1x32xf32> to vector<128x32xf32>
    %163 = arith.addf %159, %162 : vector<128x32xf32>
    %164 = math.tanh %163 : vector<128x32xf32>
    %c3_141 = arith.constant 3 : index
    %c0_142 = arith.constant 0 : index
    %c0_143 = arith.constant 0 : index
    %165 = vector.load %arg8[%c3_141, %c0_142, %c0_143] : memref<8x32x8xf32, #tpu.memory_space<vmem>>, vector<1x32x8xf32>
    %166 = vector.shape_cast %165 : vector<1x32x8xf32> to vector<32x8xf32>
    %cst_144 = arith.constant dense<0.000000e+00> : vector<128x8xf32>
    %167 = tpu.matmul %164, %166, %cst_144 {dimension_numbers = #tpu.dot_dimension_numbers<[1], [0], [0], [1], [0, 0, 1, 1], [], []>} : vector<128x32xf32>, vector<32x8xf32>, vector<128x8xf32> -> vector<128x8xf32>
    %168 = math.tanh %167 : vector<128x8xf32>
    %c4_145 = arith.constant 4 : index
    %c0_146 = arith.constant 0 : index
    %c0_147 = arith.constant 0 : index
    %169 = vector.load %arg4[%c4_145, %c0_146, %c0_147] : memref<8x8x32xf32, #tpu.memory_space<vmem>>, vector<1x8x32xf32>
    %170 = vector.shape_cast %169 : vector<1x8x32xf32> to vector<8x32xf32>
    %cst_148 = arith.constant dense<0.000000e+00> : vector<128x32xf32>
    %171 = tpu.matmul %168, %170, %cst_148 {dimension_numbers = #tpu.dot_dimension_numbers<[1], [0], [0], [1], [0, 0, 1, 1], [], []>} : vector<128x8xf32>, vector<8x32xf32>, vector<128x32xf32> -> vector<128x32xf32>
    %172 = arith.addf %44, %171 : vector<128x32xf32>
    %cst_149 = arith.constant 0.000000e+00 : f32
    %173 = vector.broadcast %cst_149 : f32 to vector<128x32xf32>
    %174 = arith.cmpf ogt, %172, %173 : vector<128x32xf32>
    %cst_150 = arith.constant 0.000000e+00 : f32
    %175 = vector.broadcast %cst_150 : f32 to vector<128x32xf32>
    %176 = arith.minimumf %172, %175 : vector<128x32xf32>
    %177 = math.exp %176 : vector<128x32xf32>
    %cst_151 = arith.constant 1.000000e+00 : f32
    %178 = vector.broadcast %cst_151 : f32 to vector<128x32xf32>
    %179 = arith.subf %177, %178 : vector<128x32xf32>
    %180 = arith.select %174, %172, %179 : vector<128x32xi1>, vector<128x32xf32>
    %c4_152 = arith.constant 4 : index
    %c0_153 = arith.constant 0 : index
    %c0_154 = arith.constant 0 : index
    %181 = vector.load %arg6[%c4_152, %c0_153, %c0_154] : memref<8x32x32xf32, #tpu.memory_space<vmem>>, vector<1x32x32xf32>
    %182 = vector.shape_cast %181 : vector<1x32x32xf32> to vector<32x32xf32>
    %cst_155 = arith.constant dense<0.000000e+00> : vector<128x32xf32>
    %183 = tpu.matmul %180, %182, %cst_155 {dimension_numbers = #tpu.dot_dimension_numbers<[1], [0], [0], [1], [0, 0, 1, 1], [], []>} : vector<128x32xf32>, vector<32x32xf32>, vector<128x32xf32> -> vector<128x32xf32>
    %c4_156 = arith.constant 4 : index
    %c0_157 = arith.constant 0 : index
    %c0_158 = arith.constant 0 : index
    %184 = vector.load %arg7[%c4_156, %c0_157, %c0_158] : memref<8x1x32xf32, #tpu.memory_space<vmem>>, vector<1x1x32xf32>
    %185 = vector.shape_cast %184 : vector<1x1x32xf32> to vector<1x32xf32>
    %186 = vector.broadcast %185 : vector<1x32xf32> to vector<128x32xf32>
    %187 = arith.addf %183, %186 : vector<128x32xf32>
    %188 = math.tanh %187 : vector<128x32xf32>
    %c4_159 = arith.constant 4 : index
    %c0_160 = arith.constant 0 : index
    %c0_161 = arith.constant 0 : index
    %189 = vector.load %arg8[%c4_159, %c0_160, %c0_161] : memref<8x32x8xf32, #tpu.memory_space<vmem>>, vector<1x32x8xf32>
    %190 = vector.shape_cast %189 : vector<1x32x8xf32> to vector<32x8xf32>
    %cst_162 = arith.constant dense<0.000000e+00> : vector<128x8xf32>
    %191 = tpu.matmul %188, %190, %cst_162 {dimension_numbers = #tpu.dot_dimension_numbers<[1], [0], [0], [1], [0, 0, 1, 1], [], []>} : vector<128x32xf32>, vector<32x8xf32>, vector<128x8xf32> -> vector<128x8xf32>
    %192 = math.tanh %191 : vector<128x8xf32>
    %c5_163 = arith.constant 5 : index
    %c0_164 = arith.constant 0 : index
    %c0_165 = arith.constant 0 : index
    %193 = vector.load %arg4[%c5_163, %c0_164, %c0_165] : memref<8x8x32xf32, #tpu.memory_space<vmem>>, vector<1x8x32xf32>
    %194 = vector.shape_cast %193 : vector<1x8x32xf32> to vector<8x32xf32>
    %cst_166 = arith.constant dense<0.000000e+00> : vector<128x32xf32>
    %195 = tpu.matmul %192, %194, %cst_166 {dimension_numbers = #tpu.dot_dimension_numbers<[1], [0], [0], [1], [0, 0, 1, 1], [], []>} : vector<128x8xf32>, vector<8x32xf32>, vector<128x32xf32> -> vector<128x32xf32>
    %196 = arith.addf %53, %195 : vector<128x32xf32>
    %cst_167 = arith.constant 0.000000e+00 : f32
    %197 = vector.broadcast %cst_167 : f32 to vector<128x32xf32>
    %198 = arith.cmpf ogt, %196, %197 : vector<128x32xf32>
    %cst_168 = arith.constant 0.000000e+00 : f32
    %199 = vector.broadcast %cst_168 : f32 to vector<128x32xf32>
    %200 = arith.minimumf %196, %199 : vector<128x32xf32>
    %201 = math.exp %200 : vector<128x32xf32>
    %cst_169 = arith.constant 1.000000e+00 : f32
    %202 = vector.broadcast %cst_169 : f32 to vector<128x32xf32>
    %203 = arith.subf %201, %202 : vector<128x32xf32>
    %204 = arith.select %198, %196, %203 : vector<128x32xi1>, vector<128x32xf32>
    %c5_170 = arith.constant 5 : index
    %c0_171 = arith.constant 0 : index
    %c0_172 = arith.constant 0 : index
    %205 = vector.load %arg6[%c5_170, %c0_171, %c0_172] : memref<8x32x32xf32, #tpu.memory_space<vmem>>, vector<1x32x32xf32>
    %206 = vector.shape_cast %205 : vector<1x32x32xf32> to vector<32x32xf32>
    %cst_173 = arith.constant dense<0.000000e+00> : vector<128x32xf32>
    %207 = tpu.matmul %204, %206, %cst_173 {dimension_numbers = #tpu.dot_dimension_numbers<[1], [0], [0], [1], [0, 0, 1, 1], [], []>} : vector<128x32xf32>, vector<32x32xf32>, vector<128x32xf32> -> vector<128x32xf32>
    %c5_174 = arith.constant 5 : index
    %c0_175 = arith.constant 0 : index
    %c0_176 = arith.constant 0 : index
    %208 = vector.load %arg7[%c5_174, %c0_175, %c0_176] : memref<8x1x32xf32, #tpu.memory_space<vmem>>, vector<1x1x32xf32>
    %209 = vector.shape_cast %208 : vector<1x1x32xf32> to vector<1x32xf32>
    %210 = vector.broadcast %209 : vector<1x32xf32> to vector<128x32xf32>
    %211 = arith.addf %207, %210 : vector<128x32xf32>
    %212 = math.tanh %211 : vector<128x32xf32>
    %c5_177 = arith.constant 5 : index
    %c0_178 = arith.constant 0 : index
    %c0_179 = arith.constant 0 : index
    %213 = vector.load %arg8[%c5_177, %c0_178, %c0_179] : memref<8x32x8xf32, #tpu.memory_space<vmem>>, vector<1x32x8xf32>
    %214 = vector.shape_cast %213 : vector<1x32x8xf32> to vector<32x8xf32>
    %cst_180 = arith.constant dense<0.000000e+00> : vector<128x8xf32>
    %215 = tpu.matmul %212, %214, %cst_180 {dimension_numbers = #tpu.dot_dimension_numbers<[1], [0], [0], [1], [0, 0, 1, 1], [], []>} : vector<128x32xf32>, vector<32x8xf32>, vector<128x8xf32> -> vector<128x8xf32>
    %216 = math.tanh %215 : vector<128x8xf32>
    %c6_181 = arith.constant 6 : index
    %c0_182 = arith.constant 0 : index
    %c0_183 = arith.constant 0 : index
    %217 = vector.load %arg4[%c6_181, %c0_182, %c0_183] : memref<8x8x32xf32, #tpu.memory_space<vmem>>, vector<1x8x32xf32>
    %218 = vector.shape_cast %217 : vector<1x8x32xf32> to vector<8x32xf32>
    %cst_184 = arith.constant dense<0.000000e+00> : vector<128x32xf32>
    %219 = tpu.matmul %216, %218, %cst_184 {dimension_numbers = #tpu.dot_dimension_numbers<[1], [0], [0], [1], [0, 0, 1, 1], [], []>} : vector<128x8xf32>, vector<8x32xf32>, vector<128x32xf32> -> vector<128x32xf32>
    %220 = arith.addf %62, %219 : vector<128x32xf32>
    %cst_185 = arith.constant 0.000000e+00 : f32
    %221 = vector.broadcast %cst_185 : f32 to vector<128x32xf32>
    %222 = arith.cmpf ogt, %220, %221 : vector<128x32xf32>
    %cst_186 = arith.constant 0.000000e+00 : f32
    %223 = vector.broadcast %cst_186 : f32 to vector<128x32xf32>
    %224 = arith.minimumf %220, %223 : vector<128x32xf32>
    %225 = math.exp %224 : vector<128x32xf32>
    %cst_187 = arith.constant 1.000000e+00 : f32
    %226 = vector.broadcast %cst_187 : f32 to vector<128x32xf32>
    %227 = arith.subf %225, %226 : vector<128x32xf32>
    %228 = arith.select %222, %220, %227 : vector<128x32xi1>, vector<128x32xf32>
    %c6_188 = arith.constant 6 : index
    %c0_189 = arith.constant 0 : index
    %c0_190 = arith.constant 0 : index
    %229 = vector.load %arg6[%c6_188, %c0_189, %c0_190] : memref<8x32x32xf32, #tpu.memory_space<vmem>>, vector<1x32x32xf32>
    %230 = vector.shape_cast %229 : vector<1x32x32xf32> to vector<32x32xf32>
    %cst_191 = arith.constant dense<0.000000e+00> : vector<128x32xf32>
    %231 = tpu.matmul %228, %230, %cst_191 {dimension_numbers = #tpu.dot_dimension_numbers<[1], [0], [0], [1], [0, 0, 1, 1], [], []>} : vector<128x32xf32>, vector<32x32xf32>, vector<128x32xf32> -> vector<128x32xf32>
    %c6_192 = arith.constant 6 : index
    %c0_193 = arith.constant 0 : index
    %c0_194 = arith.constant 0 : index
    %232 = vector.load %arg7[%c6_192, %c0_193, %c0_194] : memref<8x1x32xf32, #tpu.memory_space<vmem>>, vector<1x1x32xf32>
    %233 = vector.shape_cast %232 : vector<1x1x32xf32> to vector<1x32xf32>
    %234 = vector.broadcast %233 : vector<1x32xf32> to vector<128x32xf32>
    %235 = arith.addf %231, %234 : vector<128x32xf32>
    %236 = math.tanh %235 : vector<128x32xf32>
    %c6_195 = arith.constant 6 : index
    %c0_196 = arith.constant 0 : index
    %c0_197 = arith.constant 0 : index
    %237 = vector.load %arg8[%c6_195, %c0_196, %c0_197] : memref<8x32x8xf32, #tpu.memory_space<vmem>>, vector<1x32x8xf32>
    %238 = vector.shape_cast %237 : vector<1x32x8xf32> to vector<32x8xf32>
    %cst_198 = arith.constant dense<0.000000e+00> : vector<128x8xf32>
    %239 = tpu.matmul %236, %238, %cst_198 {dimension_numbers = #tpu.dot_dimension_numbers<[1], [0], [0], [1], [0, 0, 1, 1], [], []>} : vector<128x32xf32>, vector<32x8xf32>, vector<128x8xf32> -> vector<128x8xf32>
    %240 = math.tanh %239 : vector<128x8xf32>
    %c7_199 = arith.constant 7 : index
    %c0_200 = arith.constant 0 : index
    %c0_201 = arith.constant 0 : index
    %241 = vector.load %arg4[%c7_199, %c0_200, %c0_201] : memref<8x8x32xf32, #tpu.memory_space<vmem>>, vector<1x8x32xf32>
    %242 = vector.shape_cast %241 : vector<1x8x32xf32> to vector<8x32xf32>
    %cst_202 = arith.constant dense<0.000000e+00> : vector<128x32xf32>
    %243 = tpu.matmul %240, %242, %cst_202 {dimension_numbers = #tpu.dot_dimension_numbers<[1], [0], [0], [1], [0, 0, 1, 1], [], []>} : vector<128x8xf32>, vector<8x32xf32>, vector<128x32xf32> -> vector<128x32xf32>
    %244 = arith.addf %71, %243 : vector<128x32xf32>
    %cst_203 = arith.constant 0.000000e+00 : f32
    %245 = vector.broadcast %cst_203 : f32 to vector<128x32xf32>
    %246 = arith.cmpf ogt, %244, %245 : vector<128x32xf32>
    %cst_204 = arith.constant 0.000000e+00 : f32
    %247 = vector.broadcast %cst_204 : f32 to vector<128x32xf32>
    %248 = arith.minimumf %244, %247 : vector<128x32xf32>
    %249 = math.exp %248 : vector<128x32xf32>
    %cst_205 = arith.constant 1.000000e+00 : f32
    %250 = vector.broadcast %cst_205 : f32 to vector<128x32xf32>
    %251 = arith.subf %249, %250 : vector<128x32xf32>
    %252 = arith.select %246, %244, %251 : vector<128x32xi1>, vector<128x32xf32>
    %c7_206 = arith.constant 7 : index
    %c0_207 = arith.constant 0 : index
    %c0_208 = arith.constant 0 : index
    %253 = vector.load %arg6[%c7_206, %c0_207, %c0_208] : memref<8x32x32xf32, #tpu.memory_space<vmem>>, vector<1x32x32xf32>
    %254 = vector.shape_cast %253 : vector<1x32x32xf32> to vector<32x32xf32>
    %cst_209 = arith.constant dense<0.000000e+00> : vector<128x32xf32>
    %255 = tpu.matmul %252, %254, %cst_209 {dimension_numbers = #tpu.dot_dimension_numbers<[1], [0], [0], [1], [0, 0, 1, 1], [], []>} : vector<128x32xf32>, vector<32x32xf32>, vector<128x32xf32> -> vector<128x32xf32>
    %c7_210 = arith.constant 7 : index
    %c0_211 = arith.constant 0 : index
    %c0_212 = arith.constant 0 : index
    %256 = vector.load %arg7[%c7_210, %c0_211, %c0_212] : memref<8x1x32xf32, #tpu.memory_space<vmem>>, vector<1x1x32xf32>
    %257 = vector.shape_cast %256 : vector<1x1x32xf32> to vector<1x32xf32>
    %258 = vector.broadcast %257 : vector<1x32xf32> to vector<128x32xf32>
    %259 = arith.addf %255, %258 : vector<128x32xf32>
    %260 = math.tanh %259 : vector<128x32xf32>
    %c7_213 = arith.constant 7 : index
    %c0_214 = arith.constant 0 : index
    %c0_215 = arith.constant 0 : index
    %261 = vector.load %arg8[%c7_213, %c0_214, %c0_215] : memref<8x32x8xf32, #tpu.memory_space<vmem>>, vector<1x32x8xf32>
    %262 = vector.shape_cast %261 : vector<1x32x8xf32> to vector<32x8xf32>
    %cst_216 = arith.constant dense<0.000000e+00> : vector<128x8xf32>
    %263 = tpu.matmul %260, %262, %cst_216 {dimension_numbers = #tpu.dot_dimension_numbers<[1], [0], [0], [1], [0, 0, 1, 1], [], []>} : vector<128x32xf32>, vector<32x8xf32>, vector<128x8xf32> -> vector<128x8xf32>
    %264 = math.tanh %263 : vector<128x8xf32>
    %c0_217 = arith.constant 0 : index
    %c0_218 = arith.constant 0 : index
    %c0_219 = arith.constant 0 : index
    %265 = vector.load %arg9[%c0_217, %c0_218, %c0_219] : memref<8x8x32xf32, #tpu.memory_space<vmem>>, vector<1x8x32xf32>
    %266 = vector.shape_cast %265 : vector<1x8x32xf32> to vector<8x32xf32>
    %cst_220 = arith.constant dense<0.000000e+00> : vector<128x32xf32>
    %267 = tpu.matmul %96, %266, %cst_220 {dimension_numbers = #tpu.dot_dimension_numbers<[1], [0], [0], [1], [0, 0, 1, 1], [], []>} : vector<128x8xf32>, vector<8x32xf32>, vector<128x32xf32> -> vector<128x32xf32>
    %c0_221 = arith.constant 0 : index
    %c0_222 = arith.constant 0 : index
    %c0_223 = arith.constant 0 : index
    %268 = vector.load %arg10[%c0_221, %c0_222, %c0_223] : memref<8x1x32xf32, #tpu.memory_space<vmem>>, vector<1x1x32xf32>
    %269 = vector.shape_cast %268 : vector<1x1x32xf32> to vector<1x32xf32>
    %270 = vector.broadcast %269 : vector<1x32xf32> to vector<128x32xf32>
    %271 = arith.addf %267, %270 : vector<128x32xf32>
    %c1_224 = arith.constant 1 : index
    %c0_225 = arith.constant 0 : index
    %c0_226 = arith.constant 0 : index
    %272 = vector.load %arg9[%c1_224, %c0_225, %c0_226] : memref<8x8x32xf32, #tpu.memory_space<vmem>>, vector<1x8x32xf32>
    %273 = vector.shape_cast %272 : vector<1x8x32xf32> to vector<8x32xf32>
    %cst_227 = arith.constant dense<0.000000e+00> : vector<128x32xf32>
    %274 = tpu.matmul %120, %273, %cst_227 {dimension_numbers = #tpu.dot_dimension_numbers<[1], [0], [0], [1], [0, 0, 1, 1], [], []>} : vector<128x8xf32>, vector<8x32xf32>, vector<128x32xf32> -> vector<128x32xf32>
    %c1_228 = arith.constant 1 : index
    %c0_229 = arith.constant 0 : index
    %c0_230 = arith.constant 0 : index
    %275 = vector.load %arg10[%c1_228, %c0_229, %c0_230] : memref<8x1x32xf32, #tpu.memory_space<vmem>>, vector<1x1x32xf32>
    %276 = vector.shape_cast %275 : vector<1x1x32xf32> to vector<1x32xf32>
    %277 = vector.broadcast %276 : vector<1x32xf32> to vector<128x32xf32>
    %278 = arith.addf %274, %277 : vector<128x32xf32>
    %c2_231 = arith.constant 2 : index
    %c0_232 = arith.constant 0 : index
    %c0_233 = arith.constant 0 : index
    %279 = vector.load %arg9[%c2_231, %c0_232, %c0_233] : memref<8x8x32xf32, #tpu.memory_space<vmem>>, vector<1x8x32xf32>
    %280 = vector.shape_cast %279 : vector<1x8x32xf32> to vector<8x32xf32>
    %cst_234 = arith.constant dense<0.000000e+00> : vector<128x32xf32>
    %281 = tpu.matmul %144, %280, %cst_234 {dimension_numbers = #tpu.dot_dimension_numbers<[1], [0], [0], [1], [0, 0, 1, 1], [], []>} : vector<128x8xf32>, vector<8x32xf32>, vector<128x32xf32> -> vector<128x32xf32>
    %c2_235 = arith.constant 2 : index
    %c0_236 = arith.constant 0 : index
    %c0_237 = arith.constant 0 : index
    %282 = vector.load %arg10[%c2_235, %c0_236, %c0_237] : memref<8x1x32xf32, #tpu.memory_space<vmem>>, vector<1x1x32xf32>
    %283 = vector.shape_cast %282 : vector<1x1x32xf32> to vector<1x32xf32>
    %284 = vector.broadcast %283 : vector<1x32xf32> to vector<128x32xf32>
    %285 = arith.addf %281, %284 : vector<128x32xf32>
    %c3_238 = arith.constant 3 : index
    %c0_239 = arith.constant 0 : index
    %c0_240 = arith.constant 0 : index
    %286 = vector.load %arg9[%c3_238, %c0_239, %c0_240] : memref<8x8x32xf32, #tpu.memory_space<vmem>>, vector<1x8x32xf32>
    %287 = vector.shape_cast %286 : vector<1x8x32xf32> to vector<8x32xf32>
    %cst_241 = arith.constant dense<0.000000e+00> : vector<128x32xf32>
    %288 = tpu.matmul %168, %287, %cst_241 {dimension_numbers = #tpu.dot_dimension_numbers<[1], [0], [0], [1], [0, 0, 1, 1], [], []>} : vector<128x8xf32>, vector<8x32xf32>, vector<128x32xf32> -> vector<128x32xf32>
    %c3_242 = arith.constant 3 : index
    %c0_243 = arith.constant 0 : index
    %c0_244 = arith.constant 0 : index
    %289 = vector.load %arg10[%c3_242, %c0_243, %c0_244] : memref<8x1x32xf32, #tpu.memory_space<vmem>>, vector<1x1x32xf32>
    %290 = vector.shape_cast %289 : vector<1x1x32xf32> to vector<1x32xf32>
    %291 = vector.broadcast %290 : vector<1x32xf32> to vector<128x32xf32>
    %292 = arith.addf %288, %291 : vector<128x32xf32>
    %c4_245 = arith.constant 4 : index
    %c0_246 = arith.constant 0 : index
    %c0_247 = arith.constant 0 : index
    %293 = vector.load %arg9[%c4_245, %c0_246, %c0_247] : memref<8x8x32xf32, #tpu.memory_space<vmem>>, vector<1x8x32xf32>
    %294 = vector.shape_cast %293 : vector<1x8x32xf32> to vector<8x32xf32>
    %cst_248 = arith.constant dense<0.000000e+00> : vector<128x32xf32>
    %295 = tpu.matmul %192, %294, %cst_248 {dimension_numbers = #tpu.dot_dimension_numbers<[1], [0], [0], [1], [0, 0, 1, 1], [], []>} : vector<128x8xf32>, vector<8x32xf32>, vector<128x32xf32> -> vector<128x32xf32>
    %c4_249 = arith.constant 4 : index
    %c0_250 = arith.constant 0 : index
    %c0_251 = arith.constant 0 : index
    %296 = vector.load %arg10[%c4_249, %c0_250, %c0_251] : memref<8x1x32xf32, #tpu.memory_space<vmem>>, vector<1x1x32xf32>
    %297 = vector.shape_cast %296 : vector<1x1x32xf32> to vector<1x32xf32>
    %298 = vector.broadcast %297 : vector<1x32xf32> to vector<128x32xf32>
    %299 = arith.addf %295, %298 : vector<128x32xf32>
    %c5_252 = arith.constant 5 : index
    %c0_253 = arith.constant 0 : index
    %c0_254 = arith.constant 0 : index
    %300 = vector.load %arg9[%c5_252, %c0_253, %c0_254] : memref<8x8x32xf32, #tpu.memory_space<vmem>>, vector<1x8x32xf32>
    %301 = vector.shape_cast %300 : vector<1x8x32xf32> to vector<8x32xf32>
    %cst_255 = arith.constant dense<0.000000e+00> : vector<128x32xf32>
    %302 = tpu.matmul %216, %301, %cst_255 {dimension_numbers = #tpu.dot_dimension_numbers<[1], [0], [0], [1], [0, 0, 1, 1], [], []>} : vector<128x8xf32>, vector<8x32xf32>, vector<128x32xf32> -> vector<128x32xf32>
    %c5_256 = arith.constant 5 : index
    %c0_257 = arith.constant 0 : index
    %c0_258 = arith.constant 0 : index
    %303 = vector.load %arg10[%c5_256, %c0_257, %c0_258] : memref<8x1x32xf32, #tpu.memory_space<vmem>>, vector<1x1x32xf32>
    %304 = vector.shape_cast %303 : vector<1x1x32xf32> to vector<1x32xf32>
    %305 = vector.broadcast %304 : vector<1x32xf32> to vector<128x32xf32>
    %306 = arith.addf %302, %305 : vector<128x32xf32>
    %c6_259 = arith.constant 6 : index
    %c0_260 = arith.constant 0 : index
    %c0_261 = arith.constant 0 : index
    %307 = vector.load %arg9[%c6_259, %c0_260, %c0_261] : memref<8x8x32xf32, #tpu.memory_space<vmem>>, vector<1x8x32xf32>
    %308 = vector.shape_cast %307 : vector<1x8x32xf32> to vector<8x32xf32>
    %cst_262 = arith.constant dense<0.000000e+00> : vector<128x32xf32>
    %309 = tpu.matmul %240, %308, %cst_262 {dimension_numbers = #tpu.dot_dimension_numbers<[1], [0], [0], [1], [0, 0, 1, 1], [], []>} : vector<128x8xf32>, vector<8x32xf32>, vector<128x32xf32> -> vector<128x32xf32>
    %c6_263 = arith.constant 6 : index
    %c0_264 = arith.constant 0 : index
    %c0_265 = arith.constant 0 : index
    %310 = vector.load %arg10[%c6_263, %c0_264, %c0_265] : memref<8x1x32xf32, #tpu.memory_space<vmem>>, vector<1x1x32xf32>
    %311 = vector.shape_cast %310 : vector<1x1x32xf32> to vector<1x32xf32>
    %312 = vector.broadcast %311 : vector<1x32xf32> to vector<128x32xf32>
    %313 = arith.addf %309, %312 : vector<128x32xf32>
    %c7_266 = arith.constant 7 : index
    %c0_267 = arith.constant 0 : index
    %c0_268 = arith.constant 0 : index
    %314 = vector.load %arg9[%c7_266, %c0_267, %c0_268] : memref<8x8x32xf32, #tpu.memory_space<vmem>>, vector<1x8x32xf32>
    %315 = vector.shape_cast %314 : vector<1x8x32xf32> to vector<8x32xf32>
    %cst_269 = arith.constant dense<0.000000e+00> : vector<128x32xf32>
    %316 = tpu.matmul %264, %315, %cst_269 {dimension_numbers = #tpu.dot_dimension_numbers<[1], [0], [0], [1], [0, 0, 1, 1], [], []>} : vector<128x8xf32>, vector<8x32xf32>, vector<128x32xf32> -> vector<128x32xf32>
    %c7_270 = arith.constant 7 : index
    %c0_271 = arith.constant 0 : index
    %c0_272 = arith.constant 0 : index
    %317 = vector.load %arg10[%c7_270, %c0_271, %c0_272] : memref<8x1x32xf32, #tpu.memory_space<vmem>>, vector<1x1x32xf32>
    %318 = vector.shape_cast %317 : vector<1x1x32xf32> to vector<1x32xf32>
    %319 = vector.broadcast %318 : vector<1x32xf32> to vector<128x32xf32>
    %320 = arith.addf %316, %319 : vector<128x32xf32>
    %321 = tpu.concatenate %271, %278, %285, %292, %299, %306, %313, %320 in 1 : vector<128x32xf32>, vector<128x32xf32>, vector<128x32xf32>, vector<128x32xf32>, vector<128x32xf32>, vector<128x32xf32>, vector<128x32xf32>, vector<128x32xf32> -> vector<128x256xf32>
    %c0_273 = arith.constant 0 : index
    %c0_274 = arith.constant 0 : index
    %322 = vector.load %arg11[%c0_273, %c0_274] : memref<128x256xf32, #tpu.memory_space<vmem>>, vector<128x256xf32>
    tpu.vector_store %arg11[%c0_273, %c0_274], %321 {strides = array<i32>} : memref<128x256xf32, #tpu.memory_space<vmem>>, vector<128x256xf32>,
    %323 = tpu.concatenate %96, %120, %144, %168, %192, %216, %240, %264 in 1 : vector<128x8xf32>, vector<128x8xf32>, vector<128x8xf32>, vector<128x8xf32>, vector<128x8xf32>, vector<128x8xf32>, vector<128x8xf32>, vector<128x8xf32> -> vector<128x64xf32>
    %c0_275 = arith.constant 0 : index
    %c0_276 = arith.constant 0 : index
    %324 = vector.load %arg12[%c0_275, %c0_276] : memref<128x64xf32, #tpu.memory_space<vmem>>, vector<128x64xf32>
    tpu.vector_store %arg12[%c0_275, %c0_276], %323 {strides = array<i32>} : memref<128x64xf32, #tpu.memory_space<vmem>>, vector<128x64xf32>,
    return
  }
  func.func @transform_0(%arg0: i32) -> (i32, i32, i32) {
    %c0_i32 = arith.constant 0 : i32
    %c0_i32_0 = arith.constant 0 : i32
    %c0_i32_1 = arith.constant 0 : i32
    return %c0_i32, %arg0, %c0_i32_0 : i32, i32, i32
  }
  func.func @transform_1(%arg0: i32) -> (i32, i32) {
    %c0_i32 = arith.constant 0 : i32
    %c0_i32_0 = arith.constant 0 : i32
    return %arg0, %c0_i32 : i32, i32
  }
  func.func @transform_2(%arg0: i32) -> (i32, i32, i32) {
    %c0_i32 = arith.constant 0 : i32
    %c0_i32_0 = arith.constant 0 : i32
    %c0_i32_1 = arith.constant 0 : i32
    %c0_i32_2 = arith.constant 0 : i32
    return %c0_i32, %c0_i32_0, %c0_i32_1 : i32, i32, i32
  }
  func.func @transform_3(%arg0: i32) -> (i32, i32, i32) {
    %c0_i32 = arith.constant 0 : i32
    %c0_i32_0 = arith.constant 0 : i32
    %c0_i32_1 = arith.constant 0 : i32
    %c0_i32_2 = arith.constant 0 : i32
    return %c0_i32, %c0_i32_0, %c0_i32_1 : i32, i32, i32
  }
  func.func @transform_4(%arg0: i32) -> (i32, i32, i32) {
    %c0_i32 = arith.constant 0 : i32
    %c0_i32_0 = arith.constant 0 : i32
    %c0_i32_1 = arith.constant 0 : i32
    %c0_i32_2 = arith.constant 0 : i32
    return %c0_i32, %c0_i32_0, %c0_i32_1 : i32, i32, i32
  }
  func.func @transform_5(%arg0: i32) -> (i32, i32, i32) {
    %c0_i32 = arith.constant 0 : i32
    %c0_i32_0 = arith.constant 0 : i32
    %c0_i32_1 = arith.constant 0 : i32
    %c0_i32_2 = arith.constant 0 : i32
    return %c0_i32, %c0_i32_0, %c0_i32_1 : i32, i32, i32
  }
  func.func @transform_6(%arg0: i32) -> (i32, i32, i32) {
    %c0_i32 = arith.constant 0 : i32
    %c0_i32_0 = arith.constant 0 : i32
    %c0_i32_1 = arith.constant 0 : i32
    %c0_i32_2 = arith.constant 0 : i32
    return %c0_i32, %c0_i32_0, %c0_i32_1 : i32, i32, i32
  }
  func.func @transform_7(%arg0: i32) -> (i32, i32, i32) {
    %c0_i32 = arith.constant 0 : i32
    %c0_i32_0 = arith.constant 0 : i32
    %c0_i32_1 = arith.constant 0 : i32
    %c0_i32_2 = arith.constant 0 : i32
    return %c0_i32, %c0_i32_0, %c0_i32_1 : i32, i32, i32
  }
  func.func @transform_8(%arg0: i32) -> (i32, i32, i32) {
    %c0_i32 = arith.constant 0 : i32
    %c0_i32_0 = arith.constant 0 : i32
    %c0_i32_1 = arith.constant 0 : i32
    %c0_i32_2 = arith.constant 0 : i32
    return %c0_i32, %c0_i32_0, %c0_i32_1 : i32, i32, i32
  }
  func.func @transform_9(%arg0: i32) -> (i32, i32, i32) {
    %c0_i32 = arith.constant 0 : i32
    %c0_i32_0 = arith.constant 0 : i32
    %c0_i32_1 = arith.constant 0 : i32
    %c0_i32_2 = arith.constant 0 : i32
    return %c0_i32, %c0_i32_0, %c0_i32_1 : i32, i32, i32
  }
  func.func @transform_10(%arg0: i32) -> (i32, i32) {
    %c0_i32 = arith.constant 0 : i32
    %c0_i32_0 = arith.constant 0 : i32
    return %arg0, %c0_i32 : i32, i32
  }
  func.func @transform_11(%arg0: i32) -> (i32, i32) {
    %c0_i32 = arith.constant 0 : i32
    %c0_i32_0 = arith.constant 0 : i32
    return %arg0, %c0_i32 : i32, i32
  }
}

</mosaic_0001>

<bundles_post_ra>
// kernel: rnn_forward.1
= control target key start
LH: loop header
LB: loop body
LE: loop exit
PB: predicated region body
PF: predicated region fallthrough
CT: control target
= control target key end

     0   :  { %vm63_vm0 = vcmask 195584   ;;  %vm1828_vm1 = vcmask 64512   ;;  %vm2145_vm2 = vcmask 261120   ;;  %s14166_s25 = smov 8   ;;  %s14167_s26 = smov 16   ;;  %s18269_s2 = inlined_call_operand.vmem [shape: f32[8,24,32], index: 2, kind: input, shape index: {}]   ;;  %s18270_s0 = inlined_call_operand.vmem [shape: f32[8,128,24], index: 0, kind: input, shape index: {}]   ;;  %s18271_s3 = inlined_call_operand.vmem [shape: f32[8,8,32], index: 3, kind: input, shape index: {}]   ;;  %s18272_s5 = inlined_call_operand.vmem [shape: f32[8,32,32], index: 5, kind: input, shape index: {}]   ;;  %s18273_s1 = inlined_call_operand.vmem [shape: f32[128,8], index: 1, kind: input, shape index: {}]   ;;  %s18274_s7 = inlined_call_operand.vmem [shape: f32[8,32,8], index: 7, kind: input, shape index: {}]   ;;  %s18275_s4 = inlined_call_operand.vmem [shape: f32[8,1,32], index: 4, kind: input, shape index: {}]   ;;  %s18276_s6 = inlined_call_operand.vmem [shape: f32[8,1,32], index: 6, kind: input, shape index: {}]   ;;  %s18277_s8 = inlined_call_operand.vmem [shape: f32[8,8,32], index: 8, kind: input, shape index: {}]   ;;  %s18278_s9 = inlined_call_operand.vmem [shape: f32[8,1,32], index: 9, kind: input, shape index: {}]   ;;  %s18279_s11 = inlined_call_operand.vmem [shape: f32[128,64], index: 11, kind: output, shape index: {1}]   ;;  %s18280_s10 = inlined_call_operand.vmem [shape: f32[128,256], index: 10, kind: output, shape index: {0}]  }
   0x1   :  { %v53_v0 = vld [vmem:[%s18269_s2] sm:$0xff]  ;;  %v54_v1 = vld [vmem:[%s18269_s2 + $0x8] sm:$0xff]  ;;  %v55_v4 = vld [vmem:[%s18269_s2 + $0x10] sm:$0xff]  ;;  %s14168_s27 = smov 24   ;;  %s14169_s28 = smov 32  }
   0x2   :  { %v12973_v2 = vpack.c.bf16 %v54_v1, %v53_v0  ;;  %v37_v3 = vld [vmem:[%s18270_s0] sm:$0xff]  ;;  %v10115_v5 = vld [vmem:[%s18269_s2 + $0x30] sm:$0xff]  ;;  %v10116_v6 = vld [vmem:[%s18269_s2 + $0x38] sm:$0xff]  ;;  %s14170_s30 = smov 40   ;;  %s14172_s20 = smov 64  }
   0x3   :  { %11811 = vmatprep.mubr.msk.f32.mxu0 %vm63_vm0, %v37_v3  ;;  %v12981_v7 = vpack.c.bf16 %v10116_v6, %v10115_v5  ;;  %v38_v8 = vld [vmem:[%s18270_s0 + $0x8] sm:$0xff]  ;;  %v39_v9 = vld [vmem:[%s18270_s0 + $0x10] sm:$0xff]  ;;  %v10117_v10 = vld [vmem:[%s18269_s2 + $0x40] sm:$0xff]  ;;  %s14173_s23 = smov 56  }
   0x4   :  { %12974 = vmatprep.subr.bf16.mxu0 %v12973_v2  ;;  %v10189_v11 = vld [vmem:[%s18269_s2 + $0x60] sm:$0xff]  ;;  %v10190_v12 = vld [vmem:[%s18269_s2 + $0x68] sm:$0xff]  ;;  %v40_v13 = vld [vmem:[%s18270_s0 + $0x18] sm:$0xff] }
   0x5   :  { %12976 = vmatpush3.bf16.msra.mxu0 %v12973_v2  ;;  %v41_v14 = vld [vmem:[%s18270_s0 + $0x20] sm:$0xff]  ;;  %v12989_v15 = vpack.c.bf16 %v10190_v12, %v10189_v11  ;;  %v42_v16 = vld [vmem:[%s18270_s0 + $0x28] sm:$0xff]  ;;  %v43_v17 = vld [vmem:[%s18270_s0 + $0x30] sm:$0xff] }
   0x6   :  { %11809 = vmatprep.subr.mxu0 %v55_v4  ;;  %v44_v18 = vld [vmem:[%s18270_s0 + $0x38] sm:$0xff]  ;;  %v45_v19 = vld [vmem:[%s18270_s0 + $0x40] sm:$0xff]  ;;  %v46_v20 = vld [vmem:[%s18270_s0 + $0x48] sm:$0xff] }
   0x7   :  { %v47_v21 = vld [vmem:[%s18270_s0 + $0x50] sm:$0xff]  ;;  %v48_v22 = vld [vmem:[%s18270_s0 + $0x58] sm:$0xff]  ;;  %v49_v23 = vld [vmem:[%s18270_s0 + $0x60] sm:$0xff] }
   0x8   :  { %v50_v24 = vld [vmem:[%s18270_s0 + $0x68] sm:$0xff]  ;;  %v51_v25 = vld [vmem:[%s18270_s0 + $0x70] sm:$0xff]  ;;  %v52_v26 = vld [vmem:[%s18270_s0 + $0x78] sm:$0xff] }
   0x9   :  { %11810 = vmatpush3.msra.mxu0 %v55_v4  ;;  %v10099_v27 = vld [vmem:[%s18270_s0 + $0x100] sm:$0xff]  ;;  %v10078_v28 = vld [vmem:[%s18269_s2 + $0x18] sm:$0xff]  ;;  %v10100_v30 = vld [vmem:[%s18270_s0 + $0x108] sm:$0xff] }
   0xa   :  { %11812 = vmatmul.mubr.msk.f32.vlgmr.msra.gmra.mrb[0].mxu0 %vm63_vm0, %v38_v8  ;;  %12982 = vmatprep.subr.bf16.mxu0 %v12981_v7  ;;  %v10079_v29 = vld [vmem:[%s18269_s2 + $0x20] sm:$0xff]  ;;  %v10101_v33 = vld [vmem:[%s18270_s0 + $0x110] sm:$0xff]  ;;  %v10264_v36 = vld [vmem:[%s18269_s2 + $0x98] sm:$0xff] }
   0xb   :  { %12984 = vmatpush3.bf16.msra.mxu0 %v12981_v7  ;;  %11814 = vmatprep.mubr.msk.f32.mxu0 %vm63_vm0, %v39_v9  ;;  %v12977_v31 = vpack.c.bf16 %v10079_v29, %v10078_v28  ;;  %v10062_v32 = vld [vmem:[%s18270_s0 + $0x80] sm:$0xff]  ;;  %v10191_v34 = vld [vmem:[%s18269_s2 + $0x70] sm:$0xff]  ;;  %v10080_v37 = vld [vmem:[%s18269_s2 + $0x28] sm:$0xff] }
   0xc   :  { %11869 = vmatprep.subr.mxu0 %v10117_v10  ;;  %11841 = vmatprep.mubr.msk.f32.mxu1 %vm63_vm0, %v10062_v32  ;;  %v10263_v35 = vld [vmem:[%s18269_s2 + $0x90] sm:$0xff]  ;;  %v10152_v38 = vld [vmem:[%s18269_s2 + $0x48] sm:$0xff]  ;;  %v10102_v40 = vld [vmem:[%s18270_s0 + $0x118] sm:$0xff] }
   0xd   :  { %12978 = vmatprep.subr.bf16.mxu1 %v12977_v31  ;;  %v10153_v39 = vld [vmem:[%s18269_s2 + $0x50] sm:$0xff]  ;;  %v10103_v41 = vld [vmem:[%s18270_s0 + $0x120] sm:$0xff]  ;;  %v14369_v42 = vpack.c.bf16 %v10264_v36, %v10263_v35  ;;  %v10063_v43 = vld [vmem:[%s18270_s0 + $0x88] sm:$0xff] }
   0xe   :  { %11815 = vmatmul.mubr.msk.f32.gmra.mrb[2].mxu0 %vm63_vm0, %v40_v13  ;;  %12980 = vmatpush3.bf16.msra.mxu1 %v12977_v31  ;;  %v12985_v44 = vpack.c.bf16 %v10153_v39, %v10152_v38  ;;  %v10064_v45 = vld [vmem:[%s18270_s0 + $0x90] sm:$0xff]  ;;  %v10104_v46 = vld [vmem:[%s18270_s0 + $0x128] sm:$0xff]  ;;  %v10154_v48 = vld [vmem:[%s18269_s2 + $0x58] sm:$0xff] }
   0xf   :  { %11817 = vmatprep.mubr.msk.f32.mxu0 %vm63_vm0, %v41_v14  ;;  %11870 = vmatpush3.msra.mxu0 %v10117_v10  ;;  %v10105_v47 = vld [vmem:[%s18270_s0 + $0x130] sm:$0xff]  ;;  %v10226_v49 = vld [vmem:[%s18269_s2 + $0x78] sm:$0xff]  ;;  %v10227_v50 = vld [vmem:[%s18269_s2 + $0x80] sm:$0xff] }
  0x10   :  { %12990 = vmatprep.subr.bf16.mxu0 %v12989_v15  ;;  %11839 = vmatprep.subr.mxu1 %v10080_v37  ;;  %v10065_v51 = vld [vmem:[%s18270_s0 + $0x98] sm:$0xff]  ;;  %v10066_v52 = vld [vmem:[%s18270_s0 + $0xa0] sm:$0xff]  ;;  %v14408_v54 = vpack.c.bf16 %v10227_v50, %v10226_v49  ;;  %v10067_v56 = vld [vmem:[%s18270_s0 + $0xa8] sm:$0xff] }
  0x11   :  { %v10106_v53 = vld [vmem:[%s18270_s0 + $0x138] sm:$0xff]  ;;  %v10107_v55 = vld [vmem:[%s18270_s0 + $0x140] sm:$0xff]  ;;  %v10068_v57 = vld [vmem:[%s18270_s0 + $0xb0] sm:$0xff] }
  0x12   :  { %11818 = vmatmul.mubr.msk.f32.gmra.mrb[4].mxu0 %vm63_vm0, %v42_v16  ;;  %11840 = vmatpush3.msra.mxu1 %v10080_v37  ;;  %v10108_v58 = vld [vmem:[%s18270_s0 + $0x148] sm:$0xff]  ;;  %v10109_v59 = vld [vmem:[%s18270_s0 + $0x150] sm:$0xff]  ;;  %v10069_v60 = vld [vmem:[%s18270_s0 + $0xb8] sm:$0xff] }
  0x13   :  { %11820 = vmatprep.mubr.msk.f32.mxu0 %vm63_vm0, %v43_v17  ;;  %11842 = vmatmul.mubr.msk.f32.vlgmr.msra.gmra.mrb[0].mxu1 %vm63_vm0, %v10063_v43  ;;  %v10070_v61 = vld [vmem:[%s18270_s0 + $0xc0] sm:$0xff]  ;;  %v10110_v62 = vld [vmem:[%s18270_s0 + $0x158] sm:$0xff]  ;;  %v10071_v0 = vld [vmem:[%s18270_s0 + $0xc8] sm:$0xff] }
  0x14   :  { %12986 = vmatprep.subr.bf16.mxu1 %v12985_v44  ;;  %11844 = vmatprep.mubr.msk.f32.mxu1 %vm63_vm0, %v10064_v45  ;;  %v10111_v63 = vld [vmem:[%s18270_s0 + $0x160] sm:$0xff]  ;;  %v10072_v1 = vld [vmem:[%s18270_s0 + $0xd0] sm:$0xff]  ;;  %v10112_v2 = vld [vmem:[%s18270_s0 + $0x168] sm:$0xff] }
  0x15   :  { %12988 = vmatpush3.bf16.msra.mxu1 %v12985_v44  ;;  %v10113_v3 = vld [vmem:[%s18270_s0 + $0x170] sm:$0xff]  ;;  %v10073_v4 = vld [vmem:[%s18270_s0 + $0xd8] sm:$0xff]  ;;  %v10074_v5 = vld [vmem:[%s18270_s0 + $0xe0] sm:$0xff] }
  0x16   :  { %11821 = vmatmul.mubr.msk.f32.gmra.mrb[6].mxu0 %vm63_vm0, %v44_v18  ;;  %11899 = vmatprep.subr.mxu1 %v10154_v48  ;;  %v10114_v6 = vld [vmem:[%s18270_s0 + $0x178] sm:$0xff]  ;;  %v10173_v7 = vld [vmem:[%s18270_s0 + $0x200] sm:$0xff]  ;;  %v10075_v8 = vld [vmem:[%s18270_s0 + $0xe8] sm:$0xff] }
  0x17   :  { %11823 = vmatprep.mubr.msk.f32.mxu0 %vm63_vm0, %v45_v19  ;;  %11845 = vmatmul.mubr.msk.f32.gmra.mrb[2].mxu1 %vm63_vm0, %v10065_v51  ;;  %v10076_v9 = vld [vmem:[%s18270_s0 + $0xf0] sm:$0xff]  ;;  %v10174_v10 = vld [vmem:[%s18270_s0 + $0x208] sm:$0xff]  ;;  %v10265_v12 = vld [vmem:[%s18269_s2 + $0xa0] sm:$0xff] }
  0x18   :  { %11847 = vmatprep.mubr.msk.f32.mxu1 %vm63_vm0, %v10066_v52  ;;  %v10175_v11 = vld [vmem:[%s18270_s0 + $0x210] sm:$0xff]  ;;  %v10077_v13 = vld [vmem:[%s18270_s0 + $0xf8] sm:$0xff]  ;;  %v10136_v14 = vld [vmem:[%s18270_s0 + $0x180] sm:$0xff] }
  0x19   :  { %11900 = vmatpush3.msra.mxu1 %v10154_v48  ;;  %v10177_v16 = vld [vmem:[%s18270_s0 + $0x220] sm:$0xff]  ;;  %v10137_v18 = vld [vmem:[%s18270_s0 + $0x188] sm:$0xff]  ;;  %v10180_v28 = vld [vmem:[%s18270_s0 + $0x238] sm:$0xff] }
  0x1a   :  { %11824 = vmatmul.mubr.msk.f32.gmra.mrb[8].mxu0 %vm63_vm0, %v46_v20  ;;  %12994 = vmatprep.subr.bf16.mxu1 %v14408_v54  ;;  %v14518_v17 = vld [vmem:[%s18271_s3] sm:$0xff]  ;;  %v10178_v19 = vld [vmem:[%s18270_s0 + $0x228] sm:$0xff]  ;;  %v10138_v20 = vld [vmem:[%s18270_s0 + $0x190] sm:$0xff] }
  0x1b   :  { %11826 = vmatprep.mubr.msk.f32.mxu0 %vm63_vm0, %v47_v21  ;;  %11848 = vmatmul.mubr.msk.f32.gmra.mrb[4].mxu1 %vm63_vm0, %v10067_v56  ;;  %v10228_v21 = vld [vmem:[%s18269_s2 + $0x88] sm:$0xff]  ;;  %v10181_v29 = vld [vmem:[%s18270_s0 + $0x240] sm:$0xff]  ;;  %v10142_v31 = vld [vmem:[%s18270_s0 + $0x1b0] sm:$0xff] }
  0x1c   :  { %11850 = vmatprep.mubr.msk.f32.mxu1 %vm63_vm0, %v10068_v57  ;;  %v10182_v32 = vld [vmem:[%s18270_s0 + $0x248] sm:$0xff]  ;;  %v10144_v35 = vld [vmem:[%s18270_s0 + $0x1c0] sm:$0xff]  ;;  %v10184_v36 = vld [vmem:[%s18270_s0 + $0x258] sm:$0xff] }
  0x1d   :  { %v10185_v37 = vld [vmem:[%s18270_s0 + $0x260] sm:$0xff]  ;;  %v10145_v38 = vld [vmem:[%s18270_s0 + $0x1c8] sm:$0xff]  ;;  %v10146_v39 = vld [vmem:[%s18270_s0 + $0x1d0] sm:$0xff] }
  0x1e   :  { %11827 = vmatmul.mubr.msk.f32.gmra.mrb[10].mxu0 %vm63_vm0, %v48_v22  ;;  %v10300_v22 = vld [vmem:[%s18269_s2 + $0xa8] sm:$0xff]  ;;  %v10148_v43 = vld [vmem:[%s18270_s0 + $0x1e0] sm:$0xff]  ;;  %v10188_v44 = vld [vmem:[%s18270_s0 + $0x278] sm:$0xff] }
  0x1f   :  { %11829 = vmatprep.mubr.msk.f32.mxu0 %vm63_vm0, %v49_v23  ;;  %11851 = vmatmul.mubr.msk.f32.gmra.mrb[6].mxu1 %vm63_vm0, %v10069_v60  ;;  %v10301_v23 = vld [vmem:[%s18269_s2 + $0xb0] sm:$0xff]  ;;  %v10247_v45 = vld [vmem:[%s18270_s0 + $0x300] sm:$0xff]  ;;  %v10248_v48 = vld [vmem:[%s18270_s0 + $0x308] sm:$0xff] }
  0x20   :  { %11853 = vmatprep.mubr.msk.f32.mxu1 %vm63_vm0, %v10070_v61  ;;  %v10249_v49 = vld [vmem:[%s18270_s0 + $0x310] sm:$0xff]  ;;  %v10151_v50 = vld [vmem:[%s18270_s0 + $0x1f8] sm:$0xff]  ;;  %v10210_v51 = vld [vmem:[%s18270_s0 + $0x280] sm:$0xff] }
  0x21   :  { %v10250_v52 = vld [vmem:[%s18270_s0 + $0x318] sm:$0xff]  ;;  %v10212_v56 = vld [vmem:[%s18270_s0 + $0x290] sm:$0xff] }
  0x22   :  { %11830 = vmatmul.mubr.msk.f32.gmra.mrb[12].mxu0 %vm63_vm0, %v50_v24  ;;  %v10179_v24 = vld [vmem:[%s18270_s0 + $0x230] sm:$0xff]  ;;  %v10302_v57 = vld [vmem:[%s18269_s2 + $0xb8] sm:$0xff] }
  0x23   :  { %11832 = vmatprep.mubr.msk.f32.mxu0 %vm63_vm0, %v51_v25  ;;  %11854 = vmatmul.mubr.msk.f32.gmra.mrb[8].mxu1 %vm63_vm0, %v10071_v0  ;;  %v10139_v25 = vld [vmem:[%s18270_s0 + $0x198] sm:$0xff]  ;;  %v10253_v60 = vld [vmem:[%s18270_s0 + $0x330] sm:$0xff] }
  0x24   :  { %11856 = vmatprep.mubr.msk.f32.mxu1 %vm63_vm0, %v10072_v1  ;;  %v10213_v61 = vld [vmem:[%s18270_s0 + $0x298] sm:$0xff]  ;;  %v10255_v1 = vld [vmem:[%s18270_s0 + $0x340] sm:$0xff] }
  0x25   :  { %v10254_v0 = vld [vmem:[%s18270_s0 + $0x338] sm:$0xff] }
  0x26   :  { %11833 = vmatmul.mubr.msk.f32.gmra.mrb[14].mxu0 %vm63_vm0, %v52_v26  ;;  %v10140_v26 = vld [vmem:[%s18270_s0 + $0x1a0] sm:$0xff] }
  0x27   :  { %11871 = vmatprep.mubr.msk.f32.mxu0 %vm63_vm0, %v10099_v27  ;;  %11857 = vmatmul.mubr.msk.f32.gmra.mrb[10].mxu1 %vm63_vm0, %v10073_v4  ;;  %v14555_v27 = vpack.c.bf16 %v10301_v23, %v10300_v22  ;;  %v10256_v4 = vld [vmem:[%s18270_s0 + $0x348] sm:$0xff]  ;;  %v10225_v22 = vld [vmem:[%s18270_s0 + $0x2f8] sm:$0xff]  ;;  %v10284_v23 = vld [vmem:[%s18270_s0 + $0x380] sm:$0xff] }
  0x28   :  { %11859 = vmatprep.mubr.msk.f32.mxu1 %vm63_vm0, %v10074_v5  ;;  %v10257_v5 = vld [vmem:[%s18270_s0 + $0x350] sm:$0xff] }
  0x2a   :  { %11872 = vmatmul.mubr.msk.f32.vlgmr.msra.gmra.mrb[16].mxu0 %vm63_vm0, %v10100_v30  ;;  %v10141_v30 = vld [vmem:[%s18270_s0 + $0x1a8] sm:$0xff] }
  0x2b   :  { %12992 = vmatpush3.bf16.msra.mxu0 %v12989_v15  ;;  %11874 = vmatprep.mubr.msk.f32.mxu0 %vm63_vm0, %v10101_v33  ;;  %v10176_v15 = vld [vmem:[%s18270_s0 + $0x218] sm:$0xff]  ;;  %v10183_v33 = vld [vmem:[%s18270_s0 + $0x250] sm:$0xff] }
  0x2c   :  { %11929 = vmatprep.subr.mxu0 %v10191_v34  ;;  %11860 = vmatmul.mubr.msk.f32.gmra.mrb[12].mxu1 %vm63_vm0, %v10075_v8  ;;  %v10258_v8 = vld [vmem:[%s18270_s0 + $0x358] sm:$0xff] }
  0x2d   :  { %11862 = vmatprep.mubr.msk.f32.mxu1 %vm63_vm0, %v10076_v9  ;;  %v10259_v9 = vld [vmem:[%s18270_s0 + $0x360] sm:$0xff] }
  0x2e   :  { %11875 = vmatmul.mubr.msk.f32.gmra.mrb[18].mxu0 %vm63_vm0, %v10102_v40  ;;  %v10186_v40 = vld [vmem:[%s18270_s0 + $0x268] sm:$0xff] }
  0x2f   :  { %11877 = vmatprep.mubr.msk.f32.mxu0 %vm63_vm0, %v10103_v41  ;;  %11930 = vmatpush3.msra.mxu0 %v10191_v34  ;;  %v10143_v34 = vld [vmem:[%s18270_s0 + $0x1b8] sm:$0xff]  ;;  %v10187_v41 = vld [vmem:[%s18270_s0 + $0x270] sm:$0xff] }
  0x30   :  { %12998 = vmatprep.subr.bf16.mxu0 %v14369_v42  ;;  %11863 = vmatmul.mubr.msk.f32.gmra.mrb[14].mxu1 %vm63_vm0, %v10077_v13  ;;  %v10261_v13 = vld [vmem:[%s18270_s0 + $0x370] sm:$0xff] }
  0x31   :  { %11901 = vmatprep.mubr.msk.f32.mxu1 %vm63_vm0, %v10136_v14  ;;  %v10221_v14 = vld [vmem:[%s18270_s0 + $0x2d8] sm:$0xff] }
  0x32   :  { %11878 = vmatmul.mubr.msk.f32.gmra.mrb[20].mxu0 %vm63_vm0, %v10104_v46  ;;  %v10149_v46 = vld [vmem:[%s18270_s0 + $0x1e8] sm:$0xff] }
  0x33   :  { %11880 = vmatprep.mubr.msk.f32.mxu0 %vm63_vm0, %v10105_v47  ;;  %v10150_v47 = vld [vmem:[%s18270_s0 + $0x1f0] sm:$0xff] }
  0x34   :  { %11902 = vmatmul.mubr.msk.f32.vlgmr.msra.gmra.mrb[16].mxu1 %vm63_vm0, %v10137_v18  ;;  %v10223_v18 = vld [vmem:[%s18270_s0 + $0x2e8] sm:$0xff] }
  0x35   :  { %12996 = vmatpush3.bf16.msra.mxu1 %v14408_v54  ;;  %11904 = vmatprep.mubr.msk.f32.mxu1 %vm63_vm0, %v10138_v20  ;;  %v10211_v54 = vld [vmem:[%s18270_s0 + $0x288] sm:$0xff] }
  0x36   :  { %11881 = vmatmul.mubr.msk.f32.gmra.mrb[22].mxu0 %vm63_vm0, %v10106_v53  ;;  %11959 = vmatprep.subr.mxu1 %v10228_v21  ;;  %v10251_v53 = vld [vmem:[%s18270_s0 + $0x320] sm:$0xff]  ;;  %v1812_v20 = vld [vmem:[%s18273_s1 + $0x8] sm:$0xff] }
  0x37   :  { %11883 = vmatprep.mubr.msk.f32.mxu0 %vm63_vm0, %v10107_v55  ;;  %v10252_v55 = vld [vmem:[%s18270_s0 + $0x328] sm:$0xff] }
  0x38   :  { %11905 = vmatmul.mubr.msk.f32.gmra.mrb[18].mxu1 %vm63_vm0, %v10139_v25  ;;  %v1815_v25 = vld [vmem:[%s18273_s1 + $0x20] sm:$0xff] }
  0x39   :  { %11907 = vmatprep.mubr.msk.f32.mxu1 %vm63_vm0, %v10140_v26  ;;  %11960 = vmatpush3.msra.mxu1 %v10228_v21  ;;  %v1813_v21 = vld [vmem:[%s18273_s1 + $0x10] sm:$0xff]  ;;  %v10285_v26 = vld [vmem:[%s18270_s0 + $0x388] sm:$0xff] }
  0x3a   :  { %11884 = vmatmul.mubr.msk.f32.gmra.mrb[24].mxu0 %vm63_vm0, %v10108_v58  ;;  %13002 = vmatprep.subr.bf16.mxu1 %v14555_v27  ;;  %v2134_v58 = vld [vmem:[%s18272_s5] sm:$0xff] }
  0x3b   :  { %11886 = vmatprep.mubr.msk.f32.mxu0 %vm63_vm0, %v10109_v59  ;;  %v2135_v59 = vld [vmem:[%s18272_s5 + $0x8] sm:$0xff] }
  0x3c   :  { %11908 = vmatmul.mubr.msk.f32.gmra.mrb[20].mxu1 %vm63_vm0, %v10141_v30  ;;  %v10287_v30 = vld [vmem:[%s18270_s0 + $0x398] sm:$0xff] }
  0x3d   :  { %11910 = vmatprep.mubr.msk.f32.mxu1 %vm63_vm0, %v10142_v31  ;;  %v10288_v31 = vld [vmem:[%s18270_s0 + $0x3a0] sm:$0xff] }
  0x3e   :  { %11887 = vmatmul.mubr.msk.f32.gmra.mrb[26].mxu0 %vm63_vm0, %v10110_v62  ;;  %v10214_v62 = vld [vmem:[%s18270_s0 + $0x2a0] sm:$0xff] }
  0x3f   :  { %11889 = vmatprep.mubr.msk.f32.mxu0 %vm63_vm0, %v10111_v63  ;;  %v14697_v63 = vpack.c.bf16 %v2135_v59, %v2134_v58  ;;  %v14927_v58 = vld [vmem:[%s18275_s4] ss:$0 sm:$0xff] }
  0x40   :  { %11911 = vmatmul.mubr.msk.f32.gmra.mrb[22].mxu1 %vm63_vm0, %v10143_v34  ;;  %v10289_v34 = vld [vmem:[%s18270_s0 + $0x3a8] sm:$0xff] }
  0x41   :  { %11913 = vmatprep.mubr.msk.f32.mxu1 %vm63_vm0, %v10144_v35  ;;  %v1820_v35 = vld [vmem:[%s18273_s1 + $0x48] sm:$0xff] }
  0x42   :  { %11890 = vmatmul.mubr.msk.f32.gmra.mrb[28].mxu0 %vm63_vm0, %v10112_v2  ;;  %v10215_v2 = vld [vmem:[%s18270_s0 + $0x2a8] sm:$0xff] }
  0x43   :  { %11892 = vmatprep.mubr.msk.f32.mxu0 %vm63_vm0, %v10113_v3  ;;  %v10216_v3 = vld [vmem:[%s18270_s0 + $0x2b0] sm:$0xff] }
  0x44   :  { %11914 = vmatmul.mubr.msk.f32.gmra.mrb[24].mxu1 %vm63_vm0, %v10145_v38  ;;  %v1823_v38 = vld [vmem:[%s18273_s1 + $0x60] sm:$0xff] }
  0x45   :  { %11916 = vmatprep.mubr.msk.f32.mxu1 %vm63_vm0, %v10146_v39  ;;  %v1824_v39 = vld [vmem:[%s18273_s1 + $0x68] sm:$0xff] }
  0x46   :  { %11893 = vmatmul.mubr.msk.f32.gmra.mrb[30].mxu0 %vm63_vm0, %v10114_v6  ;;  %v10217_v6 = vld [vmem:[%s18270_s0 + $0x2b8] sm:$0xff] }
  0x47   :  { %11931 = vmatprep.mubr.msk.f32.mxu0 %vm63_vm0, %v10173_v7  ;;  %v10218_v7 = vld [vmem:[%s18270_s0 + $0x2c0] sm:$0xff] }
  0x4a   :  { %11932 = vmatmul.mubr.msk.f32.vlgmr.msra.gmra.mrb[32].mxu0 %vm63_vm0, %v10174_v10  ;;  %v10219_v10 = vld [vmem:[%s18270_s0 + $0x2c8] sm:$0xff] }
  0x4b   :  { %13000 = vmatpush3.bf16.msra.mxu0 %v14369_v42  ;;  %11934 = vmatprep.mubr.msk.f32.mxu0 %vm63_vm0, %v10175_v11  ;;  %v10147_v42 = vld [vmem:[%s18270_s0 + $0x1d8] sm:$0xff]  ;;  %v10220_v11 = vld [vmem:[%s18270_s0 + $0x2d0] sm:$0xff] }
  0x4c   :  { %11989 = vmatprep.subr.mxu0 %v10265_v12  ;;  %11917 = vmatmul.mubr.msk.f32.gmra.mrb[26].mxu1 %vm63_vm0, %v10147_v42  ;;  %v10290_v42 = vld [vmem:[%s18270_s0 + $0x3b0] sm:$0xff] }
  0x4d   :  { %11919 = vmatprep.mubr.msk.f32.mxu1 %vm63_vm0, %v10148_v43  ;;  %v10291_v43 = vld [vmem:[%s18270_s0 + $0x3b8] sm:$0xff] }
  0x4e   :  { %11935 = vmatmul.mubr.msk.f32.gmra.mrb[34].mxu0 %vm63_vm0, %v10176_v15  ;;  %v10222_v15 = vld [vmem:[%s18270_s0 + $0x2e0] sm:$0xff] }
  0x4f   :  { %11937 = vmatprep.mubr.msk.f32.mxu0 %vm63_vm0, %v10177_v16  ;;  %11990 = vmatpush3.msra.mxu0 %v10265_v12  ;;  %v10260_v12 = vld [vmem:[%s18270_s0 + $0x368] sm:$0xff]  ;;  %v10262_v16 = vld [vmem:[%s18270_s0 + $0x378] sm:$0xff] }
  0x50   :  { %12045 = vmatprep.subr.mxu0 %v14518_v17  ;;  %11920 = vmatmul.mubr.msk.f32.gmra.mrb[28].mxu1 %vm63_vm0, %v10149_v46  ;;  %v10294_v46 = vld [vmem:[%s18270_s0 + $0x3d0] sm:$0xff] }
  0x51   :  { %11922 = vmatprep.mubr.msk.f32.mxu1 %vm63_vm0, %v10150_v47  ;;  %v10295_v47 = vld [vmem:[%s18270_s0 + $0x3d8] sm:$0xff] }
  0x52   :  { %11938 = vmatmul.mubr.msk.f32.gmra.mrb[36].mxu0 %vm63_vm0, %v10178_v19  ;;  %v10224_v19 = vld [vmem:[%s18270_s0 + $0x2f0] sm:$0xff] }
  0x53   :  { %11940 = vmatprep.mubr.msk.f32.mxu0 %vm63_vm0, %v10179_v24  ;;  %v1814_v24 = vld [vmem:[%s18273_s1 + $0x18] sm:$0xff] }
  0x54   :  { %11923 = vmatmul.mubr.msk.f32.gmra.mrb[30].mxu1 %vm63_vm0, %v10151_v50  ;;  %v2136_v50 = vld [vmem:[%s18272_s5 + $0x10] sm:$0xff] }
  0x55   :  { %11961 = vmatprep.mubr.msk.f32.mxu1 %vm63_vm0, %v10210_v51  ;;  %v2137_v51 = vld [vmem:[%s18272_s5 + $0x18] sm:$0xff] }
  0x56   :  { %11941 = vmatmul.mubr.msk.f32.gmra.mrb[38].mxu0 %vm63_vm0, %v10180_v28  ;;  %v1816_v28 = vld [vmem:[%s18273_s1 + $0x28] sm:$0xff] }
  0x57   :  { %11943 = vmatprep.mubr.msk.f32.mxu0 %vm63_vm0, %v10181_v29  ;;  %v1817_v29 = vld [vmem:[%s18273_s1 + $0x30] sm:$0xff] }
  0x58   :  { %11962 = vmatmul.mubr.msk.f32.vlgmr.msra.gmra.mrb[32].mxu1 %vm63_vm0, %v10211_v54  ;;  %v10299_v54 = vld [vmem:[%s18270_s0 + $0x3f8] sm:$0xff] }
  0x59   :  { %13004 = vmatpush3.bf16.msra.mxu1 %v14555_v27  ;;  %11964 = vmatprep.mubr.msk.f32.mxu1 %vm63_vm0, %v10212_v56  ;;  %v10286_v27 = vld [vmem:[%s18270_s0 + $0x390] sm:$0xff]  ;;  %v2356_v56 = vld [vmem:[%s18274_s7 + $0x8] sm:$0xff] }
  0x5a   :  { %11944 = vmatmul.mubr.msk.f32.gmra.mrb[40].mxu0 %vm63_vm0, %v10182_v32  ;;  %12019 = vmatprep.subr.mxu1 %v10302_v57  ;;  %v1818_v32 = vld [vmem:[%s18273_s1 + $0x38] sm:$0xff] }
  0x5b   :  { %11946 = vmatprep.mubr.msk.f32.mxu0 %vm63_vm0, %v10183_v33  ;;  %v1819_v33 = vld [vmem:[%s18273_s1 + $0x40] sm:$0xff] }
  0x5c   :  { %11965 = vmatmul.mubr.msk.f32.gmra.mrb[34].mxu1 %vm63_vm0, %v10213_v61 }
  0x5d   :  { %11967 = vmatprep.mubr.msk.f32.mxu1 %vm63_vm0, %v10214_v62  ;;  %12020 = vmatpush3.msra.mxu1 %v10302_v57 }
  0x5e   :  { %11947 = vmatmul.mubr.msk.f32.gmra.mrb[42].mxu0 %vm63_vm0, %v10184_v36  ;;  %13006 = vmatprep.subr.bf16.mxu1 %v14697_v63  ;;  %v1821_v36 = vld [vmem:[%s18273_s1 + $0x50] sm:$0xff] }
  0x5f   :  { %11949 = vmatprep.mubr.msk.f32.mxu0 %vm63_vm0, %v10185_v37  ;;  %v1822_v37 = vld [vmem:[%s18273_s1 + $0x58] sm:$0xff] }
  0x60   :  { %11968 = vmatmul.mubr.msk.f32.gmra.mrb[36].mxu1 %vm63_vm0, %v10215_v2 }
  0x61   :  { %11970 = vmatprep.mubr.msk.f32.mxu1 %vm63_vm0, %v10216_v3 }
  0x62   :  { %11950 = vmatmul.mubr.msk.f32.gmra.mrb[44].mxu0 %vm63_vm0, %v10186_v40  ;;  %v1825_v40 = vld [vmem:[%s18273_s1 + $0x70] sm:$0xff] }
  0x63   :  { %11952 = vmatprep.mubr.msk.f32.mxu0 %vm63_vm0, %v10187_v41  ;;  %v1826_v41 = vld [vmem:[%s18273_s1 + $0x78] sm:$0xff] }
  0x64   :  { %11971 = vmatmul.mubr.msk.f32.gmra.mrb[38].mxu1 %vm63_vm0, %v10217_v6 }
  0x65   :  { %11973 = vmatprep.mubr.msk.f32.mxu1 %vm63_vm0, %v10218_v7 }
  0x66   :  { %11953 = vmatmul.mubr.msk.f32.gmra.mrb[46].mxu0 %vm63_vm0, %v10188_v44  ;;  %v10292_v44 = vld [vmem:[%s18270_s0 + $0x3c0] sm:$0xff] }
  0x67   :  { %11991 = vmatprep.mubr.msk.f32.mxu0 %vm63_vm0, %v10247_v45  ;;  %v10293_v45 = vld [vmem:[%s18270_s0 + $0x3c8] sm:$0xff] }
  0x68   :  { %11974 = vmatmul.mubr.msk.f32.gmra.mrb[40].mxu1 %vm63_vm0, %v10219_v10 }
  0x69   :  { %11976 = vmatprep.mubr.msk.f32.mxu1 %vm63_vm0, %v10220_v11 }
  0x6a   :  { %11992 = vmatmul.mubr.msk.f32.vlgmr.msra.gmra.mrb[48].mxu0 %vm63_vm0, %v10248_v48  ;;  %v10296_v48 = vld [vmem:[%s18270_s0 + $0x3e0] sm:$0xff] }
  0x6b   :  { %12046 = vmatpush3.msra.mxu0 %v14518_v17  ;;  %11994 = vmatprep.mubr.msk.f32.mxu0 %vm63_vm0, %v10249_v49  ;;  %v1811_v17 = vld [vmem:[%s18273_s1] sm:$0xff]  ;;  %v10297_v49 = vld [vmem:[%s18270_s0 + $0x3e8] sm:$0xff] }
  0x6c   :  { %11977 = vmatmul.mubr.msk.f32.gmra.mrb[42].mxu1 %vm63_vm0, %v10221_v14 }
  0x6d   :  { %11979 = vmatprep.mubr.msk.f32.mxu1 %vm63_vm0, %v10222_v15 }
  0x6e   :  { %11995 = vmatmul.mubr.msk.f32.gmra.mrb[50].mxu0 %vm63_vm0, %v10250_v52  ;;  %v13009_v52 = vpack.c.bf16 %v2137_v51, %v2136_v50 }
  0x6f   :  { %11997 = vmatprep.mubr.msk.f32.mxu0 %vm63_vm0, %v10251_v53  ;;  %v10298_v53 = vld [vmem:[%s18270_s0 + $0x3f0] sm:$0xff] }
  0x70   :  { %11980 = vmatmul.mubr.msk.f32.gmra.mrb[44].mxu1 %vm63_vm0, %v10223_v18 }
  0x71   :  { %11982 = vmatprep.mubr.msk.f32.mxu1 %vm63_vm0, %v10224_v19 }
  0x72   :  { %11998 = vmatmul.mubr.msk.f32.gmra.mrb[52].mxu0 %vm63_vm0, %v10252_v55  ;;  %v2355_v55 = vld [vmem:[%s18274_s7] sm:$0xff] }
  0x73   :  { %12000 = vmatprep.mubr.msk.f32.mxu0 %vm63_vm0, %v10253_v60  ;;  %v13013_v57 = vpack.c.bf16 %v2356_v56, %v2355_v55 }
  0x74   :  { %11983 = vmatmul.mubr.msk.f32.gmra.mrb[46].mxu1 %vm63_vm0, %v10225_v22 }
  0x75   :  { %12021 = vmatprep.mubr.msk.f32.mxu1 %vm63_vm0, %v10284_v23  ;;  %13014 = vmatprep.subr.bf16.mxu0 %v13013_v57 }
  0x76   :  { %12001 = vmatmul.mubr.msk.f32.gmra.mrb[54].mxu0 %vm63_vm0, %v10254_v0 }
  0x77   :  { %12003 = vmatprep.mubr.msk.f32.mxu0 %vm63_vm0, %v10255_v1 }
  0x78   :  { %12022 = vmatmul.mubr.msk.f32.vlgmr.msra.gmra.mrb[48].mxu1 %vm63_vm0, %v10285_v26 }
  0x79   :  { %13008 = vmatpush3.bf16.msra.mxu1 %v14697_v63  ;;  %12024 = vmatprep.mubr.msk.f32.mxu1 %vm63_vm0, %v10286_v27 }
  0x7a   :  { %12004 = vmatmul.mubr.msk.f32.gmra.mrb[56].mxu0 %vm63_vm0, %v10256_v4  ;;  %13010 = vmatprep.subr.bf16.mxu1 %v13009_v52 }
  0x7b   :  { %12006 = vmatprep.mubr.msk.f32.mxu0 %vm63_vm0, %v10257_v5 }
  0x7c   :  { %12025 = vmatmul.mubr.msk.f32.gmra.mrb[50].mxu1 %vm63_vm0, %v10287_v30 }
  0x7d   :  { %12027 = vmatprep.mubr.msk.f32.mxu1 %vm63_vm0, %v10288_v31  ;;  %13012 = vmatpush3.bf16.msra.mxu1 %v13009_v52 }
  0x7e   :  { %12007 = vmatmul.mubr.msk.f32.gmra.mrb[58].mxu0 %vm63_vm0, %v10258_v8 }
  0x7f   :  { %12009 = vmatprep.mubr.msk.f32.mxu0 %vm63_vm0, %v10259_v9 }
  0x80   :  { %12028 = vmatmul.mubr.msk.f32.gmra.mrb[52].mxu1 %vm63_vm0, %v10289_v34 }
  0x81   :  { %12030 = vmatprep.mubr.msk.f32.mxu1 %vm63_vm0, %v10290_v42 }
  0x82   :  { %12010 = vmatmul.mubr.msk.f32.gmra.mrb[60].mxu0 %vm63_vm0, %v10260_v12 }
  0x83   :  { %12012 = vmatprep.mubr.msk.f32.mxu0 %vm63_vm0, %v10261_v13 }
  0x84   :  { %12031 = vmatmul.mubr.msk.f32.gmra.mrb[54].mxu1 %vm63_vm0, %v10291_v43 }
  0x85   :  { %12033 = vmatprep.mubr.msk.f32.mxu1 %vm63_vm0, %v10292_v44 }
  0x86   :  { %12013 = vmatmul.mubr.msk.f32.gmra.mrb[62].mxu0 %vm63_vm0, %v10262_v16 }
  0x87   :  { %12047 = vmatprep.mubr.msk.f32.mxu0 %vm1828_vm1, %v1811_v17 }
  0x88   :  { %12034 = vmatmul.mubr.msk.f32.gmra.mrb[56].mxu1 %vm63_vm0, %v10293_v45 }
  0x89   :  { %12036 = vmatprep.mubr.msk.f32.mxu1 %vm63_vm0, %v10294_v46 }
  0x8a   :  { %12048 = vmatmul.mubr.msk.f32.vlgmr.msra.gmra.mrb[0].mxu0 %vm1828_vm1, %v1812_v20 }
  0x8b   :  { %12050 = vmatprep.mubr.msk.f32.mxu0 %vm1828_vm1, %v1813_v21  ;;  %13016 = vmatpush3.bf16.msra.mxu0 %v13013_v57 }
  0x8c   :  { %12037 = vmatmul.mubr.msk.f32.gmra.mrb[58].mxu1 %vm63_vm0, %v10295_v47 }
  0x8d   :  { %12039 = vmatprep.mubr.msk.f32.mxu1 %vm63_vm0, %v10296_v48 }
  0x8e   :  { %12051 = vmatmul.mubr.msk.f32.gmra.mrb[2].mxu0 %vm1828_vm1, %v1814_v24 }
  0x8f   :  { %12053 = vmatprep.mubr.msk.f32.mxu0 %vm1828_vm1, %v1815_v25 }
  0x90   :  { %12040 = vmatmul.mubr.msk.f32.gmra.mrb[60].mxu1 %vm63_vm0, %v10297_v49 }
  0x91   :  { %12042 = vmatprep.mubr.msk.f32.mxu1 %vm63_vm0, %v10298_v53 }
  0x92   :  { %12054 = vmatmul.mubr.msk.f32.gmra.mrb[4].mxu0 %vm1828_vm1, %v1816_v28 }
  0x93   :  { %12056 = vmatprep.mubr.msk.f32.mxu0 %vm1828_vm1, %v1817_v29 }
  0x94   :  { %12043 = vmatmul.mubr.msk.f32.gmra.mrb[62].mxu1 %vm63_vm0, %v10299_v54 }
  0x96   :  { %12057 = vmatmul.mubr.msk.f32.gmra.mrb[6].mxu0 %vm1828_vm1, %v1818_v32 }
  0x97   :  { %12059 = vmatprep.mubr.msk.f32.mxu0 %vm1828_vm1, %v1819_v33 }
  0x9a   :  { %12060 = vmatmul.mubr.msk.f32.gmra.mrb[8].mxu0 %vm1828_vm1, %v1820_v35 }
  0x9b   :  { %12062 = vmatprep.mubr.msk.f32.mxu0 %vm1828_vm1, %v1821_v36 }
  0x9e   :  { %12063 = vmatmul.mubr.msk.f32.gmra.mrb[10].mxu0 %vm1828_vm1, %v1822_v37 }
  0x9f   :  { %12065 = vmatprep.mubr.msk.f32.mxu0 %vm1828_vm1, %v1823_v38 }
  0xa2   :  { %12066 = vmatmul.mubr.msk.f32.gmra.mrb[12].mxu0 %vm1828_vm1, %v1824_v39 }
  0xa3   :  { %12068 = vmatprep.mubr.msk.f32.mxu0 %vm1828_vm1, %v1825_v40 }
  0xa6   :  { %12069 = vmatmul.mubr.msk.f32.gmra.mrb[14].mxu0 %vm1828_vm1, %v1826_v41 }
 0x15d   :  { %v12049_v59 = vpop.f32.mrb[0].mxu0 }
 0x15e   :  { %v13133_v60 = vadd.f32 %v12049_v59, %v14927_v58  ;;  %v1943_v61 = vpop.f32.mrb[1].mxu0 }
 0x15f   :  { %v13134_v62 = vadd.f32 %v14927_v58, %v1943_v61 }
 0x160   :  { %v2055_v63 = vmin.f32 %v13133_v60, 0.0  ;;  %vm2039_vm4 = vcmp.gt.f32.partialorder %v13133_v60, 0.0 }
 0x161   :  { %v2054_v0 = vmin.f32 %v13134_v62, 0.0  ;;  %v12052_v1 = vpop.f32.mrb[2].mxu0  ;;  %vm2038_vm3 = vcmp.gt.f32.partialorder %v13134_v62, 0.0 }
 0x162   :  { %v2072_v2 = vmul.f32 1.442695, %v2055_v63  ;;  %v14932_v3 = vadd.f32 %v12052_v1, %v14927_v58  ;;  %v1953_v4 = vpop.f32.mrb[3].mxu0 }
 0x163   :  { %v2070_v5 = vmul.f32 1.442695, %v2054_v0  ;;  %v14935_v6 = vadd.f32 %v14927_v58, %v1953_v4 }
 0x164   :  { %13398 = vpow2.f32 %v2072_v2  ;;  %v2057_v7 = vmin.f32 %v14932_v3, 0.0  ;;  %vm2041_vm6 = vcmp.gt.f32.partialorder %v14932_v3, 0.0 }
 0x165   :  { %13400 = vpow2.f32 %v2070_v5  ;;  %v2056_v8 = vmin.f32 %v14935_v6, 0.0  ;;  %v12055_v9 = vpop.f32.mrb[4].mxu0  ;;  %vm2040_vm5 = vcmp.gt.f32.partialorder %v14935_v6, 0.0 }
 0x166   :  { %v2076_v10 = vmul.f32 1.442695, %v2057_v7  ;;  %v14940_v11 = vadd.f32 %v12055_v9, %v14927_v58  ;;  %v1963_v12 = vpop.f32.mrb[5].mxu0 }
 0x167   :  { %v2074_v13 = vmul.f32 1.442695, %v2056_v8  ;;  %v14943_v14 = vadd.f32 %v14927_v58, %v1963_v12 }
 0x168   :  { %13402 = vpow2.f32 %v2076_v10  ;;  %v2059_v15 = vmin.f32 %v14940_v11, 0.0  ;;  %vm2043_vm8 = vcmp.gt.f32.partialorder %v14940_v11, 0.0 }
 0x169   :  { %13404 = vpow2.f32 %v2074_v13  ;;  %v2058_v16 = vmin.f32 %v14943_v14, 0.0  ;;  %v12058_v17 = vpop.f32.mrb[6].mxu0  ;;  %vm2042_vm7 = vcmp.gt.f32.partialorder %v14943_v14, 0.0 }
 0x16a   :  { %v2080_v18 = vmul.f32 1.442695, %v2059_v15  ;;  %v14948_v19 = vadd.f32 %v12058_v17, %v14927_v58  ;;  %v1973_v20 = vpop.f32.mrb[7].mxu0 }
 0x16b   :  { %v2078_v21 = vmul.f32 1.442695, %v2058_v16  ;;  %v14951_v22 = vadd.f32 %v14927_v58, %v1973_v20 }
 0x16c   :  { %13406 = vpow2.f32 %v2080_v18  ;;  %v2061_v23 = vmin.f32 %v14948_v19, 0.0  ;;  %vm2045_vm10 = vcmp.gt.f32.partialorder %v14948_v19, 0.0 }
 0x16d   :  { %13408 = vpow2.f32 %v2078_v21  ;;  %v2060_v24 = vmin.f32 %v14951_v22, 0.0  ;;  %v12061_v25 = vpop.f32.mrb[8].mxu0  ;;  %vm2044_vm9 = vcmp.gt.f32.partialorder %v14951_v22, 0.0 }
 0x16e   :  { %v13399_v26 = vpop.eup %13398  ;;  %v2084_v27 = vmul.f32 1.442695, %v2061_v23  ;;  %v14956_v28 = vadd.f32 %v12061_v25, %v14927_v58  ;;  %v1983_v29 = vpop.f32.mrb[9].mxu0 }
 0x16f   :  { %v13401_v30 = vpop.eup %13400  ;;  %v10338_v31 = vadd.f32 -1.0, %v13399_v26  ;;  %v2082_v32 = vmul.f32 1.442695, %v2060_v24  ;;  %v14959_v33 = vadd.f32 %v14927_v58, %v1983_v29 }
 0x170   :  { %13410 = vpow2.f32 %v2084_v27  ;;  %v2063_v34 = vmin.f32 %v14956_v28, 0.0  ;;  %v10337_v35 = vadd.f32 -1.0, %v13401_v30  ;;  %vm2047_vm12 = vcmp.gt.f32.partialorder %v14956_v28, 0.0 }
 0x171   :  { %13412 = vpow2.f32 %v2082_v32  ;;  %v2062_v36 = vmin.f32 %v14959_v33, 0.0  ;;  %v12064_v37 = vpop.f32.mrb[10].mxu0  ;;  %v2119_v44 = vsel %vm2039_vm4, %v13133_v60, %v10338_v31  ;;  %vm2046_vm11 = vcmp.gt.f32.partialorder %v14959_v33, 0.0 }
 0x172   :  { %v13403_v38 = vpop.eup %13402  ;;  %v2088_v39 = vmul.f32 1.442695, %v2063_v34  ;;  %v14964_v40 = vadd.f32 %v12064_v37, %v14927_v58  ;;  %v1993_v41 = vpop.f32.mrb[11].mxu0  ;;  %v2118_v42 = vsel %vm2038_vm3, %v13134_v62, %v10337_v35 }
 0x173   :  { %v13405_v43 = vpop.eup %13404  ;;  %v2086_v45 = vmul.f32 1.442695, %v2062_v36  ;;  %v14967_v46 = vadd.f32 %v14927_v58, %v1993_v41  ;;  %12079 = vmatprep.mubr.msk.f32.mxu1 %vm2145_vm2, %v2118_v42  ;;  %v10340_v47 = vadd.f32 -1.0, %v13403_v38 }
 0x174   :  { %13414 = vpow2.f32 %v2088_v39  ;;  %v2065_v48 = vmin.f32 %v14964_v40, 0.0  ;;  %12080 = vmatmul.mubr.msk.f32.vlgmr.msra.gmra.mrb[64].mxu1 %vm2145_vm2, %v2119_v44  ;;  %v10339_v49 = vadd.f32 -1.0, %v13405_v43  ;;  %vm2049_vm14 = vcmp.gt.f32.partialorder %v14964_v40, 0.0  ;;  %v2357_v43 = vld [vmem:[%s18274_s7 + $0x10] sm:$0xff]  ;;  %v2358_v44 = vld [vmem:[%s18274_s7 + $0x18] sm:$0xff] }
 0x175   :  { %13416 = vpow2.f32 %v2086_v45  ;;  %v2064_v50 = vmin.f32 %v14967_v46, 0.0  ;;  %v12067_v51 = vpop.f32.mrb[12].mxu0  ;;  %v2121_v61 = vsel %vm2041_vm6, %v14932_v3, %v10340_v47  ;;  %vm2048_vm13 = vcmp.gt.f32.partialorder %v14967_v46, 0.0  ;;  %v15038_v47 = vld [vmem:[%s18276_s6] ss:$0 sm:$0xff] }
 0x176   :  { %v13407_v52 = vpop.eup %13406  ;;  %v2092_v53 = vmul.f32 1.442695, %v2065_v48  ;;  %v14976_v54 = vadd.f32 %v12067_v51, %v14927_v58  ;;  %v2003_v55 = vpop.f32.mrb[13].mxu0  ;;  %v2120_v56 = vsel %vm2040_vm5, %v14935_v6, %v10339_v49  ;;  %v13017_v45 = vpack.c.bf16 %v2358_v44, %v2357_v43 }
 0x177   :  { %v13409_v57 = vpop.eup %13408  ;;  %v2090_v59 = vmul.f32 1.442695, %v2064_v50  ;;  %v14980_v60 = vadd.f32 %v14927_v58, %v2003_v55  ;;  %12082 = vmatprep.mubr.msk.f32.mxu1 %vm2145_vm2, %v2120_v56  ;;  %v10342_v62 = vadd.f32 -1.0, %v13407_v52 }
 0x178   :  { %13418 = vpow2.f32 %v2092_v53  ;;  %v2067_v63 = vmin.f32 %v14976_v54, 0.0  ;;  %12083 = vmatmul.mubr.msk.f32.gmra.mrb[66].mxu1 %vm2145_vm2, %v2121_v61  ;;  %v10341_v0 = vadd.f32 -1.0, %v13409_v57  ;;  %vm2051_vm3 = vcmp.gt.f32.partialorder %v14976_v54, 0.0  ;;  %13018 = vmatprep.subr.bf16.mxu0 %v13017_v45 }
 0x179   :  { %13420 = vpow2.f32 %v2090_v59  ;;  %v2066_v1 = vmin.f32 %v14980_v60, 0.0  ;;  %v12070_v2 = vpop.f32.mrb[14].mxu0  ;;  %v2123_v12 = vsel %vm2043_vm8, %v14940_v11, %v10342_v62  ;;  %vm2050_vm15 = vcmp.gt.f32.partialorder %v14980_v60, 0.0  ;;  %13020 = vmatpush3.bf16.msra.mxu0 %v13017_v45 }
 0x17a   :  { %v13411_v4 = vpop.eup %13410  ;;  %v2096_v5 = vmul.f32 1.442695, %v2067_v63  ;;  %v14990_v6 = vadd.f32 %v12070_v2, %v14927_v58  ;;  %v2013_v3 = vpop.f32.mrb[15].mxu0  ;;  %v2122_v7 = vsel %vm2042_vm7, %v14943_v14, %v10341_v0 }
 0x17b   :  { %v13413_v8 = vpop.eup %13412  ;;  %v2094_v9 = vmul.f32 1.442695, %v2066_v1  ;;  %v13148_v10 = vadd.f32 %v14927_v58, %v2013_v3  ;;  %12085 = vmatprep.mubr.msk.f32.mxu1 %vm2145_vm2, %v2122_v7  ;;  %v10344_v13 = vadd.f32 -1.0, %v13411_v4 }
 0x17c   :  { %13422 = vpow2.f32 %v2096_v5  ;;  %v2069_v15 = vmin.f32 %v14990_v6, 0.0  ;;  %12086 = vmatmul.mubr.msk.f32.gmra.mrb[68].mxu1 %vm2145_vm2, %v2123_v12  ;;  %v10343_v16 = vadd.f32 -1.0, %v13413_v8  ;;  %vm2053_vm5 = vcmp.gt.f32.partialorder %v14990_v6, 0.0 }
 0x17d   :  { %13424 = vpow2.f32 %v2094_v9  ;;  %v2068_v17 = vmin.f32 %v13148_v10, 0.0  ;;  %v2125_v11 = vsel %vm2045_vm10, %v14948_v19, %v10344_v13  ;;  %vm2052_vm4 = vcmp.gt.f32.partialorder %v13148_v10, 0.0 }
 0x17e   :  { %v13415_v14 = vpop.eup %13414  ;;  %v2100_v18 = vmul.f32 1.442695, %v2069_v15  ;;  %v2124_v58 = vsel %vm2044_vm9, %v14951_v22, %v10343_v16 }
 0x17f   :  { %v13417_v20 = vpop.eup %13416  ;;  %v2098_v21 = vmul.f32 1.442695, %v2068_v17  ;;  %12088 = vmatprep.mubr.msk.f32.mxu1 %vm2145_vm2, %v2124_v58  ;;  %v10346_v23 = vadd.f32 -1.0, %v13415_v14 }
 0x180   :  { %13426 = vpow2.f32 %v2100_v18  ;;  %12089 = vmatmul.mubr.msk.f32.gmra.mrb[70].mxu1 %vm2145_vm2, %v2125_v11  ;;  %v10345_v24 = vadd.f32 -1.0, %v13417_v20 }
 0x181   :  { %13428 = vpow2.f32 %v2098_v21  ;;  %v2127_v27 = vsel %vm2047_vm12, %v14956_v28, %v10346_v23 }
 0x182   :  { %v13419_v25 = vpop.eup %13418  ;;  %v2126_v26 = vsel %vm2046_vm11, %v14959_v33, %v10345_v24 }
 0x183   :  { %v13421_v22 = vpop.eup %13420  ;;  %12091 = vmatprep.mubr.msk.f32.mxu1 %vm2145_vm2, %v2126_v26  ;;  %v10348_v29 = vadd.f32 -1.0, %v13419_v25 }
 0x184   :  { %12092 = vmatmul.mubr.msk.f32.gmra.mrb[72].mxu1 %vm2145_vm2, %v2127_v27  ;;  %v10347_v19 = vadd.f32 -1.0, %v13421_v22 }
 0x185   :  { %v2129_v33 = vsel %vm2049_vm14, %v14964_v40, %v10348_v29 }
 0x186   :  { %v13423_v30 = vpop.eup %13422  ;;  %v2128_v31 = vsel %vm2048_vm13, %v14967_v46, %v10347_v19  ;;  %v10386_v46 = vld [vmem:[%s18271_s3 + $0x8] sm:$0xff] }
 0x187   :  { %v13425_v32 = vpop.eup %13424  ;;  %12094 = vmatprep.mubr.msk.f32.mxu1 %vm2145_vm2, %v2128_v31  ;;  %v10350_v34 = vadd.f32 -1.0, %v13423_v30  ;;  %12135 = vmatprep.subr.mxu1 %v10386_v46 }
 0x188   :  { %12095 = vmatmul.mubr.msk.f32.gmra.mrb[74].mxu1 %vm2145_vm2, %v2129_v33  ;;  %v10349_v28 = vadd.f32 -1.0, %v13425_v32  ;;  %v10419_v33 = vld [vmem:[%s18272_s5 + $0x20] sm:$0xff] }
 0x189   :  { %v2131_v38 = vsel %vm2051_vm3, %v14976_v54, %v10350_v34  ;;  %12136 = vmatpush3.msra.mxu1 %v10386_v46  ;;  %v10420_v34 = vld [vmem:[%s18272_s5 + $0x28] sm:$0xff] }
 0x18a   :  { %v13427_v35 = vpop.eup %13426  ;;  %v2130_v36 = vsel %vm2050_vm15, %v14980_v60, %v10349_v28  ;;  %v13021_v28 = vpack.c.bf16 %v10420_v34, %v10419_v33 }
 0x18b   :  { %v13429_v37 = vpop.eup %13428  ;;  %12097 = vmatprep.mubr.msk.f32.mxu1 %vm2145_vm2, %v2130_v36  ;;  %v10352_v39 = vadd.f32 -1.0, %v13427_v35 }
 0x18c   :  { %12098 = vmatmul.mubr.msk.f32.gmra.mrb[76].mxu1 %vm2145_vm2, %v2131_v38  ;;  %v10351_v40 = vadd.f32 -1.0, %v13429_v37  ;;  %13022 = vmatprep.subr.bf16.mxu0 %v13021_v28 }
 0x18d   :  { %v2133_v42 = vsel %vm2053_vm5, %v14990_v6, %v10352_v39 }
 0x18e   :  { %v2132_v41 = vsel %vm2052_vm4, %v13148_v10, %v10351_v40 }
 0x18f   :  { %12100 = vmatprep.mubr.msk.f32.mxu1 %vm2145_vm2, %v2132_v41 }
 0x190   :  { %12101 = vmatmul.mubr.msk.f32.gmra.mrb[78].mxu1 %vm2145_vm2, %v2133_v42 }
 0x247   :  { %v12081_v48 = vpop.f32.mrb[64].mxu1 }
 0x248   :  { %v2266_v49 = vadd.f32 %v12081_v48, %v15038_v47  ;;  %v2260_v50 = vpop.f32.mrb[65].mxu1 }
 0x249   :  { %v2261_v51 = vadd.f32 %v15038_v47, %v2260_v50 }
 0x24b   :  { %13430 = vtanh.f32 %v2261_v51  ;;  %v12084_v52 = vpop.f32.mrb[66].mxu1 }
 0x24c   :  { %13432 = vtanh.f32 %v2266_v49  ;;  %v2276_v53 = vadd.f32 %v12084_v52, %v15038_v47  ;;  %v2270_v54 = vpop.f32.mrb[67].mxu1 }
 0x24d   :  { %v2271_v55 = vadd.f32 %v15038_v47, %v2270_v54 }
 0x24f   :  { %13434 = vtanh.f32 %v2271_v55  ;;  %v12087_v56 = vpop.f32.mrb[68].mxu1 }
 0x250   :  { %13436 = vtanh.f32 %v2276_v53  ;;  %v2286_v57 = vadd.f32 %v12087_v56, %v15038_v47  ;;  %v2280_v59 = vpop.f32.mrb[69].mxu1 }
 0x251   :  { %v2281_v60 = vadd.f32 %v15038_v47, %v2280_v59 }
 0x253   :  { %13438 = vtanh.f32 %v2281_v60  ;;  %v12090_v61 = vpop.f32.mrb[70].mxu1 }
 0x254   :  { %13440 = vtanh.f32 %v2286_v57  ;;  %v2296_v62 = vadd.f32 %v12090_v61, %v15038_v47  ;;  %v2290_v63 = vpop.f32.mrb[71].mxu1 }
 0x255   :  { %v13431_v0 = vpop.eup %13430  ;;  %v2291_v1 = vadd.f32 %v15038_v47, %v2290_v63 }
 0x256   :  { %v13433_v2 = vpop.eup %13432  ;;  %12111 = vmatprep.mubr.msk.f32.mxu0 %vm2145_vm2, %v13431_v0 }
 0x257   :  { %13442 = vtanh.f32 %v2291_v1  ;;  %v12093_v4 = vpop.f32.mrb[72].mxu1  ;;  %12112 = vmatmul.mubr.msk.f32.vlgmr.msra.gmra.mrb[64].mxu0 %vm2145_vm2, %v13433_v2 }
 0x258   :  { %13444 = vtanh.f32 %v2296_v62  ;;  %v2306_v5 = vadd.f32 %v12093_v4, %v15038_v47  ;;  %v2300_v6 = vpop.f32.mrb[73].mxu1  ;;  %13024 = vmatpush3.bf16.msra.mxu0 %v13021_v28 }
 0x259   :  { %v13435_v3 = vpop.eup %13434  ;;  %v2301_v7 = vadd.f32 %v15038_v47, %v2300_v6  ;;  %v10422_v6 = vld [vmem:[%s18272_s5 + $0x38] sm:$0xff] }
 0x25a   :  { %v13437_v8 = vpop.eup %13436  ;;  %12114 = vmatprep.mubr.msk.f32.mxu0 %vm2145_vm2, %v13435_v3 }
 0x25b   :  { %13446 = vtanh.f32 %v2301_v7  ;;  %v12096_v9 = vpop.f32.mrb[74].mxu1  ;;  %12115 = vmatmul.mubr.msk.f32.gmra.mrb[66].mxu0 %vm2145_vm2, %v13437_v8  ;;  %v10441_v7 = vld [vmem:[%s18274_s7 + $0x20] sm:$0xff]  ;;  %v10442_v8 = vld [vmem:[%s18274_s7 + $0x28] sm:$0xff] }
 0x25c   :  { %13448 = vtanh.f32 %v2306_v5  ;;  %v2316_v10 = vadd.f32 %v12096_v9, %v15038_v47  ;;  %v2310_v12 = vpop.f32.mrb[75].mxu1  ;;  %v10421_v5 = vld [vmem:[%s18272_s5 + $0x30] sm:$0xff]  ;;  %v13029_v9 = vpack.c.bf16 %v10442_v8, %v10441_v7 }
 0x25d   :  { %v13439_v13 = vpop.eup %13438  ;;  %v2311_v15 = vadd.f32 %v15038_v47, %v2310_v12  ;;  %v13025_v3 = vpack.c.bf16 %v10422_v6, %v10421_v5 }
 0x25e   :  { %v13441_v16 = vpop.eup %13440  ;;  %12117 = vmatprep.mubr.msk.f32.mxu0 %vm2145_vm2, %v13439_v13  ;;  %13030 = vmatprep.subr.bf16.mxu1 %v13029_v9 }
 0x25f   :  { %13450 = vtanh.f32 %v2311_v15  ;;  %v12099_v17 = vpop.f32.mrb[76].mxu1  ;;  %12118 = vmatmul.mubr.msk.f32.gmra.mrb[68].mxu0 %vm2145_vm2, %v13441_v16  ;;  %13026 = vmatprep.subr.bf16.mxu0 %v13025_v3 }
 0x260   :  { %13452 = vtanh.f32 %v2316_v10  ;;  %v2326_v14 = vadd.f32 %v12099_v17, %v15038_v47  ;;  %v2320_v18 = vpop.f32.mrb[77].mxu1  ;;  %13028 = vmatpush3.bf16.msra.mxu0 %v13025_v3  ;;  %v15157_v10 = vld [vmem:[%s18275_s4 + $0x1] ss:$0 sm:$0xff] }
 0x261   :  { %v13443_v58 = vpop.eup %13442  ;;  %v2321_v20 = vadd.f32 %v15038_v47, %v2320_v18 }
 0x262   :  { %v13445_v21 = vpop.eup %13444  ;;  %12120 = vmatprep.mubr.msk.f32.mxu0 %vm2145_vm2, %v13443_v58 }
 0x263   :  { %13454 = vtanh.f32 %v2321_v20  ;;  %v12102_v11 = vpop.f32.mrb[78].mxu1  ;;  %12121 = vmatmul.mubr.msk.f32.gmra.mrb[70].mxu0 %vm2145_vm2, %v13445_v21 }
 0x264   :  { %13456 = vtanh.f32 %v2326_v14  ;;  %v2336_v23 = vadd.f32 %v12102_v11, %v15038_v47  ;;  %v2330_v24 = vpop.f32.mrb[79].mxu1 }
 0x265   :  { %v13447_v25 = vpop.eup %13446  ;;  %v2331_v26 = vadd.f32 %v15038_v47, %v2330_v24 }
 0x266   :  { %v13449_v22 = vpop.eup %13448  ;;  %12123 = vmatprep.mubr.msk.f32.mxu0 %vm2145_vm2, %v13447_v25 }
 0x267   :  { %13458 = vtanh.f32 %v2331_v26  ;;  %12124 = vmatmul.mubr.msk.f32.gmra.mrb[72].mxu0 %vm2145_vm2, %v13449_v22 }
 0x268   :  { %13460 = vtanh.f32 %v2336_v23 }
 0x269   :  { %v13451_v27 = vpop.eup %13450 }
 0x26a   :  { %v13453_v29 = vpop.eup %13452  ;;  %12126 = vmatprep.mubr.msk.f32.mxu0 %vm2145_vm2, %v13451_v27 }
 0x26b   :  { %12127 = vmatmul.mubr.msk.f32.gmra.mrb[74].mxu0 %vm2145_vm2, %v13453_v29 }
 0x26d   :  { %v13455_v19 = vpop.eup %13454 }
 0x26e   :  { %v13457_v30 = vpop.eup %13456  ;;  %12129 = vmatprep.mubr.msk.f32.mxu0 %vm2145_vm2, %v13455_v19 }
 0x26f   :  { %12130 = vmatmul.mubr.msk.f32.gmra.mrb[76].mxu0 %vm2145_vm2, %v13457_v30 }
 0x271   :  { %v13459_v31 = vpop.eup %13458 }
 0x272   :  { %v13461_v32 = vpop.eup %13460  ;;  %12132 = vmatprep.mubr.msk.f32.mxu0 %vm2145_vm2, %v13459_v31 }
 0x273   :  { %12133 = vmatmul.mubr.msk.f32.gmra.mrb[78].mxu0 %vm2145_vm2, %v13461_v32 }
 0x32a   :  { %v12113_v35 = vpop.f32.mrb[64].mxu0 }
 0x32b   :  { %v2473_v36 = vpop.f32.mrb[65].mxu0 }
 0x32c   :  { %13462 = vtanh.f32 %v2473_v36 }
 0x32d   :  { %13464 = vtanh.f32 %v12113_v35 }
 0x32e   :  { %v12116_v37 = vpop.f32.mrb[66].mxu0 }
 0x32f   :  { %v2483_v38 = vpop.f32.mrb[67].mxu0 }
 0x330   :  { %13466 = vtanh.f32 %v2483_v38 }
 0x331   :  { %13468 = vtanh.f32 %v12116_v37 }
 0x332   :  { %v12119_v39 = vpop.f32.mrb[68].mxu0 }
 0x333   :  { %v2493_v40 = vpop.f32.mrb[69].mxu0 }
 0x334   :  { %13470 = vtanh.f32 %v2493_v40 }
 0x335   :  { %13472 = vtanh.f32 %v12119_v39 }
 0x336   :  { %v15078_v41 = vpop.eup %13462  ;;  %v12122_v42 = vpop.f32.mrb[70].mxu0 }
 0x337   :  { %v15080_v43 = vpop.eup %13464  ;;  %v2503_v44 = vpop.f32.mrb[71].mxu0  ;;  %12137 = vmatprep.mubr.msk.f32.mxu1 %vm1828_vm1, %v15078_v41 }
 0x338   :  { %13474 = vtanh.f32 %v2503_v44  ;;  %12138 = vmatmul.mubr.msk.f32.vlgmr.msra.gmra.mrb[0].mxu1 %vm1828_vm1, %v15080_v43 }
 0x339   :  { %13476 = vtanh.f32 %v12122_v42  ;;  %13032 = vmatpush3.bf16.msra.mxu1 %v13029_v9 }
 0x33a   :  { %v15086_v45 = vpop.eup %13466  ;;  %v12125_v46 = vpop.f32.mrb[72].mxu0 }
 0x33b   :  { %v15088_v47 = vpop.eup %13468  ;;  %v2513_v48 = vpop.f32.mrb[73].mxu0  ;;  %12140 = vmatprep.mubr.msk.f32.mxu1 %vm1828_vm1, %v15086_v45 }
 0x33c   :  { %13478 = vtanh.f32 %v2513_v48  ;;  %12141 = vmatmul.mubr.msk.f32.gmra.mrb[2].mxu1 %vm1828_vm1, %v15088_v47 }
 0x33d   :  { %13480 = vtanh.f32 %v12125_v46 }
 0x33e   :  { %v15094_v49 = vpop.eup %13470  ;;  %v12128_v50 = vpop.f32.mrb[74].mxu0 }
 0x33f   :  { %v15096_v51 = vpop.eup %13472  ;;  %v2523_v52 = vpop.f32.mrb[75].mxu0  ;;  %12143 = vmatprep.mubr.msk.f32.mxu1 %vm1828_vm1, %v15094_v49 }
 0x340   :  { %13482 = vtanh.f32 %v2523_v52  ;;  %12144 = vmatmul.mubr.msk.f32.gmra.mrb[4].mxu1 %vm1828_vm1, %v15096_v51 }
 0x341   :  { %13484 = vtanh.f32 %v12128_v50 }
 0x342   :  { %v15102_v53 = vpop.eup %13474  ;;  %v12131_v54 = vpop.f32.mrb[76].mxu0 }
 0x343   :  { %v15104_v55 = vpop.eup %13476  ;;  %v2533_v56 = vpop.f32.mrb[77].mxu0  ;;  %12146 = vmatprep.mubr.msk.f32.mxu1 %vm1828_vm1, %v15102_v53 }
 0x344   :  { %13486 = vtanh.f32 %v2533_v56  ;;  %12147 = vmatmul.mubr.msk.f32.gmra.mrb[6].mxu1 %vm1828_vm1, %v15104_v55 }
 0x345   :  { %13488 = vtanh.f32 %v12131_v54 }
 0x346   :  { %v15110_v57 = vpop.eup %13478  ;;  %v12134_v59 = vpop.f32.mrb[78].mxu0 }
 0x347   :  { %v15112_v60 = vpop.eup %13480  ;;  %v2543_v61 = vpop.f32.mrb[79].mxu0  ;;  %12149 = vmatprep.mubr.msk.f32.mxu1 %vm1828_vm1, %v15110_v57 }
 0x348   :  { %13490 = vtanh.f32 %v2543_v61  ;;  %12150 = vmatmul.mubr.msk.f32.gmra.mrb[8].mxu1 %vm1828_vm1, %v15112_v60 }
 0x349   :  { %13492 = vtanh.f32 %v12134_v59 }
 0x34a   :  { %v15118_v62 = vpop.eup %13482 }
 0x34b   :  { %v15120_v63 = vpop.eup %13484  ;;  %12152 = vmatprep.mubr.msk.f32.mxu1 %vm1828_vm1, %v15118_v62 }
 0x34c   :  { %12153 = vmatmul.mubr.msk.f32.gmra.mrb[10].mxu1 %vm1828_vm1, %v15120_v63 }
 0x34e   :  { %v15126_v0 = vpop.eup %13486 }
 0x34f   :  { %v15128_v1 = vpop.eup %13488  ;;  %12155 = vmatprep.mubr.msk.f32.mxu1 %vm1828_vm1, %v15126_v0 }
 0x350   :  { %12156 = vmatmul.mubr.msk.f32.gmra.mrb[12].mxu1 %vm1828_vm1, %v15128_v1 }
 0x352   :  { %v15134_v2 = vpop.eup %13490 }
 0x353   :  { %v15136_v4 = vpop.eup %13492  ;;  %12158 = vmatprep.mubr.msk.f32.mxu1 %vm1828_vm1, %v15134_v2 }
 0x354   :  { %12159 = vmatmul.mubr.msk.f32.gmra.mrb[14].mxu1 %vm1828_vm1, %v15136_v4 }
 0x40b   :  { %v12139_v12 = vpop.f32.mrb[0].mxu1 }
 0x40c   :  { %v13149_v13 = vadd.f32 %v12139_v12, %v15157_v10  ;;  %v2684_v15 = vpop.f32.mrb[1].mxu1 }
 0x40d   :  { %v13150_v16 = vadd.f32 %v15157_v10, %v2684_v15 }
 0x40e   :  { %v2796_v17 = vmin.f32 %v13149_v13, 0.0  ;;  %vm2780_vm7 = vcmp.gt.f32.partialorder %v13149_v13, 0.0 }
 0x40f   :  { %v2795_v14 = vmin.f32 %v13150_v16, 0.0  ;;  %v12142_v18 = vpop.f32.mrb[2].mxu1  ;;  %vm2779_vm6 = vcmp.gt.f32.partialorder %v13150_v16, 0.0 }
 0x410   :  { %v2813_v58 = vmul.f32 1.442695, %v2796_v17  ;;  %v15162_v20 = vadd.f32 %v12142_v18, %v15157_v10  ;;  %v2694_v21 = vpop.f32.mrb[3].mxu1 }
 0x411   :  { %v2811_v11 = vmul.f32 1.442695, %v2795_v14  ;;  %v15165_v23 = vadd.f32 %v15157_v10, %v2694_v21 }
 0x412   :  { %13494 = vpow2.f32 %v2813_v58  ;;  %v2798_v24 = vmin.f32 %v15162_v20, 0.0  ;;  %vm2782_vm9 = vcmp.gt.f32.partialorder %v15162_v20, 0.0 }
 0x413   :  { %13496 = vpow2.f32 %v2811_v11  ;;  %v2797_v25 = vmin.f32 %v15165_v23, 0.0  ;;  %v12145_v26 = vpop.f32.mrb[4].mxu1  ;;  %vm2781_vm8 = vcmp.gt.f32.partialorder %v15165_v23, 0.0 }
 0x414   :  { %v2817_v22 = vmul.f32 1.442695, %v2798_v24  ;;  %v15170_v27 = vadd.f32 %v12145_v26, %v15157_v10  ;;  %v2704_v29 = vpop.f32.mrb[5].mxu1 }
 0x415   :  { %v2815_v19 = vmul.f32 1.442695, %v2797_v25  ;;  %v15173_v30 = vadd.f32 %v15157_v10, %v2704_v29 }
 0x416   :  { %13498 = vpow2.f32 %v2817_v22  ;;  %v2800_v31 = vmin.f32 %v15170_v27, 0.0  ;;  %vm2784_vm11 = vcmp.gt.f32.partialorder %v15170_v27, 0.0 }
 0x417   :  { %13500 = vpow2.f32 %v2815_v19  ;;  %v2799_v32 = vmin.f32 %v15173_v30, 0.0  ;;  %v12148_v33 = vpop.f32.mrb[6].mxu1  ;;  %vm2783_vm10 = vcmp.gt.f32.partialorder %v15173_v30, 0.0 }
 0x418   :  { %v2821_v34 = vmul.f32 1.442695, %v2800_v31  ;;  %v15178_v28 = vadd.f32 %v12148_v33, %v15157_v10  ;;  %v2714_v35 = vpop.f32.mrb[7].mxu1 }
 0x419   :  { %v2819_v36 = vmul.f32 1.442695, %v2799_v32  ;;  %v15181_v37 = vadd.f32 %v15157_v10, %v2714_v35 }
 0x41a   :  { %13502 = vpow2.f32 %v2821_v34  ;;  %v2802_v38 = vmin.f32 %v15178_v28, 0.0  ;;  %vm2786_vm13 = vcmp.gt.f32.partialorder %v15178_v28, 0.0 }
 0x41b   :  { %13504 = vpow2.f32 %v2819_v36  ;;  %v2801_v39 = vmin.f32 %v15181_v37, 0.0  ;;  %v12151_v40 = vpop.f32.mrb[8].mxu1  ;;  %vm2785_vm12 = vcmp.gt.f32.partialorder %v15181_v37, 0.0 }
 0x41c   :  { %v13495_v42 = vpop.eup %13494  ;;  %v2825_v44 = vmul.f32 1.442695, %v2802_v38  ;;  %v15186_v46 = vadd.f32 %v12151_v40, %v15157_v10  ;;  %v2724_v48 = vpop.f32.mrb[9].mxu1 }
 0x41d   :  { %v13497_v50 = vpop.eup %13496  ;;  %v10404_v52 = vadd.f32 -1.0, %v13495_v42  ;;  %v2823_v54 = vmul.f32 1.442695, %v2801_v39  ;;  %v15189_v56 = vadd.f32 %v15157_v10, %v2724_v48 }
 0x41e   :  { %13506 = vpow2.f32 %v2825_v44  ;;  %v2804_v59 = vmin.f32 %v15186_v46, 0.0  ;;  %v10403_v61 = vadd.f32 -1.0, %v13497_v50  ;;  %vm2788_vm15 = vcmp.gt.f32.partialorder %v15186_v46, 0.0 }
 0x41f   :  { %13508 = vpow2.f32 %v2823_v54  ;;  %v2803_v5 = vmin.f32 %v15189_v56, 0.0  ;;  %v12154_v6 = vpop.f32.mrb[10].mxu1  ;;  %v2860_v17 = vsel %vm2780_vm7, %v13149_v13, %v10404_v52  ;;  %vm2787_vm14 = vcmp.gt.f32.partialorder %v15189_v56, 0.0 }
 0x420   :  { %v13499_v3 = vpop.eup %13498  ;;  %v2829_v7 = vmul.f32 1.442695, %v2804_v59  ;;  %v15194_v8 = vadd.f32 %v12154_v6, %v15157_v10  ;;  %v2734_v9 = vpop.f32.mrb[11].mxu1  ;;  %v2859_v12 = vsel %vm2779_vm6, %v13150_v16, %v10403_v61 }
 0x421   :  { %v13501_v15 = vpop.eup %13500  ;;  %v2827_v14 = vmul.f32 1.442695, %v2803_v5  ;;  %v15197_v18 = vadd.f32 %v15157_v10, %v2734_v9  ;;  %12169 = vmatprep.mubr.msk.f32.mxu0 %vm2145_vm2, %v2859_v12  ;;  %v10406_v58 = vadd.f32 -1.0, %v13499_v3 }
 0x422   :  { %13510 = vpow2.f32 %v2829_v7  ;;  %v2806_v21 = vmin.f32 %v15194_v8, 0.0  ;;  %12170 = vmatmul.mubr.msk.f32.vlgmr.msra.gmra.mrb[80].mxu0 %vm2145_vm2, %v2860_v17  ;;  %v10405_v11 = vadd.f32 -1.0, %v13501_v15  ;;  %vm2790_vm4 = vcmp.gt.f32.partialorder %v15194_v8, 0.0 }
 0x423   :  { %13512 = vpow2.f32 %v2827_v14  ;;  %v2805_v16 = vmin.f32 %v15197_v18, 0.0  ;;  %v12157_v24 = vpop.f32.mrb[12].mxu1  ;;  %v2862_v33 = vsel %vm2782_vm9, %v15162_v20, %v10406_v58  ;;  %vm2789_vm3 = vcmp.gt.f32.partialorder %v15197_v18, 0.0 }
 0x424   :  { %v13503_v13 = vpop.eup %13502  ;;  %v2833_v25 = vmul.f32 1.442695, %v2806_v21  ;;  %v15206_v26 = vadd.f32 %v12157_v24, %v15157_v10  ;;  %v2744_v22 = vpop.f32.mrb[13].mxu1  ;;  %v2861_v29 = vsel %vm2781_vm8, %v15165_v23, %v10405_v11 }
 0x425   :  { %v13505_v19 = vpop.eup %13504  ;;  %v2831_v31 = vmul.f32 1.442695, %v2805_v16  ;;  %v15210_v32 = vadd.f32 %v15157_v10, %v2744_v22  ;;  %12172 = vmatprep.mubr.msk.f32.mxu0 %vm2145_vm2, %v2861_v29  ;;  %v10408_v34 = vadd.f32 -1.0, %v13503_v13 }
 0x426   :  { %13514 = vpow2.f32 %v2833_v25  ;;  %v2808_v35 = vmin.f32 %v15206_v26, 0.0  ;;  %12173 = vmatmul.mubr.msk.f32.gmra.mrb[82].mxu0 %vm2145_vm2, %v2862_v33  ;;  %v10407_v36 = vadd.f32 -1.0, %v13505_v19  ;;  %vm2792_vm6 = vcmp.gt.f32.partialorder %v15206_v26, 0.0 }
 0x427   :  { %13516 = vpow2.f32 %v2831_v31  ;;  %v2807_v23 = vmin.f32 %v15210_v32, 0.0  ;;  %v12160_v38 = vpop.f32.mrb[14].mxu1  ;;  %v2864_v54 = vsel %vm2784_vm11, %v15170_v27, %v10408_v34  ;;  %vm2791_vm5 = vcmp.gt.f32.partialorder %v15210_v32, 0.0 }
 0x428   :  { %v13507_v39 = vpop.eup %13506  ;;  %v2837_v40 = vmul.f32 1.442695, %v2808_v35  ;;  %v15220_v42 = vadd.f32 %v12160_v38, %v15157_v10  ;;  %v2754_v20 = vpop.f32.mrb[15].mxu1  ;;  %v2863_v44 = vsel %vm2783_vm10, %v15173_v30, %v10407_v36  ;;  %v10461_v35 = vld [vmem:[%s18271_s3 + $0x10] sm:$0xff]  ;;  %v15268_v36 = vld [vmem:[%s18276_s6 + $0x1] ss:$0 sm:$0xff] }
 0x429   :  { %v13509_v48 = vpop.eup %13508  ;;  %v2835_v50 = vmul.f32 1.442695, %v2807_v23  ;;  %v13164_v52 = vadd.f32 %v15157_v10, %v2754_v20  ;;  %12175 = vmatprep.mubr.msk.f32.mxu0 %vm2145_vm2, %v2863_v44  ;;  %v10410_v59 = vadd.f32 -1.0, %v13507_v39  ;;  %12225 = vmatprep.subr.mxu0 %v10461_v35 }
 0x42a   :  { %13518 = vpow2.f32 %v2837_v40  ;;  %v2810_v61 = vmin.f32 %v15220_v42, 0.0  ;;  %12176 = vmatmul.mubr.msk.f32.gmra.mrb[84].mxu0 %vm2145_vm2, %v2864_v54  ;;  %v10409_v5 = vadd.f32 -1.0, %v13509_v48  ;;  %vm2794_vm8 = vcmp.gt.f32.partialorder %v15220_v42, 0.0 }
 0x42b   :  { %13520 = vpow2.f32 %v2835_v50  ;;  %v2809_v6 = vmin.f32 %v13164_v52, 0.0  ;;  %v2866_v27 = vsel %vm2786_vm13, %v15178_v28, %v10410_v59  ;;  %vm2793_vm7 = vcmp.gt.f32.partialorder %v13164_v52, 0.0  ;;  %12226 = vmatpush3.msra.mxu0 %v10461_v35 }
 0x42c   :  { %v13511_v30 = vpop.eup %13510  ;;  %v2841_v3 = vmul.f32 1.442695, %v2810_v61  ;;  %v2865_v10 = vsel %vm2785_vm12, %v15181_v37, %v10409_v5 }
 0x42d   :  { %v13513_v7 = vpop.eup %13512  ;;  %v2839_v9 = vmul.f32 1.442695, %v2809_v6  ;;  %12178 = vmatprep.mubr.msk.f32.mxu0 %vm2145_vm2, %v2865_v10  ;;  %v10412_v12 = vadd.f32 -1.0, %v13511_v30 }
 0x42e   :  { %13522 = vpow2.f32 %v2841_v3  ;;  %12179 = vmatmul.mubr.msk.f32.gmra.mrb[86].mxu0 %vm2145_vm2, %v2866_v27  ;;  %v10411_v15 = vadd.f32 -1.0, %v13513_v7 }
 0x42f   :  { %13524 = vpow2.f32 %v2839_v9  ;;  %v2868_v58 = vsel %vm2788_vm15, %v15186_v46, %v10412_v12 }
 0x430   :  { %v13515_v17 = vpop.eup %13514  ;;  %v2867_v14 = vsel %vm2787_vm14, %v15189_v56, %v10411_v15 }
 0x431   :  { %v13517_v37 = vpop.eup %13516  ;;  %12181 = vmatprep.mubr.msk.f32.mxu0 %vm2145_vm2, %v2867_v14  ;;  %v10414_v21 = vadd.f32 -1.0, %v13515_v17 }
 0x432   :  { %12182 = vmatmul.mubr.msk.f32.gmra.mrb[88].mxu0 %vm2145_vm2, %v2868_v58  ;;  %v10413_v28 = vadd.f32 -1.0, %v13517_v37 }
 0x433   :  { %v2870_v56 = vsel %vm2790_vm4, %v15194_v8, %v10414_v21 }
 0x434   :  { %v13519_v11 = vpop.eup %13518  ;;  %v2869_v16 = vsel %vm2789_vm3, %v15197_v18, %v10413_v28 }
 0x435   :  { %v13521_v24 = vpop.eup %13520  ;;  %12184 = vmatprep.mubr.msk.f32.mxu0 %vm2145_vm2, %v2869_v16  ;;  %v10416_v13 = vadd.f32 -1.0, %v13519_v11 }
 0x436   :  { %12185 = vmatmul.mubr.msk.f32.gmra.mrb[90].mxu0 %vm2145_vm2, %v2870_v56  ;;  %v10415_v46 = vadd.f32 -1.0, %v13521_v24 }
 0x437   :  { %v2872_v18 = vsel %vm2792_vm6, %v15206_v26, %v10416_v13  ;;  %v10444_v26 = vld [vmem:[%s18274_s7 + $0x38] sm:$0xff] }
 0x438   :  { %v13523_v25 = vpop.eup %13522  ;;  %v2871_v22 = vsel %vm2791_vm5, %v15210_v32, %v10415_v46  ;;  %v10443_v32 = vld [vmem:[%s18274_s7 + $0x30] sm:$0xff] }
 0x439   :  { %v13525_v29 = vpop.eup %13524  ;;  %12187 = vmatprep.mubr.msk.f32.mxu0 %vm2145_vm2, %v2871_v22  ;;  %v10418_v19 = vadd.f32 -1.0, %v13523_v25  ;;  %v13033_v34 = vpack.c.bf16 %v10444_v26, %v10443_v32 }
 0x43a   :  { %12188 = vmatmul.mubr.msk.f32.gmra.mrb[92].mxu0 %vm2145_vm2, %v2872_v18  ;;  %v10417_v8 = vadd.f32 -1.0, %v13525_v29 }
 0x43b   :  { %v2874_v33 = vsel %vm2794_vm8, %v15220_v42, %v10418_v19  ;;  %13034 = vmatprep.subr.bf16.mxu1 %v13033_v34 }
 0x43c   :  { %v2873_v31 = vsel %vm2793_vm7, %v13164_v52, %v10417_v8  ;;  %13036 = vmatpush3.bf16.msra.mxu1 %v13033_v34 }
 0x43d   :  { %12190 = vmatprep.mubr.msk.f32.mxu0 %vm2145_vm2, %v2873_v31 }
 0x43e   :  { %12191 = vmatmul.mubr.msk.f32.gmra.mrb[94].mxu0 %vm2145_vm2, %v2874_v33 }
 0x4f5   :  { %v12171_v23 = vpop.f32.mrb[80].mxu0 }
 0x4f6   :  { %v3008_v38 = vadd.f32 %v12171_v23, %v15268_v36  ;;  %v3002_v39 = vpop.f32.mrb[81].mxu0 }
 0x4f7   :  { %v3003_v40 = vadd.f32 %v15268_v36, %v3002_v39 }
 0x4f9   :  { %13526 = vtanh.f32 %v3003_v40  ;;  %v12174_v42 = vpop.f32.mrb[82].mxu0 }
 0x4fa   :  { %13528 = vtanh.f32 %v3008_v38  ;;  %v3018_v20 = vadd.f32 %v12174_v42, %v15268_v36  ;;  %v3012_v44 = vpop.f32.mrb[83].mxu0 }
 0x4fb   :  { %v3013_v48 = vadd.f32 %v15268_v36, %v3012_v44 }
 0x4fd   :  { %13530 = vtanh.f32 %v3013_v48  ;;  %v12177_v50 = vpop.f32.mrb[84].mxu0 }
 0x4fe   :  { %13532 = vtanh.f32 %v3018_v20  ;;  %v3028_v52 = vadd.f32 %v12177_v50, %v15268_v36  ;;  %v3022_v54 = vpop.f32.mrb[85].mxu0 }
 0x4ff   :  { %v3023_v59 = vadd.f32 %v15268_v36, %v3022_v54 }
 0x501   :  { %13534 = vtanh.f32 %v3023_v59  ;;  %v12180_v61 = vpop.f32.mrb[86].mxu0 }
 0x502   :  { %13536 = vtanh.f32 %v3028_v52  ;;  %v3038_v5 = vadd.f32 %v12180_v61, %v15268_v36  ;;  %v3032_v6 = vpop.f32.mrb[87].mxu0 }
 0x503   :  { %v13527_v30 = vpop.eup %13526  ;;  %v3033_v3 = vadd.f32 %v15268_v36, %v3032_v6 }
 0x504   :  { %v13529_v10 = vpop.eup %13528  ;;  %12201 = vmatprep.mubr.msk.f32.mxu1 %vm2145_vm2, %v13527_v30 }
 0x505   :  { %13538 = vtanh.f32 %v3033_v3  ;;  %v12183_v7 = vpop.f32.mrb[88].mxu0  ;;  %12202 = vmatmul.mubr.msk.f32.vlgmr.msra.gmra.mrb[80].mxu1 %vm2145_vm2, %v13529_v10 }
 0x506   :  { %13540 = vtanh.f32 %v3038_v5  ;;  %v3048_v9 = vadd.f32 %v12183_v7, %v15268_v36  ;;  %v3042_v27 = vpop.f32.mrb[89].mxu0 }
 0x507   :  { %v13531_v12 = vpop.eup %13530  ;;  %v3043_v15 = vadd.f32 %v15268_v36, %v3042_v27 }
 0x508   :  { %v13533_v17 = vpop.eup %13532  ;;  %12204 = vmatprep.mubr.msk.f32.mxu1 %vm2145_vm2, %v13531_v12 }
 0x509   :  { %13542 = vtanh.f32 %v3043_v15  ;;  %v12186_v14 = vpop.f32.mrb[90].mxu0  ;;  %12205 = vmatmul.mubr.msk.f32.gmra.mrb[82].mxu1 %vm2145_vm2, %v13533_v17 }
 0x50a   :  { %13544 = vtanh.f32 %v3048_v9  ;;  %v3058_v37 = vadd.f32 %v12186_v14, %v15268_v36  ;;  %v3052_v58 = vpop.f32.mrb[91].mxu0 }
 0x50b   :  { %v13535_v21 = vpop.eup %13534  ;;  %v3053_v28 = vadd.f32 %v15268_v36, %v3052_v58  ;;  %v10495_v58 = vld [vmem:[%s18272_s5 + $0x48] sm:$0xff] }
 0x50c   :  { %v13537_v11 = vpop.eup %13536  ;;  %12207 = vmatprep.mubr.msk.f32.mxu1 %vm2145_vm2, %v13535_v21 }
 0x50d   :  { %13546 = vtanh.f32 %v3053_v28  ;;  %v12189_v16 = vpop.f32.mrb[92].mxu0  ;;  %12208 = vmatmul.mubr.msk.f32.gmra.mrb[84].mxu1 %vm2145_vm2, %v13537_v11 }
 0x50e   :  { %13548 = vtanh.f32 %v3058_v37  ;;  %v3068_v24 = vadd.f32 %v12189_v16, %v15268_v36  ;;  %v3062_v56 = vpop.f32.mrb[93].mxu0  ;;  %v10494_v37 = vld [vmem:[%s18272_s5 + $0x40] sm:$0xff] }
 0x50f   :  { %v13539_v13 = vpop.eup %13538  ;;  %v3063_v46 = vadd.f32 %v15268_v36, %v3062_v56  ;;  %v13037_v28 = vpack.c.bf16 %v10495_v58, %v10494_v37 }
 0x510   :  { %v13541_v25 = vpop.eup %13540  ;;  %12210 = vmatprep.mubr.msk.f32.mxu1 %vm2145_vm2, %v13539_v13 }
 0x511   :  { %13550 = vtanh.f32 %v3063_v46  ;;  %v12192_v22 = vpop.f32.mrb[94].mxu0  ;;  %12211 = vmatmul.mubr.msk.f32.gmra.mrb[86].mxu1 %vm2145_vm2, %v13541_v25  ;;  %13038 = vmatprep.subr.bf16.mxu1 %v13037_v28  ;;  %v10496_v25 = vld [vmem:[%s18272_s5 + $0x50] sm:$0xff] }
 0x512   :  { %13552 = vtanh.f32 %v3068_v24  ;;  %v3078_v29 = vadd.f32 %v12192_v22, %v15268_v36  ;;  %v3072_v18 = vpop.f32.mrb[95].mxu0  ;;  %13040 = vmatpush3.bf16.msra.mxu1 %v13037_v28  ;;  %v10497_v22 = vld [vmem:[%s18272_s5 + $0x58] sm:$0xff] }
 0x513   :  { %v13543_v19 = vpop.eup %13542  ;;  %v3073_v8 = vadd.f32 %v15268_v36, %v3072_v18  ;;  %v10516_v18 = vld [vmem:[%s18274_s7 + $0x40] sm:$0xff] }
 0x514   :  { %v13545_v31 = vpop.eup %13544  ;;  %12213 = vmatprep.mubr.msk.f32.mxu1 %vm2145_vm2, %v13543_v19  ;;  %v10517_v19 = vld [vmem:[%s18274_s7 + $0x48] sm:$0xff] }
 0x515   :  { %13554 = vtanh.f32 %v3073_v8  ;;  %12214 = vmatmul.mubr.msk.f32.gmra.mrb[88].mxu1 %vm2145_vm2, %v13545_v31  ;;  %v13045_v8 = vpack.c.bf16 %v10517_v19, %v10516_v18  ;;  %v15419_v31 = vld [vmem:[%s18275_s4 + $0x2] ss:$0 sm:$0xff] }
 0x516   :  { %13556 = vtanh.f32 %v3078_v29  ;;  %v13041_v29 = vpack.c.bf16 %v10497_v22, %v10496_v25 }
 0x517   :  { %v13547_v33 = vpop.eup %13546  ;;  %13046 = vmatprep.subr.bf16.mxu0 %v13045_v8 }
 0x518   :  { %v13549_v32 = vpop.eup %13548  ;;  %12216 = vmatprep.mubr.msk.f32.mxu1 %vm2145_vm2, %v13547_v33  ;;  %13042 = vmatprep.subr.bf16.mxu1 %v13041_v29 }
 0x519   :  { %12217 = vmatmul.mubr.msk.f32.gmra.mrb[90].mxu1 %vm2145_vm2, %v13549_v32 }
 0x51a   :  { %13044 = vmatpush3.bf16.msra.mxu1 %v13041_v29 }
 0x51b   :  { %v13551_v26 = vpop.eup %13550 }
 0x51c   :  { %v13553_v34 = vpop.eup %13552  ;;  %12219 = vmatprep.mubr.msk.f32.mxu1 %vm2145_vm2, %v13551_v26 }
 0x51d   :  { %12220 = vmatmul.mubr.msk.f32.gmra.mrb[92].mxu1 %vm2145_vm2, %v13553_v34 }
 0x51f   :  { %v13555_v35 = vpop.eup %13554 }
 0x520   :  { %v13557_v36 = vpop.eup %13556  ;;  %12222 = vmatprep.mubr.msk.f32.mxu1 %vm2145_vm2, %v13555_v35 }
 0x521   :  { %12223 = vmatmul.mubr.msk.f32.gmra.mrb[94].mxu1 %vm2145_vm2, %v13557_v36 }
 0x5d8   :  { %v12203_v23 = vpop.f32.mrb[80].mxu1 }
 0x5d9   :  { %13558 = vtanh.f32 %v12203_v23  ;;  %v3216_v38 = vpop.f32.mrb[81].mxu1 }
 0x5da   :  { %13560 = vtanh.f32 %v3216_v38 }
 0x5dc   :  { %v12206_v39 = vpop.f32.mrb[82].mxu1 }
 0x5dd   :  { %13562 = vtanh.f32 %v12206_v39  ;;  %v3226_v40 = vpop.f32.mrb[83].mxu1 }
 0x5de   :  { %13564 = vtanh.f32 %v3226_v40 }
 0x5e0   :  { %v12209_v42 = vpop.f32.mrb[84].mxu1 }
 0x5e1   :  { %13566 = vtanh.f32 %v12209_v42  ;;  %v3236_v20 = vpop.f32.mrb[85].mxu1 }
 0x5e2   :  { %13568 = vtanh.f32 %v3236_v20 }
 0x5e3   :  { %v15302_v44 = vpop.eup %13558 }
 0x5e4   :  { %18359 = vst [vmem:[#allocation2_spill] sm:$0xff] %v15302_v44  ;;  %v15304_v48 = vpop.eup %13560  ;;  %9571 = vrot.lane.b32.xlu1 %v15302_v44, %s14166_s25  ;;  %v12212_v50 = vpop.f32.mrb[86].mxu1 }
 0x5e5   :  { %18360 = vst [vmem:[#allocation3_spill] sm:$0xff] %v15304_v48  ;;  %13570 = vtanh.f32 %v12212_v50  ;;  %9569 = vrot.lane.b32.xlu0 %v15304_v48, %s14166_s25  ;;  %v3246_v52 = vpop.f32.mrb[87].mxu1  ;;  %12227 = vmatprep.mubr.msk.f32.mxu0 %vm1828_vm1, %v15304_v48 }
 0x5e6   :  { %13572 = vtanh.f32 %v3246_v52  ;;  %12228 = vmatmul.mubr.msk.f32.vlgmr.msra.gmra.mrb[16].mxu0 %vm1828_vm1, %v15302_v44 }
 0x5e7   :  { %v15314_v54 = vpop.eup %13562  ;;  %13048 = vmatpush3.bf16.msra.mxu0 %v13045_v8 }
 0x5e8   :  { %18361 = vst [vmem:[#allocation4_spill] sm:$0xff] %v15314_v54  ;;  %v15316_v59 = vpop.eup %13564  ;;  %9575 = vrot.lane.b32.xlu1 %v15314_v54, %s14166_s25  ;;  %v12215_v61 = vpop.f32.mrb[88].mxu1 }
 0x5e9   :  { %18362 = vst [vmem:[#allocation5_spill] sm:$0xff] %v15316_v59  ;;  %13574 = vtanh.f32 %v12215_v61  ;;  %9573 = vrot.lane.b32.xlu0 %v15316_v59, %s14166_s25  ;;  %v3256_v5 = vpop.f32.mrb[89].mxu1  ;;  %12230 = vmatprep.mubr.msk.f32.mxu0 %vm1828_vm1, %v15316_v59 }
 0x5ea   :  { %13576 = vtanh.f32 %v3256_v5  ;;  %12231 = vmatmul.mubr.msk.f32.gmra.mrb[18].mxu0 %vm1828_vm1, %v15314_v54 }
 0x5eb   :  { %v15326_v6 = vpop.eup %13566 }
 0x5ec   :  { %18363 = vst [vmem:[#allocation6_spill] sm:$0xff] %v15326_v6  ;;  %v15328_v30 = vpop.eup %13568  ;;  %9579 = vrot.lane.b32.xlu1 %v15326_v6, %s14166_s25  ;;  %v12218_v3 = vpop.f32.mrb[90].mxu1 }
 0x5ed   :  { %18364 = vst [vmem:[#allocation7_spill] sm:$0xff] %v15328_v30  ;;  %13578 = vtanh.f32 %v12218_v3  ;;  %9577 = vrot.lane.b32.xlu0 %v15328_v30, %s14166_s25  ;;  %v3266_v10 = vpop.f32.mrb[91].mxu1  ;;  %12233 = vmatprep.mubr.msk.f32.mxu0 %vm1828_vm1, %v15328_v30 }
 0x5ee   :  { %13580 = vtanh.f32 %v3266_v10  ;;  %12234 = vmatmul.mubr.msk.f32.gmra.mrb[20].mxu0 %vm1828_vm1, %v15326_v6 }
 0x5ef   :  { %v15338_v7 = vpop.eup %13570 }
 0x5f0   :  { %18365 = vst [vmem:[#allocation8_spill] sm:$0xff] %v15338_v7  ;;  %v15340_v9 = vpop.eup %13572  ;;  %9583 = vrot.lane.b32.xlu1 %v15338_v7, %s14166_s25  ;;  %v12221_v27 = vpop.f32.mrb[92].mxu1 }
 0x5f1   :  { %18366 = vst [vmem:[#allocation9_spill] sm:$0xff] %v15340_v9  ;;  %13582 = vtanh.f32 %v12221_v27  ;;  %9581 = vrot.lane.b32.xlu0 %v15340_v9, %s14166_s25  ;;  %v3276_v12 = vpop.f32.mrb[93].mxu1  ;;  %12236 = vmatprep.mubr.msk.f32.mxu0 %vm1828_vm1, %v15340_v9 }
 0x5f2   :  { %13584 = vtanh.f32 %v3276_v12  ;;  %12237 = vmatmul.mubr.msk.f32.gmra.mrb[22].mxu0 %vm1828_vm1, %v15338_v7 }
 0x5f3   :  { %v15350_v15 = vpop.eup %13574 }
 0x5f4   :  { %18367 = vst [vmem:[#allocation10_spill] sm:$0xff] %v15350_v15  ;;  %v15352_v17 = vpop.eup %13576  ;;  %9587 = vrot.lane.b32.xlu1 %v15350_v15, %s14166_s25  ;;  %v12224_v14 = vpop.f32.mrb[94].mxu1 }
 0x5f5   :  { %18368 = vst [vmem:[#allocation11_spill] sm:$0xff] %v15352_v17  ;;  %13586 = vtanh.f32 %v12224_v14  ;;  %9585 = vrot.lane.b32.xlu0 %v15352_v17, %s14166_s25  ;;  %v3286_v21 = vpop.f32.mrb[95].mxu1  ;;  %12239 = vmatprep.mubr.msk.f32.mxu0 %vm1828_vm1, %v15352_v17 }
 0x5f6   :  { %13588 = vtanh.f32 %v3286_v21  ;;  %12240 = vmatmul.mubr.msk.f32.gmra.mrb[24].mxu0 %vm1828_vm1, %v15350_v15 }
 0x5f7   :  { %v15368_v11 = vpop.eup %13578 }
 0x5f8   :  { %18369 = vst [vmem:[#allocation12_spill] sm:$0xff] %v15368_v11  ;;  %v15370_v16 = vpop.eup %13580  ;;  %9591 = vrot.lane.b32.xlu1 %v15368_v11, %s14166_s25 }
 0x5f9   :  { %18370 = vst [vmem:[#allocation13_spill] sm:$0xff] %v15370_v16  ;;  %9589 = vrot.lane.b32.xlu0 %v15370_v16, %s14166_s25  ;;  %12242 = vmatprep.mubr.msk.f32.mxu0 %vm1828_vm1, %v15370_v16 }
 0x5fa   :  { %12243 = vmatmul.mubr.msk.f32.gmra.mrb[26].mxu0 %vm1828_vm1, %v15368_v11 }
 0x5fb   :  { %v15380_v24 = vpop.eup %13582 }
 0x5fc   :  { %18371 = vst [vmem:[#allocation14_spill] sm:$0xff] %v15380_v24  ;;  %v15382_v56 = vpop.eup %13584  ;;  %9595 = vrot.lane.b32.xlu1 %v15380_v24, %s14166_s25 }
 0x5fd   :  { %18372 = vst [vmem:[#allocation15_spill] sm:$0xff] %v15382_v56  ;;  %9593 = vrot.lane.b32.xlu0 %v15382_v56, %s14166_s25  ;;  %12245 = vmatprep.mubr.msk.f32.mxu0 %vm1828_vm1, %v15382_v56 }
 0x5fe   :  { %12246 = vmatmul.mubr.msk.f32.gmra.mrb[28].mxu0 %vm1828_vm1, %v15380_v24 }
 0x5ff   :  { %v15392_v13 = vpop.eup %13586 }
 0x600   :  { %18373 = vst [vmem:[#allocation16_spill] sm:$0xff] %v15392_v13  ;;  %v15394_v46 = vpop.eup %13588  ;;  %9599 = vrot.lane.b32.xlu1 %v15392_v13, %s14166_s25 }
 0x601   :  { %18374 = vst [vmem:[#allocation17_spill] sm:$0xff] %v15394_v46  ;;  %9597 = vrot.lane.b32.xlu0 %v15394_v46, %s14166_s25  ;;  %12248 = vmatprep.mubr.msk.f32.mxu0 %vm1828_vm1, %v15394_v46 }
 0x602   :  { %12249 = vmatmul.mubr.msk.f32.gmra.mrb[30].mxu0 %vm1828_vm1, %v15392_v13 }
 0x6b9   :  { %v12229_v33 = vpop.f32.mrb[16].mxu0 }
 0x6ba   :  { %v13165_v32 = vadd.f32 %v12229_v33, %v15419_v31  ;;  %v3427_v26 = vpop.f32.mrb[17].mxu0 }
 0x6bb   :  { %v13166_v34 = vadd.f32 %v15419_v31, %v3427_v26 }
 0x6bc   :  { %v3539_v35 = vmin.f32 %v13165_v32, 0.0  ;;  %vm3523_vm10 = vcmp.gt.f32.partialorder %v13165_v32, 0.0 }
 0x6bd   :  { %v3538_v36 = vmin.f32 %v13166_v34, 0.0  ;;  %v12232_v23 = vpop.f32.mrb[18].mxu0  ;;  %vm3522_vm9 = vcmp.gt.f32.partialorder %v13166_v34, 0.0 }
 0x6be   :  { %v3556_v38 = vmul.f32 1.442695, %v3539_v35  ;;  %v15424_v39 = vadd.f32 %v12232_v23, %v15419_v31  ;;  %v3437_v40 = vpop.f32.mrb[19].mxu0 }
 0x6bf   :  { %v3554_v42 = vmul.f32 1.442695, %v3538_v36  ;;  %v15427_v20 = vadd.f32 %v15419_v31, %v3437_v40 }
 0x6c0   :  { %13590 = vpow2.f32 %v3556_v38  ;;  %v3541_v50 = vmin.f32 %v15424_v39, 0.0  ;;  %vm3525_vm12 = vcmp.gt.f32.partialorder %v15424_v39, 0.0 }
 0x6c1   :  { %13592 = vpow2.f32 %v3554_v42  ;;  %v3540_v52 = vmin.f32 %v15427_v20, 0.0  ;;  %v12235_v61 = vpop.f32.mrb[20].mxu0  ;;  %vm3524_vm11 = vcmp.gt.f32.partialorder %v15427_v20, 0.0 }
 0x6c2   :  { %v3560_v5 = vmul.f32 1.442695, %v3541_v50  ;;  %v15432_v3 = vadd.f32 %v12235_v61, %v15419_v31  ;;  %v3447_v10 = vpop.f32.mrb[21].mxu0 }
 0x6c3   :  { %v3558_v27 = vmul.f32 1.442695, %v3540_v52  ;;  %v15435_v12 = vadd.f32 %v15419_v31, %v3447_v10 }
 0x6c4   :  { %13594 = vpow2.f32 %v3560_v5  ;;  %v3543_v14 = vmin.f32 %v15432_v3, 0.0  ;;  %vm3527_vm14 = vcmp.gt.f32.partialorder %v15432_v3, 0.0 }
 0x6c5   :  { %13596 = vpow2.f32 %v3558_v27  ;;  %v3542_v37 = vmin.f32 %v15435_v12, 0.0  ;;  %v12238_v58 = vpop.f32.mrb[22].mxu0  ;;  %vm3526_vm13 = vcmp.gt.f32.partialorder %v15435_v12, 0.0 }
 0x6c6   :  { %v3564_v21 = vmul.f32 1.442695, %v3543_v14  ;;  %v15440_v28 = vadd.f32 %v12238_v58, %v15419_v31  ;;  %v3457_v25 = vpop.f32.mrb[23].mxu0 }
 0x6c7   :  { %v3562_v22 = vmul.f32 1.442695, %v3542_v37  ;;  %v15443_v29 = vadd.f32 %v15419_v31, %v3457_v25 }
 0x6c8   :  { %13598 = vpow2.f32 %v3564_v21  ;;  %v3545_v18 = vmin.f32 %v15440_v28, 0.0  ;;  %vm3529_vm3 = vcmp.gt.f32.partialorder %v15440_v28, 0.0 }
 0x6c9   :  { %13600 = vpow2.f32 %v3562_v22  ;;  %v3544_v19 = vmin.f32 %v15443_v29, 0.0  ;;  %v12241_v8 = vpop.f32.mrb[24].mxu0  ;;  %vm3528_vm15 = vcmp.gt.f32.partialorder %v15443_v29, 0.0 }
 0x6ca   :  { %v13591_v33 = vpop.eup %13590  ;;  %v3568_v26 = vmul.f32 1.442695, %v3545_v18  ;;  %v15448_v35 = vadd.f32 %v12241_v8, %v15419_v31  ;;  %v3467_v36 = vpop.f32.mrb[25].mxu0 }
 0x6cb   :  { %v13593_v23 = vpop.eup %13592  ;;  %v10479_v38 = vadd.f32 -1.0, %v13591_v33  ;;  %v3566_v40 = vmul.f32 1.442695, %v3544_v19  ;;  %v15451_v42 = vadd.f32 %v15419_v31, %v3467_v36 }
 0x6cc   :  { %13602 = vpow2.f32 %v3568_v26  ;;  %v3547_v50 = vmin.f32 %v15448_v35, 0.0  ;;  %v10478_v52 = vadd.f32 -1.0, %v13593_v23  ;;  %vm3531_vm5 = vcmp.gt.f32.partialorder %v15448_v35, 0.0 }
 0x6cd   :  { %13604 = vpow2.f32 %v3566_v40  ;;  %v3546_v61 = vmin.f32 %v15451_v42, 0.0  ;;  %v12244_v5 = vpop.f32.mrb[26].mxu0  ;;  %v3603_v25 = vsel %vm3523_vm10, %v13165_v32, %v10479_v38  ;;  %vm3530_vm4 = vcmp.gt.f32.partialorder %v15451_v42, 0.0 }
 0x6ce   :  { %v13595_v10 = vpop.eup %13594  ;;  %v3572_v27 = vmul.f32 1.442695, %v3547_v50  ;;  %v15456_v14 = vadd.f32 %v12244_v5, %v15419_v31  ;;  %v3477_v37 = vpop.f32.mrb[27].mxu0  ;;  %v3602_v58 = vsel %vm3522_vm9, %v13166_v34, %v10478_v52 }
 0x6cf   :  { %v13597_v21 = vpop.eup %13596  ;;  %v3570_v22 = vmul.f32 1.442695, %v3546_v61  ;;  %v15459_v18 = vadd.f32 %v15419_v31, %v3477_v37  ;;  %12259 = vmatprep.mubr.msk.f32.mxu1 %vm2145_vm2, %v3602_v58  ;;  %v10481_v19 = vadd.f32 -1.0, %v13595_v10 }
 0x6d0   :  { %13606 = vpow2.f32 %v3572_v27  ;;  %v3549_v8 = vmin.f32 %v15456_v14, 0.0  ;;  %12260 = vmatmul.mubr.msk.f32.vlgmr.msra.gmra.mrb[96].mxu1 %vm2145_vm2, %v3603_v25  ;;  %v10480_v33 = vadd.f32 -1.0, %v13597_v21  ;;  %vm3533_vm7 = vcmp.gt.f32.partialorder %v15456_v14, 0.0 }
 0x6d1   :  { %13608 = vpow2.f32 %v3570_v22  ;;  %v3548_v34 = vmin.f32 %v15459_v18, 0.0  ;;  %v12247_v26 = vpop.f32.mrb[28].mxu0  ;;  %v3605_v5 = vsel %vm3525_vm12, %v15424_v39, %v10481_v19  ;;  %vm3532_vm6 = vcmp.gt.f32.partialorder %v15459_v18, 0.0 }
 0x6d2   :  { %v13599_v32 = vpop.eup %13598  ;;  %v3576_v36 = vmul.f32 1.442695, %v3549_v8  ;;  %v15468_v23 = vadd.f32 %v12247_v26, %v15419_v31  ;;  %v3487_v38 = vpop.f32.mrb[29].mxu0  ;;  %v3604_v40 = vsel %vm3524_vm11, %v15427_v20, %v10480_v33 }
 0x6d3   :  { %v13601_v50 = vpop.eup %13600  ;;  %v3574_v52 = vmul.f32 1.442695, %v3548_v34  ;;  %v15472_v61 = vadd.f32 %v15419_v31, %v3487_v38  ;;  %12262 = vmatprep.mubr.msk.f32.mxu1 %vm2145_vm2, %v3604_v40  ;;  %v10483_v10 = vadd.f32 -1.0, %v13599_v32 }
 0x6d4   :  { %13610 = vpow2.f32 %v3576_v36  ;;  %v3551_v27 = vmin.f32 %v15468_v23, 0.0  ;;  %12263 = vmatmul.mubr.msk.f32.gmra.mrb[98].mxu1 %vm2145_vm2, %v3605_v5  ;;  %v10482_v37 = vadd.f32 -1.0, %v13601_v50  ;;  %vm3535_vm9 = vcmp.gt.f32.partialorder %v15468_v23, 0.0 }
 0x6d5   :  { %13612 = vpow2.f32 %v3574_v52  ;;  %v3550_v20 = vmin.f32 %v15472_v61, 0.0  ;;  %v12250_v58 = vpop.f32.mrb[30].mxu0  ;;  %v3607_v26 = vsel %vm3527_vm14, %v15432_v3, %v10483_v10  ;;  %vm3534_vm8 = vcmp.gt.f32.partialorder %v15472_v61, 0.0 }
 0x6d6   :  { %v13603_v21 = vpop.eup %13602  ;;  %v3580_v25 = vmul.f32 1.442695, %v3551_v27  ;;  %v15482_v22 = vadd.f32 %v12250_v58, %v15419_v31  ;;  %v3497_v39 = vpop.f32.mrb[31].mxu0  ;;  %v3606_v19 = vsel %vm3526_vm13, %v15435_v12, %v10482_v37 }
 0x6d7   :  { %v13605_v8 = vpop.eup %13604  ;;  %v3578_v33 = vmul.f32 1.442695, %v3550_v20  ;;  %v13180_v34 = vadd.f32 %v15419_v31, %v3497_v39  ;;  %12265 = vmatprep.mubr.msk.f32.mxu1 %vm2145_vm2, %v3606_v19  ;;  %v10485_v32 = vadd.f32 -1.0, %v13603_v21 }
 0x6d8   :  { %13614 = vpow2.f32 %v3580_v25  ;;  %v3553_v36 = vmin.f32 %v15482_v22, 0.0  ;;  %12266 = vmatmul.mubr.msk.f32.gmra.mrb[100].mxu1 %vm2145_vm2, %v3607_v26  ;;  %v10484_v38 = vadd.f32 -1.0, %v13605_v8  ;;  %vm3537_vm11 = vcmp.gt.f32.partialorder %v15482_v22, 0.0 }
 0x6d9   :  { %13616 = vpow2.f32 %v3578_v33  ;;  %v3552_v40 = vmin.f32 %v13180_v34, 0.0  ;;  %v3609_v3 = vsel %vm3529_vm3, %v15440_v28, %v10485_v32  ;;  %vm3536_vm10 = vcmp.gt.f32.partialorder %v13180_v34, 0.0 }
 0x6da   :  { %v13607_v12 = vpop.eup %13606  ;;  %v3584_v50 = vmul.f32 1.442695, %v3553_v36  ;;  %v3608_v31 = vsel %vm3528_vm15, %v15443_v29, %v10484_v38 }
 0x6db   :  { %v13609_v52 = vpop.eup %13608  ;;  %v3582_v5 = vmul.f32 1.442695, %v3552_v40  ;;  %12268 = vmatprep.mubr.msk.f32.mxu1 %vm2145_vm2, %v3608_v31  ;;  %v10487_v10 = vadd.f32 -1.0, %v13607_v12 }
 0x6dc   :  { %13618 = vpow2.f32 %v3584_v50  ;;  %12269 = vmatmul.mubr.msk.f32.gmra.mrb[102].mxu1 %vm2145_vm2, %v3609_v3  ;;  %v10486_v27 = vadd.f32 -1.0, %v13609_v52 }
 0x6dd   :  { %13620 = vpow2.f32 %v3582_v5  ;;  %v3611_v58 = vsel %vm3531_vm5, %v15448_v35, %v10487_v10 }
 0x6de   :  { %v13611_v37 = vpop.eup %13610  ;;  %v3610_v20 = vsel %vm3530_vm4, %v15451_v42, %v10486_v27 }
 0x6df   :  { %v13613_v29 = vpop.eup %13612  ;;  %12271 = vmatprep.mubr.msk.f32.mxu1 %vm2145_vm2, %v3610_v20  ;;  %v10489_v21 = vadd.f32 -1.0, %v13611_v37 }
 0x6e0   :  { %12272 = vmatmul.mubr.msk.f32.gmra.mrb[104].mxu1 %vm2145_vm2, %v3611_v58  ;;  %v10488_v28 = vadd.f32 -1.0, %v13613_v29 }
 0x6e1   :  { %v3613_v42 = vsel %vm3533_vm7, %v15456_v14, %v10489_v21 }
 0x6e2   :  { %v13615_v25 = vpop.eup %13614  ;;  %v3612_v39 = vsel %vm3532_vm6, %v15459_v18, %v10488_v28 }
 0x6e3   :  { %v13617_v19 = vpop.eup %13616  ;;  %12274 = vmatprep.mubr.msk.f32.mxu1 %vm2145_vm2, %v3612_v39  ;;  %v10491_v8 = vadd.f32 -1.0, %v13615_v25 }
 0x6e4   :  { %12275 = vmatmul.mubr.msk.f32.gmra.mrb[106].mxu1 %vm2145_vm2, %v3613_v42  ;;  %v10490_v35 = vadd.f32 -1.0, %v13617_v19 }
 0x6e5   :  { %v3615_v18 = vsel %vm3535_vm9, %v15468_v23, %v10491_v8  ;;  %v10519_v23 = vld [vmem:[%s18274_s7 + $0x58] sm:$0xff] }
 0x6e6   :  { %v13619_v33 = vpop.eup %13618  ;;  %v3614_v26 = vsel %vm3534_vm8, %v15472_v61, %v10490_v35  ;;  %v10518_v61 = vld [vmem:[%s18274_s7 + $0x50] sm:$0xff] }
 0x6e7   :  { %v13621_v32 = vpop.eup %13620  ;;  %12277 = vmatprep.mubr.msk.f32.mxu1 %vm2145_vm2, %v3614_v26  ;;  %v10493_v36 = vadd.f32 -1.0, %v13619_v33  ;;  %v13049_v12 = vpack.c.bf16 %v10519_v23, %v10518_v61 }
 0x6e8   :  { %12278 = vmatmul.mubr.msk.f32.gmra.mrb[108].mxu1 %vm2145_vm2, %v3615_v18  ;;  %v10492_v14 = vadd.f32 -1.0, %v13621_v32 }
 0x6e9   :  { %v3617_v40 = vsel %vm3537_vm11, %v15482_v22, %v10493_v36  ;;  %13050 = vmatprep.subr.bf16.mxu0 %v13049_v12  ;;  %v15530_v22 = vld [vmem:[%s18276_s6 + $0x2] ss:$0 sm:$0xff] }
 0x6ea   :  { %v3616_v38 = vsel %vm3536_vm10, %v13180_v34, %v10492_v14  ;;  %13052 = vmatpush3.bf16.msra.mxu0 %v13049_v12  ;;  %v10536_v34 = vld [vmem:[%s18271_s3 + $0x18] sm:$0xff] }
 0x6eb   :  { %12280 = vmatprep.mubr.msk.f32.mxu1 %vm2145_vm2, %v3616_v38  ;;  %12315 = vmatprep.subr.mxu1 %v10536_v34 }
 0x6ec   :  { %12281 = vmatmul.mubr.msk.f32.gmra.mrb[110].mxu1 %vm2145_vm2, %v3617_v40 }
 0x6ed   :  { %12316 = vmatpush3.msra.mxu1 %v10536_v34 }
 0x7a3   :  { %v12261_v50 = vpop.f32.mrb[96].mxu1 }
 0x7a4   :  { %v3751_v31 = vadd.f32 %v12261_v50, %v15530_v22  ;;  %v3745_v52 = vpop.f32.mrb[97].mxu1 }
 0x7a5   :  { %v3746_v5 = vadd.f32 %v15530_v22, %v3745_v52 }
 0x7a7   :  { %13622 = vtanh.f32 %v3746_v5  ;;  %v12264_v3 = vpop.f32.mrb[98].mxu1 }
 0x7a8   :  { %13624 = vtanh.f32 %v3751_v31  ;;  %v3761_v10 = vadd.f32 %v12264_v3, %v15530_v22  ;;  %v3755_v27 = vpop.f32.mrb[99].mxu1 }
 0x7a9   :  { %v3756_v37 = vadd.f32 %v15530_v22, %v3755_v27 }
 0x7ab   :  { %13626 = vtanh.f32 %v3756_v37  ;;  %v12267_v20 = vpop.f32.mrb[100].mxu1 }
 0x7ac   :  { %13628 = vtanh.f32 %v3761_v10  ;;  %v3771_v29 = vadd.f32 %v12267_v20, %v15530_v22  ;;  %v3765_v58 = vpop.f32.mrb[101].mxu1 }
 0x7ad   :  { %v3766_v21 = vadd.f32 %v15530_v22, %v3765_v58 }
 0x7af   :  { %13630 = vtanh.f32 %v3766_v21  ;;  %v12270_v28 = vpop.f32.mrb[102].mxu1 }
 0x7b0   :  { %13632 = vtanh.f32 %v3771_v29  ;;  %v3781_v25 = vadd.f32 %v12270_v28, %v15530_v22  ;;  %v3775_v39 = vpop.f32.mrb[103].mxu1 }
 0x7b1   :  { %v13623_v19 = vpop.eup %13622  ;;  %v3776_v42 = vadd.f32 %v15530_v22, %v3775_v39 }
 0x7b2   :  { %v13625_v8 = vpop.eup %13624  ;;  %12291 = vmatprep.mubr.msk.f32.mxu0 %vm2145_vm2, %v13623_v19 }
 0x7b3   :  { %13634 = vtanh.f32 %v3776_v42  ;;  %v12273_v35 = vpop.f32.mrb[104].mxu1  ;;  %12292 = vmatmul.mubr.msk.f32.vlgmr.msra.gmra.mrb[96].mxu0 %vm2145_vm2, %v13625_v8 }
 0x7b4   :  { %13636 = vtanh.f32 %v3781_v25  ;;  %v3791_v33 = vadd.f32 %v12273_v35, %v15530_v22  ;;  %v3785_v26 = vpop.f32.mrb[105].mxu1 }
 0x7b5   :  { %v13627_v32 = vpop.eup %13626  ;;  %v3786_v18 = vadd.f32 %v15530_v22, %v3785_v26 }
 0x7b6   :  { %v13629_v36 = vpop.eup %13628  ;;  %12294 = vmatprep.mubr.msk.f32.mxu0 %vm2145_vm2, %v13627_v32 }
 0x7b7   :  { %13638 = vtanh.f32 %v3786_v18  ;;  %v12276_v14 = vpop.f32.mrb[106].mxu1  ;;  %12295 = vmatmul.mubr.msk.f32.gmra.mrb[98].mxu0 %vm2145_vm2, %v13629_v36 }
 0x7b8   :  { %13640 = vtanh.f32 %v3791_v33  ;;  %v3801_v38 = vadd.f32 %v12276_v14, %v15530_v22  ;;  %v3795_v40 = vpop.f32.mrb[107].mxu1 }
 0x7b9   :  { %v13631_v61 = vpop.eup %13630  ;;  %v3796_v23 = vadd.f32 %v15530_v22, %v3795_v40 }
 0x7ba   :  { %v13633_v12 = vpop.eup %13632  ;;  %12297 = vmatprep.mubr.msk.f32.mxu0 %vm2145_vm2, %v13631_v61 }
 0x7bb   :  { %13642 = vtanh.f32 %v3796_v23  ;;  %v12279_v34 = vpop.f32.mrb[108].mxu1  ;;  %12298 = vmatmul.mubr.msk.f32.gmra.mrb[100].mxu0 %vm2145_vm2, %v13633_v12 }
 0x7bc   :  { %13644 = vtanh.f32 %v3801_v38  ;;  %v3811_v50 = vadd.f32 %v12279_v34, %v15530_v22  ;;  %v3805_v31 = vpop.f32.mrb[109].mxu1 }
 0x7bd   :  { %v13635_v52 = vpop.eup %13634  ;;  %v3806_v5 = vadd.f32 %v15530_v22, %v3805_v31 }
 0x7be   :  { %v13637_v3 = vpop.eup %13636  ;;  %12300 = vmatprep.mubr.msk.f32.mxu0 %vm2145_vm2, %v13635_v52 }
 0x7bf   :  { %13646 = vtanh.f32 %v3806_v5  ;;  %v12282_v10 = vpop.f32.mrb[110].mxu1  ;;  %12301 = vmatmul.mubr.msk.f32.gmra.mrb[102].mxu0 %vm2145_vm2, %v13637_v3 }
 0x7c0   :  { %13648 = vtanh.f32 %v3811_v50  ;;  %v3821_v27 = vadd.f32 %v12282_v10, %v15530_v22  ;;  %v3815_v37 = vpop.f32.mrb[111].mxu1 }
 0x7c1   :  { %v13639_v20 = vpop.eup %13638  ;;  %v3816_v29 = vadd.f32 %v15530_v22, %v3815_v37 }
 0x7c2   :  { %v13641_v58 = vpop.eup %13640  ;;  %12303 = vmatprep.mubr.msk.f32.mxu0 %vm2145_vm2, %v13639_v20 }
 0x7c3   :  { %13650 = vtanh.f32 %v3816_v29  ;;  %12304 = vmatmul.mubr.msk.f32.gmra.mrb[104].mxu0 %vm2145_vm2, %v13641_v58  ;;  %v10569_v58 = vld [vmem:[%s18272_s5 + $0x60] sm:$0xff] }
 0x7c4   :  { %13652 = vtanh.f32 %v3821_v27 }
 0x7c5   :  { %v13643_v21 = vpop.eup %13642 }
 0x7c6   :  { %v13645_v28 = vpop.eup %13644  ;;  %12306 = vmatprep.mubr.msk.f32.mxu0 %vm2145_vm2, %v13643_v21  ;;  %v10570_v21 = vld [vmem:[%s18272_s5 + $0x68] sm:$0xff] }
 0x7c7   :  { %12307 = vmatmul.mubr.msk.f32.gmra.mrb[106].mxu0 %vm2145_vm2, %v13645_v28 }
 0x7c9   :  { %v13647_v25 = vpop.eup %13646 }
 0x7ca   :  { %v13649_v39 = vpop.eup %13648  ;;  %12309 = vmatprep.mubr.msk.f32.mxu0 %vm2145_vm2, %v13647_v25  ;;  %v13053_v25 = vpack.c.bf16 %v10570_v21, %v10569_v58 }
 0x7cb   :  { %12310 = vmatmul.mubr.msk.f32.gmra.mrb[108].mxu0 %vm2145_vm2, %v13649_v39 }
 0x7cc   :  { %13054 = vmatprep.subr.bf16.mxu0 %v13053_v25 }
 0x7cd   :  { %v13651_v22 = vpop.eup %13650  ;;  %13056 = vmatpush3.bf16.msra.mxu0 %v13053_v25 }
 0x7ce   :  { %v13653_v19 = vpop.eup %13652  ;;  %12312 = vmatprep.mubr.msk.f32.mxu0 %vm2145_vm2, %v13651_v22 }
 0x7cf   :  { %12313 = vmatmul.mubr.msk.f32.gmra.mrb[110].mxu0 %vm2145_vm2, %v13653_v19 }
 0x886   :  { %v12293_v42 = vpop.f32.mrb[96].mxu0 }
 0x887   :  { %13654 = vtanh.f32 %v12293_v42  ;;  %v3959_v8 = vpop.f32.mrb[97].mxu0 }
 0x888   :  { %13656 = vtanh.f32 %v3959_v8 }
 0x88a   :  { %v12296_v35 = vpop.f32.mrb[98].mxu0 }
 0x88b   :  { %13658 = vtanh.f32 %v12296_v35  ;;  %v3969_v33 = vpop.f32.mrb[99].mxu0 }
 0x88c   :  { %13660 = vtanh.f32 %v3969_v33  ;;  %v10571_v33 = vld [vmem:[%s18272_s5 + $0x70] sm:$0xff] }
 0x88e   :  { %v12299_v26 = vpop.f32.mrb[100].mxu0 }
 0x88f   :  { %13662 = vtanh.f32 %v12299_v26  ;;  %v3979_v32 = vpop.f32.mrb[101].mxu0  ;;  %v10572_v26 = vld [vmem:[%s18272_s5 + $0x78] sm:$0xff] }
 0x890   :  { %13664 = vtanh.f32 %v3979_v32  ;;  %v13057_v32 = vpack.c.bf16 %v10572_v26, %v10571_v33 }
 0x891   :  { %v15564_v18 = vpop.eup %13654 }
 0x892   :  { %v15566_v36 = vpop.eup %13656  ;;  %9619 = vrot.lane.b32.xlu1 %v15564_v18, %s14167_s26  ;;  %v12302_v14 = vpop.f32.mrb[102].mxu0  ;;  %13058 = vmatprep.subr.bf16.mxu0 %v13057_v32 }
 0x893   :  { %13666 = vtanh.f32 %v12302_v14  ;;  %9617 = vrot.lane.b32.xlu0 %v15566_v36, %s14167_s26  ;;  %v3989_v38 = vpop.f32.mrb[103].mxu0  ;;  %12317 = vmatprep.mubr.msk.f32.mxu1 %vm1828_vm1, %v15566_v36  ;;  %v10591_v14 = vld [vmem:[%s18274_s7 + $0x60] sm:$0xff] }
 0x894   :  { %13668 = vtanh.f32 %v3989_v38  ;;  %12318 = vmatmul.mubr.msk.f32.vlgmr.msra.gmra.mrb[16].mxu1 %vm1828_vm1, %v15564_v18  ;;  %13060 = vmatpush3.bf16.msra.mxu0 %v13057_v32  ;;  %v10592_v38 = vld [vmem:[%s18274_s7 + $0x68] sm:$0xff] }
 0x895   :  { %v15576_v40 = vpop.eup %13658 }
 0x896   :  { %v15578_v61 = vpop.eup %13660  ;;  %9623 = vrot.lane.b32.xlu1 %v15576_v40, %s14167_s26  ;;  %v12305_v23 = vpop.f32.mrb[104].mxu0 }
 0x897   :  { %13670 = vtanh.f32 %v12305_v23  ;;  %9621 = vrot.lane.b32.xlu0 %v15578_v61, %s14167_s26  ;;  %v3999_v12 = vpop.f32.mrb[105].mxu0  ;;  %12320 = vmatprep.mubr.msk.f32.mxu1 %vm1828_vm1, %v15578_v61  ;;  %v13061_v23 = vpack.c.bf16 %v10592_v38, %v10591_v14 }
 0x898   :  { %13672 = vtanh.f32 %v3999_v12  ;;  %12321 = vmatmul.mubr.msk.f32.gmra.mrb[18].mxu1 %vm1828_vm1, %v15576_v40  ;;  %v15681_v12 = vld [vmem:[%s18275_s4 + $0x3] ss:$0 sm:$0xff] }
 0x899   :  { %v15588_v34 = vpop.eup %13662  ;;  %13062 = vmatprep.subr.bf16.mxu1 %v13061_v23 }
 0x89a   :  { %v15590_v50 = vpop.eup %13664  ;;  %9627 = vrot.lane.b32.xlu1 %v15588_v34, %s14167_s26  ;;  %v12308_v31 = vpop.f32.mrb[106].mxu0  ;;  %13064 = vmatpush3.bf16.msra.mxu1 %v13061_v23 }
 0x89b   :  { %13674 = vtanh.f32 %v12308_v31  ;;  %9625 = vrot.lane.b32.xlu0 %v15590_v50, %s14167_s26  ;;  %v4009_v52 = vpop.f32.mrb[107].mxu0  ;;  %12323 = vmatprep.mubr.msk.f32.mxu1 %vm1828_vm1, %v15590_v50 }
 0x89c   :  { %13676 = vtanh.f32 %v4009_v52  ;;  %12324 = vmatmul.mubr.msk.f32.gmra.mrb[20].mxu1 %vm1828_vm1, %v15588_v34 }
 0x89d   :  { %v15600_v5 = vpop.eup %13666 }
 0x89e   :  { %v15602_v3 = vpop.eup %13668  ;;  %9631 = vrot.lane.b32.xlu1 %v15600_v5, %s14167_s26  ;;  %v12311_v10 = vpop.f32.mrb[108].mxu0 }
 0x89f   :  { %13678 = vtanh.f32 %v12311_v10  ;;  %9629 = vrot.lane.b32.xlu0 %v15602_v3, %s14167_s26  ;;  %v4019_v27 = vpop.f32.mrb[109].mxu0  ;;  %12326 = vmatprep.mubr.msk.f32.mxu1 %vm1828_vm1, %v15602_v3 }
 0x8a0   :  { %13680 = vtanh.f32 %v4019_v27  ;;  %12327 = vmatmul.mubr.msk.f32.gmra.mrb[22].mxu1 %vm1828_vm1, %v15600_v5 }
 0x8a1   :  { %v15612_v37 = vpop.eup %13670 }
 0x8a2   :  { %v15614_v20 = vpop.eup %13672  ;;  %9635 = vrot.lane.b32.xlu1 %v15612_v37, %s14167_s26  ;;  %v12314_v29 = vpop.f32.mrb[110].mxu0 }
 0x8a3   :  { %13682 = vtanh.f32 %v12314_v29  ;;  %9633 = vrot.lane.b32.xlu0 %v15614_v20, %s14167_s26  ;;  %v4029_v28 = vpop.f32.mrb[111].mxu0  ;;  %12329 = vmatprep.mubr.msk.f32.mxu1 %vm1828_vm1, %v15614_v20 }
 0x8a4   :  { %13684 = vtanh.f32 %v4029_v28  ;;  %12330 = vmatmul.mubr.msk.f32.gmra.mrb[24].mxu1 %vm1828_vm1, %v15612_v37 }
 0x8a5   :  { %v15630_v39 = vpop.eup %13674 }
 0x8a6   :  { %v15632_v22 = vpop.eup %13676  ;;  %9639 = vrot.lane.b32.xlu1 %v15630_v39, %s14167_s26 }
 0x8a7   :  { %9637 = vrot.lane.b32.xlu0 %v15632_v22, %s14167_s26  ;;  %12332 = vmatprep.mubr.msk.f32.mxu1 %vm1828_vm1, %v15632_v22 }
 0x8a8   :  { %12333 = vmatmul.mubr.msk.f32.gmra.mrb[26].mxu1 %vm1828_vm1, %v15630_v39 }
 0x8a9   :  { %v15642_v19 = vpop.eup %13678 }
 0x8aa   :  { %v15644_v42 = vpop.eup %13680  ;;  %9643 = vrot.lane.b32.xlu1 %v15642_v19, %s14167_s26 }
 0x8ab   :  { %9641 = vrot.lane.b32.xlu0 %v15644_v42, %s14167_s26  ;;  %12335 = vmatprep.mubr.msk.f32.mxu1 %vm1828_vm1, %v15644_v42 }
 0x8ac   :  { %12336 = vmatmul.mubr.msk.f32.gmra.mrb[28].mxu1 %vm1828_vm1, %v15642_v19 }
 0x8ad   :  { %v15654_v8 = vpop.eup %13682 }
 0x8ae   :  { %v15656_v35 = vpop.eup %13684  ;;  %9647 = vrot.lane.b32.xlu1 %v15654_v8, %s14167_s26 }
 0x8af   :  { %9645 = vrot.lane.b32.xlu0 %v15656_v35, %s14167_s26  ;;  %12338 = vmatprep.mubr.msk.f32.mxu1 %vm1828_vm1, %v15656_v35 }
 0x8b0   :  { %12339 = vmatmul.mubr.msk.f32.gmra.mrb[30].mxu1 %vm1828_vm1, %v15654_v8 }
 0x967   :  { %v12319_v31 = vpop.f32.mrb[16].mxu1 }
 0x968   :  { %v13181_v52 = vadd.f32 %v12319_v31, %v15681_v12  ;;  %v4170_v10 = vpop.f32.mrb[17].mxu1 }
 0x969   :  { %v13182_v27 = vadd.f32 %v15681_v12, %v4170_v10 }
 0x96a   :  { %v4282_v29 = vmin.f32 %v13181_v52, 0.0  ;;  %vm4266_vm13 = vcmp.gt.f32.partialorder %v13181_v52, 0.0 }
 0x96b   :  { %v4281_v58 = vmin.f32 %v13182_v27, 0.0  ;;  %v12322_v21 = vpop.f32.mrb[18].mxu1  ;;  %vm4265_vm12 = vcmp.gt.f32.partialorder %v13182_v27, 0.0 }
 0x96c   :  { %v4299_v28 = vmul.f32 1.442695, %v4282_v29  ;;  %v15686_v25 = vadd.f32 %v12322_v21, %v15681_v12  ;;  %v4180_v33 = vpop.f32.mrb[19].mxu1 }
 0x96d   :  { %v4297_v26 = vmul.f32 1.442695, %v4281_v58  ;;  %v15689_v32 = vadd.f32 %v15681_v12, %v4180_v33 }
 0x96e   :  { %13686 = vpow2.f32 %v4299_v28  ;;  %v4284_v14 = vmin.f32 %v15686_v25, 0.0  ;;  %vm4268_vm15 = vcmp.gt.f32.partialorder %v15686_v25, 0.0 }
 0x96f   :  { %13688 = vpow2.f32 %v4297_v26  ;;  %v4283_v38 = vmin.f32 %v15689_v32, 0.0  ;;  %v12325_v23 = vpop.f32.mrb[20].mxu1  ;;  %vm4267_vm14 = vcmp.gt.f32.partialorder %v15689_v32, 0.0 }
 0x970   :  { %v4303_v31 = vmul.f32 1.442695, %v4284_v14  ;;  %v15694_v10 = vadd.f32 %v12325_v23, %v15681_v12  ;;  %v4190_v29 = vpop.f32.mrb[21].mxu1 }
 0x971   :  { %v4301_v13 = vmul.f32 1.442695, %v4283_v38  ;;  %v15697_v21 = vadd.f32 %v15681_v12, %v4190_v29 }
 0x972   :  { %13690 = vpow2.f32 %v4303_v31  ;;  %v4286_v58 = vmin.f32 %v15694_v10, 0.0  ;;  %vm4270_vm4 = vcmp.gt.f32.partialorder %v15694_v10, 0.0 }
 0x973   :  { %13692 = vpow2.f32 %v4301_v13  ;;  %v4285_v28 = vmin.f32 %v15697_v21, 0.0  ;;  %v12328_v33 = vpop.f32.mrb[22].mxu1  ;;  %vm4269_vm3 = vcmp.gt.f32.partialorder %v15697_v21, 0.0 }
 0x974   :  { %v4307_v26 = vmul.f32 1.442695, %v4286_v58  ;;  %v15702_v46 = vadd.f32 %v12328_v33, %v15681_v12  ;;  %v4200_v14 = vpop.f32.mrb[23].mxu1 }
 0x975   :  { %v4305_v24 = vmul.f32 1.442695, %v4285_v28  ;;  %v15705_v23 = vadd.f32 %v15681_v12, %v4200_v14 }
 0x976   :  { %13694 = vpow2.f32 %v4307_v26  ;;  %v4288_v38 = vmin.f32 %v15702_v46, 0.0  ;;  %vm4272_vm6 = vcmp.gt.f32.partialorder %v15702_v46, 0.0 }
 0x977   :  { %13696 = vpow2.f32 %v4305_v24  ;;  %v4287_v31 = vmin.f32 %v15705_v23, 0.0  ;;  %v12331_v29 = vpop.f32.mrb[24].mxu1  ;;  %vm4271_vm5 = vcmp.gt.f32.partialorder %v15705_v23, 0.0 }
 0x978   :  { %v13687_v13 = vpop.eup %13686  ;;  %v4311_v56 = vmul.f32 1.442695, %v4288_v38  ;;  %v15710_v11 = vadd.f32 %v12331_v29, %v15681_v12  ;;  %v4210_v58 = vpop.f32.mrb[25].mxu1 }
 0x979   :  { %v13689_v33 = vpop.eup %13688  ;;  %v10554_v16 = vadd.f32 -1.0, %v13687_v13  ;;  %v4309_v15 = vmul.f32 1.442695, %v4287_v31  ;;  %v15713_v28 = vadd.f32 %v15681_v12, %v4210_v58 }
 0x97a   :  { %13698 = vpow2.f32 %v4311_v56  ;;  %v4290_v26 = vmin.f32 %v15710_v11, 0.0  ;;  %v10553_v14 = vadd.f32 -1.0, %v13689_v33  ;;  %vm4274_vm8 = vcmp.gt.f32.partialorder %v15710_v11, 0.0 }
 0x97b   :  { %13700 = vpow2.f32 %v4309_v15  ;;  %v4289_v24 = vmin.f32 %v15713_v28, 0.0  ;;  %v12334_v17 = vpop.f32.mrb[26].mxu1  ;;  %v4346_v58 = vsel %vm4266_vm13, %v13181_v52, %v10554_v16  ;;  %vm4273_vm7 = vcmp.gt.f32.partialorder %v15713_v28, 0.0 }
 0x97c   :  { %v13691_v38 = vpop.eup %13690  ;;  %v4315_v29 = vmul.f32 1.442695, %v4290_v26  ;;  %v15718_v7 = vadd.f32 %v12334_v17, %v15681_v12  ;;  %v4220_v13 = vpop.f32.mrb[27].mxu1  ;;  %v4345_v31 = vsel %vm4265_vm12, %v13182_v27, %v10553_v14 }
 0x97d   :  { %v13693_v9 = vpop.eup %13692  ;;  %v4313_v6 = vmul.f32 1.442695, %v4289_v24  ;;  %v15721_v56 = vadd.f32 %v15681_v12, %v4220_v13  ;;  %12349 = vmatprep.mubr.msk.f32.mxu0 %vm2145_vm2, %v4345_v31  ;;  %v10556_v15 = vadd.f32 -1.0, %v13691_v38 }
 0x97e   :  { %13702 = vpow2.f32 %v4315_v29  ;;  %v4292_v33 = vmin.f32 %v15718_v7, 0.0  ;;  %12350 = vmatmul.mubr.msk.f32.vlgmr.msra.gmra.mrb[112].mxu0 %vm2145_vm2, %v4346_v58  ;;  %v10555_v26 = vadd.f32 -1.0, %v13693_v9  ;;  %vm4276_vm10 = vcmp.gt.f32.partialorder %v15718_v7, 0.0 }
 0x97f   :  { %13704 = vpow2.f32 %v4313_v6  ;;  %v4291_v17 = vmin.f32 %v15721_v56, 0.0  ;;  %v12337_v27 = vpop.f32.mrb[28].mxu1  ;;  %v4348_v6 = vsel %vm4268_vm15, %v15686_v25, %v10556_v15  ;;  %vm4275_vm9 = vcmp.gt.f32.partialorder %v15721_v56, 0.0 }
 0x980   :  { %v13695_v16 = vpop.eup %13694  ;;  %v4319_v52 = vmul.f32 1.442695, %v4292_v33  ;;  %v15730_v14 = vadd.f32 %v12337_v27, %v15681_v12  ;;  %v4230_v24 = vpop.f32.mrb[29].mxu1  ;;  %v4347_v38 = vsel %vm4267_vm14, %v15689_v32, %v10555_v26 }
 0x981   :  { %v13697_v29 = vpop.eup %13696  ;;  %v4317_v13 = vmul.f32 1.442695, %v4291_v17  ;;  %v15734_v9 = vadd.f32 %v15681_v12, %v4230_v24  ;;  %12352 = vmatprep.mubr.msk.f32.mxu0 %vm2145_vm2, %v4347_v38  ;;  %v10558_v31 = vadd.f32 -1.0, %v13695_v16 }
 0x982   :  { %13706 = vpow2.f32 %v4319_v52  ;;  %v4294_v58 = vmin.f32 %v15730_v14, 0.0  ;;  %12353 = vmatmul.mubr.msk.f32.gmra.mrb[114].mxu0 %vm2145_vm2, %v4348_v6  ;;  %v10557_v33 = vadd.f32 -1.0, %v13697_v29  ;;  %vm4278_vm12 = vcmp.gt.f32.partialorder %v15730_v14, 0.0 }
 0x983   :  { %13708 = vpow2.f32 %v4317_v13  ;;  %v4293_v32 = vmin.f32 %v15734_v9, 0.0  ;;  %v12340_v26 = vpop.f32.mrb[30].mxu1  ;;  %v4350_v29 = vsel %vm4270_vm4, %v15694_v10, %v10558_v31  ;;  %vm4277_vm11 = vcmp.gt.f32.partialorder %v15734_v9, 0.0 }
 0x984   :  { %v13699_v17 = vpop.eup %13698  ;;  %v4323_v27 = vmul.f32 1.442695, %v4294_v58  ;;  %v15744_v24 = vadd.f32 %v12340_v26, %v15681_v12  ;;  %v4240_v25 = vpop.f32.mrb[31].mxu1  ;;  %v4349_v15 = vsel %vm4269_vm3, %v15697_v21, %v10557_v33 }
 0x985   :  { %v13701_v16 = vpop.eup %13700  ;;  %v4321_v52 = vmul.f32 1.442695, %v4293_v32  ;;  %v13196_v38 = vadd.f32 %v15681_v12, %v4240_v25  ;;  %12355 = vmatprep.mubr.msk.f32.mxu0 %vm2145_vm2, %v4349_v15  ;;  %v10560_v13 = vadd.f32 -1.0, %v13699_v17 }
 0x986   :  { %13710 = vpow2.f32 %v4323_v27  ;;  %v4296_v6 = vmin.f32 %v15744_v24, 0.0  ;;  %12356 = vmatmul.mubr.msk.f32.gmra.mrb[116].mxu0 %vm2145_vm2, %v4350_v29  ;;  %v10559_v58 = vadd.f32 -1.0, %v13701_v16  ;;  %vm4280_vm14 = vcmp.gt.f32.partialorder %v15744_v24, 0.0 }
 0x987   :  { %13712 = vpow2.f32 %v4321_v52  ;;  %v4295_v26 = vmin.f32 %v13196_v38, 0.0  ;;  %v4352_v10 = vsel %vm4272_vm6, %v15702_v46, %v10560_v13  ;;  %vm4279_vm13 = vcmp.gt.f32.partialorder %v13196_v38, 0.0 }
 0x988   :  { %v13703_v21 = vpop.eup %13702  ;;  %v4327_v33 = vmul.f32 1.442695, %v4296_v6  ;;  %v4351_v12 = vsel %vm4271_vm5, %v15705_v23, %v10559_v58 }
 0x989   :  { %v13705_v32 = vpop.eup %13704  ;;  %v4325_v25 = vmul.f32 1.442695, %v4295_v26  ;;  %12358 = vmatprep.mubr.msk.f32.mxu0 %vm2145_vm2, %v4351_v12  ;;  %v10562_v31 = vadd.f32 -1.0, %v13703_v21 }
 0x98a   :  { %13714 = vpow2.f32 %v4327_v33  ;;  %12359 = vmatmul.mubr.msk.f32.gmra.mrb[118].mxu0 %vm2145_vm2, %v4352_v10  ;;  %v10561_v17 = vadd.f32 -1.0, %v13705_v32 }
 0x98b   :  { %13716 = vpow2.f32 %v4325_v25  ;;  %v4354_v16 = vsel %vm4274_vm8, %v15710_v11, %v10562_v31 }
 0x98c   :  { %v13707_v27 = vpop.eup %13706  ;;  %v4353_v15 = vsel %vm4273_vm7, %v15713_v28, %v10561_v17 }
 0x98d   :  { %v13709_v23 = vpop.eup %13708  ;;  %12361 = vmatprep.mubr.msk.f32.mxu0 %vm2145_vm2, %v4353_v15  ;;  %v10564_v52 = vadd.f32 -1.0, %v13707_v27 }
 0x98e   :  { %12362 = vmatmul.mubr.msk.f32.gmra.mrb[120].mxu0 %vm2145_vm2, %v4354_v16  ;;  %v10563_v46 = vadd.f32 -1.0, %v13709_v23 }
 0x98f   :  { %v4356_v28 = vsel %vm4276_vm10, %v15718_v7, %v10564_v52 }
 0x990   :  { %v13711_v29 = vpop.eup %13710  ;;  %v4355_v13 = vsel %vm4275_vm9, %v15721_v56, %v10563_v46 }
 0x991   :  { %v13713_v6 = vpop.eup %13712  ;;  %12364 = vmatprep.mubr.msk.f32.mxu0 %vm2145_vm2, %v4355_v13  ;;  %v10566_v58 = vadd.f32 -1.0, %v13711_v29 }
 0x992   :  { %12365 = vmatmul.mubr.msk.f32.gmra.mrb[122].mxu0 %vm2145_vm2, %v4356_v28  ;;  %v10565_v11 = vadd.f32 -1.0, %v13713_v6 }
 0x993   :  { %v4358_v56 = vsel %vm4278_vm12, %v15730_v14, %v10566_v58  ;;  %v10594_v14 = vld [vmem:[%s18274_s7 + $0x78] sm:$0xff] }
 0x994   :  { %v13715_v26 = vpop.eup %13714  ;;  %v4357_v21 = vsel %vm4277_vm11, %v15734_v9, %v10565_v11  ;;  %v10593_v9 = vld [vmem:[%s18274_s7 + $0x70] sm:$0xff] }
 0x995   :  { %v13717_v33 = vpop.eup %13716  ;;  %12367 = vmatprep.mubr.msk.f32.mxu0 %vm2145_vm2, %v4357_v21  ;;  %v10568_v12 = vadd.f32 -1.0, %v13715_v26  ;;  %v13065_v10 = vpack.c.bf16 %v10594_v14, %v10593_v9 }
 0x996   :  { %12368 = vmatmul.mubr.msk.f32.gmra.mrb[124].mxu0 %vm2145_vm2, %v4358_v56  ;;  %v10567_v7 = vadd.f32 -1.0, %v13717_v33 }
 0x997   :  { %v4360_v25 = vsel %vm4280_vm14, %v15744_v24, %v10568_v12  ;;  %13066 = vmatprep.subr.bf16.mxu1 %v13065_v10  ;;  %v15792_v24 = vld [vmem:[%s18276_s6 + $0x3] ss:$0 sm:$0xff] }
 0x998   :  { %v4359_v32 = vsel %vm4279_vm13, %v13196_v38, %v10567_v7  ;;  %13068 = vmatpush3.bf16.msra.mxu1 %v13065_v10  ;;  %v10611_v38 = vld [vmem:[%s18271_s3 + $0x20] sm:$0xff] }
 0x999   :  { %12370 = vmatprep.mubr.msk.f32.mxu0 %vm2145_vm2, %v4359_v32  ;;  %12405 = vmatprep.subr.mxu0 %v10611_v38 }
 0x99a   :  { %12371 = vmatmul.mubr.msk.f32.gmra.mrb[126].mxu0 %vm2145_vm2, %v4360_v25 }
 0x99b   :  { %12406 = vmatpush3.msra.mxu0 %v10611_v38 }
 0xa51   :  { %v12351_v31 = vpop.f32.mrb[112].mxu0 }
 0xa52   :  { %v4494_v17 = vadd.f32 %v12351_v31, %v15792_v24  ;;  %v4488_v27 = vpop.f32.mrb[113].mxu0 }
 0xa53   :  { %v4489_v15 = vadd.f32 %v15792_v24, %v4488_v27 }
 0xa55   :  { %13718 = vtanh.f32 %v4489_v15  ;;  %v12354_v23 = vpop.f32.mrb[114].mxu0 }
 0xa56   :  { %13720 = vtanh.f32 %v4494_v17  ;;  %v4504_v16 = vadd.f32 %v12354_v23, %v15792_v24  ;;  %v4498_v52 = vpop.f32.mrb[115].mxu0 }
 0xa57   :  { %v4499_v46 = vadd.f32 %v15792_v24, %v4498_v52 }
 0xa59   :  { %13722 = vtanh.f32 %v4499_v46  ;;  %v12357_v29 = vpop.f32.mrb[116].mxu0 }
 0xa5a   :  { %13724 = vtanh.f32 %v4504_v16  ;;  %v4514_v13 = vadd.f32 %v12357_v29, %v15792_v24  ;;  %v4508_v6 = vpop.f32.mrb[117].mxu0 }
 0xa5b   :  { %v4509_v28 = vadd.f32 %v15792_v24, %v4508_v6 }
 0xa5d   :  { %13726 = vtanh.f32 %v4509_v28  ;;  %v12360_v58 = vpop.f32.mrb[118].mxu0 }
 0xa5e   :  { %13728 = vtanh.f32 %v4514_v13  ;;  %v4524_v11 = vadd.f32 %v12360_v58, %v15792_v24  ;;  %v4518_v26 = vpop.f32.mrb[119].mxu0 }
 0xa5f   :  { %v13719_v21 = vpop.eup %13718  ;;  %v4519_v33 = vadd.f32 %v15792_v24, %v4518_v26 }
 0xa60   :  { %v13721_v56 = vpop.eup %13720  ;;  %12381 = vmatprep.mubr.msk.f32.mxu1 %vm2145_vm2, %v13719_v21 }
 0xa61   :  { %13730 = vtanh.f32 %v4519_v33  ;;  %v12363_v12 = vpop.f32.mrb[120].mxu0  ;;  %12382 = vmatmul.mubr.msk.f32.vlgmr.msra.gmra.mrb[112].mxu1 %vm2145_vm2, %v13721_v56 }
 0xa62   :  { %13732 = vtanh.f32 %v4524_v11  ;;  %v4534_v7 = vadd.f32 %v12363_v12, %v15792_v24  ;;  %v4528_v32 = vpop.f32.mrb[121].mxu0 }
 0xa63   :  { %v13723_v25 = vpop.eup %13722  ;;  %v4529_v9 = vadd.f32 %v15792_v24, %v4528_v32 }
 0xa64   :  { %v13725_v14 = vpop.eup %13724  ;;  %12384 = vmatprep.mubr.msk.f32.mxu1 %vm2145_vm2, %v13723_v25 }
 0xa65   :  { %13734 = vtanh.f32 %v4529_v9  ;;  %v12366_v10 = vpop.f32.mrb[122].mxu0  ;;  %12385 = vmatmul.mubr.msk.f32.gmra.mrb[114].mxu1 %vm2145_vm2, %v13725_v14 }
 0xa66   :  { %13736 = vtanh.f32 %v4534_v7  ;;  %v4544_v38 = vadd.f32 %v12366_v10, %v15792_v24  ;;  %v4538_v31 = vpop.f32.mrb[123].mxu0 }
 0xa67   :  { %v13727_v17 = vpop.eup %13726  ;;  %v4539_v27 = vadd.f32 %v15792_v24, %v4538_v31 }
 0xa68   :  { %v13729_v15 = vpop.eup %13728  ;;  %12387 = vmatprep.mubr.msk.f32.mxu1 %vm2145_vm2, %v13727_v17 }
 0xa69   :  { %13738 = vtanh.f32 %v4539_v27  ;;  %v12369_v23 = vpop.f32.mrb[124].mxu0  ;;  %12388 = vmatmul.mubr.msk.f32.gmra.mrb[116].mxu1 %vm2145_vm2, %v13729_v15 }
 0xa6a   :  { %13740 = vtanh.f32 %v4544_v38  ;;  %v4554_v16 = vadd.f32 %v12369_v23, %v15792_v24  ;;  %v4548_v52 = vpop.f32.mrb[125].mxu0 }
 0xa6b   :  { %v13731_v46 = vpop.eup %13730  ;;  %v4549_v29 = vadd.f32 %v15792_v24, %v4548_v52 }
 0xa6c   :  { %v13733_v13 = vpop.eup %13732  ;;  %12390 = vmatprep.mubr.msk.f32.mxu1 %vm2145_vm2, %v13731_v46 }
 0xa6d   :  { %13742 = vtanh.f32 %v4549_v29  ;;  %v12372_v6 = vpop.f32.mrb[126].mxu0  ;;  %12391 = vmatmul.mubr.msk.f32.gmra.mrb[118].mxu1 %vm2145_vm2, %v13733_v13 }
 0xa6e   :  { %13744 = vtanh.f32 %v4554_v16  ;;  %v4564_v28 = vadd.f32 %v12372_v6, %v15792_v24  ;;  %v4558_v58 = vpop.f32.mrb[127].mxu0 }
 0xa6f   :  { %v13735_v11 = vpop.eup %13734  ;;  %v4559_v26 = vadd.f32 %v15792_v24, %v4558_v58 }
 0xa70   :  { %v13737_v21 = vpop.eup %13736  ;;  %12393 = vmatprep.mubr.msk.f32.mxu1 %vm2145_vm2, %v13735_v11 }
 0xa71   :  { %13746 = vtanh.f32 %v4559_v26  ;;  %12394 = vmatmul.mubr.msk.f32.gmra.mrb[120].mxu1 %vm2145_vm2, %v13737_v21 }
 0xa72   :  { %13748 = vtanh.f32 %v4564_v28 }
 0xa73   :  { %v13739_v33 = vpop.eup %13738 }
 0xa74   :  { %v13741_v56 = vpop.eup %13740  ;;  %12396 = vmatprep.mubr.msk.f32.mxu1 %vm2145_vm2, %v13739_v33 }
 0xa75   :  { %12397 = vmatmul.mubr.msk.f32.gmra.mrb[122].mxu1 %vm2145_vm2, %v13741_v56 }
 0xa77   :  { %v13743_v12 = vpop.eup %13742 }
 0xa78   :  { %v13745_v7 = vpop.eup %13744  ;;  %12399 = vmatprep.mubr.msk.f32.mxu1 %vm2145_vm2, %v13743_v12 }
 0xa79   :  { %12400 = vmatmul.mubr.msk.f32.gmra.mrb[124].mxu1 %vm2145_vm2, %v13745_v7 }
 0xa7b   :  { %v13747_v24 = vpop.eup %13746 }
 0xa7c   :  { %v13749_v32 = vpop.eup %13748  ;;  %12402 = vmatprep.mubr.msk.f32.mxu1 %vm2145_vm2, %v13747_v24  ;;  %v10644_v24 = vld [vmem:[%s18272_s5 + $0x80] sm:$0xff] }
 0xa7d   :  { %12403 = vmatmul.mubr.msk.f32.gmra.mrb[126].mxu1 %vm2145_vm2, %v13749_v32  ;;  %v10645_v32 = vld [vmem:[%s18272_s5 + $0x88] sm:$0xff] }
 0xb34   :  { %v12383_v25 = vpop.f32.mrb[112].mxu1 }
 0xb35   :  { %13750 = vtanh.f32 %v12383_v25  ;;  %v4702_v9 = vpop.f32.mrb[113].mxu1 }
 0xb36   :  { %13752 = vtanh.f32 %v4702_v9  ;;  %v13069_v9 = vpack.c.bf16 %v10645_v32, %v10644_v24 }
 0xb38   :  { %v12386_v14 = vpop.f32.mrb[114].mxu1  ;;  %13070 = vmatprep.subr.bf16.mxu1 %v13069_v9 }
 0xb39   :  { %13754 = vtanh.f32 %v12386_v14  ;;  %v4712_v10 = vpop.f32.mrb[115].mxu1  ;;  %13072 = vmatpush3.bf16.msra.mxu1 %v13069_v9 }
 0xb3a   :  { %13756 = vtanh.f32 %v4712_v10 }
 0xb3c   :  { %v12389_v38 = vpop.f32.mrb[116].mxu1 }
 0xb3d   :  { %13758 = vtanh.f32 %v12389_v38  ;;  %v4722_v31 = vpop.f32.mrb[117].mxu1 }
 0xb3e   :  { %13760 = vtanh.f32 %v4722_v31 }
 0xb3f   :  { %v15826_v17 = vpop.eup %13750 }
 0xb40   :  { %18375 = vst [vmem:[#allocation18_spill] sm:$0xff] %v15826_v17  ;;  %v15828_v27 = vpop.eup %13752  ;;  %9667 = vrot.lane.b32.xlu1 %v15826_v17, %s14168_s27  ;;  %v12392_v15 = vpop.f32.mrb[118].mxu1 }
 0xb41   :  { %18376 = vst [vmem:[#allocation19_spill] sm:$0xff] %v15828_v27  ;;  %13762 = vtanh.f32 %v12392_v15  ;;  %9665 = vrot.lane.b32.xlu0 %v15828_v27, %s14168_s27  ;;  %v4732_v23 = vpop.f32.mrb[119].mxu1  ;;  %12407 = vmatprep.mubr.msk.f32.mxu0 %vm1828_vm1, %v15828_v27 }
 0xb42   :  { %13764 = vtanh.f32 %v4732_v23  ;;  %12408 = vmatmul.mubr.msk.f32.vlgmr.msra.gmra.mrb[32].mxu0 %vm1828_vm1, %v15826_v17 }
 0xb43   :  { %v15838_v16 = vpop.eup %13754 }
 0xb44   :  { %18377 = vst [vmem:[#allocation20_spill] sm:$0xff] %v15838_v16  ;;  %v15840_v52 = vpop.eup %13756  ;;  %9671 = vrot.lane.b32.xlu1 %v15838_v16, %s14168_s27  ;;  %v12395_v46 = vpop.f32.mrb[120].mxu1 }
 0xb45   :  { %18378 = vst [vmem:[#allocation21_spill] sm:$0xff] %v15840_v52  ;;  %13766 = vtanh.f32 %v12395_v46  ;;  %9669 = vrot.lane.b32.xlu0 %v15840_v52, %s14168_s27  ;;  %v4742_v29 = vpop.f32.mrb[121].mxu1  ;;  %12410 = vmatprep.mubr.msk.f32.mxu0 %vm1828_vm1, %v15840_v52  ;;  %v10646_v46 = vld [vmem:[%s18272_s5 + $0x90] sm:$0xff] }
 0xb46   :  { %13768 = vtanh.f32 %v4742_v29  ;;  %12411 = vmatmul.mubr.msk.f32.gmra.mrb[34].mxu0 %vm1828_vm1, %v15838_v16  ;;  %v10647_v29 = vld [vmem:[%s18272_s5 + $0x98] sm:$0xff] }
 0xb47   :  { %v15850_v13 = vpop.eup %13758 }
 0xb48   :  { %18379 = vst [vmem:[#allocation22_spill] sm:$0xff] %v15850_v13  ;;  %v15852_v6 = vpop.eup %13760  ;;  %9675 = vrot.lane.b32.xlu1 %v15850_v13, %s14168_s27  ;;  %v12398_v28 = vpop.f32.mrb[122].mxu1 }
 0xb49   :  { %18380 = vst [vmem:[#allocation23_spill] sm:$0xff] %v15852_v6  ;;  %13770 = vtanh.f32 %v12398_v28  ;;  %9673 = vrot.lane.b32.xlu0 %v15852_v6, %s14168_s27  ;;  %v4752_v58 = vpop.f32.mrb[123].mxu1  ;;  %12413 = vmatprep.mubr.msk.f32.mxu0 %vm1828_vm1, %v15852_v6  ;;  %v13073_v28 = vpack.c.bf16 %v10647_v29, %v10646_v46 }
 0xb4a   :  { %13772 = vtanh.f32 %v4752_v58  ;;  %12414 = vmatmul.mubr.msk.f32.gmra.mrb[36].mxu0 %vm1828_vm1, %v15850_v13  ;;  %v10666_v58 = vld [vmem:[%s18274_s7 + $0x80] sm:$0xff] }
 0xb4b   :  { %v15862_v11 = vpop.eup %13762  ;;  %13074 = vmatprep.subr.bf16.mxu1 %v13073_v28 }
 0xb4c   :  { %18381 = vst [vmem:[#allocation24_spill] sm:$0xff] %v15862_v11  ;;  %v15864_v26 = vpop.eup %13764  ;;  %9679 = vrot.lane.b32.xlu1 %v15862_v11, %s14168_s27  ;;  %v12401_v21 = vpop.f32.mrb[124].mxu1  ;;  %13076 = vmatpush3.bf16.msra.mxu1 %v13073_v28 }
 0xb4d   :  { %18382 = vst [vmem:[#allocation25_spill] sm:$0xff] %v15864_v26  ;;  %13774 = vtanh.f32 %v12401_v21  ;;  %9677 = vrot.lane.b32.xlu0 %v15864_v26, %s14168_s27  ;;  %v4762_v33 = vpop.f32.mrb[125].mxu1  ;;  %12416 = vmatprep.mubr.msk.f32.mxu0 %vm1828_vm1, %v15864_v26  ;;  %v10667_v21 = vld [vmem:[%s18274_s7 + $0x88] sm:$0xff] }
 0xb4e   :  { %13776 = vtanh.f32 %v4762_v33  ;;  %12417 = vmatmul.mubr.msk.f32.gmra.mrb[38].mxu0 %vm1828_vm1, %v15862_v11  ;;  %v13077_v33 = vpack.c.bf16 %v10667_v21, %v10666_v58 }
 0xb4f   :  { %v15874_v56 = vpop.eup %13766 }
 0xb50   :  { %18383 = vst [vmem:[#allocation26_spill] sm:$0xff] %v15874_v56  ;;  %v15876_v12 = vpop.eup %13768  ;;  %9683 = vrot.lane.b32.xlu1 %v15874_v56, %s14168_s27  ;;  %v12404_v7 = vpop.f32.mrb[126].mxu1  ;;  %13078 = vmatprep.subr.bf16.mxu0 %v13077_v33 }
 0xb51   :  { %18384 = vst [vmem:[#allocation27_spill] sm:$0xff] %v15876_v12  ;;  %13778 = vtanh.f32 %v12404_v7  ;;  %9681 = vrot.lane.b32.xlu0 %v15876_v12, %s14168_s27  ;;  %v4772_v25 = vpop.f32.mrb[127].mxu1  ;;  %12419 = vmatprep.mubr.msk.f32.mxu0 %vm1828_vm1, %v15876_v12  ;;  %v15943_v7 = vld [vmem:[%s18275_s4 + $0x4] ss:$0 sm:$0xff] }
 0xb52   :  { %13780 = vtanh.f32 %v4772_v25  ;;  %12420 = vmatmul.mubr.msk.f32.gmra.mrb[40].mxu0 %vm1828_vm1, %v15874_v56 }
 0xb53   :  { %v15892_v14 = vpop.eup %13770  ;;  %13080 = vmatpush3.bf16.msra.mxu0 %v13077_v33 }
 0xb54   :  { %18385 = vst [vmem:[#allocation28_spill] sm:$0xff] %v15892_v14  ;;  %v15894_v10 = vpop.eup %13772  ;;  %9687 = vrot.lane.b32.xlu1 %v15892_v14, %s14168_s27 }
 0xb55   :  { %18386 = vst [vmem:[#allocation29_spill] sm:$0xff] %v15894_v10  ;;  %9685 = vrot.lane.b32.xlu0 %v15894_v10, %s14168_s27  ;;  %12422 = vmatprep.mubr.msk.f32.mxu0 %vm1828_vm1, %v15894_v10 }
 0xb56   :  { %12423 = vmatmul.mubr.msk.f32.gmra.mrb[42].mxu0 %vm1828_vm1, %v15892_v14 }
 0xb57   :  { %v15904_v38 = vpop.eup %13774 }
 0xb58   :  { %18387 = vst [vmem:[#allocation30_spill] sm:$0xff] %v15904_v38  ;;  %v15906_v31 = vpop.eup %13776  ;;  %9691 = vrot.lane.b32.xlu1 %v15904_v38, %s14168_s27 }
 0xb59   :  { %18388 = vst [vmem:[#allocation31_spill] sm:$0xff] %v15906_v31  ;;  %9689 = vrot.lane.b32.xlu0 %v15906_v31, %s14168_s27  ;;  %12425 = vmatprep.mubr.msk.f32.mxu0 %vm1828_vm1, %v15906_v31 }
 0xb5a   :  { %12426 = vmatmul.mubr.msk.f32.gmra.mrb[44].mxu0 %vm1828_vm1, %v15904_v38 }
 0xb5b   :  { %v15916_v15 = vpop.eup %13778 }
 0xb5c   :  { %18389 = vst [vmem:[#allocation32_spill] sm:$0xff] %v15916_v15  ;;  %v15918_v23 = vpop.eup %13780  ;;  %9695 = vrot.lane.b32.xlu1 %v15916_v15, %s14168_s27 }
 0xb5d   :  { %18390 = vst [vmem:[#allocation33_spill] sm:$0xff] %v15918_v23  ;;  %9693 = vrot.lane.b32.xlu0 %v15918_v23, %s14168_s27  ;;  %12428 = vmatprep.mubr.msk.f32.mxu0 %vm1828_vm1, %v15918_v23  ;;  %s14174_s27 = smov 96  }
 0xb5e   :  { %12429 = vmatmul.mubr.msk.f32.gmra.mrb[46].mxu0 %vm1828_vm1, %v15916_v15 }
 0xc15   :  { %v12409_v24 = vpop.f32.mrb[32].mxu0 }
 0xc16   :  { %v13197_v32 = vadd.f32 %v12409_v24, %v15943_v7  ;;  %v4913_v25 = vpop.f32.mrb[33].mxu0 }
 0xc17   :  { %v13198_v9 = vadd.f32 %v15943_v7, %v4913_v25 }
 0xc18   :  { %v5025_v46 = vmin.f32 %v13197_v32, 0.0  ;;  %vm5009_vm3 = vcmp.gt.f32.partialorder %v13197_v32, 0.0 }
 0xc19   :  { %v5024_v29 = vmin.f32 %v13198_v9, 0.0  ;;  %v12412_v28 = vpop.f32.mrb[34].mxu0  ;;  %vm5008_vm15 = vcmp.gt.f32.partialorder %v13198_v9, 0.0 }
 0xc1a   :  { %v5042_v15 = vmul.f32 1.442695, %v5025_v46  ;;  %v15948_v23 = vadd.f32 %v12412_v28, %v15943_v7  ;;  %v4923_v58 = vpop.f32.mrb[35].mxu0 }
 0xc1b   :  { %v5040_v21 = vmul.f32 1.442695, %v5024_v29  ;;  %v15951_v33 = vadd.f32 %v15943_v7, %v4923_v58 }
 0xc1c   :  { %13782 = vpow2.f32 %v5042_v15  ;;  %v5027_v38 = vmin.f32 %v15948_v23, 0.0  ;;  %vm5011_vm5 = vcmp.gt.f32.partialorder %v15948_v23, 0.0 }
 0xc1d   :  { %13784 = vpow2.f32 %v5040_v21  ;;  %v5026_v24 = vmin.f32 %v15951_v33, 0.0  ;;  %v12415_v31 = vpop.f32.mrb[36].mxu0  ;;  %vm5010_vm4 = vcmp.gt.f32.partialorder %v15951_v33, 0.0 }
 0xc1e   :  { %v5046_v25 = vmul.f32 1.442695, %v5027_v38  ;;  %v15956_v14 = vadd.f32 %v12415_v31, %v15943_v7  ;;  %v4933_v46 = vpop.f32.mrb[37].mxu0 }
 0xc1f   :  { %v5044_v10 = vmul.f32 1.442695, %v5026_v24  ;;  %v15959_v28 = vadd.f32 %v15943_v7, %v4933_v46 }
 0xc20   :  { %13786 = vpow2.f32 %v5046_v25  ;;  %v5029_v29 = vmin.f32 %v15956_v14, 0.0  ;;  %vm5013_vm7 = vcmp.gt.f32.partialorder %v15956_v14, 0.0 }
 0xc21   :  { %13788 = vpow2.f32 %v5044_v10  ;;  %v5028_v15 = vmin.f32 %v15959_v28, 0.0  ;;  %v12418_v58 = vpop.f32.mrb[38].mxu0  ;;  %vm5012_vm6 = vcmp.gt.f32.partialorder %v15959_v28, 0.0 }
 0xc22   :  { %v5050_v21 = vmul.f32 1.442695, %v5029_v29  ;;  %v15964_v56 = vadd.f32 %v12418_v58, %v15943_v7  ;;  %v4943_v38 = vpop.f32.mrb[39].mxu0 }
 0xc23   :  { %v5048_v12 = vmul.f32 1.442695, %v5028_v15  ;;  %v15967_v31 = vadd.f32 %v15943_v7, %v4943_v38 }
 0xc24   :  { %13790 = vpow2.f32 %v5050_v21  ;;  %v5031_v24 = vmin.f32 %v15964_v56, 0.0  ;;  %vm5015_vm9 = vcmp.gt.f32.partialorder %v15964_v56, 0.0 }
 0xc25   :  { %13792 = vpow2.f32 %v5048_v12  ;;  %v5030_v25 = vmin.f32 %v15967_v31, 0.0  ;;  %v12421_v46 = vpop.f32.mrb[40].mxu0  ;;  %vm5014_vm8 = vcmp.gt.f32.partialorder %v15967_v31, 0.0 }
 0xc26   :  { %v13783_v10 = vpop.eup %13782  ;;  %v5054_v11 = vmul.f32 1.442695, %v5031_v24  ;;  %v15972_v26 = vadd.f32 %v12421_v46, %v15943_v7  ;;  %v4953_v29 = vpop.f32.mrb[41].mxu0 }
 0xc27   :  { %v13785_v58 = vpop.eup %13784  ;;  %v10629_v13 = vadd.f32 -1.0, %v13783_v10  ;;  %v5052_v6 = vmul.f32 1.442695, %v5030_v25  ;;  %v15975_v15 = vadd.f32 %v15943_v7, %v4953_v29 }
 0xc28   :  { %13794 = vpow2.f32 %v5054_v11  ;;  %v5033_v21 = vmin.f32 %v15972_v26, 0.0  ;;  %v10628_v38 = vadd.f32 -1.0, %v13785_v58  ;;  %vm5017_vm11 = vcmp.gt.f32.partialorder %v15972_v26, 0.0 }
 0xc29   :  { %13796 = vpow2.f32 %v5052_v6  ;;  %v5032_v12 = vmin.f32 %v15975_v15, 0.0  ;;  %v12424_v16 = vpop.f32.mrb[42].mxu0  ;;  %v5089_v29 = vsel %vm5009_vm3, %v13197_v32, %v10629_v13  ;;  %vm5016_vm10 = vcmp.gt.f32.partialorder %v15975_v15, 0.0 }
 0xc2a   :  { %v13787_v24 = vpop.eup %13786  ;;  %v5058_v46 = vmul.f32 1.442695, %v5033_v21  ;;  %v15980_v52 = vadd.f32 %v12424_v16, %v15943_v7  ;;  %v4963_v10 = vpop.f32.mrb[43].mxu0  ;;  %v5088_v25 = vsel %vm5008_vm15, %v13198_v9, %v10628_v38 }
 0xc2b   :  { %v13789_v17 = vpop.eup %13788  ;;  %v5056_v27 = vmul.f32 1.442695, %v5032_v12  ;;  %v15983_v11 = vadd.f32 %v15943_v7, %v4963_v10  ;;  %12439 = vmatprep.mubr.msk.f32.mxu1 %vm2145_vm2, %v5088_v25  ;;  %v10631_v6 = vadd.f32 -1.0, %v13787_v24 }
 0xc2c   :  { %13798 = vpow2.f32 %v5058_v46  ;;  %v5035_v58 = vmin.f32 %v15980_v52, 0.0  ;;  %12440 = vmatmul.mubr.msk.f32.vlgmr.msra.gmra.mrb[128].mxu1 %vm2145_vm2, %v5089_v29  ;;  %v10630_v21 = vadd.f32 -1.0, %v13789_v17  ;;  %vm5019_vm13 = vcmp.gt.f32.partialorder %v15980_v52, 0.0 }
 0xc2d   :  { %13800 = vpow2.f32 %v5056_v27  ;;  %v5034_v16 = vmin.f32 %v15983_v11, 0.0  ;;  %v12427_v9 = vpop.f32.mrb[44].mxu0  ;;  %v5091_v27 = vsel %vm5011_vm5, %v15948_v23, %v10631_v6  ;;  %vm5018_vm12 = vcmp.gt.f32.partialorder %v15983_v11, 0.0 }
 0xc2e   :  { %v13791_v13 = vpop.eup %13790  ;;  %v5062_v32 = vmul.f32 1.442695, %v5035_v58  ;;  %v15992_v38 = vadd.f32 %v12427_v9, %v15943_v7  ;;  %v4973_v12 = vpop.f32.mrb[45].mxu0  ;;  %v5090_v24 = vsel %vm5010_vm4, %v15951_v33, %v10630_v21 }
 0xc2f   :  { %v13793_v46 = vpop.eup %13792  ;;  %v5060_v10 = vmul.f32 1.442695, %v5034_v16  ;;  %v15996_v17 = vadd.f32 %v15943_v7, %v4973_v12  ;;  %12442 = vmatprep.mubr.msk.f32.mxu1 %vm2145_vm2, %v5090_v24  ;;  %v10633_v25 = vadd.f32 -1.0, %v13791_v13 }
 0xc30   :  { %13802 = vpow2.f32 %v5062_v32  ;;  %v5037_v29 = vmin.f32 %v15992_v38, 0.0  ;;  %12443 = vmatmul.mubr.msk.f32.gmra.mrb[130].mxu1 %vm2145_vm2, %v5091_v27  ;;  %v10632_v58 = vadd.f32 -1.0, %v13793_v46  ;;  %vm5021_vm15 = vcmp.gt.f32.partialorder %v15992_v38, 0.0 }
 0xc31   :  { %13804 = vpow2.f32 %v5060_v10  ;;  %v5036_v33 = vmin.f32 %v15996_v17, 0.0  ;;  %v12430_v21 = vpop.f32.mrb[46].mxu0  ;;  %v5093_v46 = vsel %vm5013_vm7, %v15956_v14, %v10633_v25  ;;  %vm5020_vm14 = vcmp.gt.f32.partialorder %v15996_v17, 0.0 }
 0xc32   :  { %v13795_v16 = vpop.eup %13794  ;;  %v5066_v9 = vmul.f32 1.442695, %v5037_v29  ;;  %v16006_v12 = vadd.f32 %v12430_v21, %v15943_v7  ;;  %v4983_v23 = vpop.f32.mrb[47].mxu0  ;;  %v5092_v6 = vsel %vm5012_vm6, %v15959_v28, %v10632_v58 }
 0xc33   :  { %v13797_v13 = vpop.eup %13796  ;;  %v5064_v32 = vmul.f32 1.442695, %v5036_v33  ;;  %v13212_v24 = vadd.f32 %v15943_v7, %v4983_v23  ;;  %12445 = vmatprep.mubr.msk.f32.mxu1 %vm2145_vm2, %v5092_v6  ;;  %v10635_v10 = vadd.f32 -1.0, %v13795_v16 }
 0xc34   :  { %13806 = vpow2.f32 %v5066_v9  ;;  %v5039_v27 = vmin.f32 %v16006_v12, 0.0  ;;  %12446 = vmatmul.mubr.msk.f32.gmra.mrb[132].mxu1 %vm2145_vm2, %v5093_v46  ;;  %v10634_v29 = vadd.f32 -1.0, %v13797_v13  ;;  %vm5023_vm4 = vcmp.gt.f32.partialorder %v16006_v12, 0.0 }
 0xc35   :  { %13808 = vpow2.f32 %v5064_v32  ;;  %v5038_v21 = vmin.f32 %v13212_v24, 0.0  ;;  %v5095_v14 = vsel %vm5015_vm9, %v15964_v56, %v10635_v10  ;;  %vm5022_vm3 = vcmp.gt.f32.partialorder %v13212_v24, 0.0 }
 0xc36   :  { %v13799_v28 = vpop.eup %13798  ;;  %v5070_v58 = vmul.f32 1.442695, %v5039_v27  ;;  %v5094_v7 = vsel %vm5014_vm8, %v15967_v31, %v10634_v29 }
 0xc37   :  { %v13801_v33 = vpop.eup %13800  ;;  %v5068_v23 = vmul.f32 1.442695, %v5038_v21  ;;  %12448 = vmatprep.mubr.msk.f32.mxu1 %vm2145_vm2, %v5094_v7  ;;  %v10637_v25 = vadd.f32 -1.0, %v13799_v28 }
 0xc38   :  { %13810 = vpow2.f32 %v5070_v58  ;;  %12449 = vmatmul.mubr.msk.f32.gmra.mrb[134].mxu1 %vm2145_vm2, %v5095_v14  ;;  %v10636_v16 = vadd.f32 -1.0, %v13801_v33 }
 0xc39   :  { %13812 = vpow2.f32 %v5068_v23  ;;  %v5097_v13 = vsel %vm5017_vm11, %v15972_v26, %v10637_v25 }
 0xc3a   :  { %v13803_v9 = vpop.eup %13802  ;;  %v5096_v6 = vsel %vm5016_vm10, %v15975_v15, %v10636_v16 }
 0xc3b   :  { %v13805_v31 = vpop.eup %13804  ;;  %12451 = vmatprep.mubr.msk.f32.mxu1 %vm2145_vm2, %v5096_v6  ;;  %v10639_v32 = vadd.f32 -1.0, %v13803_v9 }
 0xc3c   :  { %12452 = vmatmul.mubr.msk.f32.gmra.mrb[136].mxu1 %vm2145_vm2, %v5097_v13  ;;  %v10638_v56 = vadd.f32 -1.0, %v13805_v31 }
 0xc3d   :  { %v5099_v15 = vsel %vm5019_vm13, %v15980_v52, %v10639_v32 }
 0xc3e   :  { %v13807_v46 = vpop.eup %13806  ;;  %v5098_v10 = vsel %vm5018_vm12, %v15983_v11, %v10638_v56 }
 0xc3f   :  { %v13809_v27 = vpop.eup %13808  ;;  %12454 = vmatprep.mubr.msk.f32.mxu1 %vm2145_vm2, %v5098_v10  ;;  %v10641_v29 = vadd.f32 -1.0, %v13807_v46 }
 0xc40   :  { %12455 = vmatmul.mubr.msk.f32.gmra.mrb[138].mxu1 %vm2145_vm2, %v5099_v15  ;;  %v10640_v26 = vadd.f32 -1.0, %v13809_v27 }
 0xc41   :  { %v5101_v11 = vsel %vm5021_vm15, %v15992_v38, %v10641_v29  ;;  %v10669_v38 = vld [vmem:[%s18274_s7 + $0x98] sm:$0xff] }
 0xc42   :  { %v13811_v21 = vpop.eup %13810  ;;  %v5100_v28 = vsel %vm5020_vm14, %v15996_v17, %v10640_v26  ;;  %v10668_v17 = vld [vmem:[%s18274_s7 + $0x90] sm:$0xff] }
 0xc43   :  { %v13813_v58 = vpop.eup %13812  ;;  %12457 = vmatprep.mubr.msk.f32.mxu1 %vm2145_vm2, %v5100_v28  ;;  %v10643_v7 = vadd.f32 -1.0, %v13811_v21  ;;  %v13081_v14 = vpack.c.bf16 %v10669_v38, %v10668_v17 }
 0xc44   :  { %12458 = vmatmul.mubr.msk.f32.gmra.mrb[140].mxu1 %vm2145_vm2, %v5101_v11  ;;  %v10642_v52 = vadd.f32 -1.0, %v13813_v58 }
 0xc45   :  { %v5103_v23 = vsel %vm5023_vm4, %v16006_v12, %v10643_v7  ;;  %13082 = vmatprep.subr.bf16.mxu0 %v13081_v14  ;;  %v16054_v12 = vld [vmem:[%s18276_s6 + $0x4] ss:$0 sm:$0xff] }
 0xc46   :  { %v5102_v33 = vsel %vm5022_vm3, %v13212_v24, %v10642_v52  ;;  %13084 = vmatpush3.bf16.msra.mxu0 %v13081_v14  ;;  %v10686_v24 = vld [vmem:[%s18271_s3 + $0x28] sm:$0xff] }
 0xc47   :  { %12460 = vmatprep.mubr.msk.f32.mxu1 %vm2145_vm2, %v5102_v33  ;;  %12495 = vmatprep.subr.mxu1 %v10686_v24 }
 0xc48   :  { %12461 = vmatmul.mubr.msk.f32.gmra.mrb[142].mxu1 %vm2145_vm2, %v5103_v23 }
 0xc49   :  { %12496 = vmatpush3.msra.mxu1 %v10686_v24 }
 0xcff   :  { %v12441_v25 = vpop.f32.mrb[128].mxu1 }
 0xd00   :  { %v5237_v16 = vadd.f32 %v12441_v25, %v16054_v12  ;;  %v5231_v9 = vpop.f32.mrb[129].mxu1 }
 0xd01   :  { %v5232_v6 = vadd.f32 %v16054_v12, %v5231_v9 }
 0xd03   :  { %13814 = vtanh.f32 %v5232_v6  ;;  %v12444_v31 = vpop.f32.mrb[130].mxu1 }
 0xd04   :  { %13816 = vtanh.f32 %v5237_v16  ;;  %v5247_v13 = vadd.f32 %v12444_v31, %v16054_v12  ;;  %v5241_v32 = vpop.f32.mrb[131].mxu1 }
 0xd05   :  { %v5242_v56 = vadd.f32 %v16054_v12, %v5241_v32 }
 0xd07   :  { %13818 = vtanh.f32 %v5242_v56  ;;  %v12447_v46 = vpop.f32.mrb[132].mxu1 }
 0xd08   :  { %13820 = vtanh.f32 %v5247_v13  ;;  %v5257_v10 = vadd.f32 %v12447_v46, %v16054_v12  ;;  %v5251_v27 = vpop.f32.mrb[133].mxu1 }
 0xd09   :  { %v5252_v15 = vadd.f32 %v16054_v12, %v5251_v27 }
 0xd0b   :  { %13822 = vtanh.f32 %v5252_v15  ;;  %v12450_v29 = vpop.f32.mrb[134].mxu1 }
 0xd0c   :  { %13824 = vtanh.f32 %v5257_v10  ;;  %v5267_v26 = vadd.f32 %v12450_v29, %v16054_v12  ;;  %v5261_v21 = vpop.f32.mrb[135].mxu1 }
 0xd0d   :  { %v13815_v28 = vpop.eup %13814  ;;  %v5262_v58 = vadd.f32 %v16054_v12, %v5261_v21 }
 0xd0e   :  { %v13817_v11 = vpop.eup %13816  ;;  %12471 = vmatprep.mubr.msk.f32.mxu0 %vm2145_vm2, %v13815_v28 }
 0xd0f   :  { %13826 = vtanh.f32 %v5262_v58  ;;  %v12453_v7 = vpop.f32.mrb[136].mxu1  ;;  %12472 = vmatmul.mubr.msk.f32.vlgmr.msra.gmra.mrb[128].mxu0 %vm2145_vm2, %v13817_v11 }
 0xd10   :  { %13828 = vtanh.f32 %v5267_v26  ;;  %v5277_v52 = vadd.f32 %v12453_v7, %v16054_v12  ;;  %v5271_v33 = vpop.f32.mrb[137].mxu1 }
 0xd11   :  { %v13819_v23 = vpop.eup %13818  ;;  %v5272_v17 = vadd.f32 %v16054_v12, %v5271_v33 }
 0xd12   :  { %v13821_v38 = vpop.eup %13820  ;;  %12474 = vmatprep.mubr.msk.f32.mxu0 %vm2145_vm2, %v13819_v23 }
 0xd13   :  { %13830 = vtanh.f32 %v5272_v17  ;;  %v12456_v14 = vpop.f32.mrb[138].mxu1  ;;  %12475 = vmatmul.mubr.msk.f32.gmra.mrb[130].mxu0 %vm2145_vm2, %v13821_v38 }
 0xd14   :  { %13832 = vtanh.f32 %v5277_v52  ;;  %v5287_v24 = vadd.f32 %v12456_v14, %v16054_v12  ;;  %v5281_v25 = vpop.f32.mrb[139].mxu1 }
 0xd15   :  { %v13823_v16 = vpop.eup %13822  ;;  %v5282_v9 = vadd.f32 %v16054_v12, %v5281_v25 }
 0xd16   :  { %v13825_v6 = vpop.eup %13824  ;;  %12477 = vmatprep.mubr.msk.f32.mxu0 %vm2145_vm2, %v13823_v16 }
 0xd17   :  { %13834 = vtanh.f32 %v5282_v9  ;;  %v12459_v31 = vpop.f32.mrb[140].mxu1  ;;  %12478 = vmatmul.mubr.msk.f32.gmra.mrb[132].mxu0 %vm2145_vm2, %v13825_v6 }
 0xd18   :  { %13836 = vtanh.f32 %v5287_v24  ;;  %v5297_v13 = vadd.f32 %v12459_v31, %v16054_v12  ;;  %v5291_v32 = vpop.f32.mrb[141].mxu1 }
 0xd19   :  { %v13827_v56 = vpop.eup %13826  ;;  %v5292_v46 = vadd.f32 %v16054_v12, %v5291_v32 }
 0xd1a   :  { %v13829_v10 = vpop.eup %13828  ;;  %12480 = vmatprep.mubr.msk.f32.mxu0 %vm2145_vm2, %v13827_v56 }
 0xd1b   :  { %13838 = vtanh.f32 %v5292_v46  ;;  %v12462_v27 = vpop.f32.mrb[142].mxu1  ;;  %12481 = vmatmul.mubr.msk.f32.gmra.mrb[134].mxu0 %vm2145_vm2, %v13829_v10 }
 0xd1c   :  { %13840 = vtanh.f32 %v5297_v13  ;;  %v5307_v15 = vadd.f32 %v12462_v27, %v16054_v12  ;;  %v5301_v29 = vpop.f32.mrb[143].mxu1 }
 0xd1d   :  { %v13831_v26 = vpop.eup %13830  ;;  %v5302_v21 = vadd.f32 %v16054_v12, %v5301_v29 }
 0xd1e   :  { %v13833_v28 = vpop.eup %13832  ;;  %12483 = vmatprep.mubr.msk.f32.mxu0 %vm2145_vm2, %v13831_v26 }
 0xd1f   :  { %13842 = vtanh.f32 %v5302_v21  ;;  %12484 = vmatmul.mubr.msk.f32.gmra.mrb[136].mxu0 %vm2145_vm2, %v13833_v28 }
 0xd20   :  { %13844 = vtanh.f32 %v5307_v15 }
 0xd21   :  { %v13835_v58 = vpop.eup %13834 }
 0xd22   :  { %v13837_v11 = vpop.eup %13836  ;;  %12486 = vmatprep.mubr.msk.f32.mxu0 %vm2145_vm2, %v13835_v58 }
 0xd23   :  { %12487 = vmatmul.mubr.msk.f32.gmra.mrb[138].mxu0 %vm2145_vm2, %v13837_v11 }
 0xd25   :  { %v13839_v7 = vpop.eup %13838 }
 0xd26   :  { %v13841_v52 = vpop.eup %13840  ;;  %12489 = vmatprep.mubr.msk.f32.mxu0 %vm2145_vm2, %v13839_v7 }
 0xd27   :  { %12490 = vmatmul.mubr.msk.f32.gmra.mrb[140].mxu0 %vm2145_vm2, %v13841_v52 }
 0xd29   :  { %v13843_v12 = vpop.eup %13842 }
 0xd2a   :  { %v13845_v33 = vpop.eup %13844  ;;  %12492 = vmatprep.mubr.msk.f32.mxu0 %vm2145_vm2, %v13843_v12  ;;  %v10719_v12 = vld [vmem:[%s18272_s5 + $0xa0] sm:$0xff] }
 0xd2b   :  { %12493 = vmatmul.mubr.msk.f32.gmra.mrb[142].mxu0 %vm2145_vm2, %v13845_v33  ;;  %v10720_v33 = vld [vmem:[%s18272_s5 + $0xa8] sm:$0xff] }
 0xde2   :  { %v12473_v23 = vpop.f32.mrb[128].mxu0 }
 0xde3   :  { %13846 = vtanh.f32 %v12473_v23  ;;  %v5445_v17 = vpop.f32.mrb[129].mxu0 }
 0xde4   :  { %13848 = vtanh.f32 %v5445_v17  ;;  %v13085_v17 = vpack.c.bf16 %v10720_v33, %v10719_v12 }
 0xde6   :  { %v12476_v38 = vpop.f32.mrb[130].mxu0  ;;  %13086 = vmatprep.subr.bf16.mxu0 %v13085_v17 }
 0xde7   :  { %13850 = vtanh.f32 %v12476_v38  ;;  %v5455_v14 = vpop.f32.mrb[131].mxu0  ;;  %13088 = vmatpush3.bf16.msra.mxu0 %v13085_v17 }
 0xde8   :  { %13852 = vtanh.f32 %v5455_v14 }
 0xdea   :  { %v12479_v24 = vpop.f32.mrb[132].mxu0 }
 0xdeb   :  { %13854 = vtanh.f32 %v12479_v24  ;;  %v5465_v25 = vpop.f32.mrb[133].mxu0 }
 0xdec   :  { %13856 = vtanh.f32 %v5465_v25 }
 0xded   :  { %v16088_v16 = vpop.eup %13846 }
 0xdee   :  { %v16090_v9 = vpop.eup %13848  ;;  %9715 = vrot.lane.b32.xlu1 %v16088_v16, %s14169_s28  ;;  %v12482_v6 = vpop.f32.mrb[134].mxu0 }
 0xdef   :  { %13858 = vtanh.f32 %v12482_v6  ;;  %9713 = vrot.lane.b32.xlu0 %v16090_v9, %s14169_s28  ;;  %v5475_v31 = vpop.f32.mrb[135].mxu0  ;;  %12497 = vmatprep.mubr.msk.f32.mxu1 %vm1828_vm1, %v16090_v9 }
 0xdf0   :  { %13860 = vtanh.f32 %v5475_v31  ;;  %12498 = vmatmul.mubr.msk.f32.vlgmr.msra.gmra.mrb[32].mxu1 %vm1828_vm1, %v16088_v16 }
 0xdf1   :  { %v16100_v13 = vpop.eup %13850 }
 0xdf2   :  { %18391 = vst [vmem:[#allocation34_spill] sm:$0xff] %v16100_v13  ;;  %v16102_v32 = vpop.eup %13852  ;;  %9719 = vrot.lane.b32.xlu1 %v16100_v13, %s14169_s28  ;;  %v12485_v56 = vpop.f32.mrb[136].mxu0 }
 0xdf3   :  { %13862 = vtanh.f32 %v12485_v56  ;;  %9717 = vrot.lane.b32.xlu0 %v16102_v32, %s14169_s28  ;;  %v5485_v46 = vpop.f32.mrb[137].mxu0  ;;  %12500 = vmatprep.mubr.msk.f32.mxu1 %vm1828_vm1, %v16102_v32  ;;  %v10721_v56 = vld [vmem:[%s18272_s5 + $0xb0] sm:$0xff] }
 0xdf4   :  { %13864 = vtanh.f32 %v5485_v46  ;;  %12501 = vmatmul.mubr.msk.f32.gmra.mrb[34].mxu1 %vm1828_vm1, %v16100_v13  ;;  %v10722_v46 = vld [vmem:[%s18272_s5 + $0xb8] sm:$0xff] }
 0xdf5   :  { %v16112_v10 = vpop.eup %13854 }
 0xdf6   :  { %18392 = vst [vmem:[#allocation35_spill] sm:$0xff] %v16112_v10  ;;  %v16114_v27 = vpop.eup %13856  ;;  %9723 = vrot.lane.b32.xlu1 %v16112_v10, %s14169_s28  ;;  %v12488_v15 = vpop.f32.mrb[138].mxu0 }
 0xdf7   :  { %18393 = vst [vmem:[#allocation36_spill] sm:$0xff] %v16114_v27  ;;  %13866 = vtanh.f32 %v12488_v15  ;;  %9721 = vrot.lane.b32.xlu0 %v16114_v27, %s14169_s28  ;;  %v5495_v29 = vpop.f32.mrb[139].mxu0  ;;  %12503 = vmatprep.mubr.msk.f32.mxu1 %vm1828_vm1, %v16114_v27  ;;  %v13089_v15 = vpack.c.bf16 %v10722_v46, %v10721_v56 }
 0xdf8   :  { %13868 = vtanh.f32 %v5495_v29  ;;  %12504 = vmatmul.mubr.msk.f32.gmra.mrb[36].mxu1 %vm1828_vm1, %v16112_v10  ;;  %v10741_v29 = vld [vmem:[%s18274_s7 + $0xa0] sm:$0xff] }
 0xdf9   :  { %v16124_v26 = vpop.eup %13858  ;;  %13090 = vmatprep.subr.bf16.mxu0 %v13089_v15 }
 0xdfa   :  { %18394 = vst [vmem:[#allocation37_spill] sm:$0xff] %v16124_v26  ;;  %v16126_v21 = vpop.eup %13860  ;;  %9727 = vrot.lane.b32.xlu1 %v16124_v26, %s14169_s28  ;;  %v12491_v28 = vpop.f32.mrb[140].mxu0  ;;  %13092 = vmatpush3.bf16.msra.mxu0 %v13089_v15 }
 0xdfb   :  { %18395 = vst [vmem:[#allocation38_spill] sm:$0xff] %v16126_v21  ;;  %13870 = vtanh.f32 %v12491_v28  ;;  %9725 = vrot.lane.b32.xlu0 %v16126_v21, %s14169_s28  ;;  %v5505_v58 = vpop.f32.mrb[141].mxu0  ;;  %12506 = vmatprep.mubr.msk.f32.mxu1 %vm1828_vm1, %v16126_v21  ;;  %v10742_v28 = vld [vmem:[%s18274_s7 + $0xa8] sm:$0xff] }
 0xdfc   :  { %13872 = vtanh.f32 %v5505_v58  ;;  %12507 = vmatmul.mubr.msk.f32.gmra.mrb[38].mxu1 %vm1828_vm1, %v16124_v26  ;;  %v13093_v58 = vpack.c.bf16 %v10742_v28, %v10741_v29 }
 0xdfd   :  { %v16136_v11 = vpop.eup %13862 }
 0xdfe   :  { %18396 = vst [vmem:[#allocation39_spill] sm:$0xff] %v16136_v11  ;;  %v16138_v7 = vpop.eup %13864  ;;  %9731 = vrot.lane.b32.xlu1 %v16136_v11, %s14169_s28  ;;  %v12494_v52 = vpop.f32.mrb[142].mxu0  ;;  %13094 = vmatprep.subr.bf16.mxu1 %v13093_v58 }
 0xdff   :  { %18397 = vst [vmem:[#allocation40_spill] sm:$0xff] %v16138_v7  ;;  %13874 = vtanh.f32 %v12494_v52  ;;  %9729 = vrot.lane.b32.xlu0 %v16138_v7, %s14169_s28  ;;  %v5515_v23 = vpop.f32.mrb[143].mxu0  ;;  %12509 = vmatprep.mubr.msk.f32.mxu1 %vm1828_vm1, %v16138_v7  ;;  %v16205_v52 = vld [vmem:[%s18275_s4 + $0x5] ss:$0 sm:$0xff] }
 0xe00   :  { %13876 = vtanh.f32 %v5515_v23  ;;  %12510 = vmatmul.mubr.msk.f32.gmra.mrb[40].mxu1 %vm1828_vm1, %v16136_v11 }
 0xe01   :  { %v16154_v38 = vpop.eup %13866  ;;  %13096 = vmatpush3.bf16.msra.mxu1 %v13093_v58 }
 0xe02   :  { %18398 = vst [vmem:[#allocation41_spill] sm:$0xff] %v16154_v38  ;;  %v16156_v14 = vpop.eup %13868  ;;  %9735 = vrot.lane.b32.xlu1 %v16154_v38, %s14169_s28 }
 0xe03   :  { %18399 = vst [vmem:[#allocation42_spill] sm:$0xff] %v16156_v14  ;;  %9733 = vrot.lane.b32.xlu0 %v16156_v14, %s14169_s28  ;;  %12512 = vmatprep.mubr.msk.f32.mxu1 %vm1828_vm1, %v16156_v14 }
 0xe04   :  { %12513 = vmatmul.mubr.msk.f32.gmra.mrb[42].mxu1 %vm1828_vm1, %v16154_v38 }
 0xe05   :  { %v16166_v24 = vpop.eup %13870 }
 0xe06   :  { %18400 = vst [vmem:[#allocation43_spill] sm:$0xff] %v16166_v24  ;;  %v16168_v25 = vpop.eup %13872  ;;  %9739 = vrot.lane.b32.xlu1 %v16166_v24, %s14169_s28 }
 0xe07   :  { %18401 = vst [vmem:[#allocation44_spill] sm:$0xff] %v16168_v25  ;;  %9737 = vrot.lane.b32.xlu0 %v16168_v25, %s14169_s28  ;;  %12515 = vmatprep.mubr.msk.f32.mxu1 %vm1828_vm1, %v16168_v25 }
 0xe08   :  { %12516 = vmatmul.mubr.msk.f32.gmra.mrb[44].mxu1 %vm1828_vm1, %v16166_v24 }
 0xe09   :  { %v16178_v6 = vpop.eup %13874 }
 0xe0a   :  { %18402 = vst [vmem:[#allocation45_spill] sm:$0xff] %v16178_v6  ;;  %v16180_v31 = vpop.eup %13876  ;;  %9743 = vrot.lane.b32.xlu1 %v16178_v6, %s14169_s28 }
 0xe0b   :  { %18403 = vst [vmem:[#allocation46_spill] sm:$0xff] %v16180_v31  ;;  %9741 = vrot.lane.b32.xlu0 %v16180_v31, %s14169_s28  ;;  %12518 = vmatprep.mubr.msk.f32.mxu1 %vm1828_vm1, %v16180_v31 }
 0xe0c   :  { %12519 = vmatmul.mubr.msk.f32.gmra.mrb[46].mxu1 %vm1828_vm1, %v16178_v6 }
 0xec3   :  { %v12499_v12 = vpop.f32.mrb[32].mxu1 }
 0xec4   :  { %v13213_v33 = vadd.f32 %v12499_v12, %v16205_v52  ;;  %v5656_v23 = vpop.f32.mrb[33].mxu1 }
 0xec5   :  { %v13214_v17 = vadd.f32 %v16205_v52, %v5656_v23 }
 0xec6   :  { %v5768_v56 = vmin.f32 %v13213_v33, 0.0  ;;  %vm5752_vm6 = vcmp.gt.f32.partialorder %v13213_v33, 0.0 }
 0xec7   :  { %v5767_v46 = vmin.f32 %v13214_v17, 0.0  ;;  %v12502_v15 = vpop.f32.mrb[34].mxu1  ;;  %vm5751_vm5 = vcmp.gt.f32.partialorder %v13214_v17, 0.0 }
 0xec8   :  { %v5785_v30 = vmul.f32 1.442695, %v5768_v56  ;;  %v16210_v54 = vadd.f32 %v12502_v15, %v16205_v52  ;;  %v5666_v29 = vpop.f32.mrb[35].mxu1 }
 0xec9   :  { %v5783_v28 = vmul.f32 1.442695, %v5767_v46  ;;  %v16213_v58 = vadd.f32 %v16205_v52, %v5666_v29 }
 0xeca   :  { %13878 = vpow2.f32 %v5785_v30  ;;  %v5770_v59 = vmin.f32 %v16210_v54, 0.0  ;;  %vm5754_vm8 = vcmp.gt.f32.partialorder %v16210_v54, 0.0 }
 0xecb   :  { %13880 = vpow2.f32 %v5783_v28  ;;  %v5769_v12 = vmin.f32 %v16213_v58, 0.0  ;;  %v12505_v44 = vpop.f32.mrb[36].mxu1  ;;  %vm5753_vm7 = vcmp.gt.f32.partialorder %v16213_v58, 0.0 }
 0xecc   :  { %v5789_v23 = vmul.f32 1.442695, %v5770_v59  ;;  %v16218_v48 = vadd.f32 %v12505_v44, %v16205_v52  ;;  %v5676_v56 = vpop.f32.mrb[37].mxu1 }
 0xecd   :  { %v5787_v6 = vmul.f32 1.442695, %v5769_v12  ;;  %v16221_v15 = vadd.f32 %v16205_v52, %v5676_v56 }
 0xece   :  { %13882 = vpow2.f32 %v5789_v23  ;;  %v5772_v46 = vmin.f32 %v16218_v48, 0.0  ;;  %vm5756_vm10 = vcmp.gt.f32.partialorder %v16218_v48, 0.0 }
 0xecf   :  { %13884 = vpow2.f32 %v5787_v6  ;;  %v5771_v30 = vmin.f32 %v16221_v15, 0.0  ;;  %v12508_v29 = vpop.f32.mrb[38].mxu1  ;;  %vm5755_vm9 = vcmp.gt.f32.partialorder %v16221_v15, 0.0 }
 0xed0   :  { %v5793_v28 = vmul.f32 1.442695, %v5772_v46  ;;  %v16226_v31 = vadd.f32 %v12508_v29, %v16205_v52  ;;  %v5686_v59 = vpop.f32.mrb[39].mxu1 }
 0xed1   :  { %v5791_v24 = vmul.f32 1.442695, %v5771_v30  ;;  %v16229_v44 = vadd.f32 %v16205_v52, %v5686_v59 }
 0xed2   :  { %13886 = vpow2.f32 %v5793_v28  ;;  %v5774_v12 = vmin.f32 %v16226_v31, 0.0  ;;  %vm5758_vm12 = vcmp.gt.f32.partialorder %v16226_v31, 0.0 }
 0xed3   :  { %13888 = vpow2.f32 %v5791_v24  ;;  %v5773_v23 = vmin.f32 %v16229_v44, 0.0  ;;  %v12511_v56 = vpop.f32.mrb[40].mxu1  ;;  %vm5757_vm11 = vcmp.gt.f32.partialorder %v16229_v44, 0.0 }
 0xed4   :  { %v13879_v6 = vpop.eup %13878  ;;  %v5797_v25 = vmul.f32 1.442695, %v5774_v12  ;;  %v16234_v38 = vadd.f32 %v12511_v56, %v16205_v52  ;;  %v5696_v46 = vpop.f32.mrb[41].mxu1 }
 0xed5   :  { %v13881_v29 = vpop.eup %13880  ;;  %v10704_v14 = vadd.f32 -1.0, %v13879_v6  ;;  %v5795_v11 = vmul.f32 1.442695, %v5773_v23  ;;  %v16237_v30 = vadd.f32 %v16205_v52, %v5696_v46 }
 0xed6   :  { %13890 = vpow2.f32 %v5797_v25  ;;  %v5776_v28 = vmin.f32 %v16234_v38, 0.0  ;;  %v10703_v59 = vadd.f32 -1.0, %v13881_v29  ;;  %vm5760_vm14 = vcmp.gt.f32.partialorder %v16234_v38, 0.0 }
 0xed7   :  { %13892 = vpow2.f32 %v5795_v11  ;;  %v5775_v24 = vmin.f32 %v16237_v30, 0.0  ;;  %v12514_v7 = vpop.f32.mrb[42].mxu1  ;;  %v5832_v46 = vsel %vm5752_vm6, %v13213_v33, %v10704_v14  ;;  %vm5759_vm13 = vcmp.gt.f32.partialorder %v16237_v30, 0.0 }
 0xed8   :  { %v13883_v12 = vpop.eup %13882  ;;  %v5801_v56 = vmul.f32 1.442695, %v5776_v28  ;;  %v16242_v26 = vadd.f32 %v12514_v7, %v16205_v52  ;;  %v5706_v6 = vpop.f32.mrb[43].mxu1  ;;  %v5831_v23 = vsel %vm5751_vm5, %v13214_v17, %v10703_v59 }
 0xed9   :  { %v13885_v21 = vpop.eup %13884  ;;  %v5799_v10 = vmul.f32 1.442695, %v5775_v24  ;;  %v16245_v25 = vadd.f32 %v16205_v52, %v5706_v6  ;;  %12529 = vmatprep.mubr.msk.f32.mxu0 %vm2145_vm2, %v5831_v23  ;;  %v10706_v11 = vadd.f32 -1.0, %v13883_v12 }
 0xeda   :  { %13894 = vpow2.f32 %v5801_v56  ;;  %v5778_v29 = vmin.f32 %v16242_v26, 0.0  ;;  %12530 = vmatmul.mubr.msk.f32.vlgmr.msra.gmra.mrb[144].mxu0 %vm2145_vm2, %v5832_v46  ;;  %v10705_v28 = vadd.f32 -1.0, %v13885_v21  ;;  %vm5762_vm3 = vcmp.gt.f32.partialorder %v16242_v26, 0.0 }
 0xedb   :  { %13896 = vpow2.f32 %v5799_v10  ;;  %v5777_v7 = vmin.f32 %v16245_v25, 0.0  ;;  %v12517_v17 = vpop.f32.mrb[44].mxu1  ;;  %v5834_v10 = vsel %vm5754_vm8, %v16210_v54, %v10706_v11  ;;  %vm5761_vm15 = vcmp.gt.f32.partialorder %v16245_v25, 0.0 }
 0xedc   :  { %v13887_v14 = vpop.eup %13886  ;;  %v5805_v33 = vmul.f32 1.442695, %v5778_v29  ;;  %v16254_v59 = vadd.f32 %v12517_v17, %v16205_v52  ;;  %v5716_v24 = vpop.f32.mrb[45].mxu1  ;;  %v5833_v12 = vsel %vm5753_vm7, %v16213_v58, %v10705_v28  ;;  %vm9921_vm8 = vcmask 130048  }
 0xedd   :  { %v13889_v56 = vpop.eup %13888  ;;  %v5803_v6 = vmul.f32 1.442695, %v5777_v7  ;;  %v16258_v21 = vadd.f32 %v16205_v52, %v5716_v24  ;;  %12532 = vmatprep.mubr.msk.f32.mxu0 %vm2145_vm2, %v5833_v12  ;;  %v10708_v23 = vadd.f32 -1.0, %v13887_v14 }
 0xede   :  { %13898 = vpow2.f32 %v5805_v33  ;;  %v5780_v46 = vmin.f32 %v16254_v59, 0.0  ;;  %12533 = vmatmul.mubr.msk.f32.gmra.mrb[146].mxu0 %vm2145_vm2, %v5834_v10  ;;  %v10707_v29 = vadd.f32 -1.0, %v13889_v56  ;;  %vm5764_vm5 = vcmp.gt.f32.partialorder %v16254_v59, 0.0 }
 0xedf   :  { %13900 = vpow2.f32 %v5803_v6  ;;  %v5779_v58 = vmin.f32 %v16258_v21, 0.0  ;;  %v12520_v28 = vpop.f32.mrb[46].mxu1  ;;  %v5836_v56 = vsel %vm5756_vm10, %v16218_v48, %v10708_v23  ;;  %vm5763_vm4 = vcmp.gt.f32.partialorder %v16258_v21, 0.0 }
 0xee0   :  { %v13891_v7 = vpop.eup %13890  ;;  %v5809_v17 = vmul.f32 1.442695, %v5780_v46  ;;  %v16268_v24 = vadd.f32 %v12520_v28, %v16205_v52  ;;  %v5726_v54 = vpop.f32.mrb[47].mxu1  ;;  %v5835_v11 = vsel %vm5755_vm9, %v16221_v15, %v10707_v29  ;;  %vm9970_vm9 = vcmask 326656  }
 0xee1   :  { %v13893_v14 = vpop.eup %13892  ;;  %v5807_v33 = vmul.f32 1.442695, %v5779_v58  ;;  %v13228_v12 = vadd.f32 %v16205_v52, %v5726_v54  ;;  %12535 = vmatprep.mubr.msk.f32.mxu0 %vm2145_vm2, %v5835_v11  ;;  %v10710_v6 = vadd.f32 -1.0, %v13891_v7 }
 0xee2   :  { %13902 = vpow2.f32 %v5809_v17  ;;  %v5782_v10 = vmin.f32 %v16268_v24, 0.0  ;;  %12536 = vmatmul.mubr.msk.f32.gmra.mrb[148].mxu0 %vm2145_vm2, %v5836_v56  ;;  %v10709_v46 = vadd.f32 -1.0, %v13893_v14  ;;  %vm5766_vm7 = vcmp.gt.f32.partialorder %v16268_v24, 0.0 }
 0xee3   :  { %13904 = vpow2.f32 %v5807_v33  ;;  %v5781_v28 = vmin.f32 %v13228_v12, 0.0  ;;  %v5838_v48 = vsel %vm5758_vm12, %v16226_v31, %v10710_v6  ;;  %vm5765_vm6 = vcmp.gt.f32.partialorder %v13228_v12, 0.0 }
 0xee4   :  { %v13895_v15 = vpop.eup %13894  ;;  %v5813_v29 = vmul.f32 1.442695, %v5782_v10  ;;  %v5837_v52 = vsel %vm5757_vm11, %v16229_v44, %v10709_v46 }
 0xee5   :  { %v13897_v58 = vpop.eup %13896  ;;  %v5811_v54 = vmul.f32 1.442695, %v5781_v28  ;;  %12538 = vmatprep.mubr.msk.f32.mxu0 %vm2145_vm2, %v5837_v52  ;;  %v10712_v23 = vadd.f32 -1.0, %v13895_v15 }
 0xee6   :  { %13906 = vpow2.f32 %v5813_v29  ;;  %12539 = vmatmul.mubr.msk.f32.gmra.mrb[150].mxu0 %vm2145_vm2, %v5838_v48  ;;  %v10711_v7 = vadd.f32 -1.0, %v13897_v58 }
 0xee7   :  { %13908 = vpow2.f32 %v5811_v54  ;;  %v5840_v14 = vsel %vm5760_vm14, %v16234_v38, %v10712_v23 }
 0xee8   :  { %v13899_v17 = vpop.eup %13898  ;;  %v5839_v11 = vsel %vm5759_vm13, %v16237_v30, %v10711_v7 }
 0xee9   :  { %v13901_v44 = vpop.eup %13900  ;;  %12541 = vmatprep.mubr.msk.f32.mxu0 %vm2145_vm2, %v5839_v11  ;;  %v10714_v33 = vadd.f32 -1.0, %v13899_v17 }
 0xeea   :  { %12542 = vmatmul.mubr.msk.f32.gmra.mrb[152].mxu0 %vm2145_vm2, %v5840_v14  ;;  %v10713_v31 = vadd.f32 -1.0, %v13901_v44 }
 0xeeb   :  { %v5842_v30 = vsel %vm5762_vm3, %v16242_v26, %v10714_v33 }
 0xeec   :  { %v13903_v56 = vpop.eup %13902  ;;  %v5841_v6 = vsel %vm5761_vm15, %v16245_v25, %v10713_v31 }
 0xeed   :  { %v13905_v10 = vpop.eup %13904  ;;  %12544 = vmatprep.mubr.msk.f32.mxu0 %vm2145_vm2, %v5841_v6  ;;  %v10716_v46 = vadd.f32 -1.0, %v13903_v56 }
 0xeee   :  { %12545 = vmatmul.mubr.msk.f32.gmra.mrb[154].mxu0 %vm2145_vm2, %v5842_v30  ;;  %v10715_v38 = vadd.f32 -1.0, %v13905_v10 }
 0xeef   :  { %v5844_v25 = vsel %vm5764_vm5, %v16254_v59, %v10716_v46  ;;  %v10744_v59 = vld [vmem:[%s18274_s7 + $0xb8] sm:$0xff] }
 0xef0   :  { %v13907_v28 = vpop.eup %13906  ;;  %v5843_v15 = vsel %vm5763_vm4, %v16258_v21, %v10715_v38  ;;  %v10743_v21 = vld [vmem:[%s18274_s7 + $0xb0] sm:$0xff] }
 0xef1   :  { %v13909_v29 = vpop.eup %13908  ;;  %12547 = vmatprep.mubr.msk.f32.mxu0 %vm2145_vm2, %v5843_v15  ;;  %v10718_v52 = vadd.f32 -1.0, %v13907_v28  ;;  %v13097_v48 = vpack.c.bf16 %v10744_v59, %v10743_v21 }
 0xef2   :  { %12548 = vmatmul.mubr.msk.f32.gmra.mrb[156].mxu0 %vm2145_vm2, %v5844_v25  ;;  %v10717_v26 = vadd.f32 -1.0, %v13909_v29 }
 0xef3   :  { %v5846_v54 = vsel %vm5766_vm7, %v16268_v24, %v10718_v52  ;;  %13098 = vmatprep.subr.bf16.mxu1 %v13097_v48  ;;  %v16316_v24 = vld [vmem:[%s18276_s6 + $0x5] ss:$0 sm:$0xff] }
 0xef4   :  { %v5845_v58 = vsel %vm5765_vm6, %v13228_v12, %v10717_v26  ;;  %13100 = vmatpush3.bf16.msra.mxu1 %v13097_v48  ;;  %v10761_v12 = vld [vmem:[%s18271_s3 + $0x30] sm:$0xff] }
 0xef5   :  { %12550 = vmatprep.mubr.msk.f32.mxu0 %vm2145_vm2, %v5845_v58  ;;  %12585 = vmatprep.subr.mxu0 %v10761_v12 }
 0xef6   :  { %12551 = vmatmul.mubr.msk.f32.gmra.mrb[158].mxu0 %vm2145_vm2, %v5846_v54 }
 0xef7   :  { %12586 = vmatpush3.msra.mxu0 %v10761_v12 }
 0xfad   :  { %v12531_v23 = vpop.f32.mrb[144].mxu0 }
 0xfae   :  { %v5980_v7 = vadd.f32 %v12531_v23, %v16316_v24  ;;  %v5974_v17 = vpop.f32.mrb[145].mxu0 }
 0xfaf   :  { %v5975_v11 = vadd.f32 %v16316_v24, %v5974_v17 }
 0xfb1   :  { %13910 = vtanh.f32 %v5975_v11  ;;  %v12534_v44 = vpop.f32.mrb[146].mxu0 }
 0xfb2   :  { %13912 = vtanh.f32 %v5980_v7  ;;  %v5990_v14 = vadd.f32 %v12534_v44, %v16316_v24  ;;  %v5984_v33 = vpop.f32.mrb[147].mxu0 }
 0xfb3   :  { %v5985_v31 = vadd.f32 %v16316_v24, %v5984_v33 }
 0xfb5   :  { %13914 = vtanh.f32 %v5985_v31  ;;  %v12537_v56 = vpop.f32.mrb[148].mxu0 }
 0xfb6   :  { %13916 = vtanh.f32 %v5990_v14  ;;  %v6000_v6 = vadd.f32 %v12537_v56, %v16316_v24  ;;  %v5994_v10 = vpop.f32.mrb[149].mxu0 }
 0xfb7   :  { %v5995_v30 = vadd.f32 %v16316_v24, %v5994_v10 }
 0xfb9   :  { %13918 = vtanh.f32 %v5995_v30  ;;  %v12540_v46 = vpop.f32.mrb[150].mxu0 }
 0xfba   :  { %13920 = vtanh.f32 %v6000_v6  ;;  %v6010_v38 = vadd.f32 %v12540_v46, %v16316_v24  ;;  %v6004_v28 = vpop.f32.mrb[151].mxu0 }
 0xfbb   :  { %v13911_v15 = vpop.eup %13910  ;;  %v6005_v29 = vadd.f32 %v16316_v24, %v6004_v28 }
 0xfbc   :  { %v13913_v25 = vpop.eup %13912  ;;  %12561 = vmatprep.mubr.msk.f32.mxu1 %vm2145_vm2, %v13911_v15 }
 0xfbd   :  { %13922 = vtanh.f32 %v6005_v29  ;;  %v12543_v52 = vpop.f32.mrb[152].mxu0  ;;  %12562 = vmatmul.mubr.msk.f32.vlgmr.msra.gmra.mrb[144].mxu1 %vm2145_vm2, %v13913_v25 }
 0xfbe   :  { %13924 = vtanh.f32 %v6010_v38  ;;  %v6020_v26 = vadd.f32 %v12543_v52, %v16316_v24  ;;  %v6014_v58 = vpop.f32.mrb[153].mxu0 }
 0xfbf   :  { %v13915_v54 = vpop.eup %13914  ;;  %v6015_v21 = vadd.f32 %v16316_v24, %v6014_v58 }
 0xfc0   :  { %v13917_v59 = vpop.eup %13916  ;;  %12564 = vmatprep.mubr.msk.f32.mxu1 %vm2145_vm2, %v13915_v54  ;;  %v16350_v54 = vpop.permute.xlu1 %9571 }
 0xfc1   :  { %13926 = vtanh.f32 %v6015_v21  ;;  %v12546_v48 = vpop.f32.mrb[154].mxu0  ;;  %12565 = vmatmul.mubr.msk.f32.gmra.mrb[146].mxu1 %vm2145_vm2, %v13917_v59  ;;  %18404 = vst [vmem:[#allocation47_spill] sm:$0xff] %v16350_v54  ;;  %v16352_v21 = vpop.permute.xlu0 %9569 }
 0xfc2   :  { %13928 = vtanh.f32 %v6020_v26  ;;  %v6030_v12 = vadd.f32 %v12546_v48, %v16316_v24  ;;  %v6024_v23 = vpop.f32.mrb[155].mxu0  ;;  %18405 = vst [vmem:[#allocation48_spill] sm:$0xff] %v16352_v21 }
 0xfc3   :  { %v13919_v7 = vpop.eup %13918  ;;  %v6025_v17 = vadd.f32 %v16316_v24, %v6024_v23 }
 0xfc4   :  { %v13921_v11 = vpop.eup %13920  ;;  %12567 = vmatprep.mubr.msk.f32.mxu1 %vm2145_vm2, %v13919_v7  ;;  %v16354_v59 = vpop.permute.xlu1 %9575 }
 0xfc5   :  { %13930 = vtanh.f32 %v6025_v17  ;;  %v12549_v44 = vpop.f32.mrb[156].mxu0  ;;  %12568 = vmatmul.mubr.msk.f32.gmra.mrb[148].mxu1 %vm2145_vm2, %v13921_v11  ;;  %18406 = vst [vmem:[#allocation49_spill] sm:$0xff] %v16354_v59  ;;  %v16356_v48 = vpop.permute.xlu0 %9573 }
 0xfc6   :  { %13932 = vtanh.f32 %v6030_v12  ;;  %v6040_v14 = vadd.f32 %v12549_v44, %v16316_v24  ;;  %v6034_v33 = vpop.f32.mrb[157].mxu0  ;;  %18407 = vst [vmem:[#allocation50_spill] sm:$0xff] %v16356_v48 }
 0xfc7   :  { %v13923_v31 = vpop.eup %13922  ;;  %v6035_v56 = vadd.f32 %v16316_v24, %v6034_v33 }
 0xfc8   :  { %v13925_v6 = vpop.eup %13924  ;;  %12570 = vmatprep.mubr.msk.f32.mxu1 %vm2145_vm2, %v13923_v31  ;;  %v16358_v12 = vpop.permute.xlu1 %9579 }
 0xfc9   :  { %13934 = vtanh.f32 %v6035_v56  ;;  %v12552_v10 = vpop.f32.mrb[158].mxu0  ;;  %12571 = vmatmul.mubr.msk.f32.gmra.mrb[150].mxu1 %vm2145_vm2, %v13925_v6  ;;  %18408 = vst [vmem:[#allocation51_spill] sm:$0xff] %v16358_v12  ;;  %v16360_v23 = vpop.permute.xlu0 %9577 }
 0xfca   :  { %13936 = vtanh.f32 %v6040_v14  ;;  %v6050_v30 = vadd.f32 %v12552_v10, %v16316_v24  ;;  %v6044_v46 = vpop.f32.mrb[159].mxu0  ;;  %18409 = vst [vmem:[#allocation52_spill] sm:$0xff] %v16360_v23 }
 0xfcb   :  { %v13927_v38 = vpop.eup %13926  ;;  %v6045_v28 = vadd.f32 %v16316_v24, %v6044_v46 }
 0xfcc   :  { %v13929_v15 = vpop.eup %13928  ;;  %12573 = vmatprep.mubr.msk.f32.mxu1 %vm2145_vm2, %v13927_v38  ;;  %v16362_v7 = vpop.permute.xlu1 %9583 }
 0xfcd   :  { %13938 = vtanh.f32 %v6045_v28  ;;  %12574 = vmatmul.mubr.msk.f32.gmra.mrb[152].mxu1 %vm2145_vm2, %v13929_v15  ;;  %18410 = vst [vmem:[#allocation53_spill] sm:$0xff] %v16362_v7  ;;  %v16364_v17 = vpop.permute.xlu0 %9581 }
 0xfce   :  { %13940 = vtanh.f32 %v6050_v30  ;;  %18411 = vst [vmem:[#allocation54_spill] sm:$0xff] %v16364_v17 }
 0xfcf   :  { %v13931_v29 = vpop.eup %13930 }
 0xfd0   :  { %v13933_v25 = vpop.eup %13932  ;;  %12576 = vmatprep.mubr.msk.f32.mxu1 %vm2145_vm2, %v13931_v29  ;;  %v16366_v11 = vpop.permute.xlu1 %9587 }
 0xfd1   :  { %12577 = vmatmul.mubr.msk.f32.gmra.mrb[154].mxu1 %vm2145_vm2, %v13933_v25  ;;  %18412 = vst [vmem:[#allocation55_spill] sm:$0xff] %v16366_v11  ;;  %v16368_v44 = vpop.permute.xlu0 %9585 }
 0xfd2   :  { %18413 = vst [vmem:[#allocation56_spill] sm:$0xff] %v16368_v44 }
 0xfd3   :  { %v13935_v52 = vpop.eup %13934 }
 0xfd4   :  { %v13937_v26 = vpop.eup %13936  ;;  %12579 = vmatprep.mubr.msk.f32.mxu1 %vm2145_vm2, %v13935_v52  ;;  %v16370_v14 = vpop.permute.xlu1 %9591 }
 0xfd5   :  { %12580 = vmatmul.mubr.msk.f32.gmra.mrb[156].mxu1 %vm2145_vm2, %v13937_v26  ;;  %18414 = vst [vmem:[#allocation57_spill] sm:$0xff] %v16370_v14  ;;  %v16372_v33 = vpop.permute.xlu0 %9589 }
 0xfd6   :  { %18415 = vst [vmem:[#allocation58_spill] sm:$0xff] %v16372_v33 }
 0xfd7   :  { %v13939_v24 = vpop.eup %13938 }
 0xfd8   :  { %v13941_v58 = vpop.eup %13940  ;;  %12582 = vmatprep.mubr.msk.f32.mxu1 %vm2145_vm2, %v13939_v24  ;;  %v16374_v31 = vpop.permute.xlu1 %9595 }
 0xfd9   :  { %12583 = vmatmul.mubr.msk.f32.gmra.mrb[158].mxu1 %vm2145_vm2, %v13941_v58  ;;  %18416 = vst [vmem:[#allocation59_spill] sm:$0xff] %v16374_v31  ;;  %v16376_v56 = vpop.permute.xlu0 %9593 }
 0xfda   :  { %18417 = vst [vmem:[#allocation60_spill] sm:$0xff] %v16376_v56 }
 0xfdc   :  { %v16378_v6 = vpop.permute.xlu1 %9599 }
 0xfdd   :  { %v16380_v10 = vpop.permute.xlu0 %9597 }
 0xfe0   :  { %v16382_v30 = vpop.permute.xlu1 %9619 }
 0xfe1   :  { %18418 = vst [vmem:[#allocation61_spill] sm:$0xff] %v16382_v30  ;;  %v16384_v46 = vpop.permute.xlu0 %9617 }
 0xfe2   :  { %18419 = vst [vmem:[#allocation62_spill] sm:$0xff] %v16384_v46 }
 0xfe4   :  { %v16386_v38 = vpop.permute.xlu1 %9623 }
 0xfe5   :  { %18420 = vst [vmem:[#allocation63_spill] sm:$0xff] %v16386_v38  ;;  %v16388_v28 = vpop.permute.xlu0 %9621 }
 0xfe6   :  { %18421 = vst [vmem:[#allocation64_spill] sm:$0xff] %v16388_v28 }
 0xfe8   :  { %v16390_v15 = vpop.permute.xlu1 %9627 }
 0xfe9   :  { %18422 = vst [vmem:[#allocation65_spill] sm:$0xff] %v16390_v15  ;;  %v16392_v25 = vpop.permute.xlu0 %9625 }
 0xfea   :  { %18423 = vst [vmem:[#allocation66_spill] sm:$0xff] %v16392_v25  ;;  %v10795_v25 = vld [vmem:[%s18272_s5 + $0xc8] sm:$0xff] }
 0xfec   :  { %v16394_v58 = vpop.permute.xlu1 %9631 }
 0xfed   :  { %18424 = vst [vmem:[#allocation67_spill] sm:$0xff] %v16394_v58  ;;  %v16396_v56 = vpop.permute.xlu0 %9629 }
 0xfee   :  { %18425 = vst [vmem:[#allocation68_spill] sm:$0xff] %v16396_v56 }
 0xff0   :  { %v16402_v11 = vpop.permute.xlu1 %9635 }
 0xff1   :  { %18428 = vst [vmem:[#allocation71_spill] sm:$0xff] %v16402_v11 }
0x1090   :  { %v12563_v29 = vpop.f32.mrb[144].mxu1 }
0x1091   :  { %13942 = vtanh.f32 %v12563_v29  ;;  %v6188_v52 = vpop.f32.mrb[145].mxu1 }
0x1092   :  { %13944 = vtanh.f32 %v6188_v52  ;;  %v16406_v52 = vpop.permute.xlu0 %9633 }
0x1093   :  { %18429 = vst [vmem:[#allocation72_spill] sm:$0xff] %v16406_v52 }
0x1094   :  { %v12566_v26 = vpop.f32.mrb[146].mxu1 }
0x1095   :  { %13946 = vtanh.f32 %v12566_v26  ;;  %v6198_v24 = vpop.f32.mrb[147].mxu1 }
0x1096   :  { %13948 = vtanh.f32 %v6198_v24  ;;  %v16430_v11 = vpop.permute.xlu0 %9637 }
0x1097   :  { %18434 = vst [vmem:[#allocation77_spill] sm:$0xff] %v16430_v11 }
0x1098   :  { %v12569_v31 = vpop.f32.mrb[148].mxu1 }
0x1099   :  { %13950 = vtanh.f32 %v12569_v31  ;;  %v6208_v33 = vpop.f32.mrb[149].mxu1 }
0x109a   :  { %13952 = vtanh.f32 %v6208_v33  ;;  %v16450_v17 = vpop.permute.xlu0 %9641 }
0x109b   :  { %v16398_v14 = vpop.eup %13942  ;;  %18439 = vst [vmem:[#allocation82_spill] sm:$0xff] %v16450_v17 }
0x109c   :  { %18426 = vst [vmem:[#allocation69_spill] sm:$0xff] %v16398_v14  ;;  %v16400_v44 = vpop.eup %13944  ;;  %9763 = vrot.lane.b32.xlu1 %v16398_v14, %s14170_s30  ;;  %v12572_v29 = vpop.f32.mrb[150].mxu1 }
0x109d   :  { %18427 = vst [vmem:[#allocation70_spill] sm:$0xff] %v16400_v44  ;;  %13954 = vtanh.f32 %v12572_v29  ;;  %9761 = vrot.lane.b32.xlu0 %v16400_v44, %s14170_s30  ;;  %v6218_v31 = vpop.f32.mrb[151].mxu1  ;;  %12587 = vmatprep.mubr.msk.f32.mxu0 %vm1828_vm1, %v16400_v44 }
0x109e   :  { %13956 = vtanh.f32 %v6218_v31  ;;  %12588 = vmatmul.mubr.msk.f32.vlgmr.msra.gmra.mrb[48].mxu0 %vm1828_vm1, %v16398_v14  ;;  %v16424_v31 = vpop.permute.xlu1 %9639  ;;  %v16480_v28 = vpop.permute.xlu0 %9645 }
0x109f   :  { %v16414_v33 = vpop.eup %13946  ;;  %18432 = vst [vmem:[#allocation75_spill] sm:$0xff] %v16424_v31 }
0x10a0   :  { %18430 = vst [vmem:[#allocation73_spill] sm:$0xff] %v16414_v33  ;;  %v16416_v26 = vpop.eup %13948  ;;  %9767 = vrot.lane.b32.xlu1 %v16414_v33, %s14170_s30  ;;  %v12575_v24 = vpop.f32.mrb[152].mxu1 }
0x10a1   :  { %18431 = vst [vmem:[#allocation74_spill] sm:$0xff] %v16416_v26  ;;  %13958 = vtanh.f32 %v12575_v24  ;;  %9765 = vrot.lane.b32.xlu0 %v16416_v26, %s14170_s30  ;;  %v6228_v29 = vpop.f32.mrb[153].mxu1  ;;  %12590 = vmatprep.mubr.msk.f32.mxu0 %vm1828_vm1, %v16416_v26 }
0x10a2   :  { %13960 = vtanh.f32 %v6228_v29  ;;  %12591 = vmatmul.mubr.msk.f32.gmra.mrb[50].mxu0 %vm1828_vm1, %v16414_v33  ;;  %v16446_v31 = vpop.permute.xlu1 %9643 }
0x10a3   :  { %v16428_v52 = vpop.eup %13950  ;;  %18438 = vst [vmem:[#allocation81_spill] sm:$0xff] %v16446_v31 }
0x10a4   :  { %18433 = vst [vmem:[#allocation76_spill] sm:$0xff] %v16428_v52  ;;  %v16432_v56 = vpop.eup %13952  ;;  %9771 = vrot.lane.b32.xlu1 %v16428_v52, %s14170_s30  ;;  %v12578_v24 = vpop.f32.mrb[154].mxu1 }
0x10a5   :  { %18435 = vst [vmem:[#allocation78_spill] sm:$0xff] %v16432_v56  ;;  %13962 = vtanh.f32 %v12578_v24  ;;  %9769 = vrot.lane.b32.xlu0 %v16432_v56, %s14170_s30  ;;  %v6238_v58 = vpop.f32.mrb[155].mxu1  ;;  %12593 = vmatprep.mubr.msk.f32.mxu0 %vm1828_vm1, %v16432_v56 }
0x10a6   :  { %13964 = vtanh.f32 %v6238_v58  ;;  %12594 = vmatmul.mubr.msk.f32.gmra.mrb[52].mxu0 %vm1828_vm1, %v16428_v52  ;;  %v16474_v23 = vpop.permute.xlu1 %9647 }
0x10a7   :  { %v16442_v29 = vpop.eup %13954 }
0x10a8   :  { %18436 = vst [vmem:[#allocation79_spill] sm:$0xff] %v16442_v29  ;;  %v16444_v11 = vpop.eup %13956  ;;  %9775 = vrot.lane.b32.xlu1 %v16442_v29, %s14170_s30  ;;  %v12581_v24 = vpop.f32.mrb[156].mxu1 }
0x10a9   :  { %18437 = vst [vmem:[#allocation80_spill] sm:$0xff] %v16444_v11  ;;  %13966 = vtanh.f32 %v12581_v24  ;;  %9773 = vrot.lane.b32.xlu0 %v16444_v11, %s14170_s30  ;;  %v6248_v58 = vpop.f32.mrb[157].mxu1  ;;  %12596 = vmatprep.mubr.msk.f32.mxu0 %vm1828_vm1, %v16444_v11  ;;  %v10794_v24 = vld [vmem:[%s18272_s5 + $0xc0] sm:$0xff] }
0x10aa   :  { %13968 = vtanh.f32 %v6248_v58  ;;  %12597 = vmatmul.mubr.msk.f32.gmra.mrb[54].mxu0 %vm1828_vm1, %v16442_v29  ;;  %v13101_v15 = vpack.c.bf16 %v10795_v25, %v10794_v24  ;;  %v16490_v25 = vpop.permute.xlu1 %9667 }
0x10ab   :  { %v16458_v7 = vpop.eup %13958  ;;  %18444 = vst [vmem:[#allocation87_spill] sm:$0xff] %v16490_v25 }
0x10ac   :  { %18440 = vst [vmem:[#allocation83_spill] sm:$0xff] %v16458_v7  ;;  %v16460_v31 = vpop.eup %13960  ;;  %9779 = vrot.lane.b32.xlu1 %v16458_v7, %s14170_s30  ;;  %v12584_v17 = vpop.f32.mrb[158].mxu1  ;;  %13102 = vmatprep.subr.bf16.mxu1 %v13101_v15 }
0x10ad   :  { %18441 = vst [vmem:[#allocation84_spill] sm:$0xff] %v16460_v31  ;;  %13970 = vtanh.f32 %v12584_v17  ;;  %9777 = vrot.lane.b32.xlu0 %v16460_v31, %s14170_s30  ;;  %v6258_v58 = vpop.f32.mrb[159].mxu1  ;;  %12599 = vmatprep.mubr.msk.f32.mxu0 %vm1828_vm1, %v16460_v31 }
0x10ae   :  { %13972 = vtanh.f32 %v6258_v58  ;;  %12600 = vmatmul.mubr.msk.f32.gmra.mrb[56].mxu0 %vm1828_vm1, %v16458_v7  ;;  %13104 = vmatpush3.bf16.msra.mxu1 %v13101_v15  ;;  %v16496_v58 = vpop.permute.xlu0 %9665  ;;  %v16512_v25 = vpop.permute.xlu1 %9671 }
0x10af   :  { %v16478_v12 = vpop.eup %13962  ;;  %18446 = vst [vmem:[#allocation89_spill] sm:$0xff] %v16496_v58  ;;  %18450 = vst [vmem:[#allocation93_spill] sm:$0xff] %v16512_v25 }
0x10b0   :  { %18442 = vst [vmem:[#allocation85_spill] sm:$0xff] %v16478_v12  ;;  %v16482_v17 = vpop.eup %13964  ;;  %9783 = vrot.lane.b32.xlu1 %v16478_v12, %s14170_s30 }
0x10b1   :  { %18443 = vst [vmem:[#allocation86_spill] sm:$0xff] %v16482_v17  ;;  %9781 = vrot.lane.b32.xlu0 %v16482_v17, %s14170_s30  ;;  %12602 = vmatprep.mubr.msk.f32.mxu0 %vm1828_vm1, %v16482_v17 }
0x10b2   :  { %12603 = vmatmul.mubr.msk.f32.gmra.mrb[58].mxu0 %vm1828_vm1, %v16478_v12  ;;  %v16516_v58 = vpop.permute.xlu0 %9669  ;;  %v16524_v46 = vpop.permute.xlu1 %9675 }
0x10b3   :  { %v16494_v24 = vpop.eup %13966  ;;  %18451 = vst [vmem:[#allocation94_spill] sm:$0xff] %v16516_v58  ;;  %18452 = vst [vmem:[#allocation95_spill] sm:$0xff] %v16524_v46 }
0x10b4   :  { %18445 = vst [vmem:[#allocation88_spill] sm:$0xff] %v16494_v24  ;;  %v16498_v38 = vpop.eup %13968  ;;  %9787 = vrot.lane.b32.xlu1 %v16494_v24, %s14170_s30 }
0x10b5   :  { %18447 = vst [vmem:[#allocation90_spill] sm:$0xff] %v16498_v38  ;;  %9785 = vrot.lane.b32.xlu0 %v16498_v38, %s14170_s30  ;;  %12605 = vmatprep.mubr.msk.f32.mxu0 %vm1828_vm1, %v16498_v38 }
0x10b6   :  { %12606 = vmatmul.mubr.msk.f32.gmra.mrb[60].mxu0 %vm1828_vm1, %v16494_v24  ;;  %v16526_v59 = vpop.permute.xlu0 %9673  ;;  %v16528_v30 = vpop.permute.xlu1 %9679 }
0x10b7   :  { %v16508_v15 = vpop.eup %13970  ;;  %18453 = vst [vmem:[#allocation96_spill] sm:$0xff] %v16526_v59  ;;  %18454 = vst [vmem:[#allocation97_spill] sm:$0xff] %v16528_v30 }
0x10b8   :  { %18448 = vst [vmem:[#allocation91_spill] sm:$0xff] %v16508_v15  ;;  %v16510_v48 = vpop.eup %13972  ;;  %9791 = vrot.lane.b32.xlu1 %v16508_v15, %s14170_s30 }
0x10b9   :  { %18449 = vst [vmem:[#allocation92_spill] sm:$0xff] %v16510_v48  ;;  %9789 = vrot.lane.b32.xlu0 %v16510_v48, %s14170_s30  ;;  %12608 = vmatprep.mubr.msk.f32.mxu0 %vm1828_vm1, %v16510_v48 }
0x10ba   :  { %12609 = vmatmul.mubr.msk.f32.gmra.mrb[62].mxu0 %vm1828_vm1, %v16508_v15  ;;  %v16530_v25 = vpop.permute.xlu0 %9677  ;;  %v16532_v21 = vpop.permute.xlu1 %9683 }
0x10bb   :  { %18455 = vst [vmem:[#allocation98_spill] sm:$0xff] %v16530_v25  ;;  %18456 = vst [vmem:[#allocation99_spill] sm:$0xff] %v16532_v21 }
0x10be   :  { %v16534_v58 = vpop.permute.xlu0 %9681  ;;  %v16536_v54 = vpop.permute.xlu1 %9687 }
0x10bf   :  { %18457 = vst [vmem:[#allocation100_spill] sm:$0xff] %v16534_v58  ;;  %18458 = vst [vmem:[#allocation101_spill] sm:$0xff] %v16536_v54 }
0x10c2   :  { %v16538_v24 = vpop.permute.xlu0 %9685  ;;  %v16540_v48 = vpop.permute.xlu1 %9691 }
0x10c3   :  { %18459 = vst [vmem:[#allocation102_spill] sm:$0xff] %v16538_v24  ;;  %18460 = vst [vmem:[#allocation103_spill] sm:$0xff] %v16540_v48 }
0x10c6   :  { %v16542_v38 = vpop.permute.xlu0 %9689  ;;  %v9696_v15 = vpop.permute.xlu1 %9695 }
0x10c7   :  { %18461 = vst [vmem:[#allocation104_spill] sm:$0xff] %v16542_v38 }
0x10ca   :  { %v9694_v46 = vpop.permute.xlu0 %9693  ;;  %v16544_v12 = vpop.permute.xlu1 %9715 }
0x10cb   :  { %18462 = vst [vmem:[#allocation105_spill] sm:$0xff] %v16544_v12 }
0x10ce   :  { %v16546_v59 = vpop.permute.xlu0 %9713  ;;  %v16548_v30 = vpop.permute.xlu1 %9719 }
0x10cf   :  { %18463 = vst [vmem:[#allocation106_spill] sm:$0xff] %v16546_v59  ;;  %18464 = vst [vmem:[#allocation107_spill] sm:$0xff] %v16548_v30 }
0x10d2   :  { %v16550_v25 = vpop.permute.xlu0 %9717  ;;  %v16552_v21 = vpop.permute.xlu1 %9723 }
0x10d3   :  { %18465 = vst [vmem:[#allocation108_spill] sm:$0xff] %v16550_v25  ;;  %18466 = vst [vmem:[#allocation109_spill] sm:$0xff] %v16552_v21  ;;  %v10796_v25 = vld [vmem:[%s18272_s5 + $0xd0] sm:$0xff] }
0x10d6   :  { %v16554_v58 = vpop.permute.xlu0 %9721  ;;  %v16556_v54 = vpop.permute.xlu1 %9727 }
0x10d7   :  { %18467 = vst [vmem:[#allocation110_spill] sm:$0xff] %v16554_v58  ;;  %18468 = vst [vmem:[#allocation111_spill] sm:$0xff] %v16556_v54  ;;  %v10797_v58 = vld [vmem:[%s18272_s5 + $0xd8] sm:$0xff] }
0x10d8   :  { %v13105_v21 = vpack.c.bf16 %v10797_v58, %v10796_v25 }
0x10da   :  { %v16558_v24 = vpop.permute.xlu0 %9725  ;;  %v16560_v48 = vpop.permute.xlu1 %9731  ;;  %13106 = vmatprep.subr.bf16.mxu1 %v13105_v21 }
0x10db   :  { %18469 = vst [vmem:[#allocation112_spill] sm:$0xff] %v16558_v24  ;;  %18470 = vst [vmem:[#allocation113_spill] sm:$0xff] %v16560_v48  ;;  %13108 = vmatpush3.bf16.msra.mxu1 %v13105_v21 }
0x10de   :  { %v16562_v38 = vpop.permute.xlu0 %9729  ;;  %v16564_v17 = vpop.permute.xlu1 %9735 }
0x10df   :  { %18471 = vst [vmem:[#allocation114_spill] sm:$0xff] %v16562_v38  ;;  %18472 = vst [vmem:[#allocation115_spill] sm:$0xff] %v16564_v17 }
0x10e2   :  { %v16566_v12 = vpop.permute.xlu0 %9733  ;;  %v16574_v54 = vpop.permute.xlu1 %9739 }
0x10e3   :  { %18473 = vst [vmem:[#allocation116_spill] sm:$0xff] %v16566_v12  ;;  %18474 = vst [vmem:[#allocation117_spill] sm:$0xff] %v16574_v54 }
0x10e6   :  { %v16576_v24 = vpop.permute.xlu0 %9737  ;;  %v9744_v38 = vpop.permute.xlu1 %9743 }
0x10e7   :  { %18475 = vst [vmem:[#allocation118_spill] sm:$0xff] %v16576_v24 }
0x10ea   :  { %v9742_v48 = vpop.permute.xlu0 %9741 }
0x110e   :  { %v16578_v17 = vpop.permute.xlu1 %9763 }
0x110f   :  { %18476 = vst [vmem:[#allocation119_spill] sm:$0xff] %v16578_v17  ;;  %v16580_v12 = vpop.permute.xlu0 %9761 }
0x1110   :  { %18477 = vst [vmem:[#allocation120_spill] sm:$0xff] %v16580_v12 }
0x1112   :  { %v16582_v30 = vpop.permute.xlu1 %9767 }
0x1113   :  { %18478 = vst [vmem:[#allocation121_spill] sm:$0xff] %v16582_v30  ;;  %v16584_v59 = vpop.permute.xlu0 %9765 }
0x1114   :  { %18479 = vst [vmem:[#allocation122_spill] sm:$0xff] %v16584_v59  ;;  %v10816_v59 = vld [vmem:[%s18274_s7 + $0xc0] sm:$0xff] }
0x1116   :  { %v16586_v7 = vpop.permute.xlu1 %9771 }
0x1117   :  { %18480 = vst [vmem:[#allocation123_spill] sm:$0xff] %v16586_v7  ;;  %v16588_v31 = vpop.permute.xlu0 %9769 }
0x1118   :  { %18481 = vst [vmem:[#allocation124_spill] sm:$0xff] %v16588_v31  ;;  %v10817_v31 = vld [vmem:[%s18274_s7 + $0xc8] sm:$0xff] }
0x1119   :  { %v13109_v7 = vpack.c.bf16 %v10817_v31, %v10816_v59 }
0x111a   :  { %v16590_v25 = vpop.permute.xlu1 %9775 }
0x111b   :  { %18482 = vst [vmem:[#allocation125_spill] sm:$0xff] %v16590_v25  ;;  %v16592_v58 = vpop.permute.xlu0 %9773  ;;  %13110 = vmatprep.subr.bf16.mxu0 %v13109_v7 }
0x111c   :  { %18483 = vst [vmem:[#allocation126_spill] sm:$0xff] %v16592_v58  ;;  %13112 = vmatpush3.bf16.msra.mxu0 %v13109_v7  ;;  %v16635_v7 = vld [vmem:[%s18275_s4 + $0x6] ss:$0 sm:$0xff] }
0x111e   :  { %v16594_v24 = vpop.permute.xlu1 %9779 }
0x111f   :  { %18484 = vst [vmem:[#allocation127_spill] sm:$0xff] %v16594_v24  ;;  %v16596_v21 = vpop.permute.xlu0 %9777  ;;  %v9920_v24 = vsel %vm1828_vm1, %v15136_v4, %v16378_v6 }
0x1120   :  { %18485 = vst [vmem:[#allocation128_spill] sm:$0xff] %v16596_v21 }
0x1122   :  { %v16598_v54 = vpop.permute.xlu1 %9783 }
0x1123   :  { %18486 = vst [vmem:[#allocation129_spill] sm:$0xff] %v16598_v54  ;;  %v16600_v17 = vpop.permute.xlu0 %9781  ;;  %v9937_v54 = vsel %vm9921_vm8, %v9920_v24, %v16474_v23 }
0x1124   :  { %18487 = vst [vmem:[#allocation130_spill] sm:$0xff] %v16600_v17  ;;  %v9919_v17 = vsel %vm1828_vm1, %v15134_v2, %v16380_v10  ;;  %v9953_v31 = vsel %vm63_vm0, %v9937_v54, %v9696_v15 }
0x1125   :  { %v9936_v59 = vsel %vm9921_vm8, %v9919_v17, %v16480_v28  ;;  %v9969_v6 = vsel %vm2145_vm2, %v9953_v31, %v9744_v38 }
0x1126   :  { %v16608_v25 = vpop.permute.xlu1 %9787 }
0x1127   :  { %18488 = vst [vmem:[#allocation131_spill] sm:$0xff] %v16608_v25  ;;  %v16613_v21 = vpop.permute.xlu0 %9785  ;;  %v9952_v25 = vsel %vm63_vm0, %v9936_v59, %v9694_v46 }
0x1128   :  { %18489 = vst [vmem:[#allocation132_spill] sm:$0xff] %v16613_v21  ;;  %v9968_v58 = vsel %vm2145_vm2, %v9952_v25, %v9742_v48 }
0x112a   :  { %v9792_v21 = vpop.permute.xlu1 %9791 }
0x112b   :  { %v16627_v30 = vsel %vm9970_vm9, %v9969_v6, %v9792_v21  ;;  %v9790_v10 = vpop.permute.xlu0 %9789 }
0x112c   :  { %v16630_v23 = vsel %vm9970_vm9, %v9968_v58, %v9790_v10 }
0x1171   :  { %v12589_v54 = vpop.f32.mrb[48].mxu0 }
0x1172   :  { %v13229_v46 = vadd.f32 %v12589_v54, %v16635_v7  ;;  %v6399_v38 = vpop.f32.mrb[49].mxu0 }
0x1173   :  { %v13230_v28 = vadd.f32 %v16635_v7, %v6399_v38 }
0x1174   :  { %v6511_v17 = vmin.f32 %v13229_v46, 0.0  ;;  %vm6495_vm11 = vcmp.gt.f32.partialorder %v13229_v46, 0.0 }
0x1175   :  { %v6510_v48 = vmin.f32 %v13230_v28, 0.0  ;;  %v12592_v24 = vpop.f32.mrb[50].mxu0  ;;  %vm6494_vm10 = vcmp.gt.f32.partialorder %v13230_v28, 0.0 }
0x1176   :  { %v6528_v15 = vmul.f32 1.442695, %v6511_v17  ;;  %v16640_v25 = vadd.f32 %v12592_v24, %v16635_v7  ;;  %v6409_v58 = vpop.f32.mrb[51].mxu0 }
0x1177   :  { %v6526_v21 = vmul.f32 1.442695, %v6510_v48  ;;  %v16643_v59 = vadd.f32 %v16635_v7, %v6409_v58 }
0x1178   :  { %13974 = vpow2.f32 %v6528_v15  ;;  %v6513_v31 = vmin.f32 %v16640_v25, 0.0  ;;  %vm6497_vm13 = vcmp.gt.f32.partialorder %v16640_v25, 0.0 }
0x1179   :  { %13976 = vpow2.f32 %v6526_v21  ;;  %v6512_v6 = vmin.f32 %v16643_v59, 0.0  ;;  %v12595_v10 = vpop.f32.mrb[52].mxu0  ;;  %vm6496_vm12 = vcmp.gt.f32.partialorder %v16643_v59, 0.0 }
0x117a   :  { %v6532_v54 = vmul.f32 1.442695, %v6513_v31  ;;  %v16648_v38 = vadd.f32 %v12595_v10, %v16635_v7  ;;  %v6419_v17 = vpop.f32.mrb[53].mxu0 }
0x117b   :  { %v6530_v12 = vmul.f32 1.442695, %v6512_v6  ;;  %v16651_v24 = vadd.f32 %v16635_v7, %v6419_v17 }
0x117c   :  { %13978 = vpow2.f32 %v6532_v54  ;;  %v6515_v48 = vmin.f32 %v16648_v38, 0.0  ;;  %vm6499_vm15 = vcmp.gt.f32.partialorder %v16648_v38, 0.0 }
0x117d   :  { %13980 = vpow2.f32 %v6530_v12  ;;  %v6514_v15 = vmin.f32 %v16651_v24, 0.0  ;;  %v12598_v58 = vpop.f32.mrb[54].mxu0  ;;  %vm6498_vm14 = vcmp.gt.f32.partialorder %v16651_v24, 0.0 }
0x117e   :  { %v6536_v21 = vmul.f32 1.442695, %v6515_v48  ;;  %v16656_v29 = vadd.f32 %v12598_v58, %v16635_v7  ;;  %v6429_v31 = vpop.f32.mrb[55].mxu0 }
0x117f   :  { %v6534_v11 = vmul.f32 1.442695, %v6514_v15  ;;  %v16659_v10 = vadd.f32 %v16635_v7, %v6429_v31 }
0x1180   :  { %13982 = vpow2.f32 %v6536_v21  ;;  %v6517_v6 = vmin.f32 %v16656_v29, 0.0  ;;  %vm6501_vm4 = vcmp.gt.f32.partialorder %v16656_v29, 0.0 }
0x1181   :  { %13984 = vpow2.f32 %v6534_v11  ;;  %v6516_v54 = vmin.f32 %v16659_v10, 0.0  ;;  %v12601_v17 = vpop.f32.mrb[56].mxu0  ;;  %vm6500_vm3 = vcmp.gt.f32.partialorder %v16659_v10, 0.0 }
0x1182   :  { %v13975_v12 = vpop.eup %13974  ;;  %v6540_v52 = vmul.f32 1.442695, %v6517_v6  ;;  %v16664_v56 = vadd.f32 %v12601_v17, %v16635_v7  ;;  %v6439_v48 = vpop.f32.mrb[57].mxu0 }
0x1183   :  { %v13977_v58 = vpop.eup %13976  ;;  %v10779_v33 = vadd.f32 -1.0, %v13975_v12  ;;  %v6538_v26 = vmul.f32 1.442695, %v6516_v54  ;;  %v16667_v15 = vadd.f32 %v16635_v7, %v6439_v48 }
0x1184   :  { %13986 = vpow2.f32 %v6540_v52  ;;  %v6519_v21 = vmin.f32 %v16664_v56, 0.0  ;;  %v10778_v31 = vadd.f32 -1.0, %v13977_v58  ;;  %vm6503_vm6 = vcmp.gt.f32.partialorder %v16664_v56, 0.0 }
0x1185   :  { %13988 = vpow2.f32 %v6538_v26  ;;  %v6518_v11 = vmin.f32 %v16667_v15, 0.0  ;;  %v12604_v14 = vpop.f32.mrb[58].mxu0  ;;  %v6575_v48 = vsel %vm6495_vm11, %v13229_v46, %v10779_v33  ;;  %vm6502_vm5 = vcmp.gt.f32.partialorder %v16667_v15, 0.0 }
0x1186   :  { %v13979_v6 = vpop.eup %13978  ;;  %v6544_v17 = vmul.f32 1.442695, %v6519_v21  ;;  %v16672_v44 = vadd.f32 %v12604_v14, %v16635_v7  ;;  %v6449_v12 = vpop.f32.mrb[59].mxu0  ;;  %v6574_v54 = vsel %vm6494_vm10, %v13230_v28, %v10778_v31 }
0x1187   :  { %v13981_v27 = vpop.eup %13980  ;;  %v6542_v13 = vmul.f32 1.442695, %v6518_v11  ;;  %v16675_v52 = vadd.f32 %v16635_v7, %v6449_v12  ;;  %12619 = vmatprep.mubr.msk.f32.mxu1 %vm2145_vm2, %v6574_v54  ;;  %v10781_v26 = vadd.f32 -1.0, %v13979_v6 }
0x1188   :  { %13990 = vpow2.f32 %v6544_v17  ;;  %v6521_v58 = vmin.f32 %v16672_v44, 0.0  ;;  %12620 = vmatmul.mubr.msk.f32.vlgmr.msra.gmra.mrb[160].mxu1 %vm2145_vm2, %v6575_v48  ;;  %v10780_v21 = vadd.f32 -1.0, %v13981_v27  ;;  %vm6505_vm10 = vcmp.gt.f32.partialorder %v16672_v44, 0.0 }
0x1189   :  { %13992 = vpow2.f32 %v6542_v13  ;;  %v6520_v14 = vmin.f32 %v16675_v52, 0.0  ;;  %v12607_v28 = vpop.f32.mrb[60].mxu0  ;;  %v6577_v13 = vsel %vm6497_vm13, %v16640_v25, %v10781_v26  ;;  %vm6504_vm7 = vcmp.gt.f32.partialorder %v16675_v52, 0.0 }
0x118a   :  { %v13983_v33 = vpop.eup %13982  ;;  %v6548_v46 = vmul.f32 1.442695, %v6521_v58  ;;  %v16684_v31 = vadd.f32 %v12607_v28, %v16635_v7  ;;  %v6459_v11 = vpop.f32.mrb[61].mxu0  ;;  %v6576_v6 = vsel %vm6496_vm12, %v16643_v59, %v10780_v21 }
0x118b   :  { %v13985_v17 = vpop.eup %13984  ;;  %v6546_v12 = vmul.f32 1.442695, %v6520_v14  ;;  %v16688_v27 = vadd.f32 %v16635_v7, %v6459_v11  ;;  %12622 = vmatprep.mubr.msk.f32.mxu1 %vm2145_vm2, %v6576_v6  ;;  %v10783_v54 = vadd.f32 -1.0, %v13983_v33 }
0x118c   :  { %13994 = vpow2.f32 %v6548_v46  ;;  %v6523_v48 = vmin.f32 %v16684_v31, 0.0  ;;  %12623 = vmatmul.mubr.msk.f32.gmra.mrb[162].mxu1 %vm2145_vm2, %v6577_v13  ;;  %v10782_v58 = vadd.f32 -1.0, %v13985_v17  ;;  %vm6507_vm12 = vcmp.gt.f32.partialorder %v16684_v31, 0.0 }
0x118d   :  { %13996 = vpow2.f32 %v6546_v12  ;;  %v6522_v59 = vmin.f32 %v16688_v27, 0.0  ;;  %v12610_v21 = vpop.f32.mrb[62].mxu0  ;;  %v6579_v17 = vsel %vm6499_vm15, %v16648_v38, %v10783_v54  ;;  %vm6506_vm11 = vcmp.gt.f32.partialorder %v16688_v27, 0.0 }
0x118e   :  { %v13987_v14 = vpop.eup %13986  ;;  %v6552_v28 = vmul.f32 1.442695, %v6523_v48  ;;  %v16698_v11 = vadd.f32 %v12610_v21, %v16635_v7  ;;  %v6469_v25 = vpop.f32.mrb[63].mxu0  ;;  %v6578_v26 = vsel %vm6498_vm14, %v16651_v24, %v10782_v58  ;;  %vm9987_vm15 = vcmask 392192  }
0x118f   :  { %v13989_v33 = vpop.eup %13988  ;;  %v6550_v46 = vmul.f32 1.442695, %v6522_v59  ;;  %v13244_v6 = vadd.f32 %v16635_v7, %v6469_v25  ;;  %12625 = vmatprep.mubr.msk.f32.mxu1 %vm2145_vm2, %v6578_v26  ;;  %v10785_v12 = vadd.f32 -1.0, %v13987_v14 }
0x1190   :  { %13998 = vpow2.f32 %v6552_v28  ;;  %v6525_v13 = vmin.f32 %v16698_v11, 0.0  ;;  %12626 = vmatmul.mubr.msk.f32.gmra.mrb[164].mxu1 %vm2145_vm2, %v6579_v17  ;;  %v10784_v48 = vadd.f32 -1.0, %v13989_v33  ;;  %vm6509_vm14 = vcmp.gt.f32.partialorder %v16698_v11, 0.0 }
0x1191   :  { %14000 = vpow2.f32 %v6550_v46  ;;  %v6524_v21 = vmin.f32 %v13244_v6, 0.0  ;;  %v6581_v38 = vsel %vm6501_vm4, %v16656_v29, %v10785_v12  ;;  %vm6508_vm13 = vcmp.gt.f32.partialorder %v13244_v6, 0.0 }
0x1192   :  { %v13991_v24 = vpop.eup %13990  ;;  %v6556_v58 = vmul.f32 1.442695, %v6525_v13  ;;  %v6580_v7 = vsel %vm6500_vm3, %v16659_v10, %v10784_v48 }
0x1193   :  { %v13993_v59 = vpop.eup %13992  ;;  %v6554_v25 = vmul.f32 1.442695, %v6524_v21  ;;  %12628 = vmatprep.mubr.msk.f32.mxu1 %vm2145_vm2, %v6580_v7  ;;  %v10787_v54 = vadd.f32 -1.0, %v13991_v24 }
0x1194   :  { %14002 = vpow2.f32 %v6556_v58  ;;  %12629 = vmatmul.mubr.msk.f32.gmra.mrb[166].mxu1 %vm2145_vm2, %v6581_v38  ;;  %v10786_v14 = vadd.f32 -1.0, %v13993_v59 }
0x1195   :  { %14004 = vpow2.f32 %v6554_v25  ;;  %v6583_v33 = vsel %vm6503_vm6, %v16664_v56, %v10787_v54 }
0x1196   :  { %v13995_v28 = vpop.eup %13994  ;;  %v6582_v26 = vsel %vm6502_vm5, %v16667_v15, %v10786_v14 }
0x1197   :  { %v13997_v10 = vpop.eup %13996  ;;  %12631 = vmatprep.mubr.msk.f32.mxu1 %vm2145_vm2, %v6582_v26  ;;  %v10789_v46 = vadd.f32 -1.0, %v13995_v28 }
0x1198   :  { %12632 = vmatmul.mubr.msk.f32.gmra.mrb[168].mxu1 %vm2145_vm2, %v6583_v33  ;;  %v10788_v29 = vadd.f32 -1.0, %v13997_v10 }
0x1199   :  { %v6585_v15 = vsel %vm6505_vm10, %v16672_v44, %v10789_v46 }
0x119a   :  { %v13999_v17 = vpop.eup %13998  ;;  %v6584_v12 = vsel %vm6504_vm7, %v16675_v52, %v10788_v29 }
0x119b   :  { %v14001_v13 = vpop.eup %14000  ;;  %12634 = vmatprep.mubr.msk.f32.mxu1 %vm2145_vm2, %v6584_v12  ;;  %v10791_v48 = vadd.f32 -1.0, %v13999_v17 }
0x119c   :  { %12635 = vmatmul.mubr.msk.f32.gmra.mrb[170].mxu1 %vm2145_vm2, %v6585_v15  ;;  %v10790_v56 = vadd.f32 -1.0, %v14001_v13 }
0x119d   :  { %v6587_v52 = vsel %vm6507_vm12, %v16684_v31, %v10791_v48  ;;  %v10819_v31 = vld [vmem:[%s18274_s7 + $0xd8] sm:$0xff] }
0x119e   :  { %v14003_v21 = vpop.eup %14002  ;;  %v6586_v24 = vsel %vm6506_vm11, %v16688_v27, %v10790_v56  ;;  %v10818_v27 = vld [vmem:[%s18274_s7 + $0xd0] sm:$0xff] }
0x119f   :  { %v14005_v58 = vpop.eup %14004  ;;  %12637 = vmatprep.mubr.msk.f32.mxu1 %vm2145_vm2, %v6586_v24  ;;  %v10793_v7 = vadd.f32 -1.0, %v14003_v21  ;;  %v13113_v38 = vpack.c.bf16 %v10819_v31, %v10818_v27 }
0x11a0   :  { %12638 = vmatmul.mubr.msk.f32.gmra.mrb[172].mxu1 %vm2145_vm2, %v6587_v52  ;;  %v10792_v44 = vadd.f32 -1.0, %v14005_v58 }
0x11a1   :  { %v6589_v25 = vsel %vm6509_vm14, %v16698_v11, %v10793_v7  ;;  %13114 = vmatprep.subr.bf16.mxu0 %v13113_v38  ;;  %v16746_v11 = vld [vmem:[%s18276_s6 + $0x6] ss:$0 sm:$0xff] }
0x11a2   :  { %v6588_v59 = vsel %vm6508_vm13, %v13244_v6, %v10792_v44  ;;  %13116 = vmatpush3.bf16.msra.mxu0 %v13113_v38  ;;  %v10836_v6 = vld [vmem:[%s18271_s3 + $0x38] sm:$0xff]  ;;  %s14171_s3 = smov 48  }
0x11a3   :  { %12640 = vmatprep.mubr.msk.f32.mxu1 %vm2145_vm2, %v6588_v59  ;;  %12675 = vmatprep.subr.mxu1 %v10836_v6 }
0x11a4   :  { %12641 = vmatmul.mubr.msk.f32.gmra.mrb[174].mxu1 %vm2145_vm2, %v6589_v25 }
0x11a5   :  { %12676 = vmatpush3.msra.mxu1 %v10836_v6 }
0x125b   :  { %v12621_v54 = vpop.f32.mrb[160].mxu1 }
0x125c   :  { %v6723_v14 = vadd.f32 %v12621_v54, %v16746_v11  ;;  %v6717_v28 = vpop.f32.mrb[161].mxu1 }
0x125d   :  { %v6718_v26 = vadd.f32 %v16746_v11, %v6717_v28 }
0x125f   :  { %14006 = vtanh.f32 %v6718_v26  ;;  %v12624_v10 = vpop.f32.mrb[162].mxu1 }
0x1260   :  { %14008 = vtanh.f32 %v6723_v14  ;;  %v6733_v33 = vadd.f32 %v12624_v10, %v16746_v11  ;;  %v6727_v46 = vpop.f32.mrb[163].mxu1 }
0x1261   :  { %v6728_v29 = vadd.f32 %v16746_v11, %v6727_v46 }
0x1263   :  { %14010 = vtanh.f32 %v6728_v29  ;;  %v12627_v17 = vpop.f32.mrb[164].mxu1 }
0x1264   :  { %14012 = vtanh.f32 %v6733_v33  ;;  %v6743_v12 = vadd.f32 %v12627_v17, %v16746_v11  ;;  %v6737_v13 = vpop.f32.mrb[165].mxu1 }
0x1265   :  { %v6738_v15 = vadd.f32 %v16746_v11, %v6737_v13 }
0x1267   :  { %14014 = vtanh.f32 %v6738_v15  ;;  %v12630_v48 = vpop.f32.mrb[166].mxu1 }
0x1268   :  { %14016 = vtanh.f32 %v6743_v12  ;;  %v6753_v56 = vadd.f32 %v12630_v48, %v16746_v11  ;;  %v6747_v21 = vpop.f32.mrb[167].mxu1 }
0x1269   :  { %v14007_v24 = vpop.eup %14006  ;;  %v6748_v58 = vadd.f32 %v16746_v11, %v6747_v21 }
0x126a   :  { %v14009_v52 = vpop.eup %14008  ;;  %12651 = vmatprep.mubr.msk.f32.mxu0 %vm2145_vm2, %v14007_v24 }
0x126b   :  { %14018 = vtanh.f32 %v6748_v58  ;;  %v12633_v7 = vpop.f32.mrb[168].mxu1  ;;  %12652 = vmatmul.mubr.msk.f32.vlgmr.msra.gmra.mrb[160].mxu0 %vm2145_vm2, %v14009_v52 }
0x126c   :  { %14020 = vtanh.f32 %v6753_v56  ;;  %v6763_v44 = vadd.f32 %v12633_v7, %v16746_v11  ;;  %v6757_v59 = vpop.f32.mrb[169].mxu1 }
0x126d   :  { %v14011_v25 = vpop.eup %14010  ;;  %v6758_v27 = vadd.f32 %v16746_v11, %v6757_v59 }
0x126e   :  { %v14013_v31 = vpop.eup %14012  ;;  %12654 = vmatprep.mubr.msk.f32.mxu0 %vm2145_vm2, %v14011_v25 }
0x126f   :  { %14022 = vtanh.f32 %v6758_v27  ;;  %v12636_v38 = vpop.f32.mrb[170].mxu1  ;;  %12655 = vmatmul.mubr.msk.f32.gmra.mrb[162].mxu0 %vm2145_vm2, %v14013_v31 }
0x1270   :  { %14024 = vtanh.f32 %v6763_v44  ;;  %v6773_v6 = vadd.f32 %v12636_v38, %v16746_v11  ;;  %v6767_v54 = vpop.f32.mrb[171].mxu1 }
0x1271   :  { %v14015_v14 = vpop.eup %14014  ;;  %v6768_v28 = vadd.f32 %v16746_v11, %v6767_v54 }
0x1272   :  { %v14017_v26 = vpop.eup %14016  ;;  %12657 = vmatprep.mubr.msk.f32.mxu0 %vm2145_vm2, %v14015_v14 }
0x1273   :  { %14026 = vtanh.f32 %v6768_v28  ;;  %v12639_v10 = vpop.f32.mrb[172].mxu1  ;;  %12658 = vmatmul.mubr.msk.f32.gmra.mrb[164].mxu0 %vm2145_vm2, %v14017_v26 }
0x1274   :  { %14028 = vtanh.f32 %v6773_v6  ;;  %v6783_v33 = vadd.f32 %v12639_v10, %v16746_v11  ;;  %v6777_v46 = vpop.f32.mrb[173].mxu1 }
0x1275   :  { %v14019_v29 = vpop.eup %14018  ;;  %v6778_v17 = vadd.f32 %v16746_v11, %v6777_v46 }
0x1276   :  { %v14021_v12 = vpop.eup %14020  ;;  %12660 = vmatprep.mubr.msk.f32.mxu0 %vm2145_vm2, %v14019_v29 }
0x1277   :  { %14030 = vtanh.f32 %v6778_v17  ;;  %v12642_v13 = vpop.f32.mrb[174].mxu1  ;;  %12661 = vmatmul.mubr.msk.f32.gmra.mrb[166].mxu0 %vm2145_vm2, %v14021_v12 }
0x1278   :  { %14032 = vtanh.f32 %v6783_v33  ;;  %v6793_v15 = vadd.f32 %v12642_v13, %v16746_v11  ;;  %v6787_v48 = vpop.f32.mrb[175].mxu1 }
0x1279   :  { %v14023_v56 = vpop.eup %14022  ;;  %v6788_v21 = vadd.f32 %v16746_v11, %v6787_v48 }
0x127a   :  { %v14025_v24 = vpop.eup %14024  ;;  %12663 = vmatprep.mubr.msk.f32.mxu0 %vm2145_vm2, %v14023_v56 }
0x127b   :  { %14034 = vtanh.f32 %v6788_v21  ;;  %12664 = vmatmul.mubr.msk.f32.gmra.mrb[168].mxu0 %vm2145_vm2, %v14025_v24 }
0x127c   :  { %14036 = vtanh.f32 %v6793_v15 }
0x127d   :  { %v14027_v58 = vpop.eup %14026 }
0x127e   :  { %v14029_v52 = vpop.eup %14028  ;;  %12666 = vmatprep.mubr.msk.f32.mxu0 %vm2145_vm2, %v14027_v58 }
0x127f   :  { %12667 = vmatmul.mubr.msk.f32.gmra.mrb[170].mxu0 %vm2145_vm2, %v14029_v52 }
0x1281   :  { %v14031_v7 = vpop.eup %14030 }
0x1282   :  { %v14033_v44 = vpop.eup %14032  ;;  %12669 = vmatprep.mubr.msk.f32.mxu0 %vm2145_vm2, %v14031_v7 }
0x1283   :  { %12670 = vmatmul.mubr.msk.f32.gmra.mrb[172].mxu0 %vm2145_vm2, %v14033_v44 }
0x1285   :  { %v14035_v11 = vpop.eup %14034 }
0x1286   :  { %v14037_v59 = vpop.eup %14036  ;;  %12672 = vmatprep.mubr.msk.f32.mxu0 %vm2145_vm2, %v14035_v11  ;;  %v10869_v11 = vld [vmem:[%s18272_s5 + $0xe0] sm:$0xff] }
0x1287   :  { %12673 = vmatmul.mubr.msk.f32.gmra.mrb[174].mxu0 %vm2145_vm2, %v14037_v59  ;;  %v10870_v59 = vld [vmem:[%s18272_s5 + $0xe8] sm:$0xff] }
0x133e   :  { %v12653_v25 = vpop.f32.mrb[160].mxu0 }
0x133f   :  { %14038 = vtanh.f32 %v12653_v25  ;;  %v6931_v27 = vpop.f32.mrb[161].mxu0 }
0x1340   :  { %14040 = vtanh.f32 %v6931_v27  ;;  %v13117_v27 = vpack.c.bf16 %v10870_v59, %v10869_v11 }
0x1342   :  { %v12656_v31 = vpop.f32.mrb[162].mxu0  ;;  %13118 = vmatprep.subr.bf16.mxu0 %v13117_v27 }
0x1343   :  { %14042 = vtanh.f32 %v12656_v31  ;;  %v6941_v38 = vpop.f32.mrb[163].mxu0  ;;  %13120 = vmatpush3.bf16.msra.mxu0 %v13117_v27 }
0x1344   :  { %14044 = vtanh.f32 %v6941_v38 }
0x1346   :  { %v12659_v6 = vpop.f32.mrb[164].mxu0 }
0x1347   :  { %14046 = vtanh.f32 %v12659_v6  ;;  %v6951_v54 = vpop.f32.mrb[165].mxu0 }
0x1348   :  { %14048 = vtanh.f32 %v6951_v54 }
0x1349   :  { %v16780_v14 = vpop.eup %14038 }
0x134a   :  { %18490 = vst [vmem:[#allocation133_spill] sm:$0xff] %v16780_v14  ;;  %v16782_v28 = vpop.eup %14040  ;;  %9811 = vrot.lane.b32.xlu1 %v16780_v14, %s14171_s3  ;;  %v12662_v26 = vpop.f32.mrb[166].mxu0 }
0x134b   :  { %14050 = vtanh.f32 %v12662_v26  ;;  %9809 = vrot.lane.b32.xlu0 %v16782_v28, %s14171_s3  ;;  %v6961_v10 = vpop.f32.mrb[167].mxu0  ;;  %12677 = vmatprep.mubr.msk.f32.mxu1 %vm1828_vm1, %v16782_v28 }
0x134c   :  { %14052 = vtanh.f32 %v6961_v10  ;;  %12678 = vmatmul.mubr.msk.f32.vlgmr.msra.gmra.mrb[48].mxu1 %vm1828_vm1, %v16780_v14 }
0x134d   :  { %v16792_v33 = vpop.eup %14042 }
0x134e   :  { %18491 = vst [vmem:[#allocation134_spill] sm:$0xff] %v16792_v33  ;;  %v16794_v46 = vpop.eup %14044  ;;  %9815 = vrot.lane.b32.xlu1 %v16792_v33, %s14171_s3  ;;  %v12665_v29 = vpop.f32.mrb[168].mxu0 }
0x134f   :  { %18492 = vst [vmem:[#allocation135_spill] sm:$0xff] %v16794_v46  ;;  %14054 = vtanh.f32 %v12665_v29  ;;  %9813 = vrot.lane.b32.xlu0 %v16794_v46, %s14171_s3  ;;  %v6971_v17 = vpop.f32.mrb[169].mxu0  ;;  %12680 = vmatprep.mubr.msk.f32.mxu1 %vm1828_vm1, %v16794_v46  ;;  %v10871_v29 = vld [vmem:[%s18272_s5 + $0xf0] sm:$0xff] }
0x1350   :  { %14056 = vtanh.f32 %v6971_v17  ;;  %12681 = vmatmul.mubr.msk.f32.gmra.mrb[50].mxu1 %vm1828_vm1, %v16792_v33  ;;  %v10872_v17 = vld [vmem:[%s18272_s5 + $0xf8] sm:$0xff] }
0x1351   :  { %v16804_v12 = vpop.eup %14046 }
0x1352   :  { %18493 = vst [vmem:[#allocation136_spill] sm:$0xff] %v16804_v12  ;;  %v16806_v13 = vpop.eup %14048  ;;  %9819 = vrot.lane.b32.xlu1 %v16804_v12, %s14171_s3  ;;  %v12668_v15 = vpop.f32.mrb[170].mxu0 }
0x1353   :  { %18494 = vst [vmem:[#allocation137_spill] sm:$0xff] %v16806_v13  ;;  %14058 = vtanh.f32 %v12668_v15  ;;  %9817 = vrot.lane.b32.xlu0 %v16806_v13, %s14171_s3  ;;  %v6981_v48 = vpop.f32.mrb[171].mxu0  ;;  %12683 = vmatprep.mubr.msk.f32.mxu1 %vm1828_vm1, %v16806_v13  ;;  %v13121_v15 = vpack.c.bf16 %v10872_v17, %v10871_v29 }
0x1354   :  { %14060 = vtanh.f32 %v6981_v48  ;;  %12684 = vmatmul.mubr.msk.f32.gmra.mrb[52].mxu1 %vm1828_vm1, %v16804_v12 }
0x1355   :  { %v16816_v56 = vpop.eup %14050  ;;  %13122 = vmatprep.subr.bf16.mxu0 %v13121_v15 }
0x1356   :  { %18495 = vst [vmem:[#allocation138_spill] sm:$0xff] %v16816_v56  ;;  %v16818_v21 = vpop.eup %14052  ;;  %9823 = vrot.lane.b32.xlu1 %v16816_v56, %s14171_s3  ;;  %v12671_v24 = vpop.f32.mrb[172].mxu0  ;;  %13124 = vmatpush3.bf16.msra.mxu0 %v13121_v15 }
0x1357   :  { %18496 = vst [vmem:[#allocation139_spill] sm:$0xff] %v16818_v21  ;;  %14062 = vtanh.f32 %v12671_v24  ;;  %9821 = vrot.lane.b32.xlu0 %v16818_v21, %s14171_s3  ;;  %v6991_v58 = vpop.f32.mrb[173].mxu0  ;;  %12686 = vmatprep.mubr.msk.f32.mxu1 %vm1828_vm1, %v16818_v21 }
0x1358   :  { %14064 = vtanh.f32 %v6991_v58  ;;  %12687 = vmatmul.mubr.msk.f32.gmra.mrb[54].mxu1 %vm1828_vm1, %v16816_v56 }
0x1359   :  { %v16828_v52 = vpop.eup %14054 }
0x135a   :  { %18497 = vst [vmem:[#allocation140_spill] sm:$0xff] %v16828_v52  ;;  %v16830_v7 = vpop.eup %14056  ;;  %9827 = vrot.lane.b32.xlu1 %v16828_v52, %s14171_s3  ;;  %v12674_v44 = vpop.f32.mrb[174].mxu0 }
0x135b   :  { %18498 = vst [vmem:[#allocation141_spill] sm:$0xff] %v16830_v7  ;;  %14066 = vtanh.f32 %v12674_v44  ;;  %9825 = vrot.lane.b32.xlu0 %v16830_v7, %s14171_s3  ;;  %v7001_v25 = vpop.f32.mrb[175].mxu0  ;;  %12689 = vmatprep.mubr.msk.f32.mxu1 %vm1828_vm1, %v16830_v7 }
0x135c   :  { %14068 = vtanh.f32 %v7001_v25  ;;  %12690 = vmatmul.mubr.msk.f32.gmra.mrb[56].mxu1 %vm1828_vm1, %v16828_v52 }
0x135d   :  { %v16846_v31 = vpop.eup %14058 }
0x135e   :  { %18499 = vst [vmem:[#allocation142_spill] sm:$0xff] %v16846_v31  ;;  %v16848_v38 = vpop.eup %14060  ;;  %9831 = vrot.lane.b32.xlu1 %v16846_v31, %s14171_s3 }
0x135f   :  { %18500 = vst [vmem:[#allocation143_spill] sm:$0xff] %v16848_v38  ;;  %9829 = vrot.lane.b32.xlu0 %v16848_v38, %s14171_s3  ;;  %12692 = vmatprep.mubr.msk.f32.mxu1 %vm1828_vm1, %v16848_v38 }
0x1360   :  { %12693 = vmatmul.mubr.msk.f32.gmra.mrb[58].mxu1 %vm1828_vm1, %v16846_v31 }
0x1361   :  { %v16858_v6 = vpop.eup %14062 }
0x1362   :  { %18501 = vst [vmem:[#allocation144_spill] sm:$0xff] %v16858_v6  ;;  %v16860_v54 = vpop.eup %14064  ;;  %9835 = vrot.lane.b32.xlu1 %v16858_v6, %s14171_s3 }
0x1363   :  { %18502 = vst [vmem:[#allocation145_spill] sm:$0xff] %v16860_v54  ;;  %9833 = vrot.lane.b32.xlu0 %v16860_v54, %s14171_s3  ;;  %12695 = vmatprep.mubr.msk.f32.mxu1 %vm1828_vm1, %v16860_v54 }
0x1364   :  { %12696 = vmatmul.mubr.msk.f32.gmra.mrb[60].mxu1 %vm1828_vm1, %v16858_v6 }
0x1365   :  { %v16870_v26 = vpop.eup %14066 }
0x1366   :  { %18503 = vst [vmem:[#allocation146_spill] sm:$0xff] %v16870_v26  ;;  %v16872_v10 = vpop.eup %14068  ;;  %9839 = vrot.lane.b32.xlu1 %v16870_v26, %s14171_s3 }
0x1367   :  { %18504 = vst [vmem:[#allocation147_spill] sm:$0xff] %v16872_v10  ;;  %9837 = vrot.lane.b32.xlu0 %v16872_v10, %s14171_s3  ;;  %12698 = vmatprep.mubr.msk.f32.mxu1 %vm1828_vm1, %v16872_v10 }
0x1368   :  { %12699 = vmatmul.mubr.msk.f32.gmra.mrb[62].mxu1 %vm1828_vm1, %v16870_v26 }
0x13bc   :  { %v16888_v48 = vpop.permute.xlu1 %9811 }
0x13bd   :  { %18505 = vst [vmem:[#allocation148_spill] sm:$0xff] %v16888_v48  ;;  %v16890_v24 = vpop.permute.xlu0 %9809 }
0x13be   :  { %18506 = vst [vmem:[#allocation149_spill] sm:$0xff] %v16890_v24 }
0x13c0   :  { %v16892_v58 = vpop.permute.xlu1 %9815 }
0x13c1   :  { %18507 = vst [vmem:[#allocation150_spill] sm:$0xff] %v16892_v58  ;;  %v16894_v44 = vpop.permute.xlu0 %9813 }
0x13c2   :  { %18508 = vst [vmem:[#allocation151_spill] sm:$0xff] %v16894_v44  ;;  %v16915_v44 = vld [vmem:[%s18277_s8] sm:$0xff] }
0x13c3   :  { %12765 = vmatprep.subr.mxu0 %v16915_v44 }
0x13c4   :  { %v16896_v11 = vpop.permute.xlu1 %9819 }
0x13c5   :  { %18509 = vst [vmem:[#allocation152_spill] sm:$0xff] %v16896_v11  ;;  %v16898_v59 = vpop.permute.xlu0 %9817 }
0x13c6   :  { %18510 = vst [vmem:[#allocation153_spill] sm:$0xff] %v16898_v59 }
0x13c8   :  { %v16900_v25 = vpop.permute.xlu1 %9823 }
0x13c9   :  { %18511 = vst [vmem:[#allocation154_spill] sm:$0xff] %v16900_v25  ;;  %v16902_v27 = vpop.permute.xlu0 %9821 }
0x13ca   :  { %18512 = vst [vmem:[#allocation155_spill] sm:$0xff] %v16902_v27 }
0x13cc   :  { %v16904_v26 = vpop.permute.xlu1 %9827 }
0x13cd   :  { %18513 = vst [vmem:[#allocation156_spill] sm:$0xff] %v16904_v26  ;;  %v16906_v29 = vpop.permute.xlu0 %9825  ;;  %v16933_v26 = vld [vmem:[%s18275_s4 + $0x7] ss:$0 sm:$0xff] }
0x13ce   :  { %18514 = vst [vmem:[#allocation157_spill] sm:$0xff] %v16906_v29 }
0x13d0   :  { %v16908_v17 = vpop.permute.xlu1 %9831 }
0x13d1   :  { %18515 = vst [vmem:[#allocation158_spill] sm:$0xff] %v16908_v17  ;;  %v16910_v15 = vpop.permute.xlu0 %9829 }
0x13d2   :  { %18516 = vst [vmem:[#allocation159_spill] sm:$0xff] %v16910_v15 }
0x13d4   :  { %v16917_v11 = vpop.permute.xlu1 %9835 }
0x13d5   :  { %18517 = vst [vmem:[#allocation160_spill] sm:$0xff] %v16917_v11  ;;  %v16920_v25 = vpop.permute.xlu0 %9833 }
0x13d6   :  { %18518 = vst [vmem:[#allocation161_spill] sm:$0xff] %v16920_v25 }
0x13d8   :  { %v9840_v27 = vpop.permute.xlu1 %9839 }
0x13d9   :  { %v16924_v29 = vsel %vm9987_vm15, %v16627_v30, %v9840_v27  ;;  %v9838_v17 = vpop.permute.xlu0 %9837 }
0x13da   :  { %18519 = vst [vmem:[#allocation162_spill] sm:$0xff] %v16924_v29  ;;  %v16928_v15 = vsel %vm9987_vm15, %v16630_v23, %v9838_v17 }
0x13db   :  { %18520 = vst [vmem:[#allocation163_spill] sm:$0xff] %v16928_v15 }
0x141f   :  { %v12679_v11 = vpop.f32.mrb[48].mxu1 }
0x1420   :  { %v13245_v59 = vadd.f32 %v12679_v11, %v16933_v26  ;;  %v7142_v25 = vpop.f32.mrb[49].mxu1 }
0x1421   :  { %v13246_v58 = vadd.f32 %v16933_v26, %v7142_v25 }
0x1422   :  { %v7254_v24 = vmin.f32 %v13245_v59, 0.0  ;;  %vm7238_vm4 = vcmp.gt.f32.partialorder %v13245_v59, 0.0 }
0x1423   :  { %v7253_v48 = vmin.f32 %v13246_v58, 0.0  ;;  %v12682_v30 = vpop.f32.mrb[50].mxu1  ;;  %vm7237_vm3 = vcmp.gt.f32.partialorder %v13246_v58, 0.0 }
0x1424   :  { %v7271_v27 = vmul.f32 1.442695, %v7254_v24  ;;  %v16938_v29 = vadd.f32 %v12682_v30, %v16933_v26  ;;  %v7152_v23 = vpop.f32.mrb[51].mxu1 }
0x1425   :  { %v7269_v17 = vmul.f32 1.442695, %v7253_v48  ;;  %v16941_v15 = vadd.f32 %v16933_v26, %v7152_v23 }
0x1426   :  { %14070 = vpow2.f32 %v7271_v27  ;;  %v7256_v10 = vmin.f32 %v16938_v29, 0.0  ;;  %vm7240_vm6 = vcmp.gt.f32.partialorder %v16938_v29, 0.0 }
0x1427   :  { %14072 = vpow2.f32 %v7269_v17  ;;  %v7255_v11 = vmin.f32 %v16941_v15, 0.0  ;;  %v12685_v6 = vpop.f32.mrb[52].mxu1  ;;  %vm7239_vm5 = vcmp.gt.f32.partialorder %v16941_v15, 0.0 }
0x1428   :  { %v7275_v25 = vmul.f32 1.442695, %v7256_v10  ;;  %v16946_v54 = vadd.f32 %v12685_v6, %v16933_v26  ;;  %v7162_v24 = vpop.f32.mrb[53].mxu1 }
0x1429   :  { %v7273_v31 = vmul.f32 1.442695, %v7255_v11  ;;  %v16949_v30 = vadd.f32 %v16933_v26, %v7162_v24 }
0x142a   :  { %14074 = vpow2.f32 %v7275_v25  ;;  %v7258_v48 = vmin.f32 %v16946_v54, 0.0  ;;  %vm7242_vm10 = vcmp.gt.f32.partialorder %v16946_v54, 0.0 }
0x142b   :  { %14076 = vpow2.f32 %v7273_v31  ;;  %v7257_v27 = vmin.f32 %v16949_v30, 0.0  ;;  %v12688_v23 = vpop.f32.mrb[54].mxu1  ;;  %vm7241_vm7 = vcmp.gt.f32.partialorder %v16949_v30, 0.0 }
0x142c   :  { %v7279_v17 = vmul.f32 1.442695, %v7258_v48  ;;  %v16954_v38 = vadd.f32 %v12688_v23, %v16933_v26  ;;  %v7172_v10 = vpop.f32.mrb[55].mxu1 }
0x142d   :  { %v7277_v52 = vmul.f32 1.442695, %v7257_v27  ;;  %v16957_v6 = vadd.f32 %v16933_v26, %v7172_v10 }
0x142e   :  { %14078 = vpow2.f32 %v7279_v17  ;;  %v7260_v11 = vmin.f32 %v16954_v38, 0.0  ;;  %vm7244_vm12 = vcmp.gt.f32.partialorder %v16954_v38, 0.0 }
0x142f   :  { %14080 = vpow2.f32 %v7277_v52  ;;  %v7259_v25 = vmin.f32 %v16957_v6, 0.0  ;;  %v12691_v24 = vpop.f32.mrb[56].mxu1  ;;  %vm7243_vm11 = vcmp.gt.f32.partialorder %v16957_v6, 0.0 }
0x1430   :  { %v14071_v31 = vpop.eup %14070  ;;  %v7283_v7 = vmul.f32 1.442695, %v7260_v11  ;;  %v16962_v56 = vadd.f32 %v12691_v24, %v16933_v26  ;;  %v7182_v48 = vpop.f32.mrb[57].mxu1 }
0x1431   :  { %v14073_v23 = vpop.eup %14072  ;;  %v10854_v21 = vadd.f32 -1.0, %v14071_v31  ;;  %v7281_v12 = vmul.f32 1.442695, %v7259_v25  ;;  %v16965_v27 = vadd.f32 %v16933_v26, %v7182_v48 }
0x1432   :  { %14082 = vpow2.f32 %v7283_v7  ;;  %v7262_v17 = vmin.f32 %v16962_v56, 0.0  ;;  %v10853_v10 = vadd.f32 -1.0, %v14073_v23  ;;  %v16979_v23 = vld [vmem:[%s18277_s8 + $0x10] sm:$0xff]  ;;  %vm7246_vm14 = vcmp.gt.f32.partialorder %v16962_v56, 0.0 }
0x1433   :  { %14084 = vpow2.f32 %v7281_v12  ;;  %v7261_v52 = vmin.f32 %v16965_v27, 0.0  ;;  %v12694_v13 = vpop.f32.mrb[58].mxu1  ;;  %v7318_v48 = vsel %vm7238_vm4, %v13245_v59, %v10854_v21  ;;  %vm7245_vm13 = vcmp.gt.f32.partialorder %v16965_v27, 0.0 }
0x1434   :  { %v14075_v11 = vpop.eup %14074  ;;  %v7287_v24 = vmul.f32 1.442695, %v7262_v17  ;;  %v16970_v33 = vadd.f32 %v12694_v13, %v16933_v26  ;;  %v7192_v31 = vpop.f32.mrb[59].mxu1  ;;  %v7317_v25 = vsel %vm7237_vm3, %v13246_v58, %v10853_v10 }
0x1435   :  { %v14077_v46 = vpop.eup %14076  ;;  %v7285_v14 = vmul.f32 1.442695, %v7261_v52  ;;  %v16973_v7 = vadd.f32 %v16933_v26, %v7192_v31  ;;  %12709 = vmatprep.mubr.msk.f32.mxu0 %vm2145_vm2, %v7317_v25  ;;  %v10856_v12 = vadd.f32 -1.0, %v14075_v11 }
0x1436   :  { %14086 = vpow2.f32 %v7287_v24  ;;  %v7264_v13 = vmin.f32 %v16970_v33, 0.0  ;;  %12710 = vmatmul.mubr.msk.f32.vlgmr.msra.gmra.mrb[176].mxu0 %vm2145_vm2, %v7318_v48  ;;  %v10855_v58 = vadd.f32 -1.0, %v14077_v46  ;;  %vm7248_vm4 = vcmp.gt.f32.partialorder %v16970_v33, 0.0 }
0x1437   :  { %14088 = vpow2.f32 %v7285_v14  ;;  %v7263_v21 = vmin.f32 %v16973_v7, 0.0  ;;  %v12697_v59 = vpop.f32.mrb[60].mxu1  ;;  %12766 = vmatpush3.msra.mxu0 %v16915_v44  ;;  %v7320_v44 = vsel %vm7240_vm6, %v16938_v29, %v10856_v12  ;;  %vm7247_vm3 = vcmp.gt.f32.partialorder %v16973_v7, 0.0 }
0x1438   :  { %v14079_v17 = vpop.eup %14078  ;;  %v7291_v10 = vmul.f32 1.442695, %v7264_v13  ;;  %v16988_v52 = vadd.f32 %v12697_v59, %v16933_v26  ;;  %v7202_v11 = vpop.f32.mrb[61].mxu1  ;;  %v7319_v24 = vsel %vm7239_vm5, %v16941_v15, %v10855_v58  ;;  %12817 = vmatprep.subr.mxu0 %v16979_v23 }
0x1439   :  { %v14081_v46 = vpop.eup %14080  ;;  %v7289_v31 = vmul.f32 1.442695, %v7263_v21  ;;  %v16993_v14 = vadd.f32 %v16933_v26, %v7202_v11  ;;  %12712 = vmatprep.mubr.msk.f32.mxu0 %vm2145_vm2, %v7319_v24  ;;  %v10858_v25 = vadd.f32 -1.0, %v14079_v17 }
0x143a   :  { %14090 = vpow2.f32 %v7291_v10  ;;  %v7266_v48 = vmin.f32 %v16988_v52, 0.0  ;;  %12713 = vmatmul.mubr.msk.f32.gmra.mrb[178].mxu0 %vm2145_vm2, %v7320_v44  ;;  %v10857_v13 = vadd.f32 -1.0, %v14081_v46  ;;  %vm7250_vm6 = vcmp.gt.f32.partialorder %v16988_v52, 0.0 }
0x143b   :  { %14092 = vpow2.f32 %v7289_v31  ;;  %v7265_v15 = vmin.f32 %v16993_v14, 0.0  ;;  %v12700_v58 = vpop.f32.mrb[62].mxu1  ;;  %v7322_v46 = vsel %vm7242_vm10, %v16946_v54, %v10858_v25  ;;  %vm7249_vm5 = vcmp.gt.f32.partialorder %v16993_v14, 0.0 }
0x143c   :  { %v14083_v21 = vpop.eup %14082  ;;  %v7295_v59 = vmul.f32 1.442695, %v7266_v48  ;;  %v17003_v11 = vadd.f32 %v12700_v58, %v16933_v26  ;;  %v7212_v29 = vpop.f32.mrb[63].mxu1  ;;  %v7321_v12 = vsel %vm7241_vm7, %v16949_v30, %v10857_v13 }
0x143d   :  { %v14085_v17 = vpop.eup %14084  ;;  %v7293_v10 = vmul.f32 1.442695, %v7265_v15  ;;  %v13260_v24 = vadd.f32 %v16933_v26, %v7212_v29  ;;  %12715 = vmatprep.mubr.msk.f32.mxu0 %vm2145_vm2, %v7321_v12  ;;  %v10860_v31 = vadd.f32 -1.0, %v14083_v21 }
0x143e   :  { %14094 = vpow2.f32 %v7295_v59  ;;  %v7268_v44 = vmin.f32 %v17003_v11, 0.0  ;;  %12716 = vmatmul.mubr.msk.f32.gmra.mrb[180].mxu0 %vm2145_vm2, %v7322_v46  ;;  %v10859_v48 = vadd.f32 -1.0, %v14085_v17  ;;  %vm7252_vm10 = vcmp.gt.f32.partialorder %v17003_v11, 0.0 }
0x143f   :  { %14096 = vpow2.f32 %v7293_v10  ;;  %v7267_v58 = vmin.f32 %v13260_v24, 0.0  ;;  %v7324_v54 = vsel %vm7244_vm12, %v16954_v38, %v10860_v31  ;;  %vm7251_vm7 = vcmp.gt.f32.partialorder %v13260_v24, 0.0 }
0x1440   :  { %v14087_v30 = vpop.eup %14086  ;;  %v7299_v13 = vmul.f32 1.442695, %v7268_v44  ;;  %v7323_v26 = vsel %vm7243_vm11, %v16957_v6, %v10859_v48  ;;  %vm10004_vm11 = vcmask 457728   ;;  %vm9455_vm12 = vcmask 523264  }
0x1441   :  { %v14089_v15 = vpop.eup %14088  ;;  %v7297_v29 = vmul.f32 1.442695, %v7267_v58  ;;  %12718 = vmatprep.mubr.msk.f32.mxu0 %vm2145_vm2, %v7323_v26  ;;  %v10862_v25 = vadd.f32 -1.0, %v14087_v30 }
0x1442   :  { %14098 = vpow2.f32 %v7299_v13  ;;  %12719 = vmatmul.mubr.msk.f32.gmra.mrb[182].mxu0 %vm2145_vm2, %v7324_v54  ;;  %v10861_v21 = vadd.f32 -1.0, %v14089_v15 }
0x1443   :  { %14100 = vpow2.f32 %v7297_v29  ;;  %v7326_v17 = vsel %vm7246_vm14, %v16962_v56, %v10862_v25  ;;  %v18540_v25 = vld [vmem:[#allocation138_spill] sm:$0xff] }
0x1444   :  { %v14091_v59 = vpop.eup %14090  ;;  %v7325_v12 = vsel %vm7245_vm13, %v16965_v27, %v10861_v21  ;;  %v18541_v21 = vld [vmem:[#allocation141_spill] sm:$0xff] }
0x1445   :  { %v14093_v6 = vpop.eup %14092  ;;  %12721 = vmatprep.mubr.msk.f32.mxu0 %vm2145_vm2, %v7325_v12  ;;  %v10864_v10 = vadd.f32 -1.0, %v14091_v59  ;;  %v18542_v59 = vld [vmem:[#allocation140_spill] sm:$0xff]  ;;  %v18543_v12 = vld [vmem:[#allocation143_spill] sm:$0xff] }
0x1446   :  { %12722 = vmatmul.mubr.msk.f32.gmra.mrb[184].mxu0 %vm2145_vm2, %v7326_v17  ;;  %v10863_v38 = vadd.f32 -1.0, %v14093_v6  ;;  %v18544_v6 = vld [vmem:[#allocation142_spill] sm:$0xff]  ;;  %v18545_v17 = vld [vmem:[#allocation145_spill] sm:$0xff] }
0x1447   :  { %v7328_v27 = vsel %vm7248_vm4, %v16970_v33, %v10864_v10  ;;  %v18546_v10 = vld [vmem:[#allocation144_spill] sm:$0xff] }
0x1448   :  { %v14095_v46 = vpop.eup %14094  ;;  %v7327_v31 = vsel %vm7247_vm3, %v16973_v7, %v10863_v38  ;;  %v18547_v38 = vld [vmem:[#allocation147_spill] sm:$0xff] }
0x1449   :  { %v14097_v44 = vpop.eup %14096  ;;  %12724 = vmatprep.mubr.msk.f32.mxu0 %vm2145_vm2, %v7327_v31  ;;  %v10866_v48 = vadd.f32 -1.0, %v14095_v46  ;;  %v18548_v46 = vld [vmem:[#allocation146_spill] sm:$0xff] }
0x144a   :  { %12725 = vmatmul.mubr.msk.f32.gmra.mrb[186].mxu0 %vm2145_vm2, %v7328_v27  ;;  %v10865_v56 = vadd.f32 -1.0, %v14097_v44  ;;  %v17192_v31 = vld [vmem:[%s18276_s6 + $0x7] ss:$0 sm:$0xff] }
0x144b   :  { %v7330_v7 = vsel %vm7250_vm6, %v16988_v52, %v10866_v48  ;;  %v10892_v52 = vld [vmem:[%s18274_s7 + $0xe8] sm:$0xff] }
0x144c   :  { %v14099_v58 = vpop.eup %14098  ;;  %v7329_v30 = vsel %vm7249_vm5, %v16993_v14, %v10865_v56  ;;  %v10891_v14 = vld [vmem:[%s18274_s7 + $0xe0] sm:$0xff] }
0x144d   :  { %v14101_v13 = vpop.eup %14100  ;;  %12727 = vmatprep.mubr.msk.f32.mxu0 %vm2145_vm2, %v7329_v30  ;;  %v10868_v26 = vadd.f32 -1.0, %v14099_v58  ;;  %v13125_v54 = vpack.c.bf16 %v10892_v52, %v10891_v14 }
0x144e   :  { %12728 = vmatmul.mubr.msk.f32.gmra.mrb[188].mxu0 %vm2145_vm2, %v7330_v7  ;;  %v10867_v33 = vadd.f32 -1.0, %v14101_v13 }
0x144f   :  { %v7332_v29 = vsel %vm7252_vm10, %v17003_v11, %v10868_v26  ;;  %13126 = vmatprep.subr.bf16.mxu1 %v13125_v54  ;;  %v18538_v11 = vld [vmem:[#allocation136_spill] sm:$0xff] }
0x1450   :  { %v7331_v15 = vsel %vm7251_vm7, %v13260_v24, %v10867_v33  ;;  %v10985_v24 = vld [vmem:[%s18277_s8 + $0x20] sm:$0xff]  ;;  %13128 = vmatpush3.bf16.msra.mxu1 %v13125_v54 }
0x1451   :  { %12730 = vmatprep.mubr.msk.f32.mxu0 %vm2145_vm2, %v7331_v15 }
0x1452   :  { %12731 = vmatmul.mubr.msk.f32.gmra.mrb[190].mxu0 %vm2145_vm2, %v7332_v29 }
0x1453   :  { %12767 = vmatprep.mubr.msk.f32.mxu0 %vm1828_vm1, %v15078_v41 }
0x1456   :  { %12768 = vmatmul.mubr.msk.f32.vlgmr.msra.gmra.mrb[192].mxu0 %vm1828_vm1, %v15080_v43 }
0x1457   :  { %12770 = vmatprep.mubr.msk.f32.mxu0 %vm1828_vm1, %v15086_v45  ;;  %12818 = vmatpush3.msra.mxu0 %v16979_v23  ;;  %v11023_v23 = vld [vmem:[%s18277_s8 + $0x30] sm:$0xff] }
0x1458   :  { %12869 = vmatprep.subr.mxu0 %v10985_v24 }
0x145a   :  { %12771 = vmatmul.mubr.msk.f32.gmra.mrb[194].mxu0 %vm1828_vm1, %v15088_v47 }
0x145b   :  { %12773 = vmatprep.mubr.msk.f32.mxu0 %vm1828_vm1, %v15094_v49 }
0x145e   :  { %12774 = vmatmul.mubr.msk.f32.gmra.mrb[196].mxu0 %vm1828_vm1, %v15096_v51 }
0x145f   :  { %12776 = vmatprep.mubr.msk.f32.mxu0 %vm1828_vm1, %v15102_v53 }
0x1462   :  { %12777 = vmatmul.mubr.msk.f32.gmra.mrb[198].mxu0 %vm1828_vm1, %v15104_v55 }
0x1463   :  { %12779 = vmatprep.mubr.msk.f32.mxu0 %vm1828_vm1, %v15110_v57 }
0x1466   :  { %12780 = vmatmul.mubr.msk.f32.gmra.mrb[200].mxu0 %vm1828_vm1, %v15112_v60 }
0x1467   :  { %12782 = vmatprep.mubr.msk.f32.mxu0 %vm1828_vm1, %v15118_v62 }
0x146a   :  { %12783 = vmatmul.mubr.msk.f32.gmra.mrb[202].mxu0 %vm1828_vm1, %v15120_v63 }
0x146b   :  { %12785 = vmatprep.mubr.msk.f32.mxu0 %vm1828_vm1, %v15126_v0 }
0x146e   :  { %12786 = vmatmul.mubr.msk.f32.gmra.mrb[204].mxu0 %vm1828_vm1, %v15128_v1 }
0x146f   :  { %12788 = vmatprep.mubr.msk.f32.mxu0 %vm1828_vm1, %v15134_v2  ;;  %v10893_v2 = vld [vmem:[%s18274_s7 + $0xf0] sm:$0xff] }
0x1472   :  { %12789 = vmatmul.mubr.msk.f32.gmra.mrb[206].mxu0 %vm1828_vm1, %v15136_v4  ;;  %v10894_v4 = vld [vmem:[%s18274_s7 + $0xf8] sm:$0xff] }
0x1473   :  { %12819 = vmatprep.mubr.msk.f32.mxu0 %vm1828_vm1, %v15566_v36  ;;  %v18521_v36 = vld [vmem:[#allocation34_spill] sm:$0xff] }
0x1476   :  { %12820 = vmatmul.mubr.msk.f32.vlgmr.msra.gmra.mrb[208].mxu0 %vm1828_vm1, %v15564_v18  ;;  %v13129_v18 = vpack.c.bf16 %v10894_v4, %v10893_v2  ;;  %v17206_v4 = vld [vmem:[%s18277_s8 + $0x18] sm:$0xff] }
0x1477   :  { %12822 = vmatprep.mubr.msk.f32.mxu0 %vm1828_vm1, %v15578_v61  ;;  %12870 = vmatpush3.msra.mxu0 %v10985_v24  ;;  %v18523_v61 = vld [vmem:[#allocation35_spill] sm:$0xff] }
0x1478   :  { %12921 = vmatprep.subr.mxu0 %v11023_v23  ;;  %13130 = vmatprep.subr.bf16.mxu1 %v13129_v18 }
0x1479   :  { %13132 = vmatpush3.bf16.msra.mxu1 %v13129_v18 }
0x147a   :  { %12823 = vmatmul.mubr.msk.f32.gmra.mrb[210].mxu0 %vm1828_vm1, %v15576_v40  ;;  %v18522_v40 = vld [vmem:[#allocation36_spill] sm:$0xff] }
0x147b   :  { %12825 = vmatprep.mubr.msk.f32.mxu0 %vm1828_vm1, %v15590_v50  ;;  %v18525_v50 = vld [vmem:[#allocation37_spill] sm:$0xff] }
0x147e   :  { %12826 = vmatmul.mubr.msk.f32.gmra.mrb[212].mxu0 %vm1828_vm1, %v15588_v34  ;;  %v18524_v34 = vld [vmem:[#allocation38_spill] sm:$0xff] }
0x147f   :  { %12828 = vmatprep.mubr.msk.f32.mxu0 %vm1828_vm1, %v15602_v3  ;;  %v18527_v3 = vld [vmem:[#allocation39_spill] sm:$0xff] }
0x1482   :  { %12829 = vmatmul.mubr.msk.f32.gmra.mrb[214].mxu0 %vm1828_vm1, %v15600_v5  ;;  %v18526_v5 = vld [vmem:[#allocation40_spill] sm:$0xff] }
0x1483   :  { %12831 = vmatprep.mubr.msk.f32.mxu0 %vm1828_vm1, %v15614_v20  ;;  %v18529_v20 = vld [vmem:[#allocation41_spill] sm:$0xff] }
0x1486   :  { %12832 = vmatmul.mubr.msk.f32.gmra.mrb[216].mxu0 %vm1828_vm1, %v15612_v37  ;;  %v18528_v37 = vld [vmem:[#allocation42_spill] sm:$0xff] }
0x1487   :  { %12834 = vmatprep.mubr.msk.f32.mxu0 %vm1828_vm1, %v15632_v22  ;;  %v18531_v22 = vld [vmem:[#allocation43_spill] sm:$0xff] }
0x148a   :  { %12835 = vmatmul.mubr.msk.f32.gmra.mrb[218].mxu0 %vm1828_vm1, %v15630_v39  ;;  %v18530_v39 = vld [vmem:[#allocation44_spill] sm:$0xff] }
0x148b   :  { %12837 = vmatprep.mubr.msk.f32.mxu0 %vm1828_vm1, %v15644_v42  ;;  %v18533_v42 = vld [vmem:[#allocation45_spill] sm:$0xff] }
0x148e   :  { %12838 = vmatmul.mubr.msk.f32.gmra.mrb[220].mxu0 %vm1828_vm1, %v15642_v19  ;;  %v18532_v19 = vld [vmem:[#allocation46_spill] sm:$0xff] }
0x148f   :  { %12840 = vmatprep.mubr.msk.f32.mxu0 %vm1828_vm1, %v15656_v35  ;;  %v10928_v35 = vld [vmem:[%s18277_s8 + $0x8] sm:$0xff] }
0x1490   :  { %12791 = vmatprep.subr.mxu1 %v10928_v35 }
0x1492   :  { %12841 = vmatmul.mubr.msk.f32.gmra.mrb[222].mxu0 %vm1828_vm1, %v15654_v8  ;;  %v18534_v8 = vld [vmem:[#allocation133_spill] sm:$0xff] }
0x1493   :  { %12871 = vmatprep.mubr.msk.f32.mxu0 %vm1828_vm1, %v16090_v9  ;;  %v18536_v9 = vld [vmem:[#allocation134_spill] sm:$0xff] }
0x1496   :  { %12872 = vmatmul.mubr.msk.f32.vlgmr.msra.gmra.mrb[224].mxu0 %vm1828_vm1, %v16088_v16  ;;  %v18535_v16 = vld [vmem:[#allocation135_spill] sm:$0xff] }
0x1497   :  { %12874 = vmatprep.mubr.msk.f32.mxu0 %vm1828_vm1, %v16102_v32  ;;  %12922 = vmatpush3.msra.mxu0 %v11023_v23  ;;  %v18537_v32 = vld [vmem:[#allocation137_spill] sm:$0xff] }
0x149a   :  { %12875 = vmatmul.mubr.msk.f32.gmra.mrb[226].mxu0 %vm1828_vm1, %v18521_v36 }
0x149b   :  { %12877 = vmatprep.mubr.msk.f32.mxu0 %vm1828_vm1, %v18522_v40 }
0x149e   :  { %12878 = vmatmul.mubr.msk.f32.gmra.mrb[228].mxu0 %vm1828_vm1, %v18523_v61 }
0x149f   :  { %12880 = vmatprep.mubr.msk.f32.mxu0 %vm1828_vm1, %v18524_v34 }
0x14a2   :  { %12881 = vmatmul.mubr.msk.f32.gmra.mrb[230].mxu0 %vm1828_vm1, %v18525_v50 }
0x14a3   :  { %12883 = vmatprep.mubr.msk.f32.mxu0 %vm1828_vm1, %v18526_v5 }
0x14a6   :  { %12884 = vmatmul.mubr.msk.f32.gmra.mrb[232].mxu0 %vm1828_vm1, %v18527_v3 }
0x14a7   :  { %12886 = vmatprep.mubr.msk.f32.mxu0 %vm1828_vm1, %v18528_v37 }
0x14aa   :  { %12887 = vmatmul.mubr.msk.f32.gmra.mrb[234].mxu0 %vm1828_vm1, %v18529_v20 }
0x14ab   :  { %12889 = vmatprep.mubr.msk.f32.mxu0 %vm1828_vm1, %v18530_v39 }
0x14ae   :  { %12890 = vmatmul.mubr.msk.f32.gmra.mrb[236].mxu0 %vm1828_vm1, %v18531_v22 }
0x14af   :  { %12892 = vmatprep.mubr.msk.f32.mxu0 %vm1828_vm1, %v18532_v19 }
0x14b2   :  { %12893 = vmatmul.mubr.msk.f32.gmra.mrb[238].mxu0 %vm1828_vm1, %v18533_v42 }
0x14b3   :  { %12923 = vmatprep.mubr.msk.f32.mxu0 %vm1828_vm1, %v16782_v28  ;;  %v18539_v28 = vld [vmem:[#allocation139_spill] sm:$0xff] }
0x14b6   :  { %12924 = vmatmul.mubr.msk.f32.vlgmr.msra.gmra.mrb[240].mxu0 %vm1828_vm1, %v18534_v8 }
0x14b7   :  { %12926 = vmatprep.mubr.msk.f32.mxu0 %vm1828_vm1, %v18535_v16 }
0x14ba   :  { %12927 = vmatmul.mubr.msk.f32.gmra.mrb[242].mxu0 %vm1828_vm1, %v18536_v9 }
0x14bb   :  { %12929 = vmatprep.mubr.msk.f32.mxu0 %vm1828_vm1, %v18537_v32 }
0x14be   :  { %12930 = vmatmul.mubr.msk.f32.gmra.mrb[244].mxu0 %vm1828_vm1, %v18538_v11 }
0x14bf   :  { %12932 = vmatprep.mubr.msk.f32.mxu0 %vm1828_vm1, %v18539_v28 }
0x14c2   :  { %12933 = vmatmul.mubr.msk.f32.gmra.mrb[246].mxu0 %vm1828_vm1, %v18540_v25 }
0x14c3   :  { %12935 = vmatprep.mubr.msk.f32.mxu0 %vm1828_vm1, %v18541_v21 }
0x14c6   :  { %12936 = vmatmul.mubr.msk.f32.gmra.mrb[248].mxu0 %vm1828_vm1, %v18542_v59 }
0x14c7   :  { %12938 = vmatprep.mubr.msk.f32.mxu0 %vm1828_vm1, %v18543_v12 }
0x14ca   :  { %12939 = vmatmul.mubr.msk.f32.gmra.mrb[250].mxu0 %vm1828_vm1, %v18544_v6 }
0x14cb   :  { %12941 = vmatprep.mubr.msk.f32.mxu0 %vm1828_vm1, %v18545_v17 }
0x14ce   :  { %12942 = vmatmul.mubr.msk.f32.gmra.mrb[252].mxu0 %vm1828_vm1, %v18546_v10 }
0x14cf   :  { %12944 = vmatprep.mubr.msk.f32.mxu0 %vm1828_vm1, %v18547_v38 }
0x14d2   :  { %12945 = vmatmul.mubr.msk.f32.gmra.mrb[254].mxu0 %vm1828_vm1, %v18548_v46 }
0x1509   :  { %v12711_v44 = vpop.f32.mrb[176].mxu0 }
0x150a   :  { %v7466_v27 = vadd.f32 %v12711_v44, %v17192_v31  ;;  %v7460_v48 = vpop.f32.mrb[177].mxu0 }
0x150b   :  { %v7461_v56 = vadd.f32 %v17192_v31, %v7460_v48 }
0x150d   :  { %14102 = vtanh.f32 %v7461_v56  ;;  %v12714_v58 = vpop.f32.mrb[178].mxu0 }
0x150e   :  { %14104 = vtanh.f32 %v7466_v27  ;;  %v7476_v30 = vadd.f32 %v12714_v58, %v17192_v31  ;;  %v7470_v13 = vpop.f32.mrb[179].mxu0 }
0x150f   :  { %v7471_v7 = vadd.f32 %v17192_v31, %v7470_v13 }
0x1511   :  { %14106 = vtanh.f32 %v7471_v7  ;;  %v12717_v26 = vpop.f32.mrb[180].mxu0  ;;  %v18549_v7 = vld [vmem:[#allocation3_spill] sm:$0xff] }
0x1512   :  { %14108 = vtanh.f32 %v7476_v30  ;;  %v7486_v33 = vadd.f32 %v12717_v26, %v17192_v31  ;;  %v7480_v15 = vpop.f32.mrb[181].mxu0  ;;  %v11004_v26 = vld [vmem:[%s18277_s8 + $0x28] sm:$0xff] }
0x1513   :  { %v7481_v29 = vadd.f32 %v17192_v31, %v7480_v15  ;;  %v18550_v15 = vld [vmem:[#allocation2_spill] sm:$0xff] }
0x1515   :  { %14110 = vtanh.f32 %v7481_v29  ;;  %v12720_v14 = vpop.f32.mrb[182].mxu0 }
0x1516   :  { %14112 = vtanh.f32 %v7486_v33  ;;  %v7496_v52 = vadd.f32 %v12720_v14, %v17192_v31  ;;  %v7490_v54 = vpop.f32.mrb[183].mxu0  ;;  %v18551_v14 = vld [vmem:[#allocation5_spill] sm:$0xff] }
0x1517   :  { %v14103_v24 = vpop.eup %14102  ;;  %v7491_v23 = vadd.f32 %v17192_v31, %v7490_v54  ;;  %v18552_v54 = vld [vmem:[#allocation4_spill] sm:$0xff] }
0x1518   :  { %v14105_v2 = vpop.eup %14104  ;;  %12741 = vmatprep.mubr.msk.f32.mxu1 %vm2145_vm2, %v14103_v24 }
0x1519   :  { %14114 = vtanh.f32 %v7491_v23  ;;  %v12723_v18 = vpop.f32.mrb[184].mxu0  ;;  %12742 = vmatmul.mubr.msk.f32.vlgmr.msra.gmra.mrb[176].mxu1 %vm2145_vm2, %v14105_v2  ;;  %v18553_v23 = vld [vmem:[#allocation7_spill] sm:$0xff] }
0x151a   :  { %14116 = vtanh.f32 %v7496_v52  ;;  %v7506_v36 = vadd.f32 %v12723_v18, %v17192_v31  ;;  %v7500_v40 = vpop.f32.mrb[185].mxu0  ;;  %12792 = vmatpush3.msra.mxu1 %v10928_v35  ;;  %v18554_v18 = vld [vmem:[#allocation6_spill] sm:$0xff] }
0x151b   :  { %v14107_v61 = vpop.eup %14106  ;;  %v7501_v34 = vadd.f32 %v17192_v31, %v7500_v40  ;;  %12843 = vmatprep.subr.mxu1 %v17206_v4  ;;  %v18555_v40 = vld [vmem:[#allocation9_spill] sm:$0xff] }
0x151c   :  { %v14109_v50 = vpop.eup %14108  ;;  %12744 = vmatprep.mubr.msk.f32.mxu1 %vm2145_vm2, %v14107_v61  ;;  %v18556_v61 = vld [vmem:[#allocation8_spill] sm:$0xff] }
0x151d   :  { %14118 = vtanh.f32 %v7501_v34  ;;  %v12726_v5 = vpop.f32.mrb[186].mxu0  ;;  %12745 = vmatmul.mubr.msk.f32.gmra.mrb[178].mxu1 %vm2145_vm2, %v14109_v50  ;;  %v18557_v50 = vld [vmem:[#allocation11_spill] sm:$0xff] }
0x151e   :  { %14120 = vtanh.f32 %v7506_v36  ;;  %v7516_v3 = vadd.f32 %v12726_v5, %v17192_v31  ;;  %v7510_v37 = vpop.f32.mrb[187].mxu0  ;;  %v17289_v5 = vld [vmem:[%s18278_s9 + $0x2] ss:$0 sm:$0xff] }
0x151f   :  { %v14111_v20 = vpop.eup %14110  ;;  %v7511_v39 = vadd.f32 %v17192_v31, %v7510_v37 }
0x1520   :  { %v14113_v22 = vpop.eup %14112  ;;  %12747 = vmatprep.mubr.msk.f32.mxu1 %vm2145_vm2, %v14111_v20 }
0x1521   :  { %14122 = vtanh.f32 %v7511_v39  ;;  %v12729_v19 = vpop.f32.mrb[188].mxu0  ;;  %12748 = vmatmul.mubr.msk.f32.gmra.mrb[180].mxu1 %vm2145_vm2, %v14113_v22  ;;  %v18559_v39 = vld [vmem:[#allocation13_spill] sm:$0xff] }
0x1522   :  { %14124 = vtanh.f32 %v7516_v3  ;;  %v7526_v42 = vadd.f32 %v12729_v19, %v17192_v31  ;;  %v7520_v8 = vpop.f32.mrb[189].mxu0  ;;  %v18558_v3 = vld [vmem:[#allocation10_spill] sm:$0xff] }
0x1523   :  { %v14115_v35 = vpop.eup %14114  ;;  %v7521_v16 = vadd.f32 %v17192_v31, %v7520_v8  ;;  %v18560_v8 = vld [vmem:[#allocation12_spill] sm:$0xff] }
0x1524   :  { %v14117_v9 = vpop.eup %14116  ;;  %12750 = vmatprep.mubr.msk.f32.mxu1 %vm2145_vm2, %v14115_v35 }
0x1525   :  { %14126 = vtanh.f32 %v7521_v16  ;;  %v12732_v32 = vpop.f32.mrb[190].mxu0  ;;  %12751 = vmatmul.mubr.msk.f32.gmra.mrb[182].mxu1 %vm2145_vm2, %v14117_v9  ;;  %v18561_v16 = vld [vmem:[#allocation15_spill] sm:$0xff] }
0x1526   :  { %14128 = vtanh.f32 %v7526_v42  ;;  %v7536_v11 = vadd.f32 %v12732_v32, %v17192_v31  ;;  %v7530_v28 = vpop.f32.mrb[191].mxu0 }
0x1527   :  { %v14119_v25 = vpop.eup %14118  ;;  %v7531_v21 = vadd.f32 %v17192_v31, %v7530_v28  ;;  %v18562_v28 = vld [vmem:[#allocation14_spill] sm:$0xff] }
0x1528   :  { %v14121_v59 = vpop.eup %14120  ;;  %12753 = vmatprep.mubr.msk.f32.mxu1 %vm2145_vm2, %v14119_v25 }
0x1529   :  { %14130 = vtanh.f32 %v7531_v21  ;;  %12754 = vmatmul.mubr.msk.f32.gmra.mrb[184].mxu1 %vm2145_vm2, %v14121_v59  ;;  %v17226_v12 = vpop.f32.mrb[192].mxu0  ;;  %v18563_v21 = vld [vmem:[#allocation17_spill] sm:$0xff] }
0x152a   :  { %14132 = vtanh.f32 %v7536_v11  ;;  %v17228_v6 = vpop.f32.mrb[193].mxu0 }
0x152b   :  { %v14123_v17 = vpop.eup %14122 }
0x152c   :  { %v14125_v10 = vpop.eup %14124  ;;  %12756 = vmatprep.mubr.msk.f32.mxu1 %vm2145_vm2, %v14123_v17 }
0x152d   :  { %12757 = vmatmul.mubr.msk.f32.gmra.mrb[186].mxu1 %vm2145_vm2, %v14125_v10  ;;  %v17232_v38 = vpop.f32.mrb[194].mxu0 }
0x152e   :  { %v17234_v46 = vpop.f32.mrb[195].mxu0 }
0x152f   :  { %v14127_v31 = vpop.eup %14126 }
0x1530   :  { %v14129_v44 = vpop.eup %14128  ;;  %12759 = vmatprep.mubr.msk.f32.mxu1 %vm2145_vm2, %v14127_v31  ;;  %v18564_v31 = vld [vmem:[#allocation16_spill] sm:$0xff] }
0x1531   :  { %12760 = vmatmul.mubr.msk.f32.gmra.mrb[188].mxu1 %vm2145_vm2, %v14129_v44  ;;  %v17238_v27 = vpop.f32.mrb[196].mxu0 }
0x1532   :  { %v17240_v48 = vpop.f32.mrb[197].mxu0 }
0x1533   :  { %v14131_v56 = vpop.eup %14130 }
0x1534   :  { %v14133_v58 = vpop.eup %14132  ;;  %12762 = vmatprep.mubr.msk.f32.mxu1 %vm2145_vm2, %v14131_v56 }
0x1535   :  { %12763 = vmatmul.mubr.msk.f32.gmra.mrb[190].mxu1 %vm2145_vm2, %v14133_v58  ;;  %v17244_v30 = vpop.f32.mrb[198].mxu0  ;;  %v18565_v58 = vld [vmem:[#allocation19_spill] sm:$0xff] }
0x1536   :  { %v17246_v13 = vpop.f32.mrb[199].mxu0  ;;  %12793 = vmatprep.mubr.msk.f32.mxu1 %vm1828_vm1, %v18549_v7 }
0x1539   :  { %v17253_v33 = vpop.f32.mrb[200].mxu0  ;;  %12794 = vmatmul.mubr.msk.f32.vlgmr.msra.gmra.mrb[192].mxu1 %vm1828_vm1, %v18550_v15 }
0x153a   :  { %v17257_v29 = vpop.f32.mrb[201].mxu0  ;;  %12796 = vmatprep.mubr.msk.f32.mxu1 %vm1828_vm1, %v18551_v14  ;;  %12844 = vmatpush3.msra.mxu1 %v17206_v4  ;;  %v18566_v14 = vld [vmem:[#allocation18_spill] sm:$0xff] }
0x153b   :  { %12895 = vmatprep.subr.mxu1 %v11004_v26 }
0x153d   :  { %v17262_v52 = vpop.f32.mrb[202].mxu0  ;;  %12797 = vmatmul.mubr.msk.f32.gmra.mrb[194].mxu1 %vm1828_vm1, %v18552_v54 }
0x153e   :  { %v17266_v24 = vpop.f32.mrb[203].mxu0  ;;  %12799 = vmatprep.mubr.msk.f32.mxu1 %vm1828_vm1, %v18553_v23 }
0x1541   :  { %v17270_v2 = vpop.f32.mrb[204].mxu0  ;;  %12800 = vmatmul.mubr.msk.f32.gmra.mrb[196].mxu1 %vm1828_vm1, %v18554_v18  ;;  %v18567_v18 = vld [vmem:[#allocation21_spill] sm:$0xff] }
0x1542   :  { %v17274_v36 = vpop.f32.mrb[205].mxu0  ;;  %12802 = vmatprep.mubr.msk.f32.mxu1 %vm1828_vm1, %v18555_v40  ;;  %v11042_v40 = vld [vmem:[%s18277_s8 + $0x38] sm:$0xff] }
0x1545   :  { %v17278_v4 = vpop.f32.mrb[206].mxu0  ;;  %12803 = vmatmul.mubr.msk.f32.gmra.mrb[198].mxu1 %vm1828_vm1, %v18556_v61 }
0x1546   :  { %v17282_v34 = vpop.f32.mrb[207].mxu0  ;;  %12805 = vmatprep.mubr.msk.f32.mxu1 %vm1828_vm1, %v18557_v50 }
0x1549   :  { %12806 = vmatmul.mubr.msk.f32.gmra.mrb[200].mxu1 %vm1828_vm1, %v18558_v3  ;;  %v12821_v37 = vpop.f32.mrb[208].mxu0  ;;  %v18568_v3 = vld [vmem:[#allocation20_spill] sm:$0xff] }
0x154a   :  { %v8159_v20 = vadd.f32 %v12821_v37, %v17289_v5  ;;  %12808 = vmatprep.mubr.msk.f32.mxu1 %vm1828_vm1, %v18559_v39  ;;  %v8153_v22 = vpop.f32.mrb[209].mxu0  ;;  %v18569_v39 = vld [vmem:[#allocation23_spill] sm:$0xff] }
0x154b   :  { %v8154_v19 = vadd.f32 %v17289_v5, %v8153_v22 }
0x154c   :  { %9137 = vrot.lane.b32.xlu1 %v8159_v20, %s14172_s20 }
0x154d   :  { %v12824_v42 = vpop.f32.mrb[210].mxu0  ;;  %9135 = vrot.lane.b32.xlu0 %v8154_v19, %s14172_s20  ;;  %12809 = vmatmul.mubr.msk.f32.gmra.mrb[202].mxu1 %vm1828_vm1, %v18560_v8  ;;  %v18570_v19 = vld [vmem:[#allocation22_spill] sm:$0xff] }
0x154e   :  { %v8169_v35 = vadd.f32 %v12824_v42, %v17289_v5  ;;  %12811 = vmatprep.mubr.msk.f32.mxu1 %vm1828_vm1, %v18561_v16  ;;  %v8163_v9 = vpop.f32.mrb[211].mxu0 }
0x154f   :  { %v8164_v32 = vadd.f32 %v17289_v5, %v8163_v9 }
0x1550   :  { %9141 = vrot.lane.b32.xlu1 %v8169_v35, %s14172_s20  ;;  %v18571_v35 = vld [vmem:[#allocation25_spill] sm:$0xff] }
0x1551   :  { %v12827_v11 = vpop.f32.mrb[212].mxu0  ;;  %9139 = vrot.lane.b32.xlu0 %v8164_v32, %s14172_s20  ;;  %12812 = vmatmul.mubr.msk.f32.gmra.mrb[204].mxu1 %vm1828_vm1, %v18562_v28  ;;  %v18572_v32 = vld [vmem:[#allocation24_spill] sm:$0xff] }
0x1552   :  { %v8179_v25 = vadd.f32 %v12827_v11, %v17289_v5  ;;  %12814 = vmatprep.mubr.msk.f32.mxu1 %vm1828_vm1, %v18563_v21  ;;  %v8173_v59 = vpop.f32.mrb[213].mxu0 }
0x1553   :  { %v8174_v17 = vadd.f32 %v17289_v5, %v8173_v59 }
0x1554   :  { %9145 = vrot.lane.b32.xlu1 %v8179_v25, %s14172_s20  ;;  %v18573_v25 = vld [vmem:[#allocation27_spill] sm:$0xff] }
0x1555   :  { %v12830_v10 = vpop.f32.mrb[214].mxu0  ;;  %9143 = vrot.lane.b32.xlu0 %v8174_v17, %s14172_s20  ;;  %12815 = vmatmul.mubr.msk.f32.gmra.mrb[206].mxu1 %vm1828_vm1, %v18564_v31  ;;  %v18575_v17 = vld [vmem:[#allocation26_spill] sm:$0xff] }
0x1556   :  { %v8189_v44 = vadd.f32 %v12830_v10, %v17289_v5  ;;  %v8183_v56 = vpop.f32.mrb[215].mxu0  ;;  %12845 = vmatprep.mubr.msk.f32.mxu1 %vm1828_vm1, %v18565_v58  ;;  %v18576_v10 = vld [vmem:[#allocation29_spill] sm:$0xff] }
0x1557   :  { %v8184_v7 = vadd.f32 %v17289_v5, %v8183_v56 }
0x1558   :  { %9149 = vrot.lane.b32.xlu1 %v8189_v44, %s14172_s20  ;;  %v18578_v44 = vld [vmem:[#allocation28_spill] sm:$0xff] }
0x1559   :  { %v12833_v15 = vpop.f32.mrb[216].mxu0  ;;  %9147 = vrot.lane.b32.xlu0 %v8184_v7, %s14172_s20  ;;  %12846 = vmatmul.mubr.msk.f32.vlgmr.msra.gmra.mrb[208].mxu1 %vm1828_vm1, %v18566_v14  ;;  %v18582_v7 = vld [vmem:[#allocation30_spill] sm:$0xff]  ;;  %v18584_v14 = vld [vmem:[#allocation33_spill] sm:$0xff] }
0x155a   :  { %v8199_v54 = vadd.f32 %v12833_v15, %v17289_v5  ;;  %v8193_v23 = vpop.f32.mrb[217].mxu0  ;;  %12848 = vmatprep.mubr.msk.f32.mxu1 %vm1828_vm1, %v18567_v18  ;;  %12896 = vmatpush3.msra.mxu1 %v11004_v26 }
0x155b   :  { %v8194_v61 = vadd.f32 %v17289_v5, %v8193_v23  ;;  %12947 = vmatprep.subr.mxu1 %v11042_v40  ;;  %v18586_v23 = vld [vmem:[#allocation32_spill] sm:$0xff] }
0x155c   :  { %9153 = vrot.lane.b32.xlu1 %v8199_v54, %s14172_s20 }
0x155d   :  { %v12836_v50 = vpop.f32.mrb[218].mxu0  ;;  %9151 = vrot.lane.b32.xlu0 %v8194_v61, %s14172_s20  ;;  %12849 = vmatmul.mubr.msk.f32.gmra.mrb[210].mxu1 %vm1828_vm1, %v18568_v3 }
0x155e   :  { %v8209_v37 = vadd.f32 %v12836_v50, %v17289_v5  ;;  %v8203_v20 = vpop.f32.mrb[219].mxu0  ;;  %12851 = vmatprep.mubr.msk.f32.mxu1 %vm1828_vm1, %v18569_v39  ;;  %v18589_v50 = vld [vmem:[#allocation70_spill] sm:$0xff] }
0x155f   :  { %v8204_v26 = vadd.f32 %v17289_v5, %v8203_v20  ;;  %v18593_v39 = vld [vmem:[#allocation74_spill] sm:$0xff] }
0x1560   :  { %9157 = vrot.lane.b32.xlu1 %v8209_v37, %s14172_s20  ;;  %v18591_v37 = vld [vmem:[#allocation69_spill] sm:$0xff] }
0x1561   :  { %v12839_v22 = vpop.f32.mrb[220].mxu0  ;;  %9155 = vrot.lane.b32.xlu0 %v8204_v26, %s14172_s20  ;;  %12852 = vmatmul.mubr.msk.f32.gmra.mrb[212].mxu1 %vm1828_vm1, %v18570_v19 }
0x1562   :  { %v8219_v42 = vadd.f32 %v12839_v22, %v17289_v5  ;;  %v8213_v8 = vpop.f32.mrb[221].mxu0  ;;  %12854 = vmatprep.mubr.msk.f32.mxu1 %vm1828_vm1, %v18571_v35  ;;  %v18595_v22 = vld [vmem:[#allocation73_spill] sm:$0xff]  ;;  %v18599_v35 = vld [vmem:[#allocation76_spill] sm:$0xff] }
0x1563   :  { %v8214_v16 = vadd.f32 %v17289_v5, %v8213_v8 }
0x1564   :  { %9161 = vrot.lane.b32.xlu1 %v8219_v42, %s14172_s20  ;;  %v18597_v42 = vld [vmem:[#allocation78_spill] sm:$0xff] }
0x1565   :  { %v12842_v9 = vpop.f32.mrb[222].mxu0  ;;  %9159 = vrot.lane.b32.xlu0 %v8214_v16, %s14172_s20  ;;  %12855 = vmatmul.mubr.msk.f32.gmra.mrb[214].mxu1 %vm1828_vm1, %v18572_v32  ;;  %v18603_v32 = vld [vmem:[#allocation79_spill] sm:$0xff] }
0x1566   :  { %v8229_v11 = vadd.f32 %v12842_v9, %v17289_v5  ;;  %v8223_v28 = vpop.f32.mrb[223].mxu0  ;;  %12857 = vmatprep.mubr.msk.f32.mxu1 %vm1828_vm1, %v18573_v25  ;;  %v18601_v9 = vld [vmem:[#allocation80_spill] sm:$0xff]  ;;  %v11025_v25 = vld [vmem:[%s18278_s9 + $0x6] ss:$0 sm:$0xff] }
0x1567   :  { %v8224_v21 = vadd.f32 %v17289_v5, %v8223_v28  ;;  %v18580_v5 = vld [vmem:[#allocation31_spill] sm:$0xff]  ;;  %v18605_v28 = vld [vmem:[#allocation84_spill] sm:$0xff] }
0x1568   :  { %9165 = vrot.lane.b32.xlu1 %v8229_v11, %s14172_s20 }
0x1569   :  { %v17357_v59 = vpop.f32.mrb[224].mxu0  ;;  %9163 = vrot.lane.b32.xlu0 %v8224_v21, %s14172_s20  ;;  %12858 = vmatmul.mubr.msk.f32.gmra.mrb[216].mxu1 %vm1828_vm1, %v18575_v17  ;;  %v18606_v21 = vld [vmem:[#allocation83_spill] sm:$0xff] }
0x156a   :  { %18574 = vst [vmem:[#allocation34_spill] sm:$0xff] %v17357_v59  ;;  %12860 = vmatprep.mubr.msk.f32.mxu1 %vm1828_vm1, %v18576_v10  ;;  %v17364_v31 = vpop.f32.mrb[225].mxu0 }
0x156b   :  { %18577 = vst [vmem:[#allocation36_spill] sm:$0xff] %v17364_v31 }
0x156d   :  { %12861 = vmatmul.mubr.msk.f32.gmra.mrb[218].mxu1 %vm1828_vm1, %v18578_v44  ;;  %v17368_v56 = vpop.f32.mrb[226].mxu0  ;;  %v18607_v44 = vld [vmem:[#allocation86_spill] sm:$0xff] }
0x156e   :  { %18579 = vst [vmem:[#allocation35_spill] sm:$0xff] %v17368_v56  ;;  %12863 = vmatprep.mubr.msk.f32.mxu1 %vm1828_vm1, %v18580_v5  ;;  %v17372_v58 = vpop.f32.mrb[227].mxu0 }
0x156f   :  { %18581 = vst [vmem:[#allocation38_spill] sm:$0xff] %v17372_v58 }
0x1571   :  { %12864 = vmatmul.mubr.msk.f32.gmra.mrb[220].mxu1 %vm1828_vm1, %v18582_v7  ;;  %v17376_v15 = vpop.f32.mrb[228].mxu0 }
0x1572   :  { %18583 = vst [vmem:[#allocation37_spill] sm:$0xff] %v17376_v15  ;;  %12866 = vmatprep.mubr.msk.f32.mxu1 %vm1828_vm1, %v18584_v14  ;;  %v17380_v54 = vpop.f32.mrb[229].mxu0 }
0x1573   :  { %18585 = vst [vmem:[#allocation40_spill] sm:$0xff] %v17380_v54 }
0x1575   :  { %12867 = vmatmul.mubr.msk.f32.gmra.mrb[222].mxu1 %vm1828_vm1, %v18586_v23  ;;  %v17384_v18 = vpop.f32.mrb[230].mxu0  ;;  %v18608_v23 = vld [vmem:[#allocation85_spill] sm:$0xff] }
0x1576   :  { %18587 = vst [vmem:[#allocation39_spill] sm:$0xff] %v17384_v18  ;;  %v17386_v61 = vpop.f32.mrb[231].mxu0  ;;  %12897 = vmatprep.mubr.msk.f32.mxu1 %vm1828_vm1, %v18589_v50 }
0x1577   :  { %18588 = vst [vmem:[#allocation42_spill] sm:$0xff] %v17386_v61 }
0x1579   :  { %v17390_v3 = vpop.f32.mrb[232].mxu0  ;;  %12898 = vmatmul.mubr.msk.f32.vlgmr.msra.gmra.mrb[224].mxu1 %vm1828_vm1, %v18591_v37  ;;  %v18609_v37 = vld [vmem:[#allocation90_spill] sm:$0xff] }
0x157a   :  { %18590 = vst [vmem:[#allocation41_spill] sm:$0xff] %v17390_v3  ;;  %v17394_v20 = vpop.f32.mrb[233].mxu0  ;;  %12900 = vmatprep.mubr.msk.f32.mxu1 %vm1828_vm1, %v18593_v39  ;;  %12948 = vmatpush3.msra.mxu1 %v11042_v40 }
0x157b   :  { %18592 = vst [vmem:[#allocation44_spill] sm:$0xff] %v17394_v20 }
0x157d   :  { %v17398_v26 = vpop.f32.mrb[234].mxu0  ;;  %12901 = vmatmul.mubr.msk.f32.gmra.mrb[226].mxu1 %vm1828_vm1, %v18595_v22 }
0x157e   :  { %18594 = vst [vmem:[#allocation43_spill] sm:$0xff] %v17398_v26  ;;  %v17402_v19 = vpop.f32.mrb[235].mxu0  ;;  %12903 = vmatprep.mubr.msk.f32.mxu1 %vm1828_vm1, %v18597_v42 }
0x157f   :  { %18596 = vst [vmem:[#allocation46_spill] sm:$0xff] %v17402_v19 }
0x1581   :  { %v17406_v8 = vpop.f32.mrb[236].mxu0  ;;  %12904 = vmatmul.mubr.msk.f32.gmra.mrb[228].mxu1 %vm1828_vm1, %v18599_v35  ;;  %v18610_v35 = vld [vmem:[#allocation88_spill] sm:$0xff] }
0x1582   :  { %18598 = vst [vmem:[#allocation45_spill] sm:$0xff] %v17406_v8  ;;  %v17410_v16 = vpop.f32.mrb[237].mxu0  ;;  %12906 = vmatprep.mubr.msk.f32.mxu1 %vm1828_vm1, %v18601_v9 }
0x1583   :  { %18600 = vst [vmem:[#allocation133_spill] sm:$0xff] %v17410_v16 }
0x1585   :  { %v17414_v40 = vpop.f32.mrb[238].mxu0  ;;  %12907 = vmatmul.mubr.msk.f32.gmra.mrb[230].mxu1 %vm1828_vm1, %v18603_v32  ;;  %v18611_v32 = vld [vmem:[#allocation92_spill] sm:$0xff] }
0x1586   :  { %18602 = vst [vmem:[#allocation135_spill] sm:$0xff] %v17414_v40  ;;  %v17418_v11 = vpop.f32.mrb[239].mxu0  ;;  %12909 = vmatprep.mubr.msk.f32.mxu1 %vm1828_vm1, %v18605_v28 }
0x1587   :  { %18604 = vst [vmem:[#allocation134_spill] sm:$0xff] %v17418_v11 }
0x1589   :  { %12910 = vmatmul.mubr.msk.f32.gmra.mrb[232].mxu1 %vm1828_vm1, %v18606_v21  ;;  %v12925_v17 = vpop.f32.mrb[240].mxu0 }
0x158a   :  { %v8779_v10 = vadd.f32 %v12925_v17, %v11025_v25  ;;  %12912 = vmatprep.mubr.msk.f32.mxu1 %vm1828_vm1, %v18607_v44  ;;  %v8773_v5 = vpop.f32.mrb[241].mxu0 }
0x158b   :  { %v8774_v7 = vadd.f32 %v11025_v25, %v8773_v5 }
0x158c   :  { %9329 = vrot.lane.b32.xlu1 %v8779_v10, %s14172_s20  ;;  %v18612_v10 = vld [vmem:[#allocation91_spill] sm:$0xff] }
0x158d   :  { %v12928_v14 = vpop.f32.mrb[242].mxu0  ;;  %9327 = vrot.lane.b32.xlu0 %v8774_v7, %s14172_s20  ;;  %12913 = vmatmul.mubr.msk.f32.gmra.mrb[234].mxu1 %vm1828_vm1, %v18608_v23 }
0x158e   :  { %v8789_v50 = vadd.f32 %v12928_v14, %v11025_v25  ;;  %12915 = vmatprep.mubr.msk.f32.mxu1 %vm1828_vm1, %v18609_v37  ;;  %v8783_v39 = vpop.f32.mrb[243].mxu0 }
0x158f   :  { %v8784_v22 = vadd.f32 %v11025_v25, %v8783_v39 }
0x1590   :  { %9333 = vrot.lane.b32.xlu1 %v8789_v50, %s14172_s20 }
0x1591   :  { %v12931_v42 = vpop.f32.mrb[244].mxu0  ;;  %9331 = vrot.lane.b32.xlu0 %v8784_v22, %s14172_s20  ;;  %12916 = vmatmul.mubr.msk.f32.gmra.mrb[236].mxu1 %vm1828_vm1, %v18610_v35 }
0x1592   :  { %v8799_v9 = vadd.f32 %v12931_v42, %v11025_v25  ;;  %12918 = vmatprep.mubr.msk.f32.mxu1 %vm1828_vm1, %v18611_v32  ;;  %v8793_v28 = vpop.f32.mrb[245].mxu0 }
0x1593   :  { %v8794_v21 = vadd.f32 %v11025_v25, %v8793_v28 }
0x1594   :  { %9337 = vrot.lane.b32.xlu1 %v8799_v9, %s14172_s20 }
0x1595   :  { %v12934_v17 = vpop.f32.mrb[246].mxu0  ;;  %9335 = vrot.lane.b32.xlu0 %v8794_v21, %s14172_s20  ;;  %12919 = vmatmul.mubr.msk.f32.gmra.mrb[238].mxu1 %vm1828_vm1, %v18612_v10 }
0x1596   :  { %v8809_v44 = vadd.f32 %v12934_v17, %v11025_v25  ;;  %v8803_v5 = vpop.f32.mrb[247].mxu0 }
0x1597   :  { %v8804_v7 = vadd.f32 %v11025_v25, %v8803_v5 }
0x1598   :  { %9341 = vrot.lane.b32.xlu1 %v8809_v44, %s14172_s20 }
0x1599   :  { %v12937_v14 = vpop.f32.mrb[248].mxu0  ;;  %9339 = vrot.lane.b32.xlu0 %v8804_v7, %s14172_s20 }
0x159a   :  { %v8819_v23 = vadd.f32 %v12937_v14, %v11025_v25  ;;  %v8813_v50 = vpop.f32.mrb[249].mxu0 }
0x159b   :  { %v8814_v37 = vadd.f32 %v11025_v25, %v8813_v50 }
0x159c   :  { %9345 = vrot.lane.b32.xlu1 %v8819_v23, %s14172_s20 }
0x159d   :  { %v12940_v39 = vpop.f32.mrb[250].mxu0  ;;  %9343 = vrot.lane.b32.xlu0 %v8814_v37, %s14172_s20 }
0x159e   :  { %v8829_v22 = vadd.f32 %v12940_v39, %v11025_v25  ;;  %v8823_v42 = vpop.f32.mrb[251].mxu0 }
0x159f   :  { %v8824_v35 = vadd.f32 %v11025_v25, %v8823_v42 }
0x15a0   :  { %9349 = vrot.lane.b32.xlu1 %v8829_v22, %s14172_s20 }
0x15a1   :  { %v12943_v9 = vpop.f32.mrb[252].mxu0  ;;  %9347 = vrot.lane.b32.xlu0 %v8824_v35, %s14172_s20 }
0x15a2   :  { %v8839_v32 = vadd.f32 %v12943_v9, %v11025_v25  ;;  %v8833_v28 = vpop.f32.mrb[253].mxu0 }
0x15a3   :  { %v8834_v21 = vadd.f32 %v11025_v25, %v8833_v28 }
0x15a4   :  { %9353 = vrot.lane.b32.xlu1 %v8839_v32, %s14172_s20 }
0x15a5   :  { %v12946_v17 = vpop.f32.mrb[254].mxu0  ;;  %9351 = vrot.lane.b32.xlu0 %v8834_v21, %s14172_s20 }
0x15a6   :  { %v8849_v10 = vadd.f32 %v12946_v17, %v11025_v25  ;;  %v8843_v44 = vpop.f32.mrb[255].mxu0 }
0x15a7   :  { %v8844_v5 = vadd.f32 %v11025_v25, %v8843_v44 }
0x15a8   :  { %9357 = vrot.lane.b32.xlu1 %v8849_v10, %s14172_s20 }
0x15a9   :  { %9355 = vrot.lane.b32.xlu0 %v8844_v5, %s14172_s20 }
0x15ec   :  { %v12743_v7 = vpop.f32.mrb[176].mxu1 }
0x15ed   :  { %14134 = vtanh.f32 %v12743_v7  ;;  %v7674_v14 = vpop.f32.mrb[177].mxu1 }
0x15ee   :  { %14136 = vtanh.f32 %v7674_v14 }
0x15f0   :  { %v12746_v23 = vpop.f32.mrb[178].mxu1 }
0x15f1   :  { %14138 = vtanh.f32 %v12746_v23  ;;  %v7684_v50 = vpop.f32.mrb[179].mxu1 }
0x15f2   :  { %14140 = vtanh.f32 %v7684_v50 }
0x15f4   :  { %v12749_v37 = vpop.f32.mrb[180].mxu1 }
0x15f5   :  { %14142 = vtanh.f32 %v12749_v37  ;;  %v7694_v39 = vpop.f32.mrb[181].mxu1 }
0x15f6   :  { %14144 = vtanh.f32 %v7694_v39 }
0x15f7   :  { %v14135_v22 = vpop.eup %14134 }
0x15f8   :  { %v14137_v42 = vpop.eup %14136  ;;  %v12752_v35 = vpop.f32.mrb[182].mxu1  ;;  %9859 = vrot.lane.b32.xlu1 %v14135_v22, %s14173_s23 }
0x15f9   :  { %14146 = vtanh.f32 %v12752_v35  ;;  %v7704_v25 = vpop.f32.mrb[183].mxu1  ;;  %9857 = vrot.lane.b32.xlu0 %v14137_v42, %s14173_s23  ;;  %12949 = vmatprep.mubr.msk.f32.mxu1 %vm1828_vm1, %v14137_v42 }
0x15fa   :  { %14148 = vtanh.f32 %v7704_v25  ;;  %12950 = vmatmul.mubr.msk.f32.vlgmr.msra.gmra.mrb[240].mxu1 %vm1828_vm1, %v14135_v22 }
0x15fb   :  { %v14139_v9 = vpop.eup %14138 }
0x15fc   :  { %v14141_v32 = vpop.eup %14140  ;;  %v12755_v28 = vpop.f32.mrb[184].mxu1  ;;  %9863 = vrot.lane.b32.xlu1 %v14139_v9, %s14173_s23 }
0x15fd   :  { %14150 = vtanh.f32 %v12755_v28  ;;  %v7714_v21 = vpop.f32.mrb[185].mxu1  ;;  %9861 = vrot.lane.b32.xlu0 %v14141_v32, %s14173_s23  ;;  %12952 = vmatprep.mubr.msk.f32.mxu1 %vm1828_vm1, %v14141_v32  ;;  %v17479_v32 = vld [vmem:[%s18278_s9 + $0x1] ss:$0 sm:$0xff] }
0x15fe   :  { %14152 = vtanh.f32 %v7714_v21  ;;  %12953 = vmatmul.mubr.msk.f32.gmra.mrb[242].mxu1 %vm1828_vm1, %v14139_v9  ;;  %v17483_v21 = vpop.permute.xlu1 %9137 }
0x15ff   :  { %v14143_v17 = vpop.eup %14142 }
0x1600   :  { %v14145_v10 = vpop.eup %14144  ;;  %v12758_v44 = vpop.f32.mrb[186].mxu1  ;;  %9867 = vrot.lane.b32.xlu1 %v14143_v17, %s14173_s23 }
0x1601   :  { %14154 = vtanh.f32 %v12758_v44  ;;  %v7724_v5 = vpop.f32.mrb[187].mxu1  ;;  %9865 = vrot.lane.b32.xlu0 %v14145_v10, %s14173_s23  ;;  %12955 = vmatprep.mubr.msk.f32.mxu1 %vm1828_vm1, %v14145_v10  ;;  %v17486_v10 = vpop.permute.xlu0 %9135 }
0x1602   :  { %14156 = vtanh.f32 %v7724_v5  ;;  %12956 = vmatmul.mubr.msk.f32.gmra.mrb[244].mxu1 %vm1828_vm1, %v14143_v17 }
0x1603   :  { %v14147_v7 = vpop.eup %14146 }
0x1604   :  { %v14149_v14 = vpop.eup %14148  ;;  %v12761_v23 = vpop.f32.mrb[188].mxu1  ;;  %9871 = vrot.lane.b32.xlu1 %v14147_v7, %s14173_s23 }
0x1605   :  { %14158 = vtanh.f32 %v12761_v23  ;;  %v7734_v50 = vpop.f32.mrb[189].mxu1  ;;  %9869 = vrot.lane.b32.xlu0 %v14149_v14, %s14173_s23  ;;  %12958 = vmatprep.mubr.msk.f32.mxu1 %vm1828_vm1, %v14149_v14 }
0x1606   :  { %14160 = vtanh.f32 %v7734_v50  ;;  %12959 = vmatmul.mubr.msk.f32.gmra.mrb[246].mxu1 %vm1828_vm1, %v14147_v7 }
0x1607   :  { %v14151_v37 = vpop.eup %14150 }
0x1608   :  { %v14153_v39 = vpop.eup %14152  ;;  %9875 = vrot.lane.b32.xlu1 %v14151_v37, %s14173_s23  ;;  %v12764_v22 = vpop.f32.mrb[190].mxu1 }
0x1609   :  { %9873 = vrot.lane.b32.xlu0 %v14153_v39, %s14173_s23  ;;  %v7744_v42 = vpop.f32.mrb[191].mxu1  ;;  %12961 = vmatprep.mubr.msk.f32.mxu1 %vm1828_vm1, %v14153_v39  ;;  %v17497_v39 = vpop.permute.xlu1 %9141 }
0x160a   :  { %14162 = vtanh.f32 %v7744_v42  ;;  %12962 = vmatmul.mubr.msk.f32.gmra.mrb[248].mxu1 %vm1828_vm1, %v14151_v37 }
0x160b   :  { %v14155_v35 = vpop.eup %14154  ;;  %14164 = vtanh.f32 %v12764_v22 }
0x160c   :  { %v14157_v25 = vpop.eup %14156  ;;  %9879 = vrot.lane.b32.xlu1 %v14155_v35, %s14173_s23  ;;  %v12795_v9 = vpop.f32.mrb[192].mxu1 }
0x160d   :  { %9877 = vrot.lane.b32.xlu0 %v14157_v25, %s14173_s23  ;;  %v7998_v28 = vpop.f32.mrb[193].mxu1  ;;  %12964 = vmatprep.mubr.msk.f32.mxu1 %vm1828_vm1, %v14157_v25  ;;  %v8004_v44 = vadd.f32 %v12795_v9, %v17479_v32 }
0x160e   :  { %12965 = vmatmul.mubr.msk.f32.gmra.mrb[250].mxu1 %vm1828_vm1, %v14155_v35  ;;  %v7999_v50 = vadd.f32 %v17479_v32, %v7998_v28  ;;  %v17502_v35 = vpop.permute.xlu0 %9139 }
0x160f   :  { %v14159_v17 = vpop.eup %14158 }
0x1610   :  { %v14161_v5 = vpop.eup %14160  ;;  %9883 = vrot.lane.b32.xlu1 %v14159_v17, %s14173_s23  ;;  %v12798_v7 = vpop.f32.mrb[194].mxu1 }
0x1611   :  { %v8014_v14 = vadd.f32 %v12798_v7, %v17479_v32  ;;  %12967 = vmatprep.mubr.msk.f32.mxu1 %vm1828_vm1, %v14161_v5  ;;  %9073 = vrot.lane.b32.xlu0 %v8004_v44, %s14169_s28  ;;  %v8008_v23 = vpop.f32.mrb[195].mxu1  ;;  %v17512_v44 = vpop.permute.xlu1 %9145 }
0x1612   :  { %12968 = vmatmul.mubr.msk.f32.gmra.mrb[252].mxu1 %vm1828_vm1, %v14159_v17  ;;  %v8009_v9 = vadd.f32 %v17479_v32, %v8008_v23 }
0x1614   :  { %v17495_v37 = vpop.eup %14162  ;;  %9077 = vrot.lane.b32.xlu1 %v8014_v14, %s14169_s28  ;;  %v12801_v22 = vpop.f32.mrb[196].mxu1 }
0x1615   :  { %18613 = vst [vmem:[#allocation137_spill] sm:$0xff] %v17495_v37  ;;  %v17500_v42 = vpop.eup %14164  ;;  %v8018_v25 = vpop.f32.mrb[197].mxu1  ;;  %9071 = vrot.lane.b32.xlu0 %v7999_v50, %s14169_s28  ;;  %12970 = vmatprep.mubr.msk.f32.mxu1 %vm1828_vm1, %v17495_v37  ;;  %v8024_v7 = vadd.f32 %v12801_v22, %v17479_v32  ;;  %v18635_v37 = vld [vmem:[#allocation62_spill] sm:$0xff] }
0x1616   :  { %18614 = vst [vmem:[#allocation136_spill] sm:$0xff] %v17500_v42  ;;  %12971 = vmatmul.mubr.msk.f32.gmra.mrb[254].mxu1 %vm1828_vm1, %v17500_v42  ;;  %v17515_v14 = vpop.permute.xlu0 %9143  ;;  %v8019_v50 = vadd.f32 %v17479_v32, %v8018_v25  ;;  %v17522_v16 = vpop.permute.xlu1 %9149 }
0x1618   :  { %v12804_v28 = vpop.f32.mrb[198].mxu1  ;;  %9075 = vrot.lane.b32.xlu1 %v8009_v9, %s14169_s28 }
0x1619   :  { %v8028_v17 = vpop.f32.mrb[199].mxu1  ;;  %9881 = vrot.lane.b32.xlu0 %v14161_v5, %s14173_s23  ;;  %v8034_v40 = vadd.f32 %v12804_v28, %v17479_v32 }
0x161a   :  { %v8029_v9 = vadd.f32 %v17479_v32, %v8028_v17  ;;  %v17525_v22 = vpop.permute.xlu0 %9147  ;;  %v17532_v17 = vpop.permute.xlu1 %9153 }
0x161c   :  { %v12807_v11 = vpop.f32.mrb[200].mxu1  ;;  %9081 = vrot.lane.b32.xlu1 %v8024_v7, %s14169_s28 }
0x161d   :  { %v8038_v23 = vpop.f32.mrb[201].mxu1  ;;  %9079 = vrot.lane.b32.xlu0 %v8019_v50, %s14169_s28  ;;  %v8044_v25 = vadd.f32 %v12807_v11, %v17479_v32 }
0x161e   :  { %v8039_v7 = vadd.f32 %v17479_v32, %v8038_v23 }
0x1620   :  { %v12810_v5 = vpop.f32.mrb[202].mxu1  ;;  %9085 = vrot.lane.b32.xlu1 %v8034_v40, %s14169_s28  ;;  %v17535_v40 = vpop.permute.xlu0 %9151 }
0x1621   :  { %v8048_v8 = vpop.f32.mrb[203].mxu1  ;;  %9083 = vrot.lane.b32.xlu0 %v8029_v9, %s14169_s28  ;;  %v8054_v50 = vadd.f32 %v12810_v5, %v17479_v32 }
0x1622   :  { %v8049_v26 = vadd.f32 %v17479_v32, %v8048_v8 }
0x1624   :  { %v12813_v19 = vpop.f32.mrb[204].mxu1  ;;  %9089 = vrot.lane.b32.xlu1 %v8044_v25, %s14169_s28  ;;  %v17542_v25 = vpop.permute.xlu1 %9157 }
0x1625   :  { %v8058_v28 = vpop.f32.mrb[205].mxu1  ;;  %9087 = vrot.lane.b32.xlu0 %v8039_v7, %s14169_s28  ;;  %v8064_v23 = vadd.f32 %v12813_v19, %v17479_v32  ;;  %v17545_v5 = vpop.permute.xlu0 %9155 }
0x1626   :  { %v8059_v9 = vadd.f32 %v17479_v32, %v8058_v28 }
0x1628   :  { %v12816_v20 = vpop.f32.mrb[206].mxu1  ;;  %9093 = vrot.lane.b32.xlu1 %v8054_v50, %s14169_s28 }
0x1629   :  { %v8068_v11 = vpop.f32.mrb[207].mxu1  ;;  %9091 = vrot.lane.b32.xlu0 %v8049_v26, %s14169_s28  ;;  %v8074_v8 = vadd.f32 %v12816_v20, %v17479_v32  ;;  %v10968_v26 = vld [vmem:[%s18278_s9 + $0x3] ss:$0 sm:$0xff]  ;;  %v17557_v18 = vpop.permute.xlu0 %9159 }
0x162a   :  { %v8069_v50 = vadd.f32 %v17479_v32, %v8068_v11 }
0x162c   :  { %v12847_v7 = vpop.f32.mrb[208].mxu1  ;;  %9097 = vrot.lane.b32.xlu1 %v8064_v23, %s14169_s28  ;;  %v17555_v23 = vpop.permute.xlu1 %9161 }
0x162d   :  { %v8308_v3 = vpop.f32.mrb[209].mxu1  ;;  %9095 = vrot.lane.b32.xlu0 %v8059_v9, %s14169_s28  ;;  %v8314_v61 = vadd.f32 %v12847_v7, %v10968_v26 }
0x162e   :  { %v8309_v9 = vadd.f32 %v10968_v26, %v8308_v3 }
0x1630   :  { %v12850_v19 = vpop.f32.mrb[210].mxu1  ;;  %9101 = vrot.lane.b32.xlu1 %v8074_v8, %s14169_s28  ;;  %v17561_v15 = vpop.permute.xlu1 %9165 }
0x1631   :  { %v8318_v28 = vpop.f32.mrb[211].mxu1  ;;  %9099 = vrot.lane.b32.xlu0 %v8069_v50, %s14169_s28  ;;  %v8324_v32 = vadd.f32 %v12850_v19, %v10968_v26  ;;  %v17564_v50 = vpop.permute.xlu0 %9163 }
0x1632   :  { %v8319_v11 = vadd.f32 %v10968_v26, %v8318_v28  ;;  %18615 = vst [vmem:[#allocation139_spill] sm:$0xff] %v17564_v50 }
0x1634   :  { %v12853_v54 = vpop.f32.mrb[212].mxu1  ;;  %9201 = vrot.lane.b32.xlu1 %v8314_v61, %s14174_s27  ;;  %v17567_v56 = vpop.permute.xlu1 %9329 }
0x1635   :  { %v8328_v20 = vpop.f32.mrb[213].mxu1  ;;  %9199 = vrot.lane.b32.xlu0 %v8309_v9, %s14174_s27  ;;  %v8334_v3 = vadd.f32 %v12853_v54, %v10968_v26  ;;  %18616 = vst [vmem:[#allocation138_spill] sm:$0xff] %v17567_v56  ;;  %v17570_v9 = vpop.permute.xlu0 %9327 }
0x1636   :  { %v8329_v58 = vadd.f32 %v10968_v26, %v8328_v20  ;;  %18617 = vst [vmem:[#allocation141_spill] sm:$0xff] %v17570_v9 }
0x1638   :  { %v12856_v8 = vpop.f32.mrb[214].mxu1  ;;  %9205 = vrot.lane.b32.xlu1 %v8324_v32, %s14174_s27  ;;  %v17575_v54 = vpop.permute.xlu1 %9333 }
0x1639   :  { %v8338_v7 = vpop.f32.mrb[215].mxu1  ;;  %9203 = vrot.lane.b32.xlu0 %v8319_v11, %s14174_s27  ;;  %v8344_v28 = vadd.f32 %v12856_v8, %v10968_v26  ;;  %18618 = vst [vmem:[#allocation140_spill] sm:$0xff] %v17575_v54  ;;  %v17577_v11 = vpop.permute.xlu0 %9331 }
0x163a   :  { %v8339_v31 = vadd.f32 %v10968_v26, %v8338_v7  ;;  %18619 = vst [vmem:[#allocation143_spill] sm:$0xff] %v17577_v11 }
0x163c   :  { %v12859_v61 = vpop.f32.mrb[216].mxu1  ;;  %9209 = vrot.lane.b32.xlu1 %v8334_v3, %s14174_s27  ;;  %v17581_v7 = vpop.permute.xlu1 %9337 }
0x163d   :  { %v8348_v19 = vpop.f32.mrb[217].mxu1  ;;  %9207 = vrot.lane.b32.xlu0 %v8329_v58, %s14174_s27  ;;  %v8354_v20 = vadd.f32 %v12859_v61, %v10968_v26  ;;  %18620 = vst [vmem:[#allocation142_spill] sm:$0xff] %v17581_v7 }
0x163e   :  { %v8349_v56 = vadd.f32 %v10968_v26, %v8348_v19 }
0x1640   :  { %v12862_v32 = vpop.f32.mrb[218].mxu1  ;;  %9213 = vrot.lane.b32.xlu1 %v8344_v28, %s14174_s27 }
0x1641   :  { %v8358_v59 = vpop.f32.mrb[219].mxu1  ;;  %9211 = vrot.lane.b32.xlu0 %v8339_v31, %s14174_s27  ;;  %v8364_v58 = vadd.f32 %v12862_v32, %v10968_v26  ;;  %v17584_v31 = vpop.permute.xlu0 %9335 }
0x1642   :  { %v8359_v8 = vadd.f32 %v10968_v26, %v8358_v59  ;;  %18621 = vst [vmem:[#allocation145_spill] sm:$0xff] %v17584_v31  ;;  %v18634_v31 = vld [vmem:[#allocation49_spill] sm:$0xff] }
0x1644   :  { %v12865_v3 = vpop.f32.mrb[220].mxu1  ;;  %9217 = vrot.lane.b32.xlu1 %v8354_v20, %s14174_s27 }
0x1645   :  { %v8368_v9 = vpop.f32.mrb[221].mxu1  ;;  %9215 = vrot.lane.b32.xlu0 %v8349_v56, %s14174_s27  ;;  %v8374_v61 = vadd.f32 %v12865_v3, %v10968_v26  ;;  %v17589_v56 = vpop.permute.xlu1 %9341 }
0x1646   :  { %v8369_v19 = vadd.f32 %v10968_v26, %v8368_v9  ;;  %18622 = vst [vmem:[#allocation144_spill] sm:$0xff] %v17589_v56  ;;  %v17591_v32 = vpop.permute.xlu0 %9339 }
0x1647   :  { %18623 = vst [vmem:[#allocation147_spill] sm:$0xff] %v17591_v32 }
0x1648   :  { %v12868_v28 = vpop.f32.mrb[222].mxu1  ;;  %9221 = vrot.lane.b32.xlu1 %v8364_v58, %s14174_s27  ;;  %v17596_v58 = vld [vmem:[%s18278_s9 + $0x5] ss:$0 sm:$0xff] }
0x1649   :  { %v8378_v54 = vpop.f32.mrb[223].mxu1  ;;  %9219 = vrot.lane.b32.xlu0 %v8359_v8, %s14174_s27  ;;  %v8384_v59 = vadd.f32 %v12868_v28, %v10968_v26 }
0x164a   :  { %v8379_v7 = vadd.f32 %v10968_v26, %v8378_v54  ;;  %v17605_v26 = vpop.permute.xlu0 %9343 }
0x164b   :  { %18625 = vst [vmem:[#allocation3_spill] sm:$0xff] %v17605_v26 }
0x164c   :  { %v12899_v11 = vpop.f32.mrb[224].mxu1  ;;  %9225 = vrot.lane.b32.xlu1 %v8374_v61, %s14174_s27 }
0x164d   :  { %v8618_v20 = vpop.f32.mrb[225].mxu1  ;;  %9223 = vrot.lane.b32.xlu0 %v8369_v19, %s14174_s27  ;;  %v8624_v3 = vadd.f32 %v12899_v11, %v17596_v58  ;;  %v17602_v19 = vpop.permute.xlu1 %9345 }
0x164e   :  { %v8619_v61 = vadd.f32 %v17596_v58, %v8618_v20  ;;  %18624 = vst [vmem:[#allocation146_spill] sm:$0xff] %v17602_v19 }
0x1650   :  { %v12902_v8 = vpop.f32.mrb[226].mxu1  ;;  %9229 = vrot.lane.b32.xlu1 %v8384_v59, %s14174_s27 }
0x1651   :  { %v8628_v9 = vpop.f32.mrb[227].mxu1  ;;  %9227 = vrot.lane.b32.xlu0 %v8379_v7, %s14174_s27  ;;  %v8634_v32 = vadd.f32 %v12902_v8, %v17596_v58  ;;  %v17612_v7 = vpop.permute.xlu1 %9349 }
0x1652   :  { %v8629_v59 = vadd.f32 %v17596_v58, %v8628_v9  ;;  %18626 = vst [vmem:[#allocation2_spill] sm:$0xff] %v17612_v7 }
0x1654   :  { %v12905_v28 = vpop.f32.mrb[228].mxu1  ;;  %9265 = vrot.lane.b32.xlu1 %v8624_v3, %s14169_s28  ;;  %v17615_v3 = vpop.permute.xlu0 %9347 }
0x1655   :  { %v8638_v54 = vpop.f32.mrb[229].mxu1  ;;  %9263 = vrot.lane.b32.xlu0 %v8619_v61, %s14169_s28  ;;  %v8644_v20 = vadd.f32 %v12905_v28, %v17596_v58  ;;  %18627 = vst [vmem:[#allocation5_spill] sm:$0xff] %v17615_v3  ;;  %v17622_v61 = vpop.permute.xlu1 %9353 }
0x1656   :  { %v8639_v26 = vadd.f32 %v17596_v58, %v8638_v54  ;;  %18628 = vst [vmem:[#allocation4_spill] sm:$0xff] %v17622_v61  ;;  %v18632_v61 = vld [vmem:[#allocation61_spill] sm:$0xff] }
0x1658   :  { %v12908_v56 = vpop.f32.mrb[230].mxu1  ;;  %9269 = vrot.lane.b32.xlu1 %v8634_v32, %s14169_s28  ;;  %v17625_v28 = vpop.permute.xlu0 %9351 }
0x1659   :  { %v8648_v11 = vpop.f32.mrb[231].mxu1  ;;  %9267 = vrot.lane.b32.xlu0 %v8629_v59, %s14169_s28  ;;  %v8654_v9 = vadd.f32 %v12908_v56, %v17596_v58  ;;  %18629 = vst [vmem:[#allocation7_spill] sm:$0xff] %v17625_v28  ;;  %v18630_v56 = vld [vmem:[#allocation47_spill] sm:$0xff] }
0x165a   :  { %v8649_v32 = vadd.f32 %v17596_v58, %v8648_v11 }
0x165c   :  { %v12911_v19 = vpop.f32.mrb[232].mxu1  ;;  %9273 = vrot.lane.b32.xlu1 %v8644_v20, %s14169_s28  ;;  %v17650_v42 = vpop.permute.xlu0 %9355 }
0x165d   :  { %v8658_v8 = vpop.f32.mrb[233].mxu1  ;;  %9271 = vrot.lane.b32.xlu0 %v8639_v26, %s14169_s28  ;;  %v8664_v54 = vadd.f32 %v12911_v19, %v17596_v58  ;;  %v9906_v26 = vsel %vm1828_vm1, %v15080_v43, %v18630_v56  ;;  %v17640_v19 = vpop.permute.xlu1 %9357  ;;  %v18636_v56 = vld [vmem:[#allocation87_spill] sm:$0xff]  ;;  %18637 = vst [vmem:[#allocation9_spill] sm:$0xff] %v17650_v42 }
0x165e   :  { %v8659_v20 = vadd.f32 %v17596_v58, %v8658_v8  ;;  %18633 = vst [vmem:[#allocation6_spill] sm:$0xff] %v17640_v19  ;;  %v18640_v19 = vld [vmem:[#allocation105_spill] sm:$0xff] }
0x1660   :  { %v12914_v59 = vpop.f32.mrb[234].mxu1  ;;  %9277 = vrot.lane.b32.xlu1 %v8654_v9, %s14169_s28  ;;  %v18631_v9 = vld [vmem:[#allocation48_spill] sm:$0xff] }
0x1661   :  { %v8668_v3 = vpop.f32.mrb[235].mxu1  ;;  %9275 = vrot.lane.b32.xlu0 %v8649_v32, %s14169_s28  ;;  %v9905_v28 = vsel %vm1828_vm1, %v15078_v41, %v18631_v9  ;;  %v9923_v32 = vsel %vm9921_vm8, %v9906_v26, %v18632_v61  ;;  %v8674_v8 = vadd.f32 %v12914_v59, %v17596_v58  ;;  %v18638_v9 = vld [vmem:[#allocation50_spill] sm:$0xff]  ;;  %v18639_v26 = vld [vmem:[#allocation89_spill] sm:$0xff] }
0x1662   :  { %v9922_v43 = vsel %vm9921_vm8, %v9905_v28, %v18635_v37  ;;  %v8669_v41 = vadd.f32 %v17596_v58, %v8668_v3  ;;  %v9907_v61 = vsel %vm1828_vm1, %v15086_v45, %v18638_v9  ;;  %v18641_v37 = vld [vmem:[#allocation63_spill] sm:$0xff]  ;;  %v18646_v9 = vld [vmem:[#allocation148_spill] sm:$0xff] }
0x1663   :  { %v9938_v59 = vsel %vm63_vm0, %v9922_v43, %v18639_v26  ;;  %v18644_v43 = vld [vmem:[#allocation64_spill] sm:$0xff] }
0x1664   :  { %v12917_v7 = vpop.f32.mrb[236].mxu1  ;;  %9281 = vrot.lane.b32.xlu1 %v8664_v54, %s14169_s28  ;;  %v9908_v54 = vsel %vm1828_vm1, %v15088_v47, %v18634_v31 }
0x1665   :  { %v8678_v11 = vpop.f32.mrb[237].mxu1  ;;  %9279 = vrot.lane.b32.xlu0 %v8659_v20, %s14169_s28  ;;  %v9939_v20 = vsel %vm63_vm0, %v9923_v32, %v18636_v56  ;;  %v9925_v28 = vsel %vm9921_vm8, %v9908_v54, %v18641_v37  ;;  %v18642_v32 = vld [vmem:[#allocation106_spill] sm:$0xff]  ;;  %v18643_v56 = vld [vmem:[#allocation119_spill] sm:$0xff]  ;;  %v8684_v54 = vadd.f32 %v12917_v7, %v17596_v58 }
0x1666   :  { %v9955_v47 = vsel %vm2145_vm2, %v9939_v20, %v18640_v19  ;;  %v9954_v3 = vsel %vm2145_vm2, %v9938_v59, %v18642_v32  ;;  %v9924_v19 = vsel %vm9921_vm8, %v9907_v61, %v18644_v43  ;;  %v18645_v20 = vld [vmem:[#allocation120_spill] sm:$0xff]  ;;  %v18647_v59 = vld [vmem:[#allocation93_spill] sm:$0xff]  ;;  %v18649_v43 = vld [vmem:[#allocation51_spill] sm:$0xff] }
0x1667   :  { %v9972_v42 = vsel %vm9970_vm9, %v9955_v47, %v18643_v56  ;;  %v9941_v32 = vsel %vm63_vm0, %v9925_v28, %v18647_v59  ;;  %v18648_v47 = vld [vmem:[#allocation149_spill] sm:$0xff]  ;;  %v18651_v7 = vld [vmem:[#allocation107_spill] sm:$0xff]  ;;  %v18652_v28 = vld [vmem:[#allocation52_spill] sm:$0xff] }
0x1668   :  { %v12920_v31 = vpop.f32.mrb[238].mxu1  ;;  %9285 = vrot.lane.b32.xlu1 %v8674_v8, %s14169_s28  ;;  %v9971_v8 = vsel %vm9970_vm9, %v9954_v3, %v18645_v20  ;;  %v9989_v26 = vsel %vm9987_vm15, %v9972_v42, %v18646_v9  ;;  %v9910_v3 = vsel %vm1828_vm1, %v15096_v51, %v18649_v43  ;;  %v18650_v20 = vld [vmem:[#allocation94_spill] sm:$0xff]  ;;  %v9957_v9 = vsel %vm2145_vm2, %v9941_v32, %v18651_v7  ;;  %v18653_v51 = vld [vmem:[#allocation65_spill] sm:$0xff]  ;;  %v18660_v7 = vld [vmem:[#allocation151_spill] sm:$0xff] }
0x1669   :  { %v8688_v45 = vpop.f32.mrb[239].mxu1  ;;  %9283 = vrot.lane.b32.xlu0 %v8669_v41, %s14169_s28  ;;  %v9988_v56 = vsel %vm9987_vm15, %v9971_v8, %v18648_v47  ;;  %v8679_v41 = vadd.f32 %v17596_v58, %v8678_v11  ;;  %v9940_v42 = vsel %vm63_vm0, %v9924_v19, %v18650_v20  ;;  %v9909_v8 = vsel %vm1828_vm1, %v15094_v49, %v18652_v28  ;;  %v18654_v19 = vld [vmem:[#allocation108_spill] sm:$0xff]  ;;  %v18655_v59 = vld [vmem:[#allocation121_spill] sm:$0xff]  ;;  %v18657_v49 = vld [vmem:[#allocation122_spill] sm:$0xff] }
0x166a   :  { %v9860_v37 = vpop.permute.xlu1 %9859  ;;  %v9974_v32 = vsel %vm9970_vm9, %v9957_v9, %v18655_v59  ;;  %v8694_v43 = vadd.f32 %v12920_v31, %v17596_v58  ;;  %v18659_v20 = vld [vmem:[#allocation95_spill] sm:$0xff] }
0x166b   :  { %v10006_v50 = vsel %vm10004_vm11, %v9989_v26, %v9860_v37  ;;  %v9858_v61 = vpop.permute.xlu0 %9857  ;;  %v9927_v26 = vsel %vm9921_vm8, %v9910_v3, %v18653_v51  ;;  %v9956_v37 = vsel %vm2145_vm2, %v9940_v42, %v18654_v19  ;;  %v18662_v19 = vld [vmem:[#allocation109_spill] sm:$0xff] }
0x166c   :  { %10022 = vst.msk [vmem:[%s18279_s11 + $0x8] sm:$0xff] %vm9455_vm12, %v10006_v50  ;;  %v10005_v11 = vsel %vm10004_vm11, %v9988_v56, %v9858_v61  ;;  %9289 = vrot.lane.b32.xlu1 %v8684_v54, %s14169_s28  ;;  %v18656_v50 = vld [vmem:[#allocation66_spill] sm:$0xff]  ;;  %v9973_v47 = vsel %vm9970_vm9, %v9956_v37, %v18657_v49  ;;  %v9943_v42 = vsel %vm63_vm0, %v9927_v26, %v18659_v20  ;;  %v18663_v26 = vld [vmem:[#allocation53_spill] sm:$0xff] }
0x166d   :  { %10021 = vst.msk [vmem:[%s18279_s11] sm:$0xff] %vm9455_vm12, %v10005_v11  ;;  %9287 = vrot.lane.b32.xlu0 %v8679_v41, %s14169_s28  ;;  %v9926_v54 = vsel %vm9921_vm8, %v9909_v8, %v18656_v50  ;;  %v18658_v56 = vld [vmem:[#allocation150_spill] sm:$0xff]  ;;  %v9990_v9 = vsel %vm9987_vm15, %v9973_v47, %v18660_v7  ;;  %v8689_v41 = vadd.f32 %v17596_v58, %v8688_v45  ;;  %v18661_v8 = vld [vmem:[#allocation96_spill] sm:$0xff]  ;;  %v18667_v47 = vld [vmem:[#allocation67_spill] sm:$0xff] }
0x166e   :  { %v9991_v61 = vsel %vm9987_vm15, %v9974_v32, %v18658_v56  ;;  %v9864_v3 = vpop.permute.xlu1 %9863  ;;  %v9942_v51 = vsel %vm63_vm0, %v9926_v54, %v18661_v8  ;;  %v9959_v37 = vsel %vm2145_vm2, %v9943_v42, %v18662_v19  ;;  %v9912_v58 = vsel %vm1828_vm1, %v15104_v55, %v18663_v26  ;;  %v18664_v45 = vld [vmem:[#allocation110_spill] sm:$0xff]  ;;  %v18665_v32 = vld [vmem:[#allocation123_spill] sm:$0xff]  ;;  %v18668_v56 = vld [vmem:[#allocation124_spill] sm:$0xff] }
0x166f   :  { %v10008_v11 = vsel %vm10004_vm11, %v9991_v61, %v9864_v3  ;;  %v9862_v28 = vpop.permute.xlu0 %9861  ;;  %v9958_v59 = vsel %vm2145_vm2, %v9942_v51, %v18664_v45  ;;  %v9976_v50 = vsel %vm9970_vm9, %v9959_v37, %v18665_v32  ;;  %v18666_v54 = vld [vmem:[#allocation54_spill] sm:$0xff]  ;;  %v9929_v55 = vsel %vm9921_vm8, %v9912_v58, %v18667_v47  ;;  %v18670_v42 = vld [vmem:[#allocation68_spill] sm:$0xff]  ;;  %v18674_v37 = vld [vmem:[#allocation111_spill] sm:$0xff] }
0x1670   :  { %10024 = vst.msk [vmem:[%s18279_s11 + $0x18] sm:$0xff] %vm9455_vm12, %v10008_v11  ;;  %v10007_v31 = vsel %vm10004_vm11, %v9990_v9, %v9862_v28  ;;  %9293 = vrot.lane.b32.xlu1 %v8694_v43, %s14169_s28  ;;  %v9911_v49 = vsel %vm1828_vm1, %v15102_v53, %v18666_v54  ;;  %v9975_v61 = vsel %vm9970_vm9, %v9958_v59, %v18668_v56  ;;  %v18669_v43 = vld [vmem:[#allocation152_spill] sm:$0xff]  ;;  %v18671_v9 = vld [vmem:[#allocation97_spill] sm:$0xff]  ;;  %v18673_v51 = vld [vmem:[#allocation98_spill] sm:$0xff] }
0x1671   :  { %10023 = vst.msk [vmem:[%s18279_s11 + $0x10] sm:$0xff] %vm9455_vm12, %v10007_v31  ;;  %9291 = vrot.lane.b32.xlu0 %v8689_v41, %s14169_s28  ;;  %v9993_v3 = vsel %vm9987_vm15, %v9976_v50, %v18669_v43  ;;  %v9928_v7 = vsel %vm9921_vm8, %v9911_v49, %v18670_v42  ;;  %v9945_v41 = vsel %vm63_vm0, %v9929_v55, %v18671_v9  ;;  %v18672_v11 = vld [vmem:[#allocation153_spill] sm:$0xff]  ;;  %v18675_v58 = vld [vmem:[#allocation55_spill] sm:$0xff]  ;;  %v18676_v59 = vld [vmem:[#allocation112_spill] sm:$0xff] }
0x1672   :  { %v9868_v20 = vpop.permute.xlu1 %9867  ;;  %v9992_v28 = vsel %vm9987_vm15, %v9975_v61, %v18672_v11  ;;  %v9944_v19 = vsel %vm63_vm0, %v9928_v7, %v18673_v51  ;;  %v9961_v31 = vsel %vm2145_vm2, %v9945_v41, %v18674_v37  ;;  %v9914_v45 = vsel %vm1828_vm1, %v15112_v60, %v18675_v58  ;;  %v18677_v50 = vld [vmem:[#allocation125_spill] sm:$0xff]  ;;  %v18678_v49 = vld [vmem:[#allocation56_spill] sm:$0xff]  ;;  %v18679_v55 = vld [vmem:[#allocation71_spill] sm:$0xff] }
0x1673   :  { %v10010_v53 = vsel %vm10004_vm11, %v9993_v3, %v9868_v20  ;;  %v9866_v8 = vpop.permute.xlu0 %9865  ;;  %v9960_v32 = vsel %vm2145_vm2, %v9944_v19, %v18676_v59  ;;  %v9978_v54 = vsel %vm9970_vm9, %v9961_v31, %v18677_v50  ;;  %v9913_v47 = vsel %vm1828_vm1, %v15110_v57, %v18678_v49  ;;  %v18680_v61 = vld [vmem:[#allocation126_spill] sm:$0xff]  ;;  %v18682_v42 = vld [vmem:[#allocation72_spill] sm:$0xff]  ;;  %v18683_v9 = vld [vmem:[#allocation99_spill] sm:$0xff] }
0x1674   :  { %10026 = vst.msk [vmem:[%s18279_s11 + $0x28] sm:$0xff] %vm9455_vm12, %v10010_v53  ;;  %v10009_v26 = vsel %vm10004_vm11, %v9992_v28, %v9866_v8  ;;  %v9931_v56 = vsel %vm9921_vm8, %v9914_v45, %v18679_v55  ;;  %v9977_v60 = vsel %vm9970_vm9, %v9960_v32, %v18680_v61  ;;  %v18681_v43 = vld [vmem:[#allocation154_spill] sm:$0xff]  ;;  %v9930_v7 = vsel %vm9921_vm8, %v9913_v47, %v18682_v42  ;;  %v18684_v11 = vld [vmem:[#allocation155_spill] sm:$0xff]  ;;  %v18685_v8 = vld [vmem:[#allocation100_spill] sm:$0xff] }
0x1675   :  { %10025 = vst.msk [vmem:[%s18279_s11 + $0x20] sm:$0xff] %vm9455_vm12, %v10009_v26  ;;  %v9995_v3 = vsel %vm9987_vm15, %v9978_v54, %v18681_v43  ;;  %v9947_v41 = vsel %vm63_vm0, %v9931_v56, %v18683_v9  ;;  %v9994_v28 = vsel %vm9987_vm15, %v9977_v60, %v18684_v11  ;;  %v9946_v51 = vsel %vm63_vm0, %v9930_v7, %v18685_v8  ;;  %v18686_v19 = vld [vmem:[#allocation113_spill] sm:$0xff]  ;;  %v18688_v45 = vld [vmem:[#allocation114_spill] sm:$0xff]  ;;  %v18689_v32 = vld [vmem:[#allocation127_spill] sm:$0xff] }
0x1676   :  { %v9872_v20 = vpop.permute.xlu1 %9871  ;;  %v9963_v37 = vsel %vm2145_vm2, %v9947_v41, %v18686_v19  ;;  %v18687_v26 = vld [vmem:[#allocation57_spill] sm:$0xff]  ;;  %v9962_v59 = vsel %vm2145_vm2, %v9946_v51, %v18688_v45  ;;  %v18690_v54 = vld [vmem:[#allocation58_spill] sm:$0xff]  ;;  %v18691_v47 = vld [vmem:[#allocation75_spill] sm:$0xff] }
0x1677   :  { %v10012_v57 = vsel %vm10004_vm11, %v9995_v3, %v9872_v20  ;;  %v9870_v53 = vpop.permute.xlu0 %9869  ;;  %v9916_v58 = vsel %vm1828_vm1, %v15120_v63, %v18687_v26  ;;  %v9980_v50 = vsel %vm9970_vm9, %v9963_v37, %v18689_v32  ;;  %v9915_v49 = vsel %vm1828_vm1, %v15118_v62, %v18690_v54  ;;  %v18692_v56 = vld [vmem:[#allocation128_spill] sm:$0xff]  ;;  %v18694_v3 = vld [vmem:[#allocation77_spill] sm:$0xff]  ;;  %v18699_v19 = vld [vmem:[#allocation59_spill] sm:$0xff] }
0x1678   :  { %10028 = vst.msk [vmem:[%s18279_s11 + $0x38] sm:$0xff] %vm9455_vm12, %v10012_v57  ;;  %v10011_v31 = vsel %vm10004_vm11, %v9994_v28, %v9870_v53  ;;  %v9933_v55 = vsel %vm9921_vm8, %v9916_v58, %v18691_v47  ;;  %v9979_v63 = vsel %vm9970_vm9, %v9962_v59, %v18692_v56  ;;  %v18693_v61 = vld [vmem:[#allocation156_spill] sm:$0xff]  ;;  %v9932_v20 = vsel %vm9921_vm8, %v9915_v49, %v18694_v3  ;;  %v18695_v42 = vld [vmem:[#allocation101_spill] sm:$0xff]  ;;  %v18697_v28 = vld [vmem:[#allocation102_spill] sm:$0xff] }
0x1679   :  { %10027 = vst.msk [vmem:[%s18279_s11 + $0x30] sm:$0xff] %vm9455_vm12, %v10011_v31  ;;  %v9997_v60 = vsel %vm9987_vm15, %v9980_v50, %v18693_v61  ;;  %v9949_v7 = vsel %vm63_vm0, %v9933_v55, %v18695_v42  ;;  %v18696_v9 = vld [vmem:[#allocation157_spill] sm:$0xff]  ;;  %v9948_v57 = vsel %vm63_vm0, %v9932_v20, %v18697_v28  ;;  %v18698_v53 = vld [vmem:[#allocation115_spill] sm:$0xff]  ;;  %v9918_v37 = vsel %vm1828_vm1, %v15128_v1, %v18699_v19  ;;  %v18700_v31 = vld [vmem:[#allocation116_spill] sm:$0xff] }
0x167a   :  { %v9876_v43 = vpop.permute.xlu1 %9875  ;;  %v9996_v41 = vsel %vm9987_vm15, %v9979_v63, %v18696_v9  ;;  %v9965_v8 = vsel %vm2145_vm2, %v9949_v7, %v18698_v53  ;;  %v9964_v26 = vsel %vm2145_vm2, %v9948_v57, %v18700_v31  ;;  %v18701_v58 = vld [vmem:[#allocation129_spill] sm:$0xff]  ;;  %v18703_v50 = vld [vmem:[#allocation130_spill] sm:$0xff]  ;;  %v18705_v55 = vld [vmem:[#allocation103_spill] sm:$0xff] }
0x167b   :  { %v10014_v62 = vsel %vm10004_vm11, %v9997_v60, %v9876_v43  ;;  %v9874_v11 = vpop.permute.xlu0 %9873  ;;  %v9982_v45 = vsel %vm9970_vm9, %v9965_v8, %v18701_v58  ;;  %v18702_v59 = vld [vmem:[#allocation81_spill] sm:$0xff]  ;;  %v9981_v54 = vsel %vm9970_vm9, %v9964_v26, %v18703_v50  ;;  %v18704_v49 = vld [vmem:[#allocation158_spill] sm:$0xff]  ;;  %v18706_v63 = vld [vmem:[#allocation159_spill] sm:$0xff] }
0x167c   :  { %10030 = vst.msk [vmem:[%s18279_s11 + $0x48] sm:$0xff] %vm9455_vm12, %v10014_v62  ;;  %v10013_v51 = vsel %vm10004_vm11, %v9996_v41, %v9874_v11  ;;  %v9935_v32 = vsel %vm9921_vm8, %v9918_v37, %v18702_v59  ;;  %v9999_v1 = vsel %vm9987_vm15, %v9982_v45, %v18704_v49  ;;  %v9998_v61 = vsel %vm9987_vm15, %v9981_v54, %v18706_v63  ;;  %v18707_v3 = vld [vmem:[#allocation117_spill] sm:$0xff]  ;;  %v18708_v7 = vld [vmem:[#allocation131_spill] sm:$0xff]  ;;  %v18709_v41 = vld [vmem:[#allocation160_spill] sm:$0xff] }
0x167d   :  { %10029 = vst.msk [vmem:[%s18279_s11 + $0x40] sm:$0xff] %vm9455_vm12, %v10013_v51  ;;  %v9951_v56 = vsel %vm63_vm0, %v9935_v32, %v18705_v55  ;;  %v18710_v53 = vld [vmem:[#allocation60_spill] sm:$0xff]  ;;  %v18711_v19 = vld [vmem:[#allocation82_spill] sm:$0xff]  ;;  %v18715_v49 = vld [vmem:[#allocation161_spill] sm:$0xff] }
0x167e   :  { %v9880_v47 = vpop.permute.xlu1 %9879  ;;  %v9967_v20 = vsel %vm2145_vm2, %v9951_v56, %v18707_v3  ;;  %v9917_v8 = vsel %vm1828_vm1, %v15126_v0, %v18710_v53  ;;  %v18712_v26 = vld [vmem:[#allocation104_spill] sm:$0xff]  ;;  %v18713_v45 = vld [vmem:[#allocation118_spill] sm:$0xff] }
0x167f   :  { %v10016_v60 = vsel %vm10004_vm11, %v9999_v1, %v9880_v47  ;;  %v9878_v43 = vpop.permute.xlu0 %9877  ;;  %v9984_v9 = vsel %vm9970_vm9, %v9967_v20, %v18708_v7  ;;  %v9934_v37 = vsel %vm9921_vm8, %v9917_v8, %v18711_v19  ;;  %v18714_v32 = vld [vmem:[#allocation132_spill] sm:$0xff] }
0x1680   :  { %10032 = vst.msk [vmem:[%s18279_s11 + $0x58] sm:$0xff] %vm9455_vm12, %v10016_v60  ;;  %v10015_v42 = vsel %vm10004_vm11, %v9998_v61, %v9878_v43  ;;  %v10001_v62 = vsel %vm9987_vm15, %v9984_v9, %v18709_v41  ;;  %v9950_v58 = vsel %vm63_vm0, %v9934_v37, %v18712_v26  ;;  %vm9472_vm0 = vcmask 785408  }
0x1681   :  { %10031 = vst.msk [vmem:[%s18279_s11 + $0x50] sm:$0xff] %vm9455_vm12, %v10015_v42  ;;  %v9966_v59 = vsel %vm2145_vm2, %v9950_v58, %v18713_v45  ;;  %v17907_v42 = vld [vmem:[%s18278_s9] ss:$0 sm:$0xff] }
0x1682   :  { %v9884_v11 = vpop.permute.xlu1 %9883  ;;  %v9983_v50 = vsel %vm9970_vm9, %v9966_v59, %v18714_v32  ;;  %v7849_v41 = vadd.f32 %v17226_v12, %v17907_v42  ;;  %v7859_v19 = vadd.f32 %v17232_v38, %v17907_v42  ;;  %v7854_v37 = vadd.f32 %v17907_v42, %v17234_v46 }
0x1683   :  { %v10018_v28 = vsel %vm10004_vm11, %v10001_v62, %v9884_v11  ;;  %v9074_v57 = vpop.permute.xlu0 %9073  ;;  %v10000_v1 = vsel %vm9987_vm15, %v9983_v50, %v18715_v49  ;;  %v7844_v62 = vadd.f32 %v17907_v42, %v17228_v6  ;;  %v7869_v46 = vadd.f32 %v17238_v27, %v17907_v42 }
0x1684   :  { %10034 = vst.msk [vmem:[%s18279_s11 + $0x68] sm:$0xff] %vm9455_vm12, %v10018_v28  ;;  %v9440_v28 = vsel %vm2145_vm2, %v7849_v41, %v9074_v57  ;;  %v7874_v49 = vadd.f32 %v17907_v42, %v17246_v13 }
0x1685   :  { %v9457_v12 = vsel %vm9455_vm12, %v9440_v28, %v17483_v21  ;;  %v7864_v21 = vadd.f32 %v17907_v42, %v17240_v48 }
0x1686   :  { %v9078_v51 = vpop.permute.xlu1 %9077 }
0x1687   :  { %v9072_v31 = vpop.permute.xlu0 %9071  ;;  %v9442_v6 = vsel %vm2145_vm2, %v7859_v19, %v9078_v51 }
0x1688   :  { %v9439_v8 = vsel %vm2145_vm2, %v7844_v62, %v9072_v31 }
0x1689   :  { %v9456_v57 = vsel %vm9455_vm12, %v9439_v8, %v17486_v10  ;;  %v9459_v10 = vsel %vm9455_vm12, %v9442_v6, %v17497_v39  ;;  %v7879_v39 = vadd.f32 %v17244_v30, %v17907_v42 }
0x168a   :  { %v9076_v54 = vpop.permute.xlu1 %9075 }
0x168b   :  { %v9882_v47 = vpop.permute.xlu0 %9881  ;;  %v9441_v31 = vsel %vm2145_vm2, %v7854_v37, %v9076_v54 }
0x168c   :  { %v10017_v0 = vsel %vm10004_vm11, %v10000_v1, %v9882_v47  ;;  %v9458_v50 = vsel %vm9455_vm12, %v9441_v31, %v17502_v35 }
0x168d   :  { %10033 = vst.msk [vmem:[%s18279_s11 + $0x60] sm:$0xff] %vm9455_vm12, %v10017_v0 }
0x168e   :  { %v9082_v55 = vpop.permute.xlu1 %9081 }
0x168f   :  { %v9080_v56 = vpop.permute.xlu0 %9079  ;;  %v9444_v59 = vsel %vm2145_vm2, %v7869_v46, %v9082_v55 }
0x1690   :  { %v9443_v27 = vsel %vm2145_vm2, %v7864_v21, %v9080_v56  ;;  %v9461_v35 = vsel %vm9455_vm12, %v9444_v59, %v17512_v44  ;;  %v7889_v44 = vadd.f32 %v17253_v33, %v17907_v42 }
0x1691   :  { %v9460_v55 = vsel %vm9455_vm12, %v9443_v27, %v17515_v14 }
0x1692   :  { %v9086_v63 = vpop.permute.xlu1 %9085 }
0x1693   :  { %v9084_v61 = vpop.permute.xlu0 %9083  ;;  %v9446_v47 = vsel %vm2145_vm2, %v7879_v39, %v9086_v63  ;;  %v7884_v63 = vadd.f32 %v17907_v42, %v17257_v29 }
0x1694   :  { %v9445_v30 = vsel %vm2145_vm2, %v7874_v49, %v9084_v61  ;;  %v9463_v14 = vsel %vm9455_vm12, %v9446_v47, %v17522_v16  ;;  %v7899_v16 = vadd.f32 %v17262_v52, %v17907_v42 }
0x1695   :  { %v9462_v28 = vsel %vm9455_vm12, %v9445_v30, %v17525_v22 }
0x1696   :  { %v9090_v60 = vpop.permute.xlu1 %9089 }
0x1697   :  { %v9088_v43 = vpop.permute.xlu0 %9087  ;;  %v9448_v41 = vsel %vm2145_vm2, %v7889_v44, %v9090_v60  ;;  %v7894_v60 = vadd.f32 %v17907_v42, %v17266_v24 }
0x1698   :  { %v9447_v33 = vsel %vm2145_vm2, %v7884_v63, %v9088_v43  ;;  %v9465_v22 = vsel %vm9455_vm12, %v9448_v41, %v17532_v17  ;;  %v7909_v17 = vadd.f32 %v17270_v2, %v17907_v42 }
0x169a   :  { %v17900_v3 = vpop.permute.xlu1 %9093 }
0x169b   :  { %v17902_v20 = vpop.permute.xlu0 %9091  ;;  %v9450_v19 = vsel %vm2145_vm2, %v7899_v16, %v17900_v3 }
0x169c   :  { %v9467_v3 = vsel %vm9455_vm12, %v9450_v19, %v17542_v25  ;;  %v7919_v25 = vadd.f32 %v17278_v4, %v17907_v42 }
0x169e   :  { %v17909_v7 = vpop.permute.xlu1 %9097 }
0x169f   :  { %v17911_v9 = vpop.permute.xlu0 %9095  ;;  %v9452_v6 = vsel %vm2145_vm2, %v7909_v17, %v17909_v7 }
0x16a0   :  { %v9469_v7 = vsel %vm9455_vm12, %v9452_v6, %v17555_v23 }
0x16a2   :  { %v17917_v11 = vpop.permute.xlu1 %9101 }
0x16a3   :  { %v17920_v53 = vpop.permute.xlu0 %9099  ;;  %v9454_v31 = vsel %vm2145_vm2, %v7919_v25, %v17917_v11  ;;  %v18716_v11 = vld [vmem:[#allocation139_spill] sm:$0xff] }
0x16a4   :  { %v9471_v23 = vsel %vm9455_vm12, %v9454_v31, %v17561_v15  ;;  %v11044_v15 = vld [vmem:[%s18278_s9 + $0x7] ss:$0 sm:$0xff] }
0x16a6   :  { %v9202_v26 = vpop.permute.xlu1 %9201 }
0x16a7   :  { %v9474_v58 = vsel %vm9472_vm0, %v9457_v12, %v9202_v26  ;;  %v9200_v45 = vpop.permute.xlu0 %9199  ;;  %v9464_v12 = vsel %vm9455_vm12, %v9447_v33, %v17535_v40  ;;  %v9449_v26 = vsel %vm2145_vm2, %v7894_v60, %v17902_v20  ;;  %v7904_v40 = vadd.f32 %v17907_v42, %v17274_v36 }
0x16a8   :  { %9539 = vst [vmem:[%s18280_s10 + $0x10] sm:$0xff] %v9474_v58  ;;  %v9473_v38 = vsel %vm9472_vm0, %v9456_v57, %v9200_v45  ;;  %v9466_v57 = vsel %vm9455_vm12, %v9449_v26, %v17545_v5  ;;  %v7914_v5 = vadd.f32 %v17907_v42, %v17282_v34 }
0x16a9   :  { %9537 = vst [vmem:[%s18280_s10] sm:$0xff] %v9473_v38  ;;  %v9451_v45 = vsel %vm2145_vm2, %v7904_v40, %v17911_v9 }
0x16aa   :  { %v9206_v51 = vpop.permute.xlu1 %9205  ;;  %v9468_v46 = vsel %vm9455_vm12, %v9451_v45, %v17557_v18  ;;  %v9453_v21 = vsel %vm2145_vm2, %v7914_v5, %v17920_v53 }
0x16ab   :  { %v9476_v32 = vsel %vm9472_vm0, %v9459_v10, %v9206_v51  ;;  %v9204_v54 = vpop.permute.xlu0 %9203  ;;  %v9470_v10 = vsel %vm9455_vm12, %v9453_v21, %v18716_v11  ;;  %v18722_v11 = vld [vmem:[#allocation38_spill] sm:$0xff] }
0x16ac   :  { %9543 = vst [vmem:[%s18280_s10 + $0x30] sm:$0xff] %v9476_v32  ;;  %v9475_v48 = vsel %vm9472_vm0, %v9458_v50, %v9204_v54 }
0x16ad   :  { %9541 = vst [vmem:[%s18280_s10 + $0x20] sm:$0xff] %v9475_v48 }
0x16ae   :  { %v9210_v1 = vpop.permute.xlu1 %9209 }
0x16af   :  { %v9478_v0 = vsel %vm9472_vm0, %v9461_v35, %v9210_v1  ;;  %v9208_v56 = vpop.permute.xlu0 %9207 }
0x16b0   :  { %9547 = vst [vmem:[%s18280_s10 + $0x50] sm:$0xff] %v9478_v0  ;;  %v9477_v13 = vsel %vm9472_vm0, %v9460_v55, %v9208_v56 }
0x16b1   :  { %9545 = vst [vmem:[%s18280_s10 + $0x40] sm:$0xff] %v9477_v13 }
0x16b2   :  { %v9214_v61 = vpop.permute.xlu1 %9213 }
0x16b3   :  { %v9480_v62 = vsel %vm9472_vm0, %v9463_v14, %v9214_v61  ;;  %v9212_v8 = vpop.permute.xlu0 %9211 }
0x16b4   :  { %9551 = vst [vmem:[%s18280_s10 + $0x70] sm:$0xff] %v9480_v62  ;;  %v9479_v29 = vsel %vm9472_vm0, %v9462_v28, %v9212_v8 }
0x16b5   :  { %9549 = vst [vmem:[%s18280_s10 + $0x60] sm:$0xff] %v9479_v29 }
0x16b6   :  { %v9218_v43 = vpop.permute.xlu1 %9217 }
0x16b7   :  { %v9482_v37 = vsel %vm9472_vm0, %v9465_v22, %v9218_v43  ;;  %v9216_v52 = vpop.permute.xlu0 %9215 }
0x16b8   :  { %9555 = vst [vmem:[%s18280_s10 + $0x90] sm:$0xff] %v9482_v37  ;;  %v9481_v24 = vsel %vm9472_vm0, %v9464_v12, %v9216_v52  ;;  %v18717_v12 = vld [vmem:[#allocation136_spill] sm:$0xff]  ;;  %v18718_v52 = vld [vmem:[#allocation137_spill] sm:$0xff] }
0x16b9   :  { %9553 = vst [vmem:[%s18280_s10 + $0x80] sm:$0xff] %v9481_v24 }
0x16ba   :  { %v9222_v20 = vpop.permute.xlu1 %9221 }
0x16bb   :  { %v9484_v58 = vsel %vm9472_vm0, %v9467_v3, %v9222_v20  ;;  %v9220_v2 = vpop.permute.xlu0 %9219 }
0x16bc   :  { %9559 = vst [vmem:[%s18280_s10 + $0xb0] sm:$0xff] %v9484_v58  ;;  %v9483_v36 = vsel %vm9472_vm0, %v9466_v57, %v9220_v2 }
0x16bd   :  { %9557 = vst [vmem:[%s18280_s10 + $0xa0] sm:$0xff] %v9483_v36 }
0x16be   :  { %v9226_v9 = vpop.permute.xlu1 %9225 }
0x16bf   :  { %v9486_v38 = vsel %vm9472_vm0, %v9469_v7, %v9226_v9  ;;  %v9224_v4 = vpop.permute.xlu0 %9223  ;;  %v18101_v7 = vld [vmem:[%s18278_s9 + $0x4] ss:$0 sm:$0xff] }
0x16c0   :  { %9563 = vst [vmem:[%s18280_s10 + $0xd0] sm:$0xff] %v9486_v38  ;;  %v9485_v34 = vsel %vm9472_vm0, %v9468_v46, %v9224_v4  ;;  %v18719_v9 = vld [vmem:[#allocation34_spill] sm:$0xff]  ;;  %v18720_v38 = vld [vmem:[#allocation36_spill] sm:$0xff] }
0x16c1   :  { %9561 = vst [vmem:[%s18280_s10 + $0xc0] sm:$0xff] %v9485_v34  ;;  %v8469_v31 = vadd.f32 %v18719_v9, %v18101_v7  ;;  %v8464_v46 = vadd.f32 %v18101_v7, %v18720_v38  ;;  %v18736_v38 = vld [vmem:[#allocation147_spill] sm:$0xff] }
0x16c2   :  { %v9230_v42 = vpop.permute.xlu1 %9229 }
0x16c3   :  { %v9488_v18 = vsel %vm9472_vm0, %v9471_v23, %v9230_v42  ;;  %v9228_v53 = vpop.permute.xlu0 %9227  ;;  %v18721_v42 = vld [vmem:[#allocation35_spill] sm:$0xff] }
0x16c4   :  { %9567 = vst [vmem:[%s18280_s10 + $0xf0] sm:$0xff] %v9488_v18  ;;  %v9487_v51 = vsel %vm9472_vm0, %v9470_v10, %v9228_v53  ;;  %v8479_v18 = vadd.f32 %v18721_v42, %v18101_v7  ;;  %v8474_v10 = vadd.f32 %v18101_v7, %v18722_v11  ;;  %v18723_v53 = vld [vmem:[#allocation138_spill] sm:$0xff] }
0x16c5   :  { %9565 = vst [vmem:[%s18280_s10 + $0xe0] sm:$0xff] %v9487_v51 }
0x16c6   :  { %v9266_v26 = vpop.permute.xlu1 %9265 }
0x16c7   :  { %v9264_v24 = vpop.permute.xlu0 %9263  ;;  %v9490_v21 = vsel %vm2145_vm2, %v8469_v31, %v9266_v26 }
0x16c8   :  { %v9489_v23 = vsel %vm2145_vm2, %v8464_v46, %v9264_v24  ;;  %v9506_v51 = vsel %vm9455_vm12, %v9490_v21, %v18723_v53  ;;  %v18733_v24 = vld [vmem:[#allocation41_spill] sm:$0xff]  ;;  %v18739_v53 = vld [vmem:[#allocation146_spill] sm:$0xff] }
0x16ca   :  { %v9270_v17 = vpop.permute.xlu1 %9269 }
0x16cb   :  { %v9268_v40 = vpop.permute.xlu0 %9267 }
0x16cd   :  { %v12951_v59 = vpop.f32.mrb[240].mxu1 }
0x16ce   :  { %v8982_v32 = vadd.f32 %v12951_v59, %v11044_v15  ;;  %v8976_v50 = vpop.f32.mrb[241].mxu1  ;;  %v9274_v3 = vpop.permute.xlu1 %9273  ;;  %v9492_v59 = vsel %vm2145_vm2, %v8479_v18, %v9270_v17  ;;  %v8509_v17 = vadd.f32 %v18733_v24, %v18101_v7  ;;  %v18737_v18 = vld [vmem:[#allocation43_spill] sm:$0xff] }
0x16cf   :  { %v8977_v54 = vadd.f32 %v11044_v15, %v8976_v50  ;;  %v9272_v20 = vpop.permute.xlu0 %9271  ;;  %v18724_v50 = vld [vmem:[#allocation141_spill] sm:$0xff]  ;;  %v8519_v11 = vadd.f32 %v18737_v18, %v18101_v7 }
0x16d0   :  { %9393 = vrot.lane.b32.xlu1 %v8982_v32, %s14174_s27 }
0x16d1   :  { %v12954_v27 = vpop.f32.mrb[242].mxu1  ;;  %9391 = vrot.lane.b32.xlu0 %v8977_v54, %s14174_s27  ;;  %v9505_v54 = vsel %vm9455_vm12, %v9489_v23, %v18724_v50 }
0x16d2   :  { %v8992_v48 = vadd.f32 %v12954_v27, %v11044_v15  ;;  %v8986_v39 = vpop.f32.mrb[243].mxu1  ;;  %v9278_v6 = vpop.permute.xlu1 %9277 }
0x16d3   :  { %v8987_v49 = vadd.f32 %v11044_v15, %v8986_v39  ;;  %v9276_v58 = vpop.permute.xlu0 %9275 }
0x16d4   :  { %9397 = vrot.lane.b32.xlu1 %v8992_v48, %s14174_s27  ;;  %v9491_v48 = vsel %vm2145_vm2, %v8474_v10, %v9268_v40  ;;  %v18734_v40 = vld [vmem:[#allocation44_spill] sm:$0xff] }
0x16d5   :  { %v12957_v35 = vpop.f32.mrb[244].mxu1  ;;  %9395 = vrot.lane.b32.xlu0 %v8987_v49, %s14174_s27  ;;  %v18725_v49 = vld [vmem:[#allocation37_spill] sm:$0xff] }
0x16d6   :  { %v9002_v1 = vadd.f32 %v12957_v35, %v11044_v15  ;;  %v8996_v47 = vpop.f32.mrb[245].mxu1  ;;  %v9282_v57 = vpop.permute.xlu1 %9281  ;;  %v8489_v35 = vadd.f32 %v18725_v49, %v18101_v7 }
0x16d7   :  { %v8997_v0 = vadd.f32 %v11044_v15, %v8996_v47  ;;  %v9280_v2 = vpop.permute.xlu0 %9279  ;;  %v9498_v9 = vsel %vm2145_vm2, %v8509_v17, %v9282_v57  ;;  %v18738_v57 = vld [vmem:[#allocation46_spill] sm:$0xff] }
0x16d8   :  { %9401 = vrot.lane.b32.xlu1 %v9002_v1, %s14174_s27  ;;  %v18726_v1 = vld [vmem:[#allocation40_spill] sm:$0xff]  ;;  %v8514_v10 = vadd.f32 %v18101_v7, %v18738_v57  ;;  %v18751_v17 = vld [vmem:[#allocation162_spill] sm:$0xff] }
0x16d9   :  { %v12960_v55 = vpop.f32.mrb[246].mxu1  ;;  %9399 = vrot.lane.b32.xlu0 %v8997_v0, %s14174_s27  ;;  %v8484_v47 = vadd.f32 %v18101_v7, %v18726_v1  ;;  %v18727_v0 = vld [vmem:[#allocation140_spill] sm:$0xff]  ;;  %v18743_v1 = vld [vmem:[#allocation2_spill] sm:$0xff] }
0x16da   :  { %v9012_v56 = vadd.f32 %v12960_v55, %v11044_v15  ;;  %v9006_v30 = vpop.f32.mrb[247].mxu1  ;;  %v18090_v45 = vpop.permute.xlu1 %9285  ;;  %v9508_v55 = vsel %vm9455_vm12, %v9492_v59, %v18727_v0 }
0x16db   :  { %v9007_v13 = vadd.f32 %v11044_v15, %v9006_v30  ;;  %v18092_v36 = vpop.permute.xlu0 %9283  ;;  %v9494_v30 = vsel %vm2145_vm2, %v8489_v35, %v9274_v3  ;;  %v8504_v3 = vadd.f32 %v18101_v7, %v18734_v40 }
0x16dc   :  { %9405 = vrot.lane.b32.xlu1 %v9012_v56, %s14174_s27 }
0x16dd   :  { %v12963_v44 = vpop.f32.mrb[248].mxu1  ;;  %9403 = vrot.lane.b32.xlu0 %v9007_v13, %s14174_s27  ;;  %v9497_v23 = vsel %vm2145_vm2, %v8504_v3, %v9280_v2 }
0x16de   :  { %v9022_v63 = vadd.f32 %v12963_v44, %v11044_v15  ;;  %v9016_v14 = vpop.f32.mrb[249].mxu1  ;;  %v18094_v25 = vpop.permute.xlu1 %9289  ;;  %v18728_v44 = vld [vmem:[#allocation143_spill] sm:$0xff] }
0x16df   :  { %v9017_v61 = vadd.f32 %v11044_v15, %v9016_v14  ;;  %v18096_v5 = vpop.permute.xlu0 %9287 }
0x16e0   :  { %9409 = vrot.lane.b32.xlu1 %v9022_v63, %s14174_s27  ;;  %v9507_v63 = vsel %vm9455_vm12, %v9491_v48, %v18728_v44 }
0x16e1   :  { %v12966_v41 = vpop.f32.mrb[250].mxu1  ;;  %9407 = vrot.lane.b32.xlu0 %v9017_v61, %s14174_s27  ;;  %v9493_v61 = vsel %vm2145_vm2, %v8484_v47, %v9272_v20  ;;  %v18735_v20 = vld [vmem:[#allocation144_spill] sm:$0xff] }
0x16e2   :  { %v9032_v62 = vadd.f32 %v12966_v41, %v11044_v15  ;;  %v9026_v28 = vpop.f32.mrb[251].mxu1  ;;  %v18107_v4 = vpop.permute.xlu1 %9293 }
0x16e3   :  { %v9027_v8 = vadd.f32 %v11044_v15, %v9026_v28  ;;  %v18110_v34 = vpop.permute.xlu0 %9291 }
0x16e4   :  { %9413 = vrot.lane.b32.xlu1 %v9032_v62, %s14174_s27  ;;  %v18729_v62 = vld [vmem:[#allocation39_spill] sm:$0xff] }
0x16e5   :  { %v12969_v33 = vpop.f32.mrb[252].mxu1  ;;  %9411 = vrot.lane.b32.xlu0 %v9027_v8, %s14174_s27  ;;  %v8499_v28 = vadd.f32 %v18729_v62, %v18101_v7  ;;  %v18730_v8 = vld [vmem:[#allocation42_spill] sm:$0xff]  ;;  %v18747_v62 = vld [vmem:[#allocation4_spill] sm:$0xff] }
0x16e6   :  { %v9042_v29 = vadd.f32 %v12969_v33, %v11044_v15  ;;  %v9036_v16 = vpop.f32.mrb[253].mxu1  ;;  %v8494_v33 = vadd.f32 %v18101_v7, %v18730_v8 }
0x16e7   :  { %v9037_v60 = vadd.f32 %v11044_v15, %v9036_v16 }
0x16e8   :  { %9417 = vrot.lane.b32.xlu1 %v9042_v29, %s14174_s27  ;;  %v18731_v29 = vld [vmem:[#allocation142_spill] sm:$0xff] }
0x16e9   :  { %9415 = vrot.lane.b32.xlu0 %v9037_v60, %s14174_s27  ;;  %v12972_v22 = vpop.f32.mrb[254].mxu1  ;;  %v9510_v16 = vsel %vm9455_vm12, %v9494_v30, %v18731_v29  ;;  %v18748_v29 = vld [vmem:[#allocation7_spill] sm:$0xff] }
0x16ea   :  { %v9052_v43 = vadd.f32 %v12972_v22, %v11044_v15  ;;  %v9046_v19 = vpop.f32.mrb[255].mxu1  ;;  %v9496_v22 = vsel %vm2145_vm2, %v8499_v28, %v9278_v6 }
0x16eb   :  { %v9047_v37 = vadd.f32 %v11044_v15, %v9046_v19  ;;  %v18732_v19 = vld [vmem:[#allocation145_spill] sm:$0xff]  ;;  %v9512_v6 = vsel %vm9455_vm12, %v9496_v22, %v18735_v20  ;;  %v18752_v20 = vld [vmem:[#allocation163_spill] sm:$0xff] }
0x16ec   :  { %9421 = vrot.lane.b32.xlu1 %v9052_v43, %s14174_s27 }
0x16ed   :  { %9419 = vrot.lane.b32.xlu0 %v9047_v37, %s14174_s27  ;;  %v9509_v37 = vsel %vm9455_vm12, %v9493_v61, %v18732_v19 }
0x16f0   :  { %9887 = vrot.lane.b32.xlu1 %v18717_v12, %s14173_s23 }
0x16f1   :  { %9885 = vrot.lane.b32.xlu0 %v18718_v52, %s14173_s23  ;;  %v9495_v52 = vsel %vm2145_vm2, %v8494_v33, %v9276_v58 }
0x16f2   :  { %v9511_v46 = vsel %vm9455_vm12, %v9495_v52, %v18736_v38 }
0x1742   :  { %v9394_v15 = vpop.permute.xlu1 %9393 }
0x1743   :  { %v9522_v32 = vsel %vm9472_vm0, %v9506_v51, %v9394_v15  ;;  %v9392_v27 = vpop.permute.xlu0 %9391  ;;  %v9514_v51 = vsel %vm9455_vm12, %v9498_v9, %v18739_v53  ;;  %v9500_v15 = vsel %vm2145_vm2, %v8519_v11, %v18090_v45  ;;  %v18742_v45 = vld [vmem:[#allocation133_spill] sm:$0xff] }
0x1744   :  { %9540 = vst [vmem:[%s18280_s10 + $0x18] sm:$0xff] %v9522_v32  ;;  %v9521_v39 = vsel %vm9472_vm0, %v9505_v54, %v9392_v27  ;;  %v18740_v32 = vld [vmem:[#allocation3_spill] sm:$0xff]  ;;  %v9499_v27 = vsel %vm2145_vm2, %v8514_v10, %v18092_v36  ;;  %v8524_v35 = vadd.f32 %v18101_v7, %v18742_v45  ;;  %v9516_v47 = vsel %vm9455_vm12, %v9500_v15, %v18743_v1 }
0x1745   :  { %9538 = vst [vmem:[%s18280_s10 + $0x8] sm:$0xff] %v9521_v39  ;;  %v9513_v50 = vsel %vm9455_vm12, %v9497_v23, %v18740_v32  ;;  %v18741_v39 = vld [vmem:[#allocation45_spill] sm:$0xff] }
0x1746   :  { %v9398_v56 = vpop.permute.xlu1 %9397  ;;  %v8529_v49 = vadd.f32 %v18741_v39, %v18101_v7  ;;  %v9501_v44 = vsel %vm2145_vm2, %v8524_v35, %v18096_v5 }
0x1747   :  { %v9524_v13 = vsel %vm9472_vm0, %v9508_v55, %v9398_v56  ;;  %v9396_v14 = vpop.permute.xlu0 %9395  ;;  %v18744_v56 = vld [vmem:[#allocation5_spill] sm:$0xff] }
0x1748   :  { %9544 = vst [vmem:[%s18280_s10 + $0x38] sm:$0xff] %v9524_v13  ;;  %v9523_v41 = vsel %vm9472_vm0, %v9507_v63, %v9396_v14  ;;  %v9502_v0 = vsel %vm2145_vm2, %v8529_v49, %v18094_v25  ;;  %v9515_v30 = vsel %vm9455_vm12, %v9499_v27, %v18744_v56  ;;  %v18745_v14 = vld [vmem:[#allocation135_spill] sm:$0xff]  ;;  %v18746_v25 = vld [vmem:[#allocation134_spill] sm:$0xff] }
0x1749   :  { %9542 = vst [vmem:[%s18280_s10 + $0x28] sm:$0xff] %v9523_v41  ;;  %v8539_v61 = vadd.f32 %v18745_v14, %v18101_v7  ;;  %v8534_v41 = vadd.f32 %v18101_v7, %v18746_v25  ;;  %v9518_v28 = vsel %vm9455_vm12, %v9502_v0, %v18747_v62 }
0x174a   :  { %v9402_v60 = vpop.permute.xlu1 %9401 }
0x174b   :  { %v9526_v43 = vsel %vm9472_vm0, %v9510_v16, %v9402_v60  ;;  %v9400_v12 = vpop.permute.xlu0 %9399  ;;  %v9504_v8 = vsel %vm2145_vm2, %v8539_v61, %v18107_v4  ;;  %v9517_v16 = vsel %vm9455_vm12, %v9501_v44, %v18748_v29  ;;  %v9503_v22 = vsel %vm2145_vm2, %v8534_v41, %v18110_v34  ;;  %v18749_v4 = vld [vmem:[#allocation6_spill] sm:$0xff] }
0x174c   :  { %9548 = vst [vmem:[%s18280_s10 + $0x58] sm:$0xff] %v9526_v43  ;;  %v9525_v26 = vsel %vm9472_vm0, %v9509_v37, %v9400_v12  ;;  %v9520_v43 = vsel %vm9455_vm12, %v9504_v8, %v18749_v4  ;;  %v18750_v12 = vld [vmem:[#allocation9_spill] sm:$0xff] }
0x174d   :  { %9546 = vst [vmem:[%s18280_s10 + $0x48] sm:$0xff] %v9525_v26  ;;  %v9519_v52 = vsel %vm9455_vm12, %v9503_v22, %v18750_v12 }
0x174e   :  { %v9406_v58 = vpop.permute.xlu1 %9405 }
0x174f   :  { %v9528_v31 = vsel %vm9472_vm0, %v9512_v6, %v9406_v58  ;;  %v9404_v21 = vpop.permute.xlu0 %9403 }
0x1750   :  { %9552 = vst [vmem:[%s18280_s10 + $0x78] sm:$0xff] %v9528_v31  ;;  %v9527_v42 = vsel %vm9472_vm0, %v9511_v46, %v9404_v21 }
0x1751   :  { %9550 = vst [vmem:[%s18280_s10 + $0x68] sm:$0xff] %v9527_v42 }
0x1752   :  { %v9410_v2 = vpop.permute.xlu1 %9409 }
0x1753   :  { %v9530_v59 = vsel %vm9472_vm0, %v9514_v51, %v9410_v2  ;;  %v9408_v54 = vpop.permute.xlu0 %9407 }
0x1754   :  { %9556 = vst [vmem:[%s18280_s10 + $0x98] sm:$0xff] %v9530_v59  ;;  %v9529_v48 = vsel %vm9472_vm0, %v9513_v50, %v9408_v54 }
0x1755   :  { %9554 = vst [vmem:[%s18280_s10 + $0x88] sm:$0xff] %v9529_v48 }
0x1756   :  { %v9414_v36 = vpop.permute.xlu1 %9413 }
0x1757   :  { %v9532_v55 = vsel %vm9472_vm0, %v9516_v47, %v9414_v36  ;;  %v9412_v13 = vpop.permute.xlu0 %9411 }
0x1758   :  { %9560 = vst [vmem:[%s18280_s10 + $0xb8] sm:$0xff] %v9532_v55  ;;  %v9531_v63 = vsel %vm9472_vm0, %v9515_v30, %v9412_v13 }
0x1759   :  { %9558 = vst [vmem:[%s18280_s10 + $0xa8] sm:$0xff] %v9531_v63 }
0x175a   :  { %v9418_v5 = vpop.permute.xlu1 %9417 }
0x175b   :  { %v9534_v33 = vsel %vm9472_vm0, %v9518_v28, %v9418_v5  ;;  %v9416_v60 = vpop.permute.xlu0 %9415 }
0x175c   :  { %9564 = vst [vmem:[%s18280_s10 + $0xd8] sm:$0xff] %v9534_v33  ;;  %v9533_v7 = vsel %vm9472_vm0, %v9517_v16, %v9416_v60 }
0x175d   :  { %9562 = vst [vmem:[%s18280_s10 + $0xc8] sm:$0xff] %v9533_v7 }
0x175e   :  { %v9422_v19 = vpop.permute.xlu1 %9421 }
0x175f   :  { %v9536_v37 = vsel %vm9472_vm0, %v9520_v43, %v9422_v19  ;;  %v9420_v34 = vpop.permute.xlu0 %9419 }
0x1760   :  { %9568 = vst [vmem:[%s18280_s10 + $0xf8] sm:$0xff] %v9536_v37  ;;  %v9535_v26 = vsel %vm9472_vm0, %v9519_v52, %v9420_v34 }
0x1761   :  { %9566 = vst [vmem:[%s18280_s10 + $0xe8] sm:$0xff] %v9535_v26 }
0x1762   :  { %v9888_v24 = vpop.permute.xlu1 %9887 }
0x1763   :  { %v10020_v40 = vsel %vm10004_vm11, %v18751_v17, %v9888_v24  ;;  %v9886_v3 = vpop.permute.xlu0 %9885 }
0x1764   :  { %10036 = vst.msk [vmem:[%s18279_s11 + $0x78] sm:$0xff] %vm9455_vm12, %v10020_v40  ;;  %v10019_v6 = vsel %vm10004_vm11, %v18752_v20, %v9886_v3 }
0x1765   :  { %10035 = vst.msk [vmem:[%s18279_s11 + $0x70] sm:$0xff] %vm9455_vm12, %v10019_v6 }

</bundles_post_ra>
